<compile_context>
chip_gen: v7x
topology: tpu7x:2x2x1
jax: 0.10.0
libtpu: 0.0.40
codegen_flags: <defaults>
</compile_context>

<pallas_src>
import functools

import jax
import jax.numpy as jnp
from jax import lax
from jax.experimental import pallas as pl
from jax.experimental.pallas import tpu as pltpu

HIDDEN = 64
EDGE_IN = 7
TILE_E_ENC = 512     # edge-encoder edge tile (lane-dense, multiple of 128)
TILE_E_MSG = 256     # processor-layer edge tile (multiple of 128)
LN_EPS = 1e-5
VMEM_LIMIT_BYTES = 32 * 1024 * 1024   # explicit scoped-VMEM budget (fits v5e/v6e/v7x)


def _round_up(v, m):
    return (v + m - 1) // m * m


# ---------------------------------------------------------------------------
# Kernel 1: fused edge encoder (3x Linear [+ReLU] + LayerNorm) over edge tiles
# ---------------------------------------------------------------------------
def _edge_encoder_kernel(ea_ref, w1_ref, w2_ref, w3_ref, b_ref, o_ref):
    f32, bf16 = jnp.float32, jnp.bfloat16
    x = ea_ref[...].astype(bf16)                                   # (TE, 7)
    h = jnp.dot(x, w1_ref[...], preferred_element_type=f32) + b_ref[0:1, :]
    h = jnp.maximum(h, 0.0)
    h = jnp.dot(h.astype(bf16), w2_ref[...], preferred_element_type=f32) + b_ref[1:2, :]
    h = jnp.maximum(h, 0.0)
    h = jnp.dot(h.astype(bf16), w3_ref[...], preferred_element_type=f32) + b_ref[2:3, :]
    mean = jnp.mean(h, axis=-1, keepdims=True)
    var = jnp.mean((h - mean) ** 2, axis=-1, keepdims=True)        # biased, like torch
    y = (h - mean) * jax.lax.rsqrt(var + LN_EPS)
    o_ref[...] = (y * b_ref[3:4, :] + b_ref[4:5, :]).astype(o_ref.dtype)


def edge_encoder(edge_attr, params, *, tile_e=TILE_E_ENC):
    E, F = edge_attr.shape
    assert E % tile_e == 0, "pad edges before calling edge_encoder"
    w1, b1 = params["edge_lin1"]
    w2, b2 = params["edge_lin2"]
    w3, b3 = params["edge_lin3"]
    H = w1.shape[1]
    biases = jnp.stack([b1, b2, b3, params["edge_ln_g"], params["edge_ln_b"]], axis=0)

    def res(shape):
        return pl.BlockSpec(shape, lambda t: (0, 0))

    return pl.pallas_call(
        _edge_encoder_kernel,
        out_shape=jax.ShapeDtypeStruct((E, H), jnp.bfloat16),
        grid=(E // tile_e,),
        in_specs=[
            pl.BlockSpec((tile_e, F), lambda t: (t, 0)),
            res((F, H)), res((H, H)), res((H, H)), res((5, H)),
        ],
        out_specs=pl.BlockSpec((tile_e, H), lambda t: (t, 0)),
        compiler_params=pltpu.CompilerParams(dimension_semantics=("parallel",)),
    )(edge_attr, w1, w2, w3, biases)


# ---------------------------------------------------------------------------
# Kernel 2/3: fused ProcessorLayer (optionally + input encoder / + output head)
# ---------------------------------------------------------------------------
def _processor_layer_kernel(*refs, encode, head, hidden):
    i = 0
    x_ref = refs[i]; i += 1          # (N, Din) f32, resident node input
    e_ref = refs[i]; i += 1          # (TE, H)  bf16 edge-feature tile
    src_ref = refs[i]; i += 1        # (1, TE)  i32 source-index row
    dst_ref = refs[i]; i += 1        # (1, TE)  i32 target-index row
    if encode:
        enc_w_ref = refs[i]; i += 1  # (Din, H) bf16 node_lin weight
    wm1_ref = refs[i]; i += 1        # (3H, H)  bf16 message layer 1
    wm2_ref = refs[i]; i += 1        # (H, H)   bf16 message layer 2
    wn1_ref = refs[i]; i += 1        # (2H, H)  bf16 node layer 1
    wn2_ref = refs[i]; i += 1        # (H, H)   bf16 node layer 2
    if head:
        hw_ref = refs[i]; i += 1     # (H, OUT) bf16 output MLP weight
        hb_ref = refs[i]; i += 1     # (1, OUT) f32  output MLP bias
    b_ref = refs[i]; i += 1          # (4|5, H) f32 packed biases
    out_ref = refs[i]; i += 1        # (N, H) or (N, OUT) f32
    h_ref = refs[i]; i += 1          # scratch (N, H)  f32 node features
    acc_ref = refs[i]; i += 1        # scratch (N, H)  f32 segment-sum accumulator
    p_ref = refs[i]; i += 1          # scratch (2N, H) bf16 hoisted [h@Wa ; h@Wb]

    H = hidden
    f32, bf16 = jnp.float32, jnp.bfloat16
    t = pl.program_id(0)
    n_tiles = pl.num_programs(0)
    tile_e = e_ref.shape[0]
    n = h_ref.shape[0]
    off = 1 if encode else 0

    @pl.when(t == 0)
    def _init():
        if encode:
            h = jnp.dot(x_ref[...].astype(bf16), enc_w_ref[...],
                        preferred_element_type=f32) + b_ref[0:1, :]
        else:
            h = x_ref[...]
        h_ref[...] = h
        h_bf = h.astype(bf16)
        # hoist the h-side wm1 projections out of the edge loop (paid once, not per tile)
        p_ref[0:n, :] = jnp.dot(h_bf, wm1_ref[0:H, :],
                                preferred_element_type=f32).astype(bf16)
        p_ref[n:2 * n, :] = jnp.dot(h_bf, wm1_ref[H:2 * H, :],
                                    preferred_element_type=f32).astype(bf16)
        acc_ref[...] = jnp.zeros(acc_ref.shape, acc_ref.dtype)

    # ---- one transposed one-hot serves both the fused gather and the scatter ----
    # Gt[i,k] = 1 iff (i < N and dst[k]==i) or (i >= N and src[k]+N==i); padded edges
    # (src=dst=-1) produce all-zero columns, so they gather zeros and scatter nothing.
    sub2 = lax.broadcasted_iota(jnp.int32, (2 * n, tile_e), 0)
    tgt = jnp.where(sub2 < n, dst_ref[...], src_ref[...] + n)           # (2N, TE)
    gt = jnp.where(sub2 == tgt, 1.0, 0.0).astype(bf16)                  # [dst ; src] one-hot

    # fused gather: Pa[dst] + Pb[src] in a single K=2N MXU pass (contract dim 0)
    pre = lax.dot_general(gt, p_ref[...], (((0,), (0,)), ((), ())),
                          preferred_element_type=f32)                   # (TE, H)

    m = pre + jnp.dot(e_ref[...], wm1_ref[2 * H:3 * H, :],
                      preferred_element_type=f32) + b_ref[off:off + 1, :]
    m = jnp.maximum(m, 0.0)
    m = jnp.dot(m.astype(bf16), wm2_ref[...], preferred_element_type=f32) \
        + b_ref[off + 1:off + 2, :]

    # scatter-add at dst: reuse the dst half of the SAME one-hot (no second build)
    acc_ref[...] += jnp.dot(gt[0:n, :], m.astype(bf16), preferred_element_type=f32)

    # ---- node update + residual (+ optional output head) after the last tile ----
    @pl.when(t == n_tiles - 1)
    def _finalize():
        h_f = h_ref[...]
        u = (jnp.dot(h_f.astype(bf16), wn1_ref[0:H, :], preferred_element_type=f32)
             + jnp.dot(acc_ref[...].astype(bf16), wn1_ref[H:2 * H, :],
                       preferred_element_type=f32)
             + b_ref[off + 2:off + 3, :])
        u = jnp.maximum(u, 0.0)
        u = jnp.dot(u.astype(bf16), wn2_ref[...], preferred_element_type=f32) \
            + b_ref[off + 3:off + 4, :]
        h_new = h_f + u                                                  # residual
        if head:
            y = jnp.dot(h_new.astype(bf16), hw_ref[...],
                        preferred_element_type=f32) + hb_ref[...]
            out_ref[...] = y.astype(out_ref.dtype)
        else:
            out_ref[...] = h_new.astype(out_ref.dtype)


def processor_layer(x, e, src_row, dst_row, lp, *,
                    enc_w=None, enc_b=None, head_w=None, head_b=None,
                    tile_e=TILE_E_MSG):
    N = x.shape[0]
    E, H = e.shape
    assert E % tile_e == 0, "pad edges before calling processor_layer"
    wm1, bm1 = lp["msg1"]
    wm2, bm2 = lp["msg2"]
    wn1, bn1 = lp["node1"]
    wn2, bn2 = lp["node2"]
    encode = enc_w is not None
    use_head = head_w is not None

    bias_rows = ([enc_b] if encode else []) + [bm1, bm2, bn1, bn2]
    biases = jnp.stack(bias_rows, axis=0)                                # (4|5, H)

    def res(shape):
        return pl.BlockSpec(shape, lambda t: (0, 0))

    in_specs = [
        res(x.shape),
        pl.BlockSpec((tile_e, H), lambda t: (t, 0)),
        pl.BlockSpec((1, tile_e), lambda t: (0, t)),
        pl.BlockSpec((1, tile_e), lambda t: (0, t)),
    ]
    operands = [x, e, src_row, dst_row]
    if encode:
        in_specs.append(res(enc_w.shape)); operands.append(enc_w)
    in_specs += [res(wm1.shape), res(wm2.shape), res(wn1.shape), res(wn2.shape)]
    operands += [wm1, wm2, wn1, wn2]
    if use_head:
        hb2 = head_b.reshape(1, -1)
        in_specs += [res(head_w.shape), res(hb2.shape)]
        operands += [head_w, hb2]
    in_specs.append(res(biases.shape)); operands.append(biases)

    out_dim = head_w.shape[1] if use_head else H
    kernel = functools.partial(_processor_layer_kernel,
                               encode=encode, head=use_head, hidden=H)
    return pl.pallas_call(
        kernel,
        out_shape=jax.ShapeDtypeStruct((N, out_dim), jnp.float32),
        grid=(E // tile_e,),
        in_specs=in_specs,
        out_specs=res((N, out_dim)),
        scratch_shapes=[pltpu.VMEM((N, H), jnp.float32),       # h (node state)
                        pltpu.VMEM((N, H), jnp.float32),       # segment-sum acc
                        pltpu.VMEM((2 * N, H), jnp.bfloat16)], # hoisted [h@Wa ; h@Wb]
        compiler_params=pltpu.CompilerParams(
            dimension_semantics=("arbitrary",),   # edge axis carries the accumulator
            vmem_limit_bytes=VMEM_LIMIT_BYTES),
    )(*operands)


# ---------------------------------------------------------------------------
# Parameters & forward
# ---------------------------------------------------------------------------
def _init_linear(key, fan_in, fan_out, scale=0.1):
    kw, kb = jax.random.split(key)
    w = (scale * jax.random.normal(kw, (fan_in, fan_out), jnp.float32)).astype(jnp.bfloat16)
    b = scale * jax.random.normal(kb, (fan_out,), jnp.float32)
    return w, b


def init_params(key, input_dim_node, output_dim):
    keys = jax.random.split(key, 8)
    p = {}
    p["node_lin"] = _init_linear(keys[0], input_dim_node, HIDDEN)
    p["edge_lin1"] = _init_linear(keys[1], EDGE_IN, HIDDEN)
    p["edge_lin2"] = _init_linear(keys[2], HIDDEN, HIDDEN)
    p["edge_lin3"] = _init_linear(keys[3], HIDDEN, HIDDEN)
    p["edge_ln_g"] = jnp.ones((HIDDEN,), jnp.float32)
    p["edge_ln_b"] = jnp.zeros((HIDDEN,), jnp.float32)
    for li, name in enumerate(["conv1", "conv2"]):
        k0, k1, k2, k3 = jax.random.split(keys[4 + li], 4)
        p[name] = {
            "msg1": _init_linear(k0, 3 * HIDDEN, HIDDEN),
            "msg2": _init_linear(k1, HIDDEN, HIDDEN),
            "node1": _init_linear(k2, 2 * HIDDEN, HIDDEN),
            "node2": _init_linear(k3, HIDDEN, HIDDEN),
        }
    p["mlp"] = _init_linear(keys[6], HIDDEN, output_dim)
    return p


def gcn_forward(params, x, edge_attr, edge_index):
    N = x.shape[0]
    E = edge_attr.shape[0]
    n_pad = _round_up(N, 16)           # 16: keeps bf16 p_ref halves sublane-tile aligned
    assert TILE_E_ENC % TILE_E_MSG == 0
    e_pad = _round_up(E, TILE_E_ENC)

    # host-side glue: pad to tile-friendly shapes; padded edges use dst=src=-1 so their
    # one-hot columns are all-zero (they gather zeros and scatter nothing).
    x_p = jnp.pad(x, ((0, n_pad - N), (0, 0)))
    ea_p = jnp.pad(edge_attr, ((0, e_pad - E), (0, 0)))
    src = jnp.pad(edge_index[0].astype(jnp.int32), (0, e_pad - E), constant_values=-1)
    dst = jnp.pad(edge_index[1].astype(jnp.int32), (0, e_pad - E), constant_values=-1)
    src_row = src.reshape(1, e_pad)
    dst_row = dst.reshape(1, e_pad)

    # 1) fused edge encoder (3x Linear [+ReLU] + LayerNorm), bf16 output
    e = edge_encoder(ea_p, params)

    # 2) conv1 ProcessorLayer with node_lin fused at its head
    enc_w, enc_b = params["node_lin"]
    h = processor_layer(x_p, e, src_row, dst_row, params["conv1"],
                        enc_w=enc_w, enc_b=enc_b)

    # 3) conv2 ProcessorLayer with the output MLP fused at its tail
    mlp_w, mlp_b = params["mlp"]
    out = processor_layer(h, e, src_row, dst_row, params["conv2"],
                          head_w=mlp_w, head_b=mlp_b)

    # output_mask -> all real nodes for this homogeneous synthetic graph
    return out[:N]


# ---------------------------------------------------------------------------
# Pure-JAX reference mirroring the kernels' bf16-matmul / f32-accumulate math
# ---------------------------------------------------------------------------
def ref_forward(params, x, edge_attr, edge_index):
    f32, bf16 = jnp.float32, jnp.bfloat16
    H = HIDDEN

    def mm(a, w):
        return jnp.dot(a.astype(bf16), w, preferred_element_type=f32)

    src, dst = edge_index[0], edge_index[1]
    n = x.shape[0]

    w1, b1 = params["edge_lin1"]
    w2, b2 = params["edge_lin2"]
    w3, b3 = params["edge_lin3"]
    e = jnp.maximum(mm(edge_attr, w1) + b1, 0.0)
    e = jnp.maximum(mm(e, w2) + b2, 0.0)
    e = mm(e, w3) + b3
    mean = jnp.mean(e, -1, keepdims=True)
    var = jnp.mean((e - mean) ** 2, -1, keepdims=True)
    e = (e - mean) * jax.lax.rsqrt(var + LN_EPS)
    e = e * params["edge_ln_g"] + params["edge_ln_b"]
    e = e.astype(bf16).astype(f32)            # stored as bf16 between kernels

    h = mm(x, params["node_lin"][0]) + params["node_lin"][1]

    def conv(lp, h):
        wm1, bm1 = lp["msg1"]
        wm2, bm2 = lp["msg2"]
        wn1, bn1 = lp["node1"]
        wn2, bn2 = lp["node2"]
        # hoisted h-side projections, rounded to bf16 like the kernel's p_ref scratch
        pa = mm(h, wm1[:H]).astype(bf16).astype(f32)
        pb = mm(h, wm1[H:2 * H]).astype(bf16).astype(f32)
        m = pa[dst] + pb[src] + mm(e, wm1[2 * H:]) + bm1
        m = jnp.maximum(m, 0.0)
        m = mm(m, wm2) + bm2
        aggr = jax.ops.segment_sum(m.astype(bf16).astype(f32), dst, num_segments=n)
        u = mm(h, wn1[:H]) + mm(aggr, wn1[H:]) + bn1
        u = jnp.maximum(u, 0.0)
        u = mm(u, wn2) + bn2
        return h + u

    h = conv(params["conv1"], h)
    h = conv(params["conv2"], h)
    return mm(h, params["mlp"][0]) + params["mlp"][1]


# ---------------------------------------------------------------------------
if __name__ == "__main__":
    INPUT_DIM_NODE = 16
    OUTPUT_DIM = 8
    N_NODES = 64
    N_EDGES = 200     # padded to one 512-edge encoder tile / two 256-edge msg tiles

    key = jax.random.PRNGKey(0)
    kp, kx, ke, ki = jax.random.split(key, 4)

    params = init_params(kp, INPUT_DIM_NODE, OUTPUT_DIM)
    x = jax.random.normal(kx, (N_NODES, INPUT_DIM_NODE), jnp.float32)
    edge_attr = jax.random.normal(ke, (N_EDGES, EDGE_IN), jnp.float32)
    edge_index = jax.random.randint(ki, (2, N_EDGES), 0, N_NODES, jnp.int32)

    out = jax.jit(gcn_forward)(params, x, edge_attr, edge_index)
    out = jax.block_until_ready(out)

    assert out.shape == (N_NODES, OUTPUT_DIM), out.shape
    assert bool(jnp.all(jnp.isfinite(out)))

    ref = jax.block_until_ready(jax.jit(ref_forward)(params, x, edge_attr, edge_index))
    max_err = float(jnp.max(jnp.abs(out - ref)))
    assert max_err < 3e-2, f"mismatch vs reference: max abs err {max_err}"

    print("KERNEL_OK")
</pallas_src>

<mosaic_0001>
module attributes {stable_mosaic.version = 11 : i64} {
  func.func @_edge_encoder_kernel(%arg0: i32, %arg1: memref<512x7xf32, #tpu.memory_space<vmem>>, %arg2: memref<7x64xbf16, #tpu.memory_space<vmem>>, %arg3: memref<64x64xbf16, #tpu.memory_space<vmem>>, %arg4: memref<64x64xbf16, #tpu.memory_space<vmem>>, %arg5: memref<5x64xf32, #tpu.memory_space<vmem>>, %arg6: memref<512x64xbf16, #tpu.memory_space<vmem>>) attributes {dimension_semantics = [#tpu.dimension_semantics<parallel>], iteration_bounds = array<i64: 1>, scalar_prefetch = 0 : i64, scratch_operands = 0 : i64, tpu.core_type = #tpu.core_type<tc>, window_params = [{transform_indices = @transform_0, window_bounds = array<i64: 512, 7>}, {pipeline_mode = #tpu.pipeline_mode<synchronous>, transform_indices = @transform_1, window_bounds = array<i64: 7, 64>}, {pipeline_mode = #tpu.pipeline_mode<synchronous>, transform_indices = @transform_2, window_bounds = array<i64: 64, 64>}, {pipeline_mode = #tpu.pipeline_mode<synchronous>, transform_indices = @transform_3, window_bounds = array<i64: 64, 64>}, {pipeline_mode = #tpu.pipeline_mode<synchronous>, transform_indices = @transform_4, window_bounds = array<i64: 5, 64>}, {transform_indices = @transform_5, window_bounds = array<i64: 512, 64>}]} {
    %c0 = arith.constant 0 : index
    %c0_0 = arith.constant 0 : index
    %0 = vector.load %arg1[%c0, %c0_0] : memref<512x7xf32, #tpu.memory_space<vmem>>, vector<512x7xf32>
    %1 = arith.truncf %0 : vector<512x7xf32> to vector<512x7xbf16>
    %c0_1 = arith.constant 0 : index
    %c0_2 = arith.constant 0 : index
    %2 = vector.load %arg2[%c0_1, %c0_2] : memref<7x64xbf16, #tpu.memory_space<vmem>>, vector<7x64xbf16>
    %cst = arith.constant dense<0.000000e+00> : vector<512x64xf32>
    %3 = tpu.matmul %1, %2, %cst {dimension_numbers = #tpu.dot_dimension_numbers<[1], [0], [0], [1], [0, 0, 1, 1], [], []>} : vector<512x7xbf16>, vector<7x64xbf16>, vector<512x64xf32> -> vector<512x64xf32>
    %c0_3 = arith.constant 0 : index
    %c0_4 = arith.constant 0 : index
    %4 = vector.load %arg5[%c0_3, %c0_4] : memref<5x64xf32, #tpu.memory_space<vmem>>, vector<1x64xf32>
    %5 = vector.broadcast %4 : vector<1x64xf32> to vector<512x64xf32>
    %6 = arith.addf %3, %5 : vector<512x64xf32>
    %cst_5 = arith.constant 0.000000e+00 : f32
    %7 = vector.broadcast %cst_5 : f32 to vector<512x64xf32>
    %8 = arith.maximumf %6, %7 : vector<512x64xf32>
    %9 = arith.truncf %8 : vector<512x64xf32> to vector<512x64xbf16>
    %c0_6 = arith.constant 0 : index
    %c0_7 = arith.constant 0 : index
    %10 = vector.load %arg3[%c0_6, %c0_7] : memref<64x64xbf16, #tpu.memory_space<vmem>>, vector<64x64xbf16>
    %cst_8 = arith.constant dense<0.000000e+00> : vector<512x64xf32>
    %11 = tpu.matmul %9, %10, %cst_8 {dimension_numbers = #tpu.dot_dimension_numbers<[1], [0], [0], [1], [0, 0, 1, 1], [], []>} : vector<512x64xbf16>, vector<64x64xbf16>, vector<512x64xf32> -> vector<512x64xf32>
    %c1 = arith.constant 1 : index
    %c0_9 = arith.constant 0 : index
    %12 = vector.load %arg5[%c1, %c0_9] : memref<5x64xf32, #tpu.memory_space<vmem>>, vector<1x64xf32>
    %13 = vector.broadcast %12 : vector<1x64xf32> to vector<512x64xf32>
    %14 = arith.addf %11, %13 : vector<512x64xf32>
    %cst_10 = arith.constant 0.000000e+00 : f32
    %15 = vector.broadcast %cst_10 : f32 to vector<512x64xf32>
    %16 = arith.maximumf %14, %15 : vector<512x64xf32>
    %17 = arith.truncf %16 : vector<512x64xf32> to vector<512x64xbf16>
    %c0_11 = arith.constant 0 : index
    %c0_12 = arith.constant 0 : index
    %18 = vector.load %arg4[%c0_11, %c0_12] : memref<64x64xbf16, #tpu.memory_space<vmem>>, vector<64x64xbf16>
    %cst_13 = arith.constant dense<0.000000e+00> : vector<512x64xf32>
    %19 = tpu.matmul %17, %18, %cst_13 {dimension_numbers = #tpu.dot_dimension_numbers<[1], [0], [0], [1], [0, 0, 1, 1], [], []>} : vector<512x64xbf16>, vector<64x64xbf16>, vector<512x64xf32> -> vector<512x64xf32>
    %c2 = arith.constant 2 : index
    %c0_14 = arith.constant 0 : index
    %20 = vector.load %arg5[%c2, %c0_14] : memref<5x64xf32, #tpu.memory_space<vmem>>, vector<1x64xf32>
    %21 = vector.broadcast %20 : vector<1x64xf32> to vector<512x64xf32>
    %22 = arith.addf %19, %21 : vector<512x64xf32>
    %cst_15 = arith.constant dense<0.000000e+00> : vector<512xf32>
    %23 = vector.multi_reduction <add>, %22, %cst_15 [1] : vector<512x64xf32> to vector<512xf32>
    %24 = vector.shape_cast %23 : vector<512xf32> to vector<512x1xf32>
    %cst_16 = arith.constant 6.400000e+01 : f32
    %25 = vector.broadcast %cst_16 : f32 to vector<512x1xf32>
    %26 = arith.divf %24, %25 : vector<512x1xf32>
    %27 = vector.broadcast %26 : vector<512x1xf32> to vector<512x64xf32>
    %28 = arith.subf %22, %27 : vector<512x64xf32>
    %29 = arith.mulf %28, %28 : vector<512x64xf32>
    %cst_17 = arith.constant dense<0.000000e+00> : vector<512xf32>
    %30 = vector.multi_reduction <add>, %29, %cst_17 [1] : vector<512x64xf32> to vector<512xf32>
    %31 = vector.shape_cast %30 : vector<512xf32> to vector<512x1xf32>
    %cst_18 = arith.constant 6.400000e+01 : f32
    %32 = vector.broadcast %cst_18 : f32 to vector<512x1xf32>
    %33 = arith.divf %31, %32 : vector<512x1xf32>
    %34 = vector.broadcast %26 : vector<512x1xf32> to vector<512x64xf32>
    %35 = arith.subf %22, %34 : vector<512x64xf32>
    %cst_19 = arith.constant 9.99999974E-6 : f32
    %36 = vector.broadcast %cst_19 : f32 to vector<512x1xf32>
    %37 = arith.addf %33, %36 : vector<512x1xf32>
    %38 = math.rsqrt %37 : vector<512x1xf32>
    %39 = vector.broadcast %38 : vector<512x1xf32> to vector<512x64xf32>
    %40 = arith.mulf %35, %39 : vector<512x64xf32>
    %c3 = arith.constant 3 : index
    %c0_20 = arith.constant 0 : index
    %41 = vector.load %arg5[%c3, %c0_20] : memref<5x64xf32, #tpu.memory_space<vmem>>, vector<1x64xf32>
    %42 = vector.broadcast %41 : vector<1x64xf32> to vector<512x64xf32>
    %43 = arith.mulf %40, %42 : vector<512x64xf32>
    %c4 = arith.constant 4 : index
    %c0_21 = arith.constant 0 : index
    %44 = vector.load %arg5[%c4, %c0_21] : memref<5x64xf32, #tpu.memory_space<vmem>>, vector<1x64xf32>
    %45 = vector.broadcast %44 : vector<1x64xf32> to vector<512x64xf32>
    %46 = arith.addf %43, %45 : vector<512x64xf32>
    %47 = arith.truncf %46 : vector<512x64xf32> to vector<512x64xbf16>
    %c0_22 = arith.constant 0 : index
    %c0_23 = arith.constant 0 : index
    %48 = vector.load %arg6[%c0_22, %c0_23] : memref<512x64xbf16, #tpu.memory_space<vmem>>, vector<512x64xbf16>
    tpu.vector_store %arg6[%c0_22, %c0_23], %47 {strides = array<i32>} : memref<512x64xbf16, #tpu.memory_space<vmem>>, vector<512x64xbf16>,
    return
  }
  func.func @transform_0(%arg0: i32) -> (i32, i32) {
    %c0_i32 = arith.constant 0 : i32
    %c0_i32_0 = arith.constant 0 : i32
    return %arg0, %c0_i32 : i32, i32
  }
  func.func @transform_1(%arg0: i32) -> (i32, i32) {
    %c0_i32 = arith.constant 0 : i32
    %c0_i32_0 = arith.constant 0 : i32
    %c0_i32_1 = arith.constant 0 : i32
    return %c0_i32, %c0_i32_0 : i32, i32
  }
  func.func @transform_2(%arg0: i32) -> (i32, i32) {
    %c0_i32 = arith.constant 0 : i32
    %c0_i32_0 = arith.constant 0 : i32
    %c0_i32_1 = arith.constant 0 : i32
    return %c0_i32, %c0_i32_0 : i32, i32
  }
  func.func @transform_3(%arg0: i32) -> (i32, i32) {
    %c0_i32 = arith.constant 0 : i32
    %c0_i32_0 = arith.constant 0 : i32
    %c0_i32_1 = arith.constant 0 : i32
    return %c0_i32, %c0_i32_0 : i32, i32
  }
  func.func @transform_4(%arg0: i32) -> (i32, i32) {
    %c0_i32 = arith.constant 0 : i32
    %c0_i32_0 = arith.constant 0 : i32
    %c0_i32_1 = arith.constant 0 : i32
    return %c0_i32, %c0_i32_0 : i32, i32
  }
  func.func @transform_5(%arg0: i32) -> (i32, i32) {
    %c0_i32 = arith.constant 0 : i32
    %c0_i32_0 = arith.constant 0 : i32
    return %arg0, %c0_i32 : i32, i32
  }
}

module attributes {stable_mosaic.version = 11 : i64} {
  func.func @_processor_layer_kernel(%arg0: i32, %arg1: memref<64x64xf32, #tpu.memory_space<vmem>>, %arg2: memref<256x64xbf16, #tpu.memory_space<vmem>>, %arg3: memref<1x256xi32, #tpu.memory_space<vmem>>, %arg4: memref<1x256xi32, #tpu.memory_space<vmem>>, %arg5: memref<192x64xbf16, #tpu.memory_space<vmem>>, %arg6: memref<64x64xbf16, #tpu.memory_space<vmem>>, %arg7: memref<128x64xbf16, #tpu.memory_space<vmem>>, %arg8: memref<64x64xbf16, #tpu.memory_space<vmem>>, %arg9: memref<64x8xbf16, #tpu.memory_space<vmem>>, %arg10: memref<1x8xf32, #tpu.memory_space<vmem>>, %arg11: memref<4x64xf32, #tpu.memory_space<vmem>>, %arg12: memref<64x8xf32, #tpu.memory_space<vmem>>, %arg13: memref<64x64xf32, #tpu.memory_space<vmem>>, %arg14: memref<64x64xf32, #tpu.memory_space<vmem>>, %arg15: memref<128x64xbf16, #tpu.memory_space<vmem>>) attributes {dimension_semantics = [#tpu.dimension_semantics<arbitrary>], iteration_bounds = array<i64: 2>, scalar_prefetch = 0 : i64, scratch_operands = 3 : i64, tpu.core_type = #tpu.core_type<tc>, window_params = [{pipeline_mode = #tpu.pipeline_mode<synchronous>, transform_indices = @transform_0, window_bounds = array<i64: 64, 64>}, {transform_indices = @transform_1, window_bounds = array<i64: 256, 64>}, {transform_indices = @transform_2, window_bounds = array<i64: 1, 256>}, {transform_indices = @transform_3, window_bounds = array<i64: 1, 256>}, {pipeline_mode = #tpu.pipeline_mode<synchronous>, transform_indices = @transform_4, window_bounds = array<i64: 192, 64>}, {pipeline_mode = #tpu.pipeline_mode<synchronous>, transform_indices = @transform_5, window_bounds = array<i64: 64, 64>}, {pipeline_mode = #tpu.pipeline_mode<synchronous>, transform_indices = @transform_6, window_bounds = array<i64: 128, 64>}, {pipeline_mode = #tpu.pipeline_mode<synchronous>, transform_indices = @transform_7, window_bounds = array<i64: 64, 64>}, {pipeline_mode = #tpu.pipeline_mode<synchronous>, transform_indices = @transform_8, window_bounds = array<i64: 64, 8>}, {pipeline_mode = #tpu.pipeline_mode<synchronous>, transform_indices = @transform_9, window_bounds = array<i64: 1, 8>}, {pipeline_mode = #tpu.pipeline_mode<synchronous>, transform_indices = @transform_10, window_bounds = array<i64: 4, 64>}, {pipeline_mode = #tpu.pipeline_mode<synchronous>, transform_indices = @transform_11, window_bounds = array<i64: 64, 8>}]} {
    %c0_i32 = arith.constant 0 : i32
    %0 = arith.cmpi eq, %arg0, %c0_i32 : i32
    %1 = arith.extui %0 : i1 to i32
    %c0_i32_0 = arith.constant 0 : i32
    %2 = arith.cmpi ne, %1, %c0_i32_0 : i32
    scf.if %2 {
      %c0_26 = arith.constant 0 : index
      %c0_27 = arith.constant 0 : index
      %46 = vector.load %arg1[%c0_26, %c0_27] : memref<64x64xf32, #tpu.memory_space<vmem>>, vector<64x64xf32>
      %c0_28 = arith.constant 0 : index
      %c0_29 = arith.constant 0 : index
      %47 = vector.load %arg13[%c0_28, %c0_29] : memref<64x64xf32, #tpu.memory_space<vmem>>, vector<64x64xf32>
      tpu.vector_store %arg13[%c0_28, %c0_29], %46 {strides = array<i32>} : memref<64x64xf32, #tpu.memory_space<vmem>>, vector<64x64xf32>,
      %48 = arith.truncf %46 : vector<64x64xf32> to vector<64x64xbf16>
      %c0_30 = arith.constant 0 : index
      %c0_31 = arith.constant 0 : index
      %49 = vector.load %arg5[%c0_30, %c0_31] : memref<192x64xbf16, #tpu.memory_space<vmem>>, vector<64x64xbf16>
      %cst_32 = arith.constant dense<0.000000e+00> : vector<64x64xf32>
      %50 = tpu.matmul %48, %49, %cst_32 {dimension_numbers = #tpu.dot_dimension_numbers<[1], [0], [0], [1], [0, 0, 1, 1], [], []>} : vector<64x64xbf16>, vector<64x64xbf16>, vector<64x64xf32> -> vector<64x64xf32>
      %51 = arith.truncf %50 : vector<64x64xf32> to vector<64x64xbf16>
      %c0_33 = arith.constant 0 : index
      %c0_34 = arith.constant 0 : index
      %52 = vector.load %arg15[%c0_33, %c0_34] : memref<128x64xbf16, #tpu.memory_space<vmem>>, vector<64x64xbf16>
      tpu.vector_store %arg15[%c0_33, %c0_34], %51 {strides = array<i32>} : memref<128x64xbf16, #tpu.memory_space<vmem>>, vector<64x64xbf16>,
      %c64 = arith.constant 64 : index
      %c0_35 = arith.constant 0 : index
      %53 = vector.load %arg5[%c64, %c0_35] : memref<192x64xbf16, #tpu.memory_space<vmem>>, vector<64x64xbf16>
      %cst_36 = arith.constant dense<0.000000e+00> : vector<64x64xf32>
      %54 = tpu.matmul %48, %53, %cst_36 {dimension_numbers = #tpu.dot_dimension_numbers<[1], [0], [0], [1], [0, 0, 1, 1], [], []>} : vector<64x64xbf16>, vector<64x64xbf16>, vector<64x64xf32> -> vector<64x64xf32>
      %55 = arith.truncf %54 : vector<64x64xf32> to vector<64x64xbf16>
      %c64_37 = arith.constant 64 : index
      %c0_38 = arith.constant 0 : index
      %56 = vector.load %arg15[%c64_37, %c0_38] : memref<128x64xbf16, #tpu.memory_space<vmem>>, vector<64x64xbf16>
      tpu.vector_store %arg15[%c64_37, %c0_38], %55 {strides = array<i32>} : memref<128x64xbf16, #tpu.memory_space<vmem>>, vector<64x64xbf16>,
      %cst_39 = arith.constant 0.000000e+00 : f32
      %57 = vector.broadcast %cst_39 : f32 to vector<64x64xf32>
      %c0_40 = arith.constant 0 : index
      %c0_41 = arith.constant 0 : index
      %58 = vector.load %arg14[%c0_40, %c0_41] : memref<64x64xf32, #tpu.memory_space<vmem>>, vector<64x64xf32>
      tpu.vector_store %arg14[%c0_40, %c0_41], %57 {strides = array<i32>} : memref<64x64xf32, #tpu.memory_space<vmem>>, vector<64x64xf32>,
    } else {
    }
    %3 = tpu.iota {dimensions = array<i32: 0>} : vector<128x256xi32>
    %c64_i32 = arith.constant 64 : i32
    %4 = vector.broadcast %c64_i32 : i32 to vector<128x256xi32>
    %5 = arith.cmpi slt, %3, %4 : vector<128x256xi32>
    %c0 = arith.constant 0 : index
    %c0_1 = arith.constant 0 : index
    %6 = vector.load %arg4[%c0, %c0_1] : memref<1x256xi32, #tpu.memory_space<vmem>>, vector<1x256xi32>
    %c0_2 = arith.constant 0 : index
    %c0_3 = arith.constant 0 : index
    %7 = vector.load %arg3[%c0_2, %c0_3] : memref<1x256xi32, #tpu.memory_space<vmem>>, vector<1x256xi32>
    %c64_i32_4 = arith.constant 64 : i32
    %8 = vector.broadcast %c64_i32_4 : i32 to vector<1x256xi32>
    %9 = arith.addi %7, %8 : vector<1x256xi32>
    %10 = vector.shape_cast %6 : vector<1x256xi32> to vector<1x256xi32>
    %11 = vector.broadcast %10 : vector<1x256xi32> to vector<128x256xi32>
    %12 = vector.shape_cast %9 : vector<1x256xi32> to vector<1x256xi32>
    %13 = vector.broadcast %12 : vector<1x256xi32> to vector<128x256xi32>
    %14 = arith.select %5, %11, %13 : vector<128x256xi1>, vector<128x256xi32>
    %15 = arith.cmpi eq, %3, %14 : vector<128x256xi32>
    %cst = arith.constant 1.000000e+00 : f32
    %cst_5 = arith.constant 0.000000e+00 : f32
    %16 = vector.broadcast %cst : f32 to vector<128x256xf32>
    %17 = vector.broadcast %cst_5 : f32 to vector<128x256xf32>
    %18 = arith.select %15, %16, %17 : vector<128x256xi1>, vector<128x256xf32>
    %19 = arith.truncf %18 : vector<128x256xf32> to vector<128x256xbf16>
    %c0_6 = arith.constant 0 : index
    %c0_7 = arith.constant 0 : index
    %20 = vector.load %arg15[%c0_6, %c0_7] : memref<128x64xbf16, #tpu.memory_space<vmem>>, vector<128x64xbf16>
    %cst_8 = arith.constant dense<0.000000e+00> : vector<256x64xf32>
    %21 = tpu.matmul %19, %20, %cst_8 {dimension_numbers = #tpu.dot_dimension_numbers<[0], [0], [1], [1], [0, 1, 1, 1], [], []>} : vector<128x256xbf16>, vector<128x64xbf16>, vector<256x64xf32> -> vector<256x64xf32>
    %c0_9 = arith.constant 0 : index
    %c0_10 = arith.constant 0 : index
    %22 = vector.load %arg2[%c0_9, %c0_10] : memref<256x64xbf16, #tpu.memory_space<vmem>>, vector<256x64xbf16>
    %c128 = arith.constant 128 : index
    %c0_11 = arith.constant 0 : index
    %23 = vector.load %arg5[%c128, %c0_11] : memref<192x64xbf16, #tpu.memory_space<vmem>>, vector<64x64xbf16>
    %cst_12 = arith.constant dense<0.000000e+00> : vector<256x64xf32>
    %24 = tpu.matmul %22, %23, %cst_12 {dimension_numbers = #tpu.dot_dimension_numbers<[1], [0], [0], [1], [0, 0, 1, 1], [], []>} : vector<256x64xbf16>, vector<64x64xbf16>, vector<256x64xf32> -> vector<256x64xf32>
    %25 = arith.addf %21, %24 : vector<256x64xf32>
    %c0_13 = arith.constant 0 : index
    %c0_14 = arith.constant 0 : index
    %26 = vector.load %arg11[%c0_13, %c0_14] : memref<4x64xf32, #tpu.memory_space<vmem>>, vector<1x64xf32>
    %27 = vector.broadcast %26 : vector<1x64xf32> to vector<256x64xf32>
    %28 = arith.addf %25, %27 : vector<256x64xf32>
    %cst_15 = arith.constant 0.000000e+00 : f32
    %29 = vector.broadcast %cst_15 : f32 to vector<256x64xf32>
    %30 = arith.maximumf %28, %29 : vector<256x64xf32>
    %31 = arith.truncf %30 : vector<256x64xf32> to vector<256x64xbf16>
    %c0_16 = arith.constant 0 : index
    %c0_17 = arith.constant 0 : index
    %32 = vector.load %arg6[%c0_16, %c0_17] : memref<64x64xbf16, #tpu.memory_space<vmem>>, vector<64x64xbf16>
    %cst_18 = arith.constant dense<0.000000e+00> : vector<256x64xf32>
    %33 = tpu.matmul %31, %32, %cst_18 {dimension_numbers = #tpu.dot_dimension_numbers<[1], [0], [0], [1], [0, 0, 1, 1], [], []>} : vector<256x64xbf16>, vector<64x64xbf16>, vector<256x64xf32> -> vector<256x64xf32>
    %c1 = arith.constant 1 : index
    %c0_19 = arith.constant 0 : index
    %34 = vector.load %arg11[%c1, %c0_19] : memref<4x64xf32, #tpu.memory_space<vmem>>, vector<1x64xf32>
    %35 = vector.broadcast %34 : vector<1x64xf32> to vector<256x64xf32>
    %36 = arith.addf %33, %35 : vector<256x64xf32>
    %c0_20 = arith.constant 0 : index
    %c0_21 = arith.constant 0 : index
    %37 = vector.load %arg14[%c0_20, %c0_21] : memref<64x64xf32, #tpu.memory_space<vmem>>, vector<64x64xf32>
    %38 = vector.extract_strided_slice %19 {offsets = [0, 0], sizes = [64, 256], strides = [1, 1]} : vector<128x256xbf16> to vector<64x256xbf16>
    %39 = arith.truncf %36 : vector<256x64xf32> to vector<256x64xbf16>
    %cst_22 = arith.constant dense<0.000000e+00> : vector<64x64xf32>
    %40 = tpu.matmul %38, %39, %cst_22 {dimension_numbers = #tpu.dot_dimension_numbers<[1], [0], [0], [1], [0, 0, 1, 1], [], []>} : vector<64x256xbf16>, vector<256x64xbf16>, vector<64x64xf32> -> vector<64x64xf32>
    %41 = arith.addf %37, %40 : vector<64x64xf32>
    %c0_23 = arith.constant 0 : index
    %c0_24 = arith.constant 0 : index
    %42 = vector.load %arg14[%c0_23, %c0_24] : memref<64x64xf32, #tpu.memory_space<vmem>>, vector<64x64xf32>
    tpu.vector_store %arg14[%c0_23, %c0_24], %41 {strides = array<i32>} : memref<64x64xf32, #tpu.memory_space<vmem>>, vector<64x64xf32>,
    %c1_i32 = arith.constant 1 : i32
    %43 = arith.cmpi eq, %arg0, %c1_i32 : i32
    %44 = arith.extui %43 : i1 to i32
    %c0_i32_25 = arith.constant 0 : i32
    %45 = arith.cmpi ne, %44, %c0_i32_25 : i32
    scf.if %45 {
      %c0_26 = arith.constant 0 : index
      %c0_27 = arith.constant 0 : index
      %46 = vector.load %arg13[%c0_26, %c0_27] : memref<64x64xf32, #tpu.memory_space<vmem>>, vector<64x64xf32>
      %47 = arith.truncf %46 : vector<64x64xf32> to vector<64x64xbf16>
      %c0_28 = arith.constant 0 : index
      %c0_29 = arith.constant 0 : index
      %48 = vector.load %arg7[%c0_28, %c0_29] : memref<128x64xbf16, #tpu.memory_space<vmem>>, vector<64x64xbf16>
      %cst_30 = arith.constant dense<0.000000e+00> : vector<64x64xf32>
      %49 = tpu.matmul %47, %48, %cst_30 {dimension_numbers = #tpu.dot_dimension_numbers<[1], [0], [0], [1], [0, 0, 1, 1], [], []>} : vector<64x64xbf16>, vector<64x64xbf16>, vector<64x64xf32> -> vector<64x64xf32>
      %c0_31 = arith.constant 0 : index
      %c0_32 = arith.constant 0 : index
      %50 = vector.load %arg14[%c0_31, %c0_32] : memref<64x64xf32, #tpu.memory_space<vmem>>, vector<64x64xf32>
      %51 = arith.truncf %50 : vector<64x64xf32> to vector<64x64xbf16>
      %c64 = arith.constant 64 : index
      %c0_33 = arith.constant 0 : index
      %52 = vector.load %arg7[%c64, %c0_33] : memref<128x64xbf16, #tpu.memory_space<vmem>>, vector<64x64xbf16>
      %cst_34 = arith.constant dense<0.000000e+00> : vector<64x64xf32>
      %53 = tpu.matmul %51, %52, %cst_34 {dimension_numbers = #tpu.dot_dimension_numbers<[1], [0], [0], [1], [0, 0, 1, 1], [], []>} : vector<64x64xbf16>, vector<64x64xbf16>, vector<64x64xf32> -> vector<64x64xf32>
      %54 = arith.addf %49, %53 : vector<64x64xf32>
      %c2 = arith.constant 2 : index
      %c0_35 = arith.constant 0 : index
      %55 = vector.load %arg11[%c2, %c0_35] : memref<4x64xf32, #tpu.memory_space<vmem>>, vector<1x64xf32>
      %56 = vector.broadcast %55 : vector<1x64xf32> to vector<64x64xf32>
      %57 = arith.addf %54, %56 : vector<64x64xf32>
      %cst_36 = arith.constant 0.000000e+00 : f32
      %58 = vector.broadcast %cst_36 : f32 to vector<64x64xf32>
      %59 = arith.maximumf %57, %58 : vector<64x64xf32>
      %60 = arith.truncf %59 : vector<64x64xf32> to vector<64x64xbf16>
      %c0_37 = arith.constant 0 : index
      %c0_38 = arith.constant 0 : index
      %61 = vector.load %arg8[%c0_37, %c0_38] : memref<64x64xbf16, #tpu.memory_space<vmem>>, vector<64x64xbf16>
      %cst_39 = arith.constant dense<0.000000e+00> : vector<64x64xf32>
      %62 = tpu.matmul %60, %61, %cst_39 {dimension_numbers = #tpu.dot_dimension_numbers<[1], [0], [0], [1], [0, 0, 1, 1], [], []>} : vector<64x64xbf16>, vector<64x64xbf16>, vector<64x64xf32> -> vector<64x64xf32>
      %c3 = arith.constant 3 : index
      %c0_40 = arith.constant 0 : index
      %63 = vector.load %arg11[%c3, %c0_40] : memref<4x64xf32, #tpu.memory_space<vmem>>, vector<1x64xf32>
      %64 = vector.broadcast %63 : vector<1x64xf32> to vector<64x64xf32>
      %65 = arith.addf %62, %64 : vector<64x64xf32>
      %66 = arith.addf %46, %65 : vector<64x64xf32>
      %67 = arith.truncf %66 : vector<64x64xf32> to vector<64x64xbf16>
      %c0_41 = arith.constant 0 : index
      %c0_42 = arith.constant 0 : index
      %68 = vector.load %arg9[%c0_41, %c0_42] : memref<64x8xbf16, #tpu.memory_space<vmem>>, vector<64x8xbf16>
      %cst_43 = arith.constant dense<0.000000e+00> : vector<64x8xf32>
      %69 = tpu.matmul %67, %68, %cst_43 {dimension_numbers = #tpu.dot_dimension_numbers<[1], [0], [0], [1], [0, 0, 1, 1], [], []>} : vector<64x64xbf16>, vector<64x8xbf16>, vector<64x8xf32> -> vector<64x8xf32>
      %c0_44 = arith.constant 0 : index
      %c0_45 = arith.constant 0 : index
      %70 = vector.load %arg10[%c0_44, %c0_45] : memref<1x8xf32, #tpu.memory_space<vmem>>, vector<1x8xf32>
      %71 = vector.broadcast %70 : vector<1x8xf32> to vector<64x8xf32>
      %72 = arith.addf %69, %71 : vector<64x8xf32>
      %c0_46 = arith.constant 0 : index
      %c0_47 = arith.constant 0 : index
      %73 = vector.load %arg12[%c0_46, %c0_47] : memref<64x8xf32, #tpu.memory_space<vmem>>, vector<64x8xf32>
      tpu.vector_store %arg12[%c0_46, %c0_47], %72 {strides = array<i32>} : memref<64x8xf32, #tpu.memory_space<vmem>>, vector<64x8xf32>,
    } else {
    }
    return
  }
  func.func @transform_0(%arg0: i32) -> (i32, i32) {
    %c0_i32 = arith.constant 0 : i32
    %c0_i32_0 = arith.constant 0 : i32
    %c0_i32_1 = arith.constant 0 : i32
    return %c0_i32, %c0_i32_0 : i32, i32
  }
  func.func @transform_1(%arg0: i32) -> (i32, i32) {
    %c0_i32 = arith.constant 0 : i32
    %c0_i32_0 = arith.constant 0 : i32
    return %arg0, %c0_i32 : i32, i32
  }
  func.func @transform_2(%arg0: i32) -> (i32, i32) {
    %c0_i32 = arith.constant 0 : i32
    %c0_i32_0 = arith.constant 0 : i32
    return %c0_i32, %arg0 : i32, i32
  }
  func.func @transform_3(%arg0: i32) -> (i32, i32) {
    %c0_i32 = arith.constant 0 : i32
    %c0_i32_0 = arith.constant 0 : i32
    return %c0_i32, %arg0 : i32, i32
  }
  func.func @transform_4(%arg0: i32) -> (i32, i32) {
    %c0_i32 = arith.constant 0 : i32
    %c0_i32_0 = arith.constant 0 : i32
    %c0_i32_1 = arith.constant 0 : i32
    return %c0_i32, %c0_i32_0 : i32, i32
  }
  func.func @transform_5(%arg0: i32) -> (i32, i32) {
    %c0_i32 = arith.constant 0 : i32
    %c0_i32_0 = arith.constant 0 : i32
    %c0_i32_1 = arith.constant 0 : i32
    return %c0_i32, %c0_i32_0 : i32, i32
  }
  func.func @transform_6(%arg0: i32) -> (i32, i32) {
    %c0_i32 = arith.constant 0 : i32
    %c0_i32_0 = arith.constant 0 : i32
    %c0_i32_1 = arith.constant 0 : i32
    return %c0_i32, %c0_i32_0 : i32, i32
  }
  func.func @transform_7(%arg0: i32) -> (i32, i32) {
    %c0_i32 = arith.constant 0 : i32
    %c0_i32_0 = arith.constant 0 : i32
    %c0_i32_1 = arith.constant 0 : i32
    return %c0_i32, %c0_i32_0 : i32, i32
  }
  func.func @transform_8(%arg0: i32) -> (i32, i32) {
    %c0_i32 = arith.constant 0 : i32
    %c0_i32_0 = arith.constant 0 : i32
    %c0_i32_1 = arith.constant 0 : i32
    return %c0_i32, %c0_i32_0 : i32, i32
  }
  func.func @transform_9(%arg0: i32) -> (i32, i32) {
    %c0_i32 = arith.constant 0 : i32
    %c0_i32_0 = arith.constant 0 : i32
    %c0_i32_1 = arith.constant 0 : i32
    return %c0_i32, %c0_i32_0 : i32, i32
  }
  func.func @transform_10(%arg0: i32) -> (i32, i32) {
    %c0_i32 = arith.constant 0 : i32
    %c0_i32_0 = arith.constant 0 : i32
    %c0_i32_1 = arith.constant 0 : i32
    return %c0_i32, %c0_i32_0 : i32, i32
  }
  func.func @transform_11(%arg0: i32) -> (i32, i32) {
    %c0_i32 = arith.constant 0 : i32
    %c0_i32_0 = arith.constant 0 : i32
    %c0_i32_1 = arith.constant 0 : i32
    return %c0_i32, %c0_i32_0 : i32, i32
  }
}

module attributes {stable_mosaic.version = 11 : i64} {
  func.func @_processor_layer_kernel(%arg0: i32, %arg1: memref<64x16xf32, #tpu.memory_space<vmem>>, %arg2: memref<256x64xbf16, #tpu.memory_space<vmem>>, %arg3: memref<1x256xi32, #tpu.memory_space<vmem>>, %arg4: memref<1x256xi32, #tpu.memory_space<vmem>>, %arg5: memref<16x64xbf16, #tpu.memory_space<vmem>>, %arg6: memref<192x64xbf16, #tpu.memory_space<vmem>>, %arg7: memref<64x64xbf16, #tpu.memory_space<vmem>>, %arg8: memref<128x64xbf16, #tpu.memory_space<vmem>>, %arg9: memref<64x64xbf16, #tpu.memory_space<vmem>>, %arg10: memref<5x64xf32, #tpu.memory_space<vmem>>, %arg11: memref<64x64xf32, #tpu.memory_space<vmem>>, %arg12: memref<64x64xf32, #tpu.memory_space<vmem>>, %arg13: memref<64x64xf32, #tpu.memory_space<vmem>>, %arg14: memref<128x64xbf16, #tpu.memory_space<vmem>>) attributes {dimension_semantics = [#tpu.dimension_semantics<arbitrary>], iteration_bounds = array<i64: 2>, scalar_prefetch = 0 : i64, scratch_operands = 3 : i64, tpu.core_type = #tpu.core_type<tc>, window_params = [{pipeline_mode = #tpu.pipeline_mode<synchronous>, transform_indices = @transform_0, window_bounds = array<i64: 64, 16>}, {transform_indices = @transform_1, window_bounds = array<i64: 256, 64>}, {transform_indices = @transform_2, window_bounds = array<i64: 1, 256>}, {transform_indices = @transform_3, window_bounds = array<i64: 1, 256>}, {pipeline_mode = #tpu.pipeline_mode<synchronous>, transform_indices = @transform_4, window_bounds = array<i64: 16, 64>}, {pipeline_mode = #tpu.pipeline_mode<synchronous>, transform_indices = @transform_5, window_bounds = array<i64: 192, 64>}, {pipeline_mode = #tpu.pipeline_mode<synchronous>, transform_indices = @transform_6, window_bounds = array<i64: 64, 64>}, {pipeline_mode = #tpu.pipeline_mode<synchronous>, transform_indices = @transform_7, window_bounds = array<i64: 128, 64>}, {pipeline_mode = #tpu.pipeline_mode<synchronous>, transform_indices = @transform_8, window_bounds = array<i64: 64, 64>}, {pipeline_mode = #tpu.pipeline_mode<synchronous>, transform_indices = @transform_9, window_bounds = array<i64: 5, 64>}, {pipeline_mode = #tpu.pipeline_mode<synchronous>, transform_indices = @transform_10, window_bounds = array<i64: 64, 64>}]} {
    %c0_i32 = arith.constant 0 : i32
    %0 = arith.cmpi eq, %arg0, %c0_i32 : i32
    %1 = arith.extui %0 : i1 to i32
    %c0_i32_0 = arith.constant 0 : i32
    %2 = arith.cmpi ne, %1, %c0_i32_0 : i32
    scf.if %2 {
      %c0_25 = arith.constant 0 : index
      %c0_26 = arith.constant 0 : index
      %46 = vector.load %arg1[%c0_25, %c0_26] : memref<64x16xf32, #tpu.memory_space<vmem>>, vector<64x16xf32>
      %47 = arith.truncf %46 : vector<64x16xf32> to vector<64x16xbf16>
      %c0_27 = arith.constant 0 : index
      %c0_28 = arith.constant 0 : index
      %48 = vector.load %arg5[%c0_27, %c0_28] : memref<16x64xbf16, #tpu.memory_space<vmem>>, vector<16x64xbf16>
      %cst_29 = arith.constant dense<0.000000e+00> : vector<64x64xf32>
      %49 = tpu.matmul %47, %48, %cst_29 {dimension_numbers = #tpu.dot_dimension_numbers<[1], [0], [0], [1], [0, 0, 1, 1], [], []>} : vector<64x16xbf16>, vector<16x64xbf16>, vector<64x64xf32> -> vector<64x64xf32>
      %c0_30 = arith.constant 0 : index
      %c0_31 = arith.constant 0 : index
      %50 = vector.load %arg10[%c0_30, %c0_31] : memref<5x64xf32, #tpu.memory_space<vmem>>, vector<1x64xf32>
      %51 = vector.broadcast %50 : vector<1x64xf32> to vector<64x64xf32>
      %52 = arith.addf %49, %51 : vector<64x64xf32>
      %c0_32 = arith.constant 0 : index
      %c0_33 = arith.constant 0 : index
      %53 = vector.load %arg12[%c0_32, %c0_33] : memref<64x64xf32, #tpu.memory_space<vmem>>, vector<64x64xf32>
      tpu.vector_store %arg12[%c0_32, %c0_33], %52 {strides = array<i32>} : memref<64x64xf32, #tpu.memory_space<vmem>>, vector<64x64xf32>,
      %54 = arith.truncf %52 : vector<64x64xf32> to vector<64x64xbf16>
      %c0_34 = arith.constant 0 : index
      %c0_35 = arith.constant 0 : index
      %55 = vector.load %arg6[%c0_34, %c0_35] : memref<192x64xbf16, #tpu.memory_space<vmem>>, vector<64x64xbf16>
      %cst_36 = arith.constant dense<0.000000e+00> : vector<64x64xf32>
      %56 = tpu.matmul %54, %55, %cst_36 {dimension_numbers = #tpu.dot_dimension_numbers<[1], [0], [0], [1], [0, 0, 1, 1], [], []>} : vector<64x64xbf16>, vector<64x64xbf16>, vector<64x64xf32> -> vector<64x64xf32>
      %57 = arith.truncf %56 : vector<64x64xf32> to vector<64x64xbf16>
      %c0_37 = arith.constant 0 : index
      %c0_38 = arith.constant 0 : index
      %58 = vector.load %arg14[%c0_37, %c0_38] : memref<128x64xbf16, #tpu.memory_space<vmem>>, vector<64x64xbf16>
      tpu.vector_store %arg14[%c0_37, %c0_38], %57 {strides = array<i32>} : memref<128x64xbf16, #tpu.memory_space<vmem>>, vector<64x64xbf16>,
      %c64 = arith.constant 64 : index
      %c0_39 = arith.constant 0 : index
      %59 = vector.load %arg6[%c64, %c0_39] : memref<192x64xbf16, #tpu.memory_space<vmem>>, vector<64x64xbf16>
      %cst_40 = arith.constant dense<0.000000e+00> : vector<64x64xf32>
      %60 = tpu.matmul %54, %59, %cst_40 {dimension_numbers = #tpu.dot_dimension_numbers<[1], [0], [0], [1], [0, 0, 1, 1], [], []>} : vector<64x64xbf16>, vector<64x64xbf16>, vector<64x64xf32> -> vector<64x64xf32>
      %61 = arith.truncf %60 : vector<64x64xf32> to vector<64x64xbf16>
      %c64_41 = arith.constant 64 : index
      %c0_42 = arith.constant 0 : index
      %62 = vector.load %arg14[%c64_41, %c0_42] : memref<128x64xbf16, #tpu.memory_space<vmem>>, vector<64x64xbf16>
      tpu.vector_store %arg14[%c64_41, %c0_42], %61 {strides = array<i32>} : memref<128x64xbf16, #tpu.memory_space<vmem>>, vector<64x64xbf16>,
      %cst_43 = arith.constant 0.000000e+00 : f32
      %63 = vector.broadcast %cst_43 : f32 to vector<64x64xf32>
      %c0_44 = arith.constant 0 : index
      %c0_45 = arith.constant 0 : index
      %64 = vector.load %arg13[%c0_44, %c0_45] : memref<64x64xf32, #tpu.memory_space<vmem>>, vector<64x64xf32>
      tpu.vector_store %arg13[%c0_44, %c0_45], %63 {strides = array<i32>} : memref<64x64xf32, #tpu.memory_space<vmem>>, vector<64x64xf32>,
    } else {
    }
    %3 = tpu.iota {dimensions = array<i32: 0>} : vector<128x256xi32>
    %c64_i32 = arith.constant 64 : i32
    %4 = vector.broadcast %c64_i32 : i32 to vector<128x256xi32>
    %5 = arith.cmpi slt, %3, %4 : vector<128x256xi32>
    %c0 = arith.constant 0 : index
    %c0_1 = arith.constant 0 : index
    %6 = vector.load %arg4[%c0, %c0_1] : memref<1x256xi32, #tpu.memory_space<vmem>>, vector<1x256xi32>
    %c0_2 = arith.constant 0 : index
    %c0_3 = arith.constant 0 : index
    %7 = vector.load %arg3[%c0_2, %c0_3] : memref<1x256xi32, #tpu.memory_space<vmem>>, vector<1x256xi32>
    %c64_i32_4 = arith.constant 64 : i32
    %8 = vector.broadcast %c64_i32_4 : i32 to vector<1x256xi32>
    %9 = arith.addi %7, %8 : vector<1x256xi32>
    %10 = vector.shape_cast %6 : vector<1x256xi32> to vector<1x256xi32>
    %11 = vector.broadcast %10 : vector<1x256xi32> to vector<128x256xi32>
    %12 = vector.shape_cast %9 : vector<1x256xi32> to vector<1x256xi32>
    %13 = vector.broadcast %12 : vector<1x256xi32> to vector<128x256xi32>
    %14 = arith.select %5, %11, %13 : vector<128x256xi1>, vector<128x256xi32>
    %15 = arith.cmpi eq, %3, %14 : vector<128x256xi32>
    %cst = arith.constant 1.000000e+00 : f32
    %cst_5 = arith.constant 0.000000e+00 : f32
    %16 = vector.broadcast %cst : f32 to vector<128x256xf32>
    %17 = vector.broadcast %cst_5 : f32 to vector<128x256xf32>
    %18 = arith.select %15, %16, %17 : vector<128x256xi1>, vector<128x256xf32>
    %19 = arith.truncf %18 : vector<128x256xf32> to vector<128x256xbf16>
    %c0_6 = arith.constant 0 : index
    %c0_7 = arith.constant 0 : index
    %20 = vector.load %arg14[%c0_6, %c0_7] : memref<128x64xbf16, #tpu.memory_space<vmem>>, vector<128x64xbf16>
    %cst_8 = arith.constant dense<0.000000e+00> : vector<256x64xf32>
    %21 = tpu.matmul %19, %20, %cst_8 {dimension_numbers = #tpu.dot_dimension_numbers<[0], [0], [1], [1], [0, 1, 1, 1], [], []>} : vector<128x256xbf16>, vector<128x64xbf16>, vector<256x64xf32> -> vector<256x64xf32>
    %c0_9 = arith.constant 0 : index
    %c0_10 = arith.constant 0 : index
    %22 = vector.load %arg2[%c0_9, %c0_10] : memref<256x64xbf16, #tpu.memory_space<vmem>>, vector<256x64xbf16>
    %c128 = arith.constant 128 : index
    %c0_11 = arith.constant 0 : index
    %23 = vector.load %arg6[%c128, %c0_11] : memref<192x64xbf16, #tpu.memory_space<vmem>>, vector<64x64xbf16>
    %cst_12 = arith.constant dense<0.000000e+00> : vector<256x64xf32>
    %24 = tpu.matmul %22, %23, %cst_12 {dimension_numbers = #tpu.dot_dimension_numbers<[1], [0], [0], [1], [0, 0, 1, 1], [], []>} : vector<256x64xbf16>, vector<64x64xbf16>, vector<256x64xf32> -> vector<256x64xf32>
    %25 = arith.addf %21, %24 : vector<256x64xf32>
    %c1 = arith.constant 1 : index
    %c0_13 = arith.constant 0 : index
    %26 = vector.load %arg10[%c1, %c0_13] : memref<5x64xf32, #tpu.memory_space<vmem>>, vector<1x64xf32>
    %27 = vector.broadcast %26 : vector<1x64xf32> to vector<256x64xf32>
    %28 = arith.addf %25, %27 : vector<256x64xf32>
    %cst_14 = arith.constant 0.000000e+00 : f32
    %29 = vector.broadcast %cst_14 : f32 to vector<256x64xf32>
    %30 = arith.maximumf %28, %29 : vector<256x64xf32>
    %31 = arith.truncf %30 : vector<256x64xf32> to vector<256x64xbf16>
    %c0_15 = arith.constant 0 : index
    %c0_16 = arith.constant 0 : index
    %32 = vector.load %arg7[%c0_15, %c0_16] : memref<64x64xbf16, #tpu.memory_space<vmem>>, vector<64x64xbf16>
    %cst_17 = arith.constant dense<0.000000e+00> : vector<256x64xf32>
    %33 = tpu.matmul %31, %32, %cst_17 {dimension_numbers = #tpu.dot_dimension_numbers<[1], [0], [0], [1], [0, 0, 1, 1], [], []>} : vector<256x64xbf16>, vector<64x64xbf16>, vector<256x64xf32> -> vector<256x64xf32>
    %c2 = arith.constant 2 : index
    %c0_18 = arith.constant 0 : index
    %34 = vector.load %arg10[%c2, %c0_18] : memref<5x64xf32, #tpu.memory_space<vmem>>, vector<1x64xf32>
    %35 = vector.broadcast %34 : vector<1x64xf32> to vector<256x64xf32>
    %36 = arith.addf %33, %35 : vector<256x64xf32>
    %c0_19 = arith.constant 0 : index
    %c0_20 = arith.constant 0 : index
    %37 = vector.load %arg13[%c0_19, %c0_20] : memref<64x64xf32, #tpu.memory_space<vmem>>, vector<64x64xf32>
    %38 = vector.extract_strided_slice %19 {offsets = [0, 0], sizes = [64, 256], strides = [1, 1]} : vector<128x256xbf16> to vector<64x256xbf16>
    %39 = arith.truncf %36 : vector<256x64xf32> to vector<256x64xbf16>
    %cst_21 = arith.constant dense<0.000000e+00> : vector<64x64xf32>
    %40 = tpu.matmul %38, %39, %cst_21 {dimension_numbers = #tpu.dot_dimension_numbers<[1], [0], [0], [1], [0, 0, 1, 1], [], []>} : vector<64x256xbf16>, vector<256x64xbf16>, vector<64x64xf32> -> vector<64x64xf32>
    %41 = arith.addf %37, %40 : vector<64x64xf32>
    %c0_22 = arith.constant 0 : index
    %c0_23 = arith.constant 0 : index
    %42 = vector.load %arg13[%c0_22, %c0_23] : memref<64x64xf32, #tpu.memory_space<vmem>>, vector<64x64xf32>
    tpu.vector_store %arg13[%c0_22, %c0_23], %41 {strides = array<i32>} : memref<64x64xf32, #tpu.memory_space<vmem>>, vector<64x64xf32>,
    %c1_i32 = arith.constant 1 : i32
    %43 = arith.cmpi eq, %arg0, %c1_i32 : i32
    %44 = arith.extui %43 : i1 to i32
    %c0_i32_24 = arith.constant 0 : i32
    %45 = arith.cmpi ne, %44, %c0_i32_24 : i32
    scf.if %45 {
      %c0_25 = arith.constant 0 : index
      %c0_26 = arith.constant 0 : index
      %46 = vector.load %arg12[%c0_25, %c0_26] : memref<64x64xf32, #tpu.memory_space<vmem>>, vector<64x64xf32>
      %47 = arith.truncf %46 : vector<64x64xf32> to vector<64x64xbf16>
      %c0_27 = arith.constant 0 : index
      %c0_28 = arith.constant 0 : index
      %48 = vector.load %arg8[%c0_27, %c0_28] : memref<128x64xbf16, #tpu.memory_space<vmem>>, vector<64x64xbf16>
      %cst_29 = arith.constant dense<0.000000e+00> : vector<64x64xf32>
      %49 = tpu.matmul %47, %48, %cst_29 {dimension_numbers = #tpu.dot_dimension_numbers<[1], [0], [0], [1], [0, 0, 1, 1], [], []>} : vector<64x64xbf16>, vector<64x64xbf16>, vector<64x64xf32> -> vector<64x64xf32>
      %c0_30 = arith.constant 0 : index
      %c0_31 = arith.constant 0 : index
      %50 = vector.load %arg13[%c0_30, %c0_31] : memref<64x64xf32, #tpu.memory_space<vmem>>, vector<64x64xf32>
      %51 = arith.truncf %50 : vector<64x64xf32> to vector<64x64xbf16>
      %c64 = arith.constant 64 : index
      %c0_32 = arith.constant 0 : index
      %52 = vector.load %arg8[%c64, %c0_32] : memref<128x64xbf16, #tpu.memory_space<vmem>>, vector<64x64xbf16>
      %cst_33 = arith.constant dense<0.000000e+00> : vector<64x64xf32>
      %53 = tpu.matmul %51, %52, %cst_33 {dimension_numbers = #tpu.dot_dimension_numbers<[1], [0], [0], [1], [0, 0, 1, 1], [], []>} : vector<64x64xbf16>, vector<64x64xbf16>, vector<64x64xf32> -> vector<64x64xf32>
      %54 = arith.addf %49, %53 : vector<64x64xf32>
      %c3 = arith.constant 3 : index
      %c0_34 = arith.constant 0 : index
      %55 = vector.load %arg10[%c3, %c0_34] : memref<5x64xf32, #tpu.memory_space<vmem>>, vector<1x64xf32>
      %56 = vector.broadcast %55 : vector<1x64xf32> to vector<64x64xf32>
      %57 = arith.addf %54, %56 : vector<64x64xf32>
      %cst_35 = arith.constant 0.000000e+00 : f32
      %58 = vector.broadcast %cst_35 : f32 to vector<64x64xf32>
      %59 = arith.maximumf %57, %58 : vector<64x64xf32>
      %60 = arith.truncf %59 : vector<64x64xf32> to vector<64x64xbf16>
      %c0_36 = arith.constant 0 : index
      %c0_37 = arith.constant 0 : index
      %61 = vector.load %arg9[%c0_36, %c0_37] : memref<64x64xbf16, #tpu.memory_space<vmem>>, vector<64x64xbf16>
      %cst_38 = arith.constant dense<0.000000e+00> : vector<64x64xf32>
      %62 = tpu.matmul %60, %61, %cst_38 {dimension_numbers = #tpu.dot_dimension_numbers<[1], [0], [0], [1], [0, 0, 1, 1], [], []>} : vector<64x64xbf16>, vector<64x64xbf16>, vector<64x64xf32> -> vector<64x64xf32>
      %c4 = arith.constant 4 : index
      %c0_39 = arith.constant 0 : index
      %63 = vector.load %arg10[%c4, %c0_39] : memref<5x64xf32, #tpu.memory_space<vmem>>, vector<1x64xf32>
      %64 = vector.broadcast %63 : vector<1x64xf32> to vector<64x64xf32>
      %65 = arith.addf %62, %64 : vector<64x64xf32>
      %66 = arith.addf %46, %65 : vector<64x64xf32>
      %c0_40 = arith.constant 0 : index
      %c0_41 = arith.constant 0 : index
      %67 = vector.load %arg11[%c0_40, %c0_41] : memref<64x64xf32, #tpu.memory_space<vmem>>, vector<64x64xf32>
      tpu.vector_store %arg11[%c0_40, %c0_41], %66 {strides = array<i32>} : memref<64x64xf32, #tpu.memory_space<vmem>>, vector<64x64xf32>,
    } else {
    }
    return
  }
  func.func @transform_0(%arg0: i32) -> (i32, i32) {
    %c0_i32 = arith.constant 0 : i32
    %c0_i32_0 = arith.constant 0 : i32
    %c0_i32_1 = arith.constant 0 : i32
    return %c0_i32, %c0_i32_0 : i32, i32
  }
  func.func @transform_1(%arg0: i32) -> (i32, i32) {
    %c0_i32 = arith.constant 0 : i32
    %c0_i32_0 = arith.constant 0 : i32
    return %arg0, %c0_i32 : i32, i32
  }
  func.func @transform_2(%arg0: i32) -> (i32, i32) {
    %c0_i32 = arith.constant 0 : i32
    %c0_i32_0 = arith.constant 0 : i32
    return %c0_i32, %arg0 : i32, i32
  }
  func.func @transform_3(%arg0: i32) -> (i32, i32) {
    %c0_i32 = arith.constant 0 : i32
    %c0_i32_0 = arith.constant 0 : i32
    return %c0_i32, %arg0 : i32, i32
  }
  func.func @transform_4(%arg0: i32) -> (i32, i32) {
    %c0_i32 = arith.constant 0 : i32
    %c0_i32_0 = arith.constant 0 : i32
    %c0_i32_1 = arith.constant 0 : i32
    return %c0_i32, %c0_i32_0 : i32, i32
  }
  func.func @transform_5(%arg0: i32) -> (i32, i32) {
    %c0_i32 = arith.constant 0 : i32
    %c0_i32_0 = arith.constant 0 : i32
    %c0_i32_1 = arith.constant 0 : i32
    return %c0_i32, %c0_i32_0 : i32, i32
  }
  func.func @transform_6(%arg0: i32) -> (i32, i32) {
    %c0_i32 = arith.constant 0 : i32
    %c0_i32_0 = arith.constant 0 : i32
    %c0_i32_1 = arith.constant 0 : i32
    return %c0_i32, %c0_i32_0 : i32, i32
  }
  func.func @transform_7(%arg0: i32) -> (i32, i32) {
    %c0_i32 = arith.constant 0 : i32
    %c0_i32_0 = arith.constant 0 : i32
    %c0_i32_1 = arith.constant 0 : i32
    return %c0_i32, %c0_i32_0 : i32, i32
  }
  func.func @transform_8(%arg0: i32) -> (i32, i32) {
    %c0_i32 = arith.constant 0 : i32
    %c0_i32_0 = arith.constant 0 : i32
    %c0_i32_1 = arith.constant 0 : i32
    return %c0_i32, %c0_i32_0 : i32, i32
  }
  func.func @transform_9(%arg0: i32) -> (i32, i32) {
    %c0_i32 = arith.constant 0 : i32
    %c0_i32_0 = arith.constant 0 : i32
    %c0_i32_1 = arith.constant 0 : i32
    return %c0_i32, %c0_i32_0 : i32, i32
  }
  func.func @transform_10(%arg0: i32) -> (i32, i32) {
    %c0_i32 = arith.constant 0 : i32
    %c0_i32_0 = arith.constant 0 : i32
    %c0_i32_1 = arith.constant 0 : i32
    return %c0_i32, %c0_i32_0 : i32, i32
  }
}

</mosaic_0001>

<bundles_post_ra>
// kernel: gcn_forward.5
= control target key start
LH: loop header
LB: loop body
LE: loop exit
PB: predicated region body
PF: predicated region fallthrough
CT: control target
= control target key end

     0   :  { %s3082_s17 = smov 0   ;;  %s3784_s0 = inlined_call_operand.vmem [shape: f32[64,64], index: 0, kind: input, shape index: {}]   ;;  %s3785_s1 = inlined_call_operand.vmem [shape: bf16[512,64], index: 1, kind: input, shape index: {}]   ;;  %s3786_s2 = inlined_call_operand.vmem [shape: s32[1,512], index: 2, kind: input, shape index: {}]   ;;  %s3787_s3 = inlined_call_operand.vmem [shape: s32[1,512], index: 3, kind: input, shape index: {}]   ;;  %s3788_s4 = inlined_call_operand.vmem [shape: bf16[192,64], index: 4, kind: input, shape index: {}]   ;;  %s3789_s5 = inlined_call_operand.vmem [shape: bf16[64,64], index: 5, kind: input, shape index: {}]   ;;  %s3790_s6 = inlined_call_operand.vmem [shape: bf16[128,64], index: 6, kind: input, shape index: {}]   ;;  %s3791_s7 = inlined_call_operand.vmem [shape: bf16[64,64], index: 7, kind: input, shape index: {}]   ;;  %s3792_s8 = inlined_call_operand.vmem [shape: bf16[64,8], index: 8, kind: input, shape index: {}]   ;;  %s3793_s9 = inlined_call_operand.vmem [shape: f32[1,8], index: 9, kind: input, shape index: {}]   ;;  %s3794_s10 = inlined_call_operand.vmem [shape: f32[4,64], index: 10, kind: input, shape index: {}]   ;;  %s3795_s11 = inlined_call_operand.vmem [shape: f32[64,8], index: 11, kind: output, shape index: {}]  }
   0x1 LB: > { %s3088_s18 = sadd.s32 4294967295, %s3017_s17   ;;  %p2394_p0 = scmp.ge.s32.totalorder %s3017_s17, 1  ;;  %s3017_s17 = sphi %s3082_s17, %s21_s17  }
   0x2   : > { %p353_p1 = scmp.lt.s32.totalorder %s3017_s17, 3 }
   0x4   : > { %p354_p2 = pnand %p2394_p0, %p353_p1 }
   0x5   : > { %s2395_s19 = sshll.u32 (!%p354_p2), %s3088_s18, 5  ;;  %s2397_s20 = sshll.u32 (!%p354_p2), %s3088_s18, 1 }
   0x6   : > { %357 = sbr.rel (%p354_p2) target bundleno = 1815 (0x717), region = 64  ;;  %p397_p3 = scmp.lt.s32.totalorder (!%p354_p2), %s2395_s19, 63 }
   0x7   : > { %p403_p4 = scmp.lt.s32.totalorder (!%p354_p2), %s2397_s20, 3  ;;  %p2399_p5 = scmp.ne.s32.totalorder (!%p354_p2), %s3088_s18, 0 }
   0xd   : > { %s3811_s19 = smov (!%p397_p3, %s2395_s19), 63  ;;  %s3813_s20 = smov (!%p403_p4, %s2397_s20), 3 }
   0xe   : > { %s2396_s21 = sshll.u32 %s3811_s19, 2  ;;  %s405_s27 = scalar_lea.vmem %s3786_s2, %s3813_s20  ;;  %v2963_v0 = vld [vmem:[%s3788_s4] sm:$0xff] (!%p2399_p5)   ;;  %vm425_vm0 = vcmask (!%p2399_p5), 523264   ;;  %v2965_v2 = vld [vmem:[%s3788_s4 + $0x8] sm:$0xff] (!%p2399_p5)   ;;  %v3019_v3 = vmov (!%p2399_p5), 0.0   ;;  %v2967_v5 = vld [vmem:[%s3788_s4 + $0x10] sm:$0xff] (!%p2399_p5)  }
   0xf   : > { %s3099_s24 = scalar_lea.vmem %s3785_s1, %s2396_s21  ;;  %s410_s30 = scalar_lea.vmem %s3787_s3, %s3813_s20  ;;  %v2964_v1 = vld [vmem:[%s3788_s4 + $0x20] sm:$0xff] (!%p2399_p5)   ;;  %2680 = vmatprep.subr.bf16.mxu0 (!%p2399_p5), %v2963_v0  ;;  %660 = vst.msk [vmem:[#allocation3] sm:$0xff] (!%p2399_p5), %vm425_vm0, %v3019_v3  ;;  %661 = vst.msk [vmem:[#allocation3 + $0x8] sm:$0xff] (!%p2399_p5), %vm425_vm0, %v3019_v3  ;;  %v2966_v4 = vld [vmem:[%s3788_s4 + $0x28] sm:$0xff] (!%p2399_p5)  }
  0x10   : > { %416 = sbr.rel (%p2399_p5) target bundleno = 258 (0x102), region = 68  ;;  %662 = vst.msk [vmem:[#allocation3 + $0x10] sm:$0xff] (!%p2399_p5), %vm425_vm0, %v3019_v3  ;;  %663 = vst.msk [vmem:[#allocation3 + $0x18] sm:$0xff] (!%p2399_p5), %vm425_vm0, %v3019_v3  ;;  %2696 = vmatprep.subr.bf16.mxu1 (!%p2399_p5), %v2964_v1  ;;  %2681 = vmatpush3.bf16.msra.mxu0 (!%p2399_p5), %v2963_v0  ;;  %v2968_v6 = vld [vmem:[%s3788_s4 + $0x30] sm:$0xff] (!%p2399_p5)   ;;  %v2969_v7 = vld [vmem:[%s3788_s4 + $0x18] sm:$0xff] (!%p2399_p5)  }
  0x11   : > { %664 = vst.msk [vmem:[#allocation3 + $0x20] sm:$0xff] (!%p2399_p5), %vm425_vm0, %v3019_v3  ;;  %665 = vst.msk [vmem:[#allocation3 + $0x28] sm:$0xff] (!%p2399_p5), %vm425_vm0, %v3019_v3  ;;  %2697 = vmatpush3.bf16.msra.mxu1 (!%p2399_p5), %v2964_v1  ;;  %2682 = vmatprep.subr.bf16.mxu0 (!%p2399_p5), %v2965_v2  ;;  %v2970_v8 = vld [vmem:[%s3788_s4 + $0x38] sm:$0xff] (!%p2399_p5)   ;;  %v417_v9 = vld [vmem:[%s3784_s0] sm:$0xff] (!%p2399_p5) }
  0x12   : > { %666 = vst.msk [vmem:[#allocation3 + $0x30] sm:$0xff] (!%p2399_p5), %vm425_vm0, %v3019_v3  ;;  %667 = vst.msk [vmem:[#allocation3 + $0x38] sm:$0xff] (!%p2399_p5), %vm425_vm0, %v3019_v3  ;;  %2698 = vmatprep.subr.bf16.mxu1 (!%p2399_p5), %v2966_v4  ;;  %v418_v10 = vld [vmem:[%s3784_s0 + $0x8] sm:$0xff] (!%p2399_p5)  ;;  %v419_v11 = vld [vmem:[%s3784_s0 + $0x10] sm:$0xff] (!%p2399_p5) }
  0x13   : > { %426 = vst.msk [vmem:[#allocation2] sm:$0xff] (!%p2399_p5), %vm425_vm0, %v417_v9  ;;  %427 = vst.msk [vmem:[#allocation2 + $0x8] sm:$0xff] (!%p2399_p5), %vm425_vm0, %v418_v10  ;;  %v434_v12 = vpack.c.bf16 (!%p2399_p5), %v418_v10, %v417_v9  ;;  %v420_v13 = vld [vmem:[%s3784_s0 + $0x18] sm:$0xff] (!%p2399_p5)  ;;  %v421_v14 = vld [vmem:[%s3784_s0 + $0x20] sm:$0xff] (!%p2399_p5) }
  0x14   : > { %2683 = vmatpush3.bf16.msra.mxu0 (!%p2399_p5), %v2965_v2  ;;  %428 = vst.msk [vmem:[#allocation2 + $0x10] sm:$0xff] (!%p2399_p5), %vm425_vm0, %v419_v11  ;;  %v422_v15 = vld [vmem:[%s3784_s0 + $0x28] sm:$0xff] (!%p2399_p5)  ;;  %429 = vst.msk [vmem:[#allocation2 + $0x18] sm:$0xff] (!%p2399_p5), %vm425_vm0, %v420_v13  ;;  %v423_v16 = vld [vmem:[%s3784_s0 + $0x30] sm:$0xff] (!%p2399_p5)  ;;  %v435_v18 = vpack.c.bf16 (!%p2399_p5), %v420_v13, %v419_v11 }
  0x15   : > { %2699 = vmatpush3.bf16.msra.mxu1 (!%p2399_p5), %v2966_v4  ;;  %2684 = vmatprep.subr.bf16.mxu0 (!%p2399_p5), %v2967_v5  ;;  %430 = vst.msk [vmem:[#allocation2 + $0x20] sm:$0xff] (!%p2399_p5), %vm425_vm0, %v421_v14  ;;  %431 = vst.msk [vmem:[#allocation2 + $0x28] sm:$0xff] (!%p2399_p5), %vm425_vm0, %v422_v15  ;;  %v424_v17 = vld [vmem:[%s3784_s0 + $0x38] sm:$0xff] (!%p2399_p5)  ;;  %v436_v19 = vpack.c.bf16 (!%p2399_p5), %v422_v15, %v421_v14 }
  0x16   : > { %2700 = vmatprep.subr.bf16.mxu1 (!%p2399_p5), %v2968_v6  ;;  %2688 = vmatprep.mubr.msk.bf16.mxu0 (!%p2399_p5), %vm425_vm0, %v434_v12  ;;  %432 = vst.msk [vmem:[#allocation2 + $0x30] sm:$0xff] (!%p2399_p5), %vm425_vm0, %v423_v16  ;;  %433 = vst.msk [vmem:[#allocation2 + $0x38] sm:$0xff] (!%p2399_p5), %vm425_vm0, %v424_v17  ;;  %v437_v20 = vpack.c.bf16 (!%p2399_p5), %v424_v17, %v423_v16 }
  0x17   : > { %2704 = vmatprep.mubr.msk.bf16.mxu1 %vm425_vm0, %v434_v12 }
  0x18   : > { %2685 = vmatpush3.bf16.msra.mxu0 %v2967_v5 }
  0x19   : > { %2701 = vmatpush3.bf16.msra.mxu1 %v2968_v6  ;;  %2686 = vmatprep.subr.bf16.mxu0 %v2969_v7 }
  0x1a   : > { %2702 = vmatprep.subr.bf16.mxu1 %v2970_v8 }
  0x1c   : > { %2687 = vmatpush3.bf16.msra.mxu0 %v2969_v7 }
  0x1d   : > { %2703 = vmatpush3.bf16.msra.mxu1 %v2970_v8 }
  0x1f   : > { %2689 = vmatmul.mubr.msk.bf16.vlgmr.msra.gmra.mrb[0].mxu0 %vm425_vm0, %v435_v18 }
  0x20   : > { %2705 = vmatmul.mubr.msk.bf16.vlgmr.msra.gmra.mrb[0].mxu1 %vm425_vm0, %v435_v18  ;;  %2692 = vmatprep.mubr.msk.bf16.mxu0 %vm425_vm0, %v436_v19 }
  0x21   : > { %2708 = vmatprep.mubr.msk.bf16.mxu1 %vm425_vm0, %v436_v19 }
  0x27   : > { %2693 = vmatmul.mubr.msk.bf16.gmra.mrb[4].mxu0 %vm425_vm0, %v437_v20 }
  0x28   : > { %2709 = vmatmul.mubr.msk.bf16.gmra.mrb[4].mxu1 %vm425_vm0, %v437_v20 }
  0xf2   : > { %v2690_v21 = vpop.f32.mrb[0].mxu0 }
  0xf3   : > { %v2706_v22 = vpop.f32.mrb[0].mxu1  ;;  %v516_v23 = vpop.f32.mrb[1].mxu0 }
  0xf4   : > { %v621_v24 = vpop.f32.mrb[1].mxu1  ;;  %v2691_v25 = vpop.f32.mrb[2].mxu0 }
  0xf5   : > { %v548_v26 = vpack.c.bf16 %v2691_v25, %v2690_v21  ;;  %v2707_v27 = vpop.f32.mrb[2].mxu1  ;;  %v519_v28 = vpop.f32.mrb[3].mxu0 }
  0xf6   : > { %v653_v29 = vpack.c.bf16 %v2707_v27, %v2706_v22  ;;  %v547_v30 = vpack.c.bf16 %v519_v28, %v516_v23  ;;  %v624_v31 = vpop.f32.mrb[3].mxu1 }
  0xf7   : > { %552 = vst.msk [vmem:[#allocation4 + $0x8] sm:$0xff] %vm425_vm0, %v548_v26  ;;  %v652_v32 = vpack.c.bf16 %v624_v31, %v621_v24 }
  0xf8   : > { %657 = vst.msk [vmem:[#allocation4 + $0x28] sm:$0xff] %vm425_vm0, %v653_v29  ;;  %551 = vst.msk [vmem:[#allocation4] sm:$0xff] %vm425_vm0, %v547_v30 }
  0xf9   : > { %656 = vst.msk [vmem:[#allocation4 + $0x20] sm:$0xff] %vm425_vm0, %v652_v32 }
  0xfa   : > { %v2694_v33 = vpop.f32.mrb[4].mxu0 }
  0xfb   : > { %v2710_v34 = vpop.f32.mrb[4].mxu1  ;;  %v532_v35 = vpop.f32.mrb[5].mxu0 }
  0xfc   : > { %v637_v36 = vpop.f32.mrb[5].mxu1  ;;  %v2695_v37 = vpop.f32.mrb[6].mxu0 }
  0xfd   : > { %v550_v38 = vpack.c.bf16 %v2695_v37, %v2694_v33  ;;  %v2711_v39 = vpop.f32.mrb[6].mxu1  ;;  %v535_v40 = vpop.f32.mrb[7].mxu0 }
  0xfe   : > { %v655_v41 = vpack.c.bf16 %v2711_v39, %v2710_v34  ;;  %v549_v42 = vpack.c.bf16 %v535_v40, %v532_v35  ;;  %v640_v43 = vpop.f32.mrb[7].mxu1 }
  0xff   : > { %554 = vst.msk [vmem:[#allocation4 + $0x18] sm:$0xff] %vm425_vm0, %v550_v38  ;;  %v654_v44 = vpack.c.bf16 %v640_v43, %v637_v36 }
 0x100   : > { %659 = vst.msk [vmem:[#allocation4 + $0x38] sm:$0xff] %vm425_vm0, %v655_v41  ;;  %553 = vst.msk [vmem:[#allocation4 + $0x10] sm:$0xff] %vm425_vm0, %v549_v42 }
 0x101   : > { %658 = vst.msk [vmem:[#allocation4 + $0x30] sm:$0xff] %vm425_vm0, %v654_v44 }
 0x102 PF: > { %v668_v45 = vlaneseq  ;;  %v2971_v46 = vld [vmem:[%s3788_s4 + $0x40] sm:$0xff]   ;;  %v2972_v48 = vld [vmem:[%s3788_s4 + $0x48] sm:$0xff]   ;;  %v2973_v51 = vld [vmem:[%s3788_s4 + $0x50] sm:$0xff]   ;;  %v3020_v63 = vmov 0.0   ;;  %vm984_vm12 = vcmask 523264   ;;  %p2490_p6 = scmp.ne.s32.totalorder %s3088_s18, 1 }
 0x103   : > { %v3198_v47 = vld [vmem:[%s410_s30] sm:$0x3]  ;;  %2712 = vmatprep.subr.bf16.mxu0 %v2971_v46  ;;  %2904 = vmatprep.subr.bf16.mxu1 %v2971_v46  ;;  %v2974_v62 = vld [vmem:[%s3788_s4 + $0x58] sm:$0xff]   ;;  %v2976_v15 = vld [vmem:[%s3099_s24 + $0x8] sm:$0xff]  }
 0x104   : > { %v3203_v49 = vshrl.u32 %v668_v45, 7  ;;  %v702_v50 = vld [vmem:[%s405_s27] sm:$0x3]  ;;  %2713 = vmatpush3.bf16.msra.mxu0 %v2971_v46  ;;  %2908 = vmatpush3.bf16.msra.mxu1 %v2971_v46  ;;  %v2977_v20 = vld [vmem:[%s3099_s24 + $0x10] sm:$0xff]   ;;  %v833_v26 = vld [vmem:[#allocation4 + $0x8] sm:$0xff] }
 0x105   : > { %2714 = vmatprep.subr.bf16.mxu0 %v2972_v48  ;;  %2905 = vmatprep.subr.bf16.mxu1 %v2972_v48  ;;  %v3238_v61 = vadd.s32 64, %v702_v50  ;;  %v832_v12 = vld [vmem:[#allocation4] sm:$0xff]  ;;  %v2978_v34 = vld [vmem:[%s3099_s24 + $0x18] sm:$0xff]  }
 0x106   : > { %v3214_v52 = vadd.s32 8, %v3203_v49  ;;  %v706_v53 = vsub.s32 0, %v3203_v49  ;;  %v3218_v54 = vadd.s32 16, %v3203_v49  ;;  %v3221_v55 = vadd.s32 24, %v3203_v49  ;;  %v2975_v13 = vld [vmem:[%s3099_s24] sm:$0xff]  }
 0x107   : > { %v3227_v57 = vadd.s32 32, %v3203_v49  ;;  %v3230_v58 = vadd.s32 40, %v3203_v49  ;;  %v3233_v59 = vadd.s32 48, %v3203_v49  ;;  %v3236_v60 = vadd.s32 56, %v3203_v49  ;;  %2720 = vmatprep.mubr.msk.bf16.mxu0 %vm984_vm12, %v2975_v13  ;;  %v2979_v35 = vld [vmem:[%s3099_s24 + $0x20] sm:$0xff]   ;;  %v834_v37 = vld [vmem:[#allocation4 + $0x10] sm:$0xff] }
 0x108   : > { %v3224_v56 = vrot.slane %v3198_v47, %v706_v53  ;;  %2715 = vmatpush3.bf16.msra.mxu0 %v2972_v48  ;;  %2909 = vmatpush3.bf16.msra.mxu1 %v2972_v48  ;;  %v3270_v7 = vadd.s32 64, %v3203_v49  ;;  %v3273_v8 = vadd.s32 72, %v3203_v49  ;;  %v3276_v9 = vrot.slane %v3238_v61, %v706_v53 }
 0x109   : > { %2716 = vmatprep.subr.bf16.mxu0 %v2973_v51  ;;  %2906 = vmatprep.subr.bf16.mxu1 %v2973_v51  ;;  %v3292_v14 = vadd.s32 80, %v3203_v49  ;;  %v3304_v19 = vadd.s32 88, %v3203_v49  ;;  %v710_v21 = vsub.s32 1, %v3203_v49  ;;  %v3314_v23 = vadd.s32 96, %v3203_v49 }
 0x10a   : > { %vm752_vm1 = vcmp.eq.s32.totalorder %v3203_v49, %v3224_v56  ;;  %vm754_vm2 = vcmp.eq.s32.totalorder %v3214_v52, %v3224_v56  ;;  %vm756_vm3 = vcmp.eq.s32.totalorder %v3218_v54, %v3224_v56  ;;  %vm758_vm4 = vcmp.eq.s32.totalorder %v3221_v55, %v3224_v56 }
 0x10b   : > { %v784_v0 = vsel %vm752_vm1, 1.0, %v3020_v63  ;;  %v786_v1 = vsel %vm754_vm2, 1.0, %v3020_v63  ;;  %vm3253_vm5 = vmpackc.low %vm754_vm2, %vm752_vm1  ;;  %v788_v3 = vsel %vm756_vm3, 1.0, %v3020_v63  ;;  %v790_v4 = vsel %vm758_vm4, 1.0, %v3020_v63 }
 0x10c   : > { %v816_v5 = vpack.c.bf16 %v786_v1, %v784_v0  ;;  %vm760_vm6 = vcmp.eq.s32.totalorder %v3227_v57, %v3224_v56  ;;  %vm3798_vm7 = vcmp.eq.s32.totalorder %v3230_v58, %v3224_v56  ;;  %2717 = vmatpush3.bf16.msra.mxu0 %v2973_v51  ;;  %2910 = vmatpush3.bf16.msra.mxu1 %v2973_v51  ;;  %v3317_v24 = vadd.s32 104, %v3203_v49  ;;  %v2987_v0 = vld [vmem:[%s3099_s24 + $0x60] sm:$0xff]  }
 0x10d   : > { %v818_v6 = vpack.c.bf16 %v790_v4, %v788_v3  ;;  %2718 = vmatprep.subr.bf16.mxu0 %v2974_v62  ;;  %v792_v10 = vsel %vm760_vm6, 1.0, %v3020_v63  ;;  %v794_v11 = vsel %vm3798_vm7, 1.0, %v3020_v63  ;;  %vm3797_vm8 = vcmp.eq.s32.totalorder %v3233_v59, %v3224_v56  ;;  %2907 = vmatprep.subr.bf16.mxu1 %v2974_v62  ;;  %v2981_v3 = vld [vmem:[%s3099_s24 + $0x30] sm:$0xff]   ;;  %v2988_v4 = vld [vmem:[%s3099_s24 + $0x68] sm:$0xff]  }
 0x10e   : > { %1194 = vxpose.xlu0.c.b16.start [1/8] %v816_v5, 128  ;;  %vm3796_vm9 = vcmp.eq.s32.totalorder %v3236_v60, %v3224_v56  ;;  %v820_v16 = vpack.c.bf16 %v794_v11, %v792_v10  ;;  %v796_v17 = vsel %vm3797_vm8, 1.0, %v3020_v63  ;;  %vm768_vm10 = vcmp.eq.s32.totalorder %v3270_v7, %v3276_v9  ;;  %2744 = vmatprep.mubr.msk.bf16.mxu1 %vm984_vm12, %v2987_v0 }
 0x10f   : > { %v798_v18 = vsel %vm3796_vm9, 1.0, %v3020_v63  ;;  %vm770_vm11 = vcmp.eq.s32.totalorder %v3273_v8, %v3276_v9  ;;  %v3320_v25 = vrot.slane %v3198_v47, %v710_v21  ;;  %v800_v27 = vsel %vm768_vm10, 1.0, %v3020_v63  ;;  %v835_v47 = vld [vmem:[#allocation4 + $0x18] sm:$0xff] }
 0x110   : > { %2719 = vmatpush3.bf16.msra.mxu0 %v2974_v62  ;;  %2911 = vmatpush3.bf16.msra.mxu1 %v2974_v62  ;;  %v822_v22 = vpack.c.bf16 %v798_v18, %v796_v17  ;;  %v802_v28 = vsel %vm770_vm11, 1.0, %v3020_v63  ;;  %vm772_vm13 = vcmp.eq.s32.totalorder %v3292_v14, %v3276_v9  ;;  %vm774_vm14 = vcmp.eq.s32.totalorder %v3304_v19, %v3276_v9  ;;  %v836_v62 = vld [vmem:[#allocation4 + $0x20] sm:$0xff]  ;;  %v2989_v17 = vld [vmem:[%s3099_s24 + $0x70] sm:$0xff]  }
 0x111   : > { %2752 = vmatprep.subr.bf16.mxu0 %v832_v12  ;;  %vm753_vm15 = vcmp.eq.s32.totalorder %v3203_v49, %v3320_v25  ;;  %vm755_vm0 = vcmp.eq.s32.totalorder %v3214_v52, %v3320_v25  ;;  %vm757_vm1 = vcmp.eq.s32.totalorder %v3218_v54, %v3320_v25  ;;  %vm759_vm2 = vcmp.eq.s32.totalorder %v3221_v55, %v3320_v25  ;;  %v2983_v18 = vld [vmem:[%s3099_s24 + $0x40] sm:$0xff]  }
 0x112   : > { %1195 = vxpose.xlu0.c.b16.cont [2/8] %v818_v6, 128  ;;  %v785_v29 = vsel %vm753_vm15, 1.0, %v3020_v63  ;;  %v787_v30 = vsel %vm755_vm0, 1.0, %v3020_v63  ;;  %vm3340_vm10 = vmpackc.low %vm755_vm0, %vm753_vm15  ;;  %v789_v32 = vsel %vm757_vm1, 1.0, %v3020_v63  ;;  %v791_v33 = vsel %vm759_vm2, 1.0, %v3020_v63  ;;  %v1718_v55 = vld [vmem:[#allocation3] sm:$0xff] }
 0x113   : > { %2721 = vmatmul.mubr.msk.bf16.vlgmr.msra.gmra.mrb[0].mxu0 %vm984_vm12, %v2976_v15  ;;  %v817_v36 = vpack.c.bf16 %v787_v30, %v785_v29  ;;  %vm761_vm11 = vcmp.eq.s32.totalorder %v3227_v57, %v3320_v25  ;;  %vm763_vm15 = vcmp.eq.s32.totalorder %v3230_v58, %v3320_v25  ;;  %v824_v38 = vpack.c.bf16 %v802_v28, %v800_v27  ;;  %v2982_v15 = vld [vmem:[%s3099_s24 + $0x38] sm:$0xff]   ;;  %v2984_v28 = vld [vmem:[%s3099_s24 + $0x48] sm:$0xff]   ;;  %v2991_v29 = vld [vmem:[%s3789_s5] sm:$0xff]  }
 0x114   : > { %2724 = vmatprep.mubr.msk.bf16.mxu0 %vm984_vm12, %v2977_v20  ;;  %2753 = vmatpush3.bf16.msra.mxu0 %v832_v12  ;;  %v804_v39 = vsel %vm772_vm13, 1.0, %v3020_v63  ;;  %v806_v40 = vsel %vm774_vm14, 1.0, %v3020_v63  ;;  %v3367_v41 = vadd.s32 112, %v3203_v49  ;;  %v3370_v42 = vadd.s32 120, %v3203_v49  ;;  %v2985_v30 = vld [vmem:[%s3099_s24 + $0x50] sm:$0xff]  }
 0x115   : > { %2754 = vmatprep.subr.bf16.mxu0 %v833_v26  ;;  %1210 = vxpose.xlu1.c.b16.start [1/8] %v817_v36, 128  ;;  %v819_v43 = vpack.c.bf16 %v791_v33, %v789_v32  ;;  %vm776_vm0 = vcmp.eq.s32.totalorder %v3314_v23, %v3276_v9  ;;  %vm778_vm13 = vcmp.eq.s32.totalorder %v3317_v24, %v3276_v9  ;;  %v793_v44 = vsel %vm761_vm11, 1.0, %v3020_v63  ;;  %v2992_v32 = vld [vmem:[%s3789_s5 + $0x8] sm:$0xff]  }
 0x116   : > { %1196 = vxpose.xlu0.c.b16.cont [3/8] %v820_v16, 128  ;;  %v795_v45 = vsel %vm763_vm15, 1.0, %v3020_v63  ;;  %vm3800_vm14 = vcmp.eq.s32.totalorder %v3233_v59, %v3320_v25  ;;  %vm3799_vm9 = vcmp.eq.s32.totalorder %v3236_v60, %v3320_v25  ;;  %v3389_v46 = vrot.slane %v3238_v61, %v710_v21  ;;  %v2980_v61 = vld [vmem:[%s3099_s24 + $0x28] sm:$0xff]   ;;  %2745 = vmatmul.mubr.msk.bf16.vlgmr.msra.gmra.mrb[0].mxu1 %vm984_vm12, %v2988_v4  ;;  %v838_v16 = vld [vmem:[#allocation4 + $0x30] sm:$0xff] }
 0x117   : > { %v826_v48 = vpack.c.bf16 %v806_v40, %v804_v39  ;;  %v808_v49 = vsel %vm776_vm0, 1.0, %v3020_v63  ;;  %v810_v50 = vsel %vm778_vm13, 1.0, %v3020_v63  ;;  %v821_v51 = vpack.c.bf16 %v795_v45, %v793_v44  ;;  %2748 = vmatprep.mubr.msk.bf16.mxu1 %vm984_vm12, %v2989_v17  ;;  %2800 = vmatprep.subr.bf16.mxu1 %v2991_v29 }
 0x118   : > { %2755 = vmatpush3.bf16.msra.mxu0 %v833_v26  ;;  %vm780_vm8 = vcmp.eq.s32.totalorder %v3367_v41, %v3276_v9  ;;  %vm782_vm7 = vcmp.eq.s32.totalorder %v3370_v42, %v3276_v9  ;;  %v797_v52 = vsel %vm3800_vm14, 1.0, %v3020_v63  ;;  %v799_v53 = vsel %vm3799_vm9, 1.0, %v3020_v63  ;;  %2801 = vmatpush3.bf16.msra.mxu1 %v2991_v29 }
 0x119   : > { %2756 = vmatprep.subr.bf16.mxu0 %v834_v37  ;;  %1211 = vxpose.xlu1.c.b16.cont [2/8] %v819_v43, 128  ;;  %vm769_vm0 = vcmp.eq.s32.totalorder %v3270_v7, %v3389_v46  ;;  %vm771_vm13 = vcmp.eq.s32.totalorder %v3273_v8, %v3389_v46  ;;  %v828_v1 = vpack.c.bf16 %v810_v50, %v808_v49  ;;  %v812_v5 = vsel %vm780_vm8, 1.0, %v3020_v63  ;;  %v837_v8 = vld [vmem:[#allocation4 + $0x28] sm:$0xff]  ;;  %v2993_v50 = vld [vmem:[%s3789_s5 + $0x10] sm:$0xff]  }
 0x11a   : > { %1197 = vxpose.xlu0.c.b16.cont [4/8] %v822_v22, 128  ;;  %v814_v6 = vsel %vm782_vm7, 1.0, %v3020_v63  ;;  %v823_v9 = vpack.c.bf16 %v799_v53, %v797_v52  ;;  %v801_v10 = vsel %vm769_vm0, 1.0, %v3020_v63  ;;  %v803_v7 = vsel %vm771_vm13, 1.0, %v3020_v63  ;;  %2802 = vmatprep.subr.bf16.mxu1 %v2992_v32  ;;  %vm2480_vm0 = vmpackc.low %vm758_vm4, %vm756_vm3 }
 0x11b   : > { %2725 = vmatmul.mubr.msk.bf16.gmra.mrb[4].mxu0 %vm984_vm12, %v2978_v34  ;;  %vm773_vm9 = vcmp.eq.s32.totalorder %v3292_v14, %v3389_v46  ;;  %vm775_vm14 = vcmp.eq.s32.totalorder %v3304_v19, %v3389_v46  ;;  %v830_v11 = vpack.c.bf16 %v814_v6, %v812_v5  ;;  %v825_v12 = vpack.c.bf16 %v803_v7, %v801_v10  ;;  %v2990_v19 = vld [vmem:[%s3099_s24 + $0x78] sm:$0xff]   ;;  %v3486_v5 = vld [vmem:[%s3794_s10] ss:$0 sm:$0xff] }
 0x11c   : > { %2728 = vmatprep.mubr.msk.bf16.mxu0 %vm984_vm12, %v2979_v35  ;;  %2757 = vmatpush3.bf16.msra.mxu0 %v834_v37  ;;  %v805_v13 = vsel %vm773_vm9, 1.0, %v3020_v63  ;;  %v807_v14 = vsel %vm775_vm14, 1.0, %v3020_v63  ;;  %vm777_vm7 = vcmp.eq.s32.totalorder %v3314_v23, %v3389_v46  ;;  %vm779_vm8 = vcmp.eq.s32.totalorder %v3317_v24, %v3389_v46  ;;  %v839_v23 = vld [vmem:[#allocation4 + $0x38] sm:$0xff] }
 0x11d   : > { %2758 = vmatprep.subr.bf16.mxu0 %v835_v47  ;;  %1212 = vxpose.xlu1.c.b16.cont [3/8] %v821_v51, 128  ;;  %v827_v20 = vpack.c.bf16 %v807_v14, %v805_v13  ;;  %v809_v21 = vsel %vm777_vm7, 1.0, %v3020_v63  ;;  %v811_v22 = vsel %vm779_vm8, 1.0, %v3020_v63  ;;  %vm781_vm9 = vcmp.eq.s32.totalorder %v3367_v41, %v3389_v46  ;;  %v2994_v51 = vld [vmem:[%s3789_s5 + $0x18] sm:$0xff]  }
 0x11e   : > { %1198 = vxpose.xlu0.c.b16.cont [5/8] %v824_v38, 128  ;;  %vm783_vm14 = vcmp.eq.s32.totalorder %v3370_v42, %v3389_v46  ;;  %2749 = vmatmul.mubr.msk.bf16.gmra.mrb[4].mxu1 %vm984_vm12, %v2990_v19  ;;  %v829_v24 = vpack.c.bf16 %v811_v22, %v809_v21  ;;  %v813_v26 = vsel %vm781_vm9, 1.0, %v3020_v63  ;;  %vm3806_vm3 = vcmp.eq.s32.totalorder %v3233_v59, %v3320_v25 }
 0x11f   : > { %v815_v27 = vsel %vm783_vm14, 1.0, %v3020_v63  ;;  %v2986_v63 = vld [vmem:[%s3099_s24 + $0x58] sm:$0xff]   ;;  %2803 = vmatpush3.bf16.msra.mxu1 %v2992_v32  ;;  %vm3807_vm4 = vcmp.eq.s32.totalorder %v3236_v60, %v3320_v25  ;;  %v1719_v25 = vld [vmem:[#allocation3 + $0x8] sm:$0xff] }
 0x120   : > { %2759 = vmatpush3.bf16.msra.mxu0 %v835_v47  ;;  %v831_v33 = vpack.c.bf16 %v815_v27, %v813_v26  ;;  %2804 = vmatprep.subr.bf16.mxu1 %v2993_v50  ;;  %vm2486_vm13 = vmpackc.low %vm3807_vm4, %vm3806_vm3 }
 0x121   : > { %2760 = vmatprep.subr.bf16.mxu0 %v836_v62  ;;  %1213 = vxpose.xlu1.c.b16.cont [4/8] %v823_v9, 128 }
 0x122   : > { %1199 = vxpose.xlu0.c.b16.cont [6/8] %v826_v48, 128 }
 0x123   : > { %2729 = vmatmul.mubr.msk.bf16.gmra.mrb[8].mxu0 %vm984_vm12, %v2980_v61  ;;  %2805 = vmatpush3.bf16.msra.mxu1 %v2993_v50 }
 0x124   : > { %2732 = vmatprep.mubr.msk.bf16.mxu0 %vm984_vm12, %v2981_v3  ;;  %2761 = vmatpush3.bf16.msra.mxu0 %v836_v62 }
 0x125   : > { %2762 = vmatprep.subr.bf16.mxu0 %v837_v8  ;;  %1214 = vxpose.xlu1.c.b16.cont [5/8] %v825_v12, 128 }
 0x126   : > { %1200 = vxpose.xlu0.c.b16.cont [7/8] %v828_v1, 128  ;;  %2806 = vmatprep.subr.bf16.mxu1 %v2994_v51 }
 0x127   : > { %2807 = vmatpush3.bf16.msra.mxu1 %v2994_v51 }
 0x128   : > { %2763 = vmatpush3.bf16.msra.mxu0 %v837_v8 }
 0x129   : > { %2764 = vmatprep.subr.bf16.mxu0 %v838_v16  ;;  %1215 = vxpose.xlu1.c.b16.cont [6/8] %v827_v20, 128 }
 0x12a   : > { %1201 = vxpose.xlu0.c.b16.end [8/8] %v830_v11, 128 }
 0x12b   : > { %2733 = vmatmul.mubr.msk.bf16.gmra.mrb[12].mxu0 %vm984_vm12, %v2982_v15 }
 0x12c   : > { %2736 = vmatprep.mubr.msk.bf16.mxu0 %vm984_vm12, %v2983_v18  ;;  %2765 = vmatpush3.bf16.msra.mxu0 %v838_v16 }
 0x12d   : > { %2766 = vmatprep.subr.bf16.mxu0 %v839_v23  ;;  %1216 = vxpose.xlu1.c.b16.cont [7/8] %v829_v24, 128 }
 0x130   : > { %2767 = vmatpush3.bf16.msra.mxu0 %v839_v23 }
 0x131   : > { %1217 = vxpose.xlu1.c.b16.end [8/8] %v831_v33, 128 }
 0x133   : > { %2737 = vmatmul.mubr.msk.bf16.gmra.mrb[16].mxu0 %vm984_vm12, %v2984_v28 }
 0x134   : > { %2740 = vmatprep.mubr.msk.bf16.mxu0 %vm984_vm12, %v2985_v30 }
 0x13b   : > { %2741 = vmatmul.mubr.msk.bf16.gmra.mrb[20].mxu0 %vm984_vm12, %v2986_v63 }
 0x174   : > { %v1202_v34 = vpop.trf.xlu0 }
 0x175   : > { %2768 = vmatprep.mubr.bf16.mxu0 %v1202_v34 }
 0x178   : > { %v1203_v35 = vpop.trf.xlu0 }
 0x179   : > { %2769 = vmatmul.mubr.bf16.vlgmr.msra.gmra.mrb[0].mxu0 %v1203_v35 }
 0x17b   : > { %v1218_v38 = vpop.trf.xlu1 }
 0x17c   : > { %v1204_v36 = vpop.trf.xlu0 }
 0x17d   : > { %2772 = vmatprep.mubr.bf16.mxu0 %v1204_v36 }
 0x17f   : > { %v1219_v41 = vpop.trf.xlu1 }
 0x180   : > { %v1205_v37 = vpop.trf.xlu0 }
 0x181   : > { %2773 = vmatmul.mubr.bf16.gmra.mrb[4].mxu0 %v1205_v37 }
 0x183   : > { %v1220_v43 = vpop.trf.xlu1 }
 0x184   : > { %v1206_v39 = vpop.trf.xlu0 }
 0x185   : > { %2776 = vmatprep.mubr.bf16.mxu0 %v1206_v39 }
 0x187   : > { %v1221_v45 = vpop.trf.xlu1 }
 0x188   : > { %v1207_v40 = vpop.trf.xlu0 }
 0x189   : > { %2777 = vmatmul.mubr.bf16.gmra.mrb[8].mxu0 %v1207_v40 }
 0x18b   : > { %v1222_v46 = vpop.trf.xlu1 }
 0x18c   : > { %v1208_v42 = vpop.trf.xlu0 }
 0x18d   : > { %2780 = vmatprep.mubr.bf16.mxu0 %v1208_v42 }
 0x18f   : > { %v1223_v47 = vpop.trf.xlu1 }
 0x190   : > { %v1209_v44 = vpop.trf.xlu0 }
 0x191   : > { %2781 = vmatmul.mubr.bf16.gmra.mrb[12].mxu0 %v1209_v44 }
 0x192   : > { %2784 = vmatprep.mubr.bf16.mxu0 %v1218_v38 }
 0x193   : > { %v1224_v48 = vpop.trf.xlu1 }
 0x197   : > { %v1225_v49 = vpop.trf.xlu1 }
 0x199   : > { %2785 = vmatmul.mubr.bf16.gmra.mrb[16].mxu0 %v1219_v41 }
 0x19a   : > { %2788 = vmatprep.mubr.bf16.mxu0 %v1220_v43 }
 0x1a1   : > { %2789 = vmatmul.mubr.bf16.gmra.mrb[20].mxu0 %v1221_v45 }
 0x1a2   : > { %2792 = vmatprep.mubr.bf16.mxu0 %v1222_v46 }
 0x1a9   : > { %2793 = vmatmul.mubr.bf16.gmra.mrb[24].mxu0 %v1223_v47 }
 0x1aa   : > { %2796 = vmatprep.mubr.bf16.mxu0 %v1224_v48 }
 0x1b1   : > { %2797 = vmatmul.mubr.bf16.gmra.mrb[28].mxu0 %v1225_v49 }
 0x1e9   : > { %v3467_v52 = vpop.f32.mrb[0].mxu1 }
 0x1ea   : > { %v3469_v53 = vpop.f32.mrb[1].mxu1 }
 0x1eb   : > { %v3471_v61 = vpop.f32.mrb[2].mxu1 }
 0x1ec   : > { %v3473_v62 = vpop.f32.mrb[3].mxu1 }
 0x1f1   : > { %v3475_v0 = vpop.f32.mrb[4].mxu1 }
 0x1f2   : > { %v3477_v1 = vpop.f32.mrb[5].mxu1 }
 0x1f3   : > { %v3479_v3 = vpop.f32.mrb[6].mxu1 }
 0x1f4   : > { %v3481_v4 = vpop.f32.mrb[7].mxu1 }
 0x24c   : > { %v2770_v6 = vpop.f32.mrb[0].mxu0 }
 0x24d   : > { %v1394_v9 = vadd.f32 %v2770_v6, %v3486_v5  ;;  %v1260_v10 = vpop.f32.mrb[1].mxu0 }
 0x24e   : > { %v1392_v7 = vadd.f32 %v3486_v5, %v1260_v10  ;;  %v2771_v8 = vpop.f32.mrb[2].mxu0 }
 0x24f   : > { %v1395_v11 = vadd.f32 %v2771_v8, %v3486_v5  ;;  %v1263_v12 = vpop.f32.mrb[3].mxu0  ;;  %v1426_v14 = vmax.f32 %v1394_v9, 0.0 }
 0x250   : > { %v1393_v13 = vadd.f32 %v3486_v5, %v1263_v12  ;;  %v1424_v16 = vmax.f32 %v1392_v7, 0.0 }
 0x251   : > { %v1427_v15 = vmax.f32 %v1395_v11, 0.0 }
 0x252   : > { %v1425_v17 = vmax.f32 %v1393_v13, 0.0 }
 0x253   : > { %v1457_v18 = vpack.c.bf16 %v1427_v15, %v1426_v14 }
 0x254   : > { %v1456_v19 = vpack.c.bf16 %v1425_v17, %v1424_v16  ;;  %v2774_v20 = vpop.f32.mrb[4].mxu0 }
 0x255   : > { %v1398_v21 = vadd.f32 %v2774_v20, %v3486_v5  ;;  %v1276_v22 = vpop.f32.mrb[5].mxu0 }
 0x256   : > { %v1396_v23 = vadd.f32 %v3486_v5, %v1276_v22  ;;  %v2775_v24 = vpop.f32.mrb[6].mxu0  ;;  %2808 = vmatprep.mubr.msk.bf16.mxu1 %vm984_vm12, %v1456_v19 }
 0x257   : > { %v1399_v26 = vadd.f32 %v2775_v24, %v3486_v5  ;;  %v1279_v27 = vpop.f32.mrb[7].mxu0  ;;  %2809 = vmatmul.mubr.msk.bf16.vlgmr.msra.gmra.mrb[8].mxu1 %vm984_vm12, %v1457_v18  ;;  %v1430_v29 = vmax.f32 %v1398_v21, 0.0 }
 0x258   : > { %v1397_v28 = vadd.f32 %v3486_v5, %v1279_v27  ;;  %v1428_v32 = vmax.f32 %v1396_v23, 0.0 }
 0x259   : > { %v1431_v30 = vmax.f32 %v1399_v26, 0.0 }
 0x25a   : > { %v1429_v33 = vmax.f32 %v1397_v28, 0.0 }
 0x25b   : > { %v1459_v63 = vpack.c.bf16 %v1431_v30, %v1430_v29 }
 0x25c   : > { %v1458_v34 = vpack.c.bf16 %v1429_v33, %v1428_v32  ;;  %v2778_v35 = vpop.f32.mrb[8].mxu0 }
 0x25d   : > { %v1402_v36 = vadd.f32 %v2778_v35, %v3486_v5  ;;  %v1292_v37 = vpop.f32.mrb[9].mxu0 }
 0x25e   : > { %v1400_v38 = vadd.f32 %v3486_v5, %v1292_v37  ;;  %v2779_v39 = vpop.f32.mrb[10].mxu0  ;;  %2812 = vmatprep.mubr.msk.bf16.mxu1 %vm984_vm12, %v1458_v34 }
 0x25f   : > { %v1403_v40 = vadd.f32 %v2779_v39, %v3486_v5  ;;  %v1295_v41 = vpop.f32.mrb[11].mxu0  ;;  %2813 = vmatmul.mubr.msk.bf16.gmra.mrb[12].mxu1 %vm984_vm12, %v1459_v63  ;;  %v1434_v43 = vmax.f32 %v1402_v36, 0.0 }
 0x260   : > { %v1401_v42 = vadd.f32 %v3486_v5, %v1295_v41  ;;  %v1432_v45 = vmax.f32 %v1400_v38, 0.0 }
 0x261   : > { %v1435_v44 = vmax.f32 %v1403_v40, 0.0 }
 0x262   : > { %v1433_v46 = vmax.f32 %v1401_v42, 0.0 }
 0x263   : > { %v1461_v47 = vpack.c.bf16 %v1435_v44, %v1434_v43 }
 0x264   : > { %v1460_v48 = vpack.c.bf16 %v1433_v46, %v1432_v45  ;;  %v2782_v49 = vpop.f32.mrb[12].mxu0 }
 0x265   : > { %v1406_v50 = vadd.f32 %v2782_v49, %v3486_v5  ;;  %v1308_v51 = vpop.f32.mrb[13].mxu0 }
 0x266   : > { %v1404_v6 = vadd.f32 %v3486_v5, %v1308_v51  ;;  %v2783_v9 = vpop.f32.mrb[14].mxu0  ;;  %2816 = vmatprep.mubr.msk.bf16.mxu1 %vm984_vm12, %v1460_v48 }
 0x267   : > { %v1407_v10 = vadd.f32 %v2783_v9, %v3486_v5  ;;  %v1311_v7 = vpop.f32.mrb[15].mxu0  ;;  %2817 = vmatmul.mubr.msk.bf16.gmra.mrb[16].mxu1 %vm984_vm12, %v1461_v47  ;;  %v1438_v11 = vmax.f32 %v1406_v50, 0.0 }
 0x268   : > { %v1405_v8 = vadd.f32 %v3486_v5, %v1311_v7  ;;  %v1436_v13 = vmax.f32 %v1404_v6, 0.0 }
 0x269   : > { %v1439_v12 = vmax.f32 %v1407_v10, 0.0 }
 0x26a   : > { %v1437_v14 = vmax.f32 %v1405_v8, 0.0 }
 0x26b   : > { %v1463_v15 = vpack.c.bf16 %v1439_v12, %v1438_v11 }
 0x26c   : > { %v1462_v16 = vpack.c.bf16 %v1437_v14, %v1436_v13  ;;  %v2786_v17 = vpop.f32.mrb[16].mxu0 }
 0x26d   : > { %v1410_v18 = vadd.f32 %v2786_v17, %v3486_v5  ;;  %v1324_v19 = vpop.f32.mrb[17].mxu0 }
 0x26e   : > { %v1408_v20 = vadd.f32 %v3486_v5, %v1324_v19  ;;  %v2787_v21 = vpop.f32.mrb[18].mxu0  ;;  %2820 = vmatprep.mubr.msk.bf16.mxu1 %vm984_vm12, %v1462_v16 }
 0x26f   : > { %v1411_v22 = vadd.f32 %v2787_v21, %v3486_v5  ;;  %v1327_v23 = vpop.f32.mrb[19].mxu0  ;;  %2821 = vmatmul.mubr.msk.bf16.gmra.mrb[20].mxu1 %vm984_vm12, %v1463_v15  ;;  %v1442_v26 = vmax.f32 %v1410_v18, 0.0 }
 0x270   : > { %v1409_v24 = vadd.f32 %v3486_v5, %v1327_v23  ;;  %v1440_v28 = vmax.f32 %v1408_v20, 0.0 }
 0x271   : > { %v1443_v27 = vmax.f32 %v1411_v22, 0.0 }
 0x272   : > { %v1441_v29 = vmax.f32 %v1409_v24, 0.0 }
 0x273   : > { %v1465_v30 = vpack.c.bf16 %v1443_v27, %v1442_v26 }
 0x274   : > { %v1464_v32 = vpack.c.bf16 %v1441_v29, %v1440_v28  ;;  %v2790_v33 = vpop.f32.mrb[20].mxu0 }
 0x275   : > { %v1414_v63 = vadd.f32 %v2790_v33, %v3486_v5  ;;  %v1340_v34 = vpop.f32.mrb[21].mxu0 }
 0x276   : > { %v1412_v35 = vadd.f32 %v3486_v5, %v1340_v34  ;;  %v2791_v36 = vpop.f32.mrb[22].mxu0  ;;  %2824 = vmatprep.mubr.msk.bf16.mxu1 %vm984_vm12, %v1464_v32 }
 0x277   : > { %v1415_v37 = vadd.f32 %v2791_v36, %v3486_v5  ;;  %v1343_v38 = vpop.f32.mrb[23].mxu0  ;;  %2825 = vmatmul.mubr.msk.bf16.gmra.mrb[24].mxu1 %vm984_vm12, %v1465_v30  ;;  %v1446_v40 = vmax.f32 %v1414_v63, 0.0 }
 0x278   : > { %v1413_v39 = vadd.f32 %v3486_v5, %v1343_v38  ;;  %v1444_v42 = vmax.f32 %v1412_v35, 0.0 }
 0x279   : > { %v1447_v41 = vmax.f32 %v1415_v37, 0.0 }
 0x27a   : > { %v1445_v43 = vmax.f32 %v1413_v39, 0.0 }
 0x27b   : > { %v1467_v44 = vpack.c.bf16 %v1447_v41, %v1446_v40 }
 0x27c   : > { %v1466_v45 = vpack.c.bf16 %v1445_v43, %v1444_v42  ;;  %v2794_v46 = vpop.f32.mrb[24].mxu0 }
 0x27d   : > { %v1365_v47 = vadd.f32 %v2794_v46, %v3467_v52  ;;  %v1356_v48 = vpop.f32.mrb[25].mxu0 }
 0x27e   : > { %v1357_v49 = vadd.f32 %v1356_v48, %v3469_v53  ;;  %v2795_v50 = vpop.f32.mrb[26].mxu0  ;;  %2828 = vmatprep.mubr.msk.bf16.mxu1 %vm984_vm12, %v1466_v45 }
 0x27f   : > { %v1418_v51 = vadd.f32 %v3486_v5, %v1365_v47  ;;  %v1368_v6 = vadd.f32 %v2795_v50, %v3471_v61  ;;  %v1359_v9 = vpop.f32.mrb[27].mxu0  ;;  %2829 = vmatmul.mubr.msk.bf16.gmra.mrb[28].mxu1 %vm984_vm12, %v1467_v44 }
 0x280   : > { %v1416_v10 = vadd.f32 %v3486_v5, %v1357_v49  ;;  %v1360_v7 = vadd.f32 %v1359_v9, %v3473_v62 }
 0x281   : > { %v1419_v8 = vadd.f32 %v3486_v5, %v1368_v6  ;;  %v1450_v11 = vmax.f32 %v1418_v51, 0.0 }
 0x282   : > { %v1417_v52 = vadd.f32 %v3486_v5, %v1360_v7  ;;  %v1448_v12 = vmax.f32 %v1416_v10, 0.0 }
 0x283   : > { %v1451_v53 = vmax.f32 %v1419_v8, 0.0 }
 0x284   : > { %v1449_v13 = vmax.f32 %v1417_v52, 0.0  ;;  %v2798_v14 = vpop.f32.mrb[28].mxu0 }
 0x285   : > { %v1469_v15 = vpack.c.bf16 %v1451_v53, %v1450_v11  ;;  %v1381_v16 = vadd.f32 %v2798_v14, %v3475_v0  ;;  %v1372_v61 = vpop.f32.mrb[29].mxu0 }
 0x286   : > { %v1468_v17 = vpack.c.bf16 %v1449_v13, %v1448_v12  ;;  %v1373_v18 = vadd.f32 %v1372_v61, %v3477_v1  ;;  %v2799_v19 = vpop.f32.mrb[30].mxu0 }
 0x287   : > { %v1422_v20 = vadd.f32 %v3486_v5, %v1381_v16  ;;  %v1384_v62 = vadd.f32 %v2799_v19, %v3479_v3  ;;  %v1375_v21 = vpop.f32.mrb[31].mxu0  ;;  %v3021_v3 = vmov 1.0|1.0  }
 0x288   : > { %v1420_v22 = vadd.f32 %v3486_v5, %v1373_v18  ;;  %v1376_v23 = vadd.f32 %v1375_v21, %v3481_v4  ;;  %2832 = vmatprep.mubr.msk.bf16.mxu1 %vm984_vm12, %v1468_v17 }
 0x289   : > { %v1423_v24 = vadd.f32 %v3486_v5, %v1384_v62  ;;  %2833 = vmatmul.mubr.msk.bf16.gmra.mrb[32].mxu1 %vm984_vm12, %v1469_v15  ;;  %v1454_v26 = vmax.f32 %v1422_v20, 0.0 }
 0x28a   : > { %v1421_v0 = vadd.f32 %v3486_v5, %v1376_v23  ;;  %v1452_v27 = vmax.f32 %v1420_v22, 0.0  ;;  %v3550_v5 = vld [vmem:[%s3794_s10 + $0x1] ss:$0 sm:$0xff] }
 0x28b   : > { %v1455_v1 = vmax.f32 %v1423_v24, 0.0 }
 0x28c   : > { %v1453_v28 = vmax.f32 %v1421_v0, 0.0 }
 0x28d   : > { %v1471_v29 = vpack.c.bf16 %v1455_v1, %v1454_v26 }
 0x28e   : > { %v1470_v30 = vpack.c.bf16 %v1453_v28, %v1452_v27 }
 0x290   : > { %2836 = vmatprep.mubr.msk.bf16.mxu1 %vm984_vm12, %v1470_v30 }
 0x291   : > { %2837 = vmatmul.mubr.msk.bf16.gmra.mrb[36].mxu1 %vm984_vm12, %v1471_v29 }
 0x292   : > { %2475 = vmatprep.mubr.msk.bf16.mxu1 %vm3340_vm10, %v3021_v3  ;;  %vm2478_vm10 = vmpackc.low %vm759_vm2, %vm757_vm1 }
 0x293   : > { %vm2482_vm1 = vmpackc.low %vm763_vm15, %vm761_vm11  ;;  %vm3808_vm11 = vcmp.eq.s32.totalorder %v3233_v59, %v3224_v56  ;;  %vm3809_vm15 = vcmp.eq.s32.totalorder %v3236_v60, %v3224_v56 }
 0x294   : > { %vm2488_vm7 = vmpackc.low %vm3809_vm15, %vm3808_vm11 }
 0x32a   : > { %v2810_v4 = vpop.f32.mrb[8].mxu1 }
 0x32b   : > { %v1591_v32 = vpop.f32.mrb[9].mxu1  ;;  %v1600_v63 = vadd.f32 %v2810_v4, %v3550_v5 }
 0x32c   : > { %v2811_v33 = vpop.f32.mrb[10].mxu1  ;;  %v1592_v36 = vadd.f32 %v3550_v5, %v1591_v32 }
 0x32d   : > { %v1603_v34 = vadd.f32 %v2811_v33, %v3550_v5  ;;  %v1594_v35 = vpop.f32.mrb[11].mxu1 }
 0x32e   : > { %v1595_v37 = vadd.f32 %v3550_v5, %v1594_v35 }
 0x32f   : > { %v1727_v38 = vpack.c.bf16 %v1603_v34, %v1600_v63 }
 0x330   : > { %v1726_v31 = vpack.c.bf16 %v1595_v37, %v1592_v36 }
 0x332   : > { %v2814_v39 = vpop.f32.mrb[12].mxu1 }
 0x333   : > { %v1607_v40 = vpop.f32.mrb[13].mxu1  ;;  %v1616_v42 = vadd.f32 %v2814_v39, %v3550_v5 }
 0x334   : > { %v2815_v41 = vpop.f32.mrb[14].mxu1  ;;  %v1608_v45 = vadd.f32 %v3550_v5, %v1607_v40 }
 0x335   : > { %v1619_v43 = vadd.f32 %v2815_v41, %v3550_v5  ;;  %v1610_v44 = vpop.f32.mrb[15].mxu1 }
 0x336   : > { %v1611_v46 = vadd.f32 %v3550_v5, %v1610_v44 }
 0x337   : > { %v1729_v47 = vpack.c.bf16 %v1619_v43, %v1616_v42 }
 0x338   : > { %v1728_v48 = vpack.c.bf16 %v1611_v46, %v1608_v45 }
 0x33a   : > { %v2818_v49 = vpop.f32.mrb[16].mxu1 }
 0x33b   : > { %v1623_v50 = vpop.f32.mrb[17].mxu1  ;;  %v3561_v6 = vadd.f32 %v2818_v49, %v3550_v5 }
 0x33c   : > { %v2819_v51 = vpop.f32.mrb[18].mxu1  ;;  %v1624_v7 = vadd.f32 %v3550_v5, %v1623_v50 }
 0x33d   : > { %v3564_v9 = vadd.f32 %v2819_v51, %v3550_v5  ;;  %v1626_v10 = vpop.f32.mrb[19].mxu1 }
 0x33e   : > { %v1627_v8 = vadd.f32 %v3550_v5, %v1626_v10 }
 0x33f   : > { %v1731_v52 = vpack.c.bf16 %v3564_v9, %v3561_v6 }
 0x340   : > { %v1730_v11 = vpack.c.bf16 %v1627_v8, %v1624_v7 }
 0x342   : > { %v2822_v53 = vpop.f32.mrb[20].mxu1 }
 0x343   : > { %v1639_v12 = vpop.f32.mrb[21].mxu1  ;;  %v1648_v14 = vadd.f32 %v2822_v53, %v3550_v5  ;;  %v1720_v53 = vld [vmem:[#allocation3 + $0x10] sm:$0xff] }
 0x344   : > { %v2823_v13 = vpop.f32.mrb[22].mxu1  ;;  %v1640_v61 = vadd.f32 %v3550_v5, %v1639_v12 }
 0x345   : > { %v1651_v15 = vadd.f32 %v2823_v13, %v3550_v5  ;;  %v1642_v16 = vpop.f32.mrb[23].mxu1 }
 0x346   : > { %v1643_v17 = vadd.f32 %v3550_v5, %v1642_v16 }
 0x347   : > { %v1733_v18 = vpack.c.bf16 %v1651_v15, %v1648_v14 }
 0x348   : > { %v1732_v19 = vpack.c.bf16 %v1643_v17, %v1640_v61  ;;  %v1722_v17 = vld [vmem:[#allocation3 + $0x20] sm:$0xff] }
 0x34a   : > { %v2826_v20 = vpop.f32.mrb[24].mxu1 }
 0x34b   : > { %v1655_v62 = vpop.f32.mrb[25].mxu1  ;;  %v1664_v22 = vadd.f32 %v2826_v20, %v3550_v5 }
 0x34c   : > { %v2827_v21 = vpop.f32.mrb[26].mxu1  ;;  %v1656_v0 = vadd.f32 %v3550_v5, %v1655_v62  ;;  %v1723_v62 = vld [vmem:[#allocation3 + $0x28] sm:$0xff] }
 0x34d   : > { %v1667_v23 = vadd.f32 %v2827_v21, %v3550_v5  ;;  %v1658_v24 = vpop.f32.mrb[27].mxu1 }
 0x34e   : > { %v1659_v26 = vadd.f32 %v3550_v5, %v1658_v24 }
 0x34f   : > { %v1735_v1 = vpack.c.bf16 %v1667_v23, %v1664_v22 }
 0x350   : > { %v1734_v27 = vpack.c.bf16 %v1659_v26, %v1656_v0  ;;  %v1724_v26 = vld [vmem:[#allocation3 + $0x30] sm:$0xff] }
 0x352   : > { %v2830_v28 = vpop.f32.mrb[28].mxu1  ;;  %2608 = vmatprep.subr.bf16.mxu1 %v1734_v27 }
 0x353   : > { %v1671_v29 = vpop.f32.mrb[29].mxu1  ;;  %2609 = vmatpush3.bf16.msra.mxu1 %v1726_v31  ;;  %v1680_v4 = vadd.f32 %v2830_v28, %v3550_v5 }
 0x354   : > { %v2831_v30 = vpop.f32.mrb[30].mxu1  ;;  %2610 = vmatprep.subr.bf16.mxu1 %v1735_v1  ;;  %v1672_v63 = vadd.f32 %v3550_v5, %v1671_v29  ;;  %v1725_v29 = vld [vmem:[#allocation3 + $0x38] sm:$0xff] }
 0x355   : > { %v1683_v32 = vadd.f32 %v2831_v30, %v3550_v5  ;;  %v1674_v33 = vpop.f32.mrb[31].mxu1 }
 0x356   : > { %v1675_v34 = vadd.f32 %v3550_v5, %v1674_v33 }
 0x357   : > { %v1737_v35 = vpack.c.bf16 %v1683_v32, %v1680_v4  ;;  %2611 = vmatpush3.bf16.msra.mxu1 %v1727_v38 }
 0x358   : > { %v1736_v36 = vpack.c.bf16 %v1675_v34, %v1672_v63  ;;  %v2995_v63 = vld [vmem:[%s3790_s6 + $0x20] sm:$0xff] (!%p2490_p6)   ;;  %v2996_v34 = vld [vmem:[%s3790_s6 + $0x28] sm:$0xff] (!%p2490_p6)  }
 0x359   : > { %2840 = vmatprep.subr.bf16.mxu0 (!%p2490_p6), %v2995_v63 }
 0x35a   : > { %2612 = vmatprep.subr.bf16.mxu1 %v1736_v36  ;;  %2841 = vmatpush3.bf16.msra.mxu0 (!%p2490_p6), %v2995_v63 }
 0x35b   : > { %2613 = vmatpush3.bf16.msra.mxu1 %v1728_v48  ;;  %2842 = vmatprep.subr.bf16.mxu0 (!%p2490_p6), %v2996_v34 }
 0x35c   : > { %v2834_v37 = vpop.f32.mrb[32].mxu1  ;;  %2614 = vmatprep.subr.bf16.mxu1 %v1737_v35  ;;  %v2997_v35 = vld [vmem:[%s3790_s6 + $0x30] sm:$0xff] (!%p2490_p6)  }
 0x35d   : > { %v1687_v39 = vpop.f32.mrb[33].mxu1  ;;  %v1696_v40 = vadd.f32 %v2834_v37, %v3550_v5 }
 0x35e   : > { %v2835_v31 = vpop.f32.mrb[34].mxu1  ;;  %v1688_v43 = vadd.f32 %v3550_v5, %v1687_v39  ;;  %2843 = vmatpush3.bf16.msra.mxu0 (!%p2490_p6), %v2996_v34 }
 0x35f   : > { %v1699_v41 = vadd.f32 %v2835_v31, %v3550_v5  ;;  %v1690_v42 = vpop.f32.mrb[35].mxu1  ;;  %2615 = vmatpush3.bf16.msra.mxu1 %v1729_v47  ;;  %2844 = vmatprep.subr.bf16.mxu0 (!%p2490_p6), %v2997_v35  ;;  %v2998_v31 = vld [vmem:[%s3790_s6 + $0x38] sm:$0xff] (!%p2490_p6)  }
 0x360   : > { %v1691_v44 = vadd.f32 %v3550_v5, %v1690_v42  ;;  %v2999_v42 = vld [vmem:[%s3790_s6] sm:$0xff] (!%p2490_p6)  }
 0x361   : > { %v1739_v45 = vpack.c.bf16 %v1699_v41, %v1696_v40 }
 0x362   : > { %v1738_v46 = vpack.c.bf16 %v1691_v44, %v1688_v43  ;;  %2845 = vmatpush3.bf16.msra.mxu0 (!%p2490_p6), %v2997_v35 }
 0x363   : > { %2846 = vmatprep.subr.bf16.mxu0 (!%p2490_p6), %v2998_v31 }
 0x364   : > { %v2838_v38 = vpop.f32.mrb[36].mxu1  ;;  %2616 = vmatprep.subr.bf16.mxu1 %v1738_v46  ;;  %v3000_v46 = vld [vmem:[%s3790_s6 + $0x8] sm:$0xff] (!%p2490_p6)  }
 0x365   : > { %v1703_v49 = vpop.f32.mrb[37].mxu1  ;;  %2617 = vmatpush3.bf16.msra.mxu1 %v1730_v11  ;;  %v1712_v50 = vadd.f32 %v2838_v38, %v3550_v5  ;;  %v3003_v38 = vld [vmem:[%s3791_s7] sm:$0xff] (!%p2490_p6)  }
 0x366   : > { %v2839_v48 = vpop.f32.mrb[38].mxu1  ;;  %2618 = vmatprep.subr.bf16.mxu1 %v1739_v45  ;;  %v1704_v9 = vadd.f32 %v3550_v5, %v1703_v49  ;;  %2847 = vmatpush3.bf16.msra.mxu0 (!%p2490_p6), %v2998_v31 }
 0x367   : > { %v1715_v51 = vadd.f32 %v2839_v48, %v3550_v5  ;;  %v1706_v6 = vpop.f32.mrb[39].mxu1  ;;  %v3004_v48 = vld [vmem:[%s3791_s7 + $0x8] sm:$0xff] (!%p2490_p6)   ;;  %2856 = vmatprep.subr.bf16.mxu0 (!%p2490_p6), %v2999_v42 }
 0x368   : > { %v1707_v47 = vadd.f32 %v3550_v5, %v1706_v6  ;;  %v3001_v6 = vld [vmem:[%s3790_s6 + $0x10] sm:$0xff] (!%p2490_p6)  }
 0x369   : > { %v1741_v10 = vpack.c.bf16 %v1715_v51, %v1712_v50  ;;  %2619 = vmatpush3.bf16.msra.mxu1 %v1731_v52 }
 0x36a   : > { %v1740_v7 = vpack.c.bf16 %v1707_v47, %v1704_v9  ;;  %v3674_v9 = vld [vmem:[#allocation2] sm:$0xff] (!%p2490_p6)  ;;  %v3676_v47 = vld [vmem:[#allocation2 + $0x8] sm:$0xff] (!%p2490_p6) }
 0x36c   : > { %2620 = vmatprep.subr.bf16.mxu1 %v1740_v7  ;;  %v1835_v7 = vpack.c.bf16 (!%p2490_p6), %v3676_v47, %v3674_v9 }
 0x36d   : > { %2621 = vmatpush3.bf16.msra.mxu1 %v1732_v19 }
 0x36e   : > { %2622 = vmatprep.subr.bf16.mxu1 %v1741_v10 }
 0x371   : > { %2623 = vmatpush3.bf16.msra.mxu1 %v1733_v18 }
 0x372   : > { %2872 = vmatprep.subr.bf16.mxu1 (!%p2490_p6), %v3003_v38 }
 0x374   : > { %2477 = vmatmul.mubr.msk.bf16.vlgmr.msra.gmra.mrb[40].mxu1 %vm3253_vm5, %v3021_v3  ;;  %vm3805_vm5 = vcmp.eq.s32.totalorder %v3230_v58, %v3224_v56 }
 0x375   : > { %2479 = vmatprep.mubr.msk.bf16.mxu1 %vm2478_vm10, %v3021_v3  ;;  %vm2484_vm2 = vmpackc.low %vm3805_vm5, %vm760_vm6  ;;  %2873 = vmatpush3.bf16.msra.mxu1 (!%p2490_p6), %v3003_v38  ;;  %vm2336_vm6 = vcmask (!%p2490_p6), 64512  }
 0x376   : > { %2874 = vmatprep.subr.bf16.mxu1 (!%p2490_p6), %v3004_v48 }
 0x379   : > { %2875 = vmatpush3.bf16.msra.mxu1 (!%p2490_p6), %v3004_v48 }
 0x37c   : > { %2481 = vmatmul.mubr.msk.bf16.gmra.mrb[44].mxu1 %vm2480_vm0, %v3021_v3 }
 0x37d   : > { %2483 = vmatprep.mubr.msk.bf16.mxu1 %vm2482_vm1, %v3021_v3 }
 0x384   : > { %2485 = vmatmul.mubr.msk.bf16.gmra.mrb[48].mxu1 %vm2484_vm2, %v3021_v3 }
 0x385   : > { %2487 = vmatprep.mubr.msk.bf16.mxu1 %vm2486_vm13, %v3021_v3 }
 0x38c   : > { %2489 = vmatmul.mubr.msk.bf16.gmra.mrb[52].mxu1 %vm2488_vm7, %v3021_v3  ;;  %v1721_v3 = vld [vmem:[#allocation3 + $0x18] sm:$0xff] }
 0x447   : > { %v2624_v54 = vpop.f32.mrb[40].mxu1 }
 0x448   : > { %v2625_v57 = vpop.f32.mrb[41].mxu1 }
 0x449   : > { %v2626_v58 = vadd.f32 %v2625_v57, %v2624_v54  ;;  %v2627_v2 = vpop.f32.mrb[42].mxu1  ;;  %v3002_v54 = vld [vmem:[%s3790_s6 + $0x18] sm:$0xff] (!%p2490_p6)  }
 0x44a   : > { %v2628_v5 = vpop.f32.mrb[43].mxu1  ;;  %v3687_v57 = vld [vmem:[#allocation2 + $0x18] sm:$0xff] (!%p2490_p6) }
 0x44b   : > { %v1807_v8 = vadd.f32 %v2626_v58, %v1718_v55  ;;  %v2629_v52 = vadd.f32 %v2628_v5, %v2627_v2  ;;  %v3685_v55 = vld [vmem:[#allocation2 + $0x10] sm:$0xff] (!%p2490_p6)  ;;  %v3689_v58 = vld [vmem:[#allocation2 + $0x20] sm:$0xff] (!%p2490_p6)  ;;  %v3691_v2 = vld [vmem:[#allocation2 + $0x28] sm:$0xff] (!%p2490_p6) }
 0x44c   : > { %v1837_v5 = vpack.c.bf16 (!%p2490_p6), %v3691_v2, %v3689_v58 }
 0x44d   : > { %1815 = vst.msk [vmem:[#allocation3] sm:$0xff] %vm984_vm12, %v1807_v8  ;;  %v1808_v11 = vadd.f32 %v2629_v52, %v1719_v25  ;;  %v1836_v25 = vpack.c.bf16 (!%p2490_p6), %v3687_v57, %v3685_v55  ;;  %v3699_v8 = vld [vmem:[#allocation2 + $0x30] sm:$0xff] (!%p2490_p6)  ;;  %v3701_v52 = vld [vmem:[#allocation2 + $0x38] sm:$0xff] (!%p2490_p6) }
 0x44f   : > { %1816 = vst.msk [vmem:[#allocation3 + $0x8] sm:$0xff] %vm984_vm12, %v1808_v11  ;;  %v2630_v59 = vpop.f32.mrb[44].mxu1  ;;  %v1838_v11 = vpack.c.bf16 (!%p2490_p6), %v3701_v52, %v3699_v8 }
 0x450   : > { %v2631_v56 = vpop.f32.mrb[45].mxu1 }
 0x451   : > { %v2632_v60 = vadd.f32 %v2631_v56, %v2630_v59  ;;  %v2633_v12 = vpop.f32.mrb[46].mxu1  ;;  %v3005_v59 = vld [vmem:[%s3791_s7 + $0x10] sm:$0xff] (!%p2490_p6)   ;;  %v3007_v56 = vld [vmem:[%s3792_s8] sm:$0xff] (!%p2490_p6)  }
 0x452   : > { %v2634_v13 = vpop.f32.mrb[47].mxu1  ;;  %2876 = vmatprep.subr.bf16.mxu1 (!%p2490_p6), %v3005_v59 }
 0x453   : > { %v1809_v14 = vadd.f32 %v2632_v60, %v1720_v53  ;;  %v2635_v15 = vadd.f32 %v2634_v13, %v2633_v12  ;;  %2877 = vmatpush3.bf16.msra.mxu1 (!%p2490_p6), %v3005_v59  ;;  %v3006_v53 = vld [vmem:[%s3791_s7 + $0x18] sm:$0xff] (!%p2490_p6)   ;;  %v2507_v60 = vld [vmem:[%s3794_s10 + $0x2] ss:$0 sm:$0xff] (!%p2490_p6) }
 0x454   : > { %v1847_v36 = vld [vmem:[#allocation3] sm:$0xff] (!%p2490_p6)  ;;  %2878 = vmatprep.subr.bf16.mxu1 (!%p2490_p6), %v3006_v53 }
 0x455   : > { %1817 = vst.msk [vmem:[#allocation3 + $0x10] sm:$0xff] %vm984_vm12, %v1809_v14  ;;  %v1810_v16 = vadd.f32 %v2635_v15, %v1721_v3 }
 0x456   : > { %v1848_v37 = vld [vmem:[#allocation3 + $0x8] sm:$0xff] (!%p2490_p6) }
 0x457   : > { %1818 = vst.msk [vmem:[#allocation3 + $0x18] sm:$0xff] %vm984_vm12, %v1810_v16  ;;  %v2636_v61 = vpop.f32.mrb[48].mxu1  ;;  %v1855_v39 = vpack.c.bf16 (!%p2490_p6), %v1848_v37, %v1847_v36  ;;  %2879 = vmatpush3.bf16.msra.mxu1 (!%p2490_p6), %v3006_v53  ;;  %v3009_v36 = vld [vmem:[%s3792_s8 + $0x10] sm:$0xff] (!%p2490_p6)   ;;  %v3010_v37 = vld [vmem:[%s3792_s8 + $0x18] sm:$0xff] (!%p2490_p6)  }
 0x458   : > { %v2637_v18 = vpop.f32.mrb[49].mxu1  ;;  %2888 = vmatprep.subr.bf16.mxu1 (!%p2490_p6), %v3007_v56 }
 0x459   : > { %v2638_v19 = vadd.f32 %v2637_v18, %v2636_v61  ;;  %v2639_v20 = vpop.f32.mrb[50].mxu1  ;;  %2848 = vmatprep.mubr.msk.bf16.mxu0 (!%p2490_p6), %vm984_vm12, %v1855_v39  ;;  %v2508_v39 = vld [vmem:[%s3794_s10 + $0x3] ss:$0 sm:$0xff] (!%p2490_p6) }
 0x45a   : > { %v2640_v21 = vpop.f32.mrb[51].mxu1 }
 0x45b   : > { %v1811_v22 = vadd.f32 %v2638_v19, %v1722_v17  ;;  %v2641_v23 = vadd.f32 %v2640_v21, %v2639_v20 }
 0x45c   : > { %v1849_v40 = vld [vmem:[#allocation3 + $0x10] sm:$0xff] (!%p2490_p6) }
 0x45d   : > { %1819 = vst.msk [vmem:[#allocation3 + $0x20] sm:$0xff] %vm984_vm12, %v1811_v22  ;;  %v1812_v24 = vadd.f32 %v2641_v23, %v1723_v62 }
 0x45e   : > { %v1850_v41 = vld [vmem:[#allocation3 + $0x18] sm:$0xff] (!%p2490_p6) }
 0x45f   : > { %1820 = vst.msk [vmem:[#allocation3 + $0x28] sm:$0xff] %vm984_vm12, %v1812_v24  ;;  %v2642_v0 = vpop.f32.mrb[52].mxu1  ;;  %v1856_v45 = vpack.c.bf16 (!%p2490_p6), %v1850_v41, %v1849_v40 }
 0x460   : > { %v2643_v1 = vpop.f32.mrb[53].mxu1 }
 0x461   : > { %v2644_v27 = vadd.f32 %v2643_v1, %v2642_v0  ;;  %v2645_v28 = vpop.f32.mrb[54].mxu1  ;;  %1826 = sbr.rel (%p2490_p6) target bundleno = 1815 (0x717), region = 72  ;;  %2849 = vmatmul.mubr.msk.bf16.vlgmr.msra.gmra.mrb[0].mxu0 (!%p2490_p6), %vm984_vm12, %v1856_v45 }
 0x462   : > { %v2646_v30 = vpop.f32.mrb[55].mxu1  ;;  %2857 = vmatpush3.bf16.msra.mxu0 (!%p2490_p6), %v2999_v42 }
 0x463   : > { %v1813_v4 = vadd.f32 %v2644_v27, %v1724_v26  ;;  %v2647_v32 = vadd.f32 %v2646_v30, %v2645_v28  ;;  %2858 = vmatprep.subr.bf16.mxu0 (!%p2490_p6), %v3000_v46  ;;  %v3008_v26 = vld [vmem:[%s3792_s8 + $0x8] sm:$0xff] (!%p2490_p6)  }
 0x464   : > { %v1851_v43 = vld [vmem:[#allocation3 + $0x20] sm:$0xff] (!%p2490_p6) }
 0x465   : > { %1821 = vst.msk [vmem:[#allocation3 + $0x30] sm:$0xff] %vm984_vm12, %v1813_v4  ;;  %v1814_v33 = vadd.f32 %v2647_v32, %v1725_v29 }
 0x466   : > { %v1852_v44 = vld [vmem:[#allocation3 + $0x28] sm:$0xff] (!%p2490_p6)  ;;  %2859 = vmatpush3.bf16.msra.mxu0 (!%p2490_p6), %v3000_v46 }
 0x467   : > { %1822 = vst.msk [vmem:[#allocation3 + $0x38] sm:$0xff] %vm984_vm12, %v1814_v33  ;;  %v1857_v49 = vpack.c.bf16 (!%p2490_p6), %v1852_v44, %v1851_v43  ;;  %2860 = vmatprep.subr.bf16.mxu0 (!%p2490_p6), %v3001_v6 }
 0x469   : > { %2852 = vmatprep.mubr.msk.bf16.mxu0 %vm984_vm12, %v1857_v49 }
 0x46a   : > { %2861 = vmatpush3.bf16.msra.mxu0 %v3001_v6 }
 0x46b   : > { %2862 = vmatprep.subr.bf16.mxu0 %v3002_v54 }
 0x46c   : > { %v1853_v50 = vld [vmem:[#allocation3 + $0x30] sm:$0xff] }
 0x46e   : > { %v1854_v51 = vld [vmem:[#allocation3 + $0x38] sm:$0xff]  ;;  %2863 = vmatpush3.bf16.msra.mxu0 %v3002_v54 }
 0x46f   : > { %v1858_v10 = vpack.c.bf16 %v1854_v51, %v1853_v50 }
 0x471   : > { %2853 = vmatmul.mubr.msk.bf16.gmra.mrb[4].mxu0 %vm984_vm12, %v1858_v10 }
 0x472   : > { %2864 = vmatprep.mubr.msk.bf16.mxu0 %vm984_vm12, %v1835_v7 }
 0x479   : > { %2865 = vmatmul.mubr.msk.bf16.vlgmr.msra.gmra.mrb[0].mxu0 %vm984_vm12, %v1836_v25 }
 0x47a   : > { %2868 = vmatprep.mubr.msk.bf16.mxu0 %vm984_vm12, %v1837_v5 }
 0x481   : > { %2869 = vmatmul.mubr.msk.bf16.gmra.mrb[4].mxu0 %vm984_vm12, %v1838_v11 }
 0x54c   : > { %v2866_v12 = vpop.f32.mrb[0].mxu0 }
 0x54d   : > { %v2076_v3 = vadd.f32 %v2866_v12, %v2507_v60  ;;  %v2038_v13 = vpop.f32.mrb[1].mxu0  ;;  %v2517_v12 = vld [vmem:[%s3793_s9] ss:$0 sm:$0xff] }
 0x54e   : > { %v2074_v14 = vadd.f32 %v2507_v60, %v2038_v13  ;;  %v2867_v15 = vpop.f32.mrb[2].mxu0 }
 0x54f   : > { %v2077_v16 = vadd.f32 %v2867_v15, %v2507_v60  ;;  %v2041_v61 = vpop.f32.mrb[3].mxu0  ;;  %v2084_v18 = vmax.f32 %v2076_v3, 0.0 }
 0x550   : > { %v2075_v17 = vadd.f32 %v2507_v60, %v2041_v61  ;;  %v2082_v20 = vmax.f32 %v2074_v14, 0.0 }
 0x551   : > { %v2085_v19 = vmax.f32 %v2077_v16, 0.0 }
 0x552   : > { %v2083_v62 = vmax.f32 %v2075_v17, 0.0 }
 0x553   : > { %v2091_v21 = vpack.c.bf16 %v2085_v19, %v2084_v18 }
 0x554   : > { %v2870_v22 = vpop.f32.mrb[4].mxu0  ;;  %v2090_v23 = vpack.c.bf16 %v2083_v62, %v2082_v20 }
 0x555   : > { %v2080_v24 = vadd.f32 %v2870_v22, %v2507_v60  ;;  %v2054_v0 = vpop.f32.mrb[5].mxu0 }
 0x556   : > { %v2078_v1 = vadd.f32 %v2507_v60, %v2054_v0  ;;  %v2871_v27 = vpop.f32.mrb[6].mxu0  ;;  %2880 = vmatprep.mubr.msk.bf16.mxu1 %vm984_vm12, %v2090_v23 }
 0x557   : > { %v2081_v28 = vadd.f32 %v2871_v27, %v2507_v60  ;;  %v2057_v29 = vpop.f32.mrb[7].mxu0  ;;  %2881 = vmatmul.mubr.msk.bf16.vlgmr.msra.gmra.mrb[0].mxu1 %vm984_vm12, %v2091_v21  ;;  %v2088_v4 = vmax.f32 %v2080_v24, 0.0 }
 0x558   : > { %v2079_v30 = vadd.f32 %v2507_v60, %v2057_v29  ;;  %2889 = vmatpush3.bf16.msra.mxu1 %v3007_v56  ;;  %v2086_v33 = vmax.f32 %v2078_v1, 0.0 }
 0x559   : > { %v2089_v32 = vmax.f32 %v2081_v28, 0.0  ;;  %2890 = vmatprep.subr.bf16.mxu1 %v3008_v26 }
 0x55a   : > { %v2087_v63 = vmax.f32 %v2079_v30, 0.0 }
 0x55b   : > { %v2093_v34 = vpack.c.bf16 %v2089_v32, %v2088_v4 }
 0x55c   : > { %v2092_v35 = vpack.c.bf16 %v2087_v63, %v2086_v33  ;;  %2891 = vmatpush3.bf16.msra.mxu1 %v3008_v26 }
 0x55d   : > { %2892 = vmatprep.subr.bf16.mxu1 %v3009_v36 }
 0x55e   : > { %2884 = vmatprep.mubr.msk.bf16.mxu1 %vm984_vm12, %v2092_v35 }
 0x55f   : > { %2885 = vmatmul.mubr.msk.bf16.gmra.mrb[4].mxu1 %vm984_vm12, %v2093_v34 }
 0x560   : > { %2893 = vmatpush3.bf16.msra.mxu1 %v3009_v36 }
 0x561   : > { %2894 = vmatprep.subr.bf16.mxu1 %v3010_v37 }
 0x564   : > { %2895 = vmatpush3.bf16.msra.mxu1 %v3010_v37 }
 0x62a   : > { %v2882_v31 = vpop.f32.mrb[0].mxu1 }
 0x62b   : > { %v2186_v40 = vadd.f32 %v2882_v31, %v2508_v39  ;;  %v2177_v41 = vpop.f32.mrb[1].mxu1 }
 0x62c   : > { %v2178_v42 = vadd.f32 %v2508_v39, %v2177_v41  ;;  %v2883_v43 = vpop.f32.mrb[2].mxu1 }
 0x62d   : > { %v2189_v44 = vadd.f32 %v2883_v43, %v2508_v39  ;;  %v2180_v45 = vpop.f32.mrb[3].mxu1  ;;  %v2210_v38 = vadd.f32 %v2186_v40, %v3685_v55 }
 0x62e   : > { %v2181_v46 = vadd.f32 %v2508_v39, %v2180_v45  ;;  %v2208_v48 = vadd.f32 %v2178_v42, %v3674_v9 }
 0x62f   : > { %v2211_v49 = vadd.f32 %v2189_v44, %v3687_v57 }
 0x630   : > { %v2209_v50 = vadd.f32 %v2181_v46, %v3676_v47 }
 0x631   : > { %v2217_v51 = vpack.c.bf16 %v2211_v49, %v2210_v38 }
 0x632   : > { %v2886_v6 = vpop.f32.mrb[4].mxu1  ;;  %v2216_v10 = vpack.c.bf16 %v2209_v50, %v2208_v48 }
 0x633   : > { %v2202_v7 = vadd.f32 %v2886_v6, %v2508_v39  ;;  %v2193_v54 = vpop.f32.mrb[5].mxu1 }
 0x634   : > { %v2194_v25 = vadd.f32 %v2508_v39, %v2193_v54  ;;  %v2887_v5 = vpop.f32.mrb[6].mxu1  ;;  %2896 = vmatprep.mubr.msk.bf16.mxu1 %vm984_vm12, %v2216_v10 }
 0x635   : > { %v2205_v11 = vadd.f32 %v2887_v5, %v2508_v39  ;;  %v2196_v59 = vpop.f32.mrb[7].mxu1  ;;  %2897 = vmatmul.mubr.msk.bf16.vlgmr.msra.gmra.mrb[8].mxu1 %vm984_vm12, %v2217_v51  ;;  %v2214_v57 = vadd.f32 %v2202_v7, %v3699_v8 }
 0x636   : > { %v2197_v55 = vadd.f32 %v2508_v39, %v2196_v59  ;;  %v2212_v47 = vadd.f32 %v2194_v25, %v3689_v58 }
 0x637   : > { %v2215_v9 = vadd.f32 %v2205_v11, %v3701_v52 }
 0x638   : > { %v2213_v53 = vadd.f32 %v2197_v55, %v3691_v2 }
 0x639   : > { %v2219_v56 = vpack.c.bf16 %v2215_v9, %v2214_v57 }
 0x63a   : > { %v2218_v60 = vpack.c.bf16 %v2213_v53, %v2212_v47 }
 0x63c   : > { %2900 = vmatprep.mubr.msk.bf16.mxu1 %vm984_vm12, %v2218_v60 }
 0x63d   : > { %2901 = vmatmul.mubr.msk.bf16.gmra.mrb[12].mxu1 %vm984_vm12, %v2219_v56 }
 0x708   : > { %v2898_v3 = vpop.f32.mrb[8].mxu1 }
 0x709   : > { %v2314_v13 = vadd.f32 %v2898_v3, %v2517_v12  ;;  %v2305_v8 = vpop.f32.mrb[9].mxu1 }
 0x70a   : > { %v2306_v14 = vadd.f32 %v2517_v12, %v2305_v8  ;;  %v2899_v52 = vpop.f32.mrb[10].mxu1 }
 0x70b   : > { %2339 = vst.msk [vmem:[%s3795_s11 + $0x10] sm:$0xff] %vm2336_vm6, %v2314_v13  ;;  %v2317_v58 = vadd.f32 %v2899_v52, %v2517_v12  ;;  %v2308_v2 = vpop.f32.mrb[11].mxu1 }
 0x70c   : > { %2337 = vst.msk [vmem:[%s3795_s11] sm:$0xff] %vm2336_vm6, %v2306_v14  ;;  %v2309_v15 = vadd.f32 %v2517_v12, %v2308_v2 }
 0x70d   : > { %2340 = vst.msk [vmem:[%s3795_s11 + $0x18] sm:$0xff] %vm2336_vm6, %v2317_v58 }
 0x70e   : > { %2338 = vst.msk [vmem:[%s3795_s11 + $0x8] sm:$0xff] %vm2336_vm6, %v2309_v15 }
 0x710   : > { %v2902_v16 = vpop.f32.mrb[12].mxu1 }
 0x711   : > { %v2330_v61 = vadd.f32 %v2902_v16, %v2517_v12  ;;  %v2321_v17 = vpop.f32.mrb[13].mxu1 }
 0x712   : > { %v2322_v18 = vadd.f32 %v2517_v12, %v2321_v17  ;;  %v2903_v19 = vpop.f32.mrb[14].mxu1 }
 0x713   : > { %2343 = vst.msk [vmem:[%s3795_s11 + $0x30] sm:$0xff] %vm2336_vm6, %v2330_v61  ;;  %v2333_v20 = vadd.f32 %v2903_v19, %v2517_v12  ;;  %v2324_v62 = vpop.f32.mrb[15].mxu1 }
 0x714   : > { %2341 = vst.msk [vmem:[%s3795_s11 + $0x20] sm:$0xff] %vm2336_vm6, %v2322_v18  ;;  %v2325_v21 = vadd.f32 %v2517_v12, %v2324_v62 }
 0x715   : > { %2344 = vst.msk [vmem:[%s3795_s11 + $0x38] sm:$0xff] %vm2336_vm6, %v2333_v20 }
 0x716   : > { %2342 = vst.msk [vmem:[%s3795_s11 + $0x28] sm:$0xff] %vm2336_vm6, %v2325_v21 }
 0x717 PF: > { %s21_s17 = sadd.s32 1, %s3017_s17  }
 0x718   : > { %p18_p7 = scmp.ge.s32.totalorder %s21_s17, 4  }
 0x71a   :  { %20 = sbr.rel (!%p18_p7) target bundleno = 1 (0x1), region = 104 }

// kernel: gcn_forward.4
= control target key start
LH: loop header
LB: loop body
LE: loop exit
PB: predicated region body
PF: predicated region fallthrough
CT: control target
= control target key end

     0   :  { %s3009_s13 = smov 0   ;;  %s3698_s0 = inlined_call_operand.vmem [shape: f32[64,16], index: 0, kind: input, shape index: {}]   ;;  %s3699_s1 = inlined_call_operand.vmem [shape: bf16[512,64], index: 1, kind: input, shape index: {}]   ;;  %s3700_s2 = inlined_call_operand.vmem [shape: s32[1,512], index: 2, kind: input, shape index: {}]   ;;  %s3701_s3 = inlined_call_operand.vmem [shape: s32[1,512], index: 3, kind: input, shape index: {}]   ;;  %s3702_s4 = inlined_call_operand.vmem [shape: bf16[16,64], index: 4, kind: input, shape index: {}]   ;;  %s3703_s5 = inlined_call_operand.vmem [shape: bf16[192,64], index: 5, kind: input, shape index: {}]   ;;  %s3704_s6 = inlined_call_operand.vmem [shape: bf16[64,64], index: 6, kind: input, shape index: {}]   ;;  %s3705_s7 = inlined_call_operand.vmem [shape: bf16[128,64], index: 7, kind: input, shape index: {}]   ;;  %s3706_s8 = inlined_call_operand.vmem [shape: bf16[64,64], index: 8, kind: input, shape index: {}]   ;;  %s3707_s9 = inlined_call_operand.vmem [shape: f32[5,64], index: 9, kind: input, shape index: {}]   ;;  %s3708_s10 = inlined_call_operand.vmem [shape: f32[64,64], index: 10, kind: output, shape index: {}]  }
   0x1 LB: > { %s3015_s14 = sadd.s32 4294967295, %s2949_s13   ;;  %p2341_p0 = scmp.ge.s32.totalorder %s2949_s13, 1  ;;  %s2949_s13 = sphi %s3009_s13, %s20_s13  }
   0x2   : > { %p328_p1 = scmp.lt.s32.totalorder %s2949_s13, 3 }
   0x4   : > { %p329_p2 = pnand %p2341_p0, %p328_p1 }
   0x5   : > { %s2342_s15 = sshll.u32 (!%p329_p2), %s3015_s14, 5  ;;  %s2344_s16 = sshll.u32 (!%p329_p2), %s3015_s14, 1 }
   0x6   : > { %332 = sbr.rel (%p329_p2) target bundleno = 1802 (0x70a), region = 60  ;;  %p370_p3 = scmp.lt.s32.totalorder (!%p329_p2), %s2342_s15, 63 }
   0x7   : > { %p376_p4 = scmp.lt.s32.totalorder (!%p329_p2), %s2344_s16, 3  ;;  %p2346_p5 = scmp.ne.s32.totalorder (!%p329_p2), %s3015_s14, 0 }
   0xd   : > { %s3724_s15 = smov (!%p370_p3, %s2342_s15), 63  ;;  %s3726_s16 = smov (!%p376_p4, %s2344_s16), 3 }
   0xe   : > { %s2343_s17 = sshll.u32 %s3724_s15, 2  ;;  %s378_s23 = scalar_lea.vmem %s3700_s2, %s3726_s16  ;;  %v2898_v0 = vld [vmem:[%s3702_s4] sm:$0xff] (!%p2346_p5)   ;;  %v391_v2 = vld [vmem:[%s3698_s0 + $0x8] sm:$0xff] (!%p2346_p5)  ;;  %vm415_vm0 = vcmask (!%p2346_p5), 130048   ;;  %v392_v3 = vld [vmem:[%s3698_s0 + $0x10] sm:$0xff] (!%p2346_p5)  ;;  %vm493_vm1 = vcmask (!%p2346_p5), 523264  }
   0xf   : > { %s3026_s20 = scalar_lea.vmem %s3699_s1, %s2343_s17  ;;  %s383_s26 = scalar_lea.vmem %s3701_s3, %s3726_s16  ;;  %v390_v1 = vld [vmem:[%s3698_s0] sm:$0xff] (!%p2346_p5)  ;;  %2621 = vmatprep.subr.bf16.mxu0 (!%p2346_p5), %v2898_v0  ;;  %v393_v5 = vld [vmem:[%s3698_s0 + $0x18] sm:$0xff] (!%p2346_p5)  ;;  %v395_v7 = vld [vmem:[%s3698_s0 + $0x28] sm:$0xff] (!%p2346_p5)  ;;  %v2951_v21 = vmov (!%p2346_p5), 0.0  }
  0x10   : > { %389 = sbr.rel (%p2346_p5) target bundleno = 465 (0x1d1), region = 64  ;;  %v398_v4 = vpack.c.bf16 (!%p2346_p5), %v391_v2, %v390_v1  ;;  %v394_v6 = vld [vmem:[%s3698_s0 + $0x20] sm:$0xff] (!%p2346_p5)  ;;  %2622 = vmatpush3.bf16.msra.mxu0 (!%p2346_p5), %v2898_v0  ;;  %v399_v8 = vpack.c.bf16 (!%p2346_p5), %v393_v5, %v392_v3  ;;  %v396_v11 = vld [vmem:[%s3698_s0 + $0x30] sm:$0xff] (!%p2346_p5)  ;;  %v397_v12 = vld [vmem:[%s3698_s0 + $0x38] sm:$0xff] (!%p2346_p5)  ;;  %728 = vst.msk [vmem:[#allocation3] sm:$0xff] (!%p2346_p5), %vm493_vm1, %v2951_v21 }
  0x11   : > { %v400_v9 = vpack.c.bf16 (!%p2346_p5), %v395_v7, %v394_v6  ;;  %v2899_v10 = vld [vmem:[%s3703_s5 + $0x20] sm:$0xff] (!%p2346_p5)   ;;  %v2901_v14 = vld [vmem:[%s3703_s5 + $0x28] sm:$0xff] (!%p2346_p5)   ;;  %v401_v16 = vpack.c.bf16 (!%p2346_p5), %v397_v12, %v396_v11  ;;  %v2903_v17 = vld [vmem:[%s3703_s5 + $0x30] sm:$0xff] (!%p2346_p5)   ;;  %729 = vst.msk [vmem:[#allocation3 + $0x8] sm:$0xff] (!%p2346_p5), %vm493_vm1, %v2951_v21 }
  0x12   : > { %2623 = vmatprep.mubr.msk.bf16.mxu0 (!%p2346_p5), %vm415_vm0, %v398_v4  ;;  %v2900_v13 = vld [vmem:[%s3703_s5] sm:$0xff] (!%p2346_p5)   ;;  %2647 = vmatprep.subr.bf16.mxu0 (!%p2346_p5), %v2899_v10  ;;  %v2902_v15 = vld [vmem:[%s3703_s5 + $0x8] sm:$0xff] (!%p2346_p5)   ;;  %v2904_v18 = vld [vmem:[%s3703_s5 + $0x10] sm:$0xff] (!%p2346_p5)   ;;  %730 = vst.msk [vmem:[#allocation3 + $0x10] sm:$0xff] (!%p2346_p5), %vm493_vm1, %v2951_v21 }
  0x13   : > { %2624 = vmatmul.mubr.msk.bf16.vlgmr.msra.gmra.mrb[0].mxu0 (!%p2346_p5), %vm415_vm0, %v399_v8  ;;  %2631 = vmatprep.subr.bf16.mxu1 (!%p2346_p5), %v2900_v13  ;;  %v2905_v19 = vld [vmem:[%s3703_s5 + $0x38] sm:$0xff] (!%p2346_p5)   ;;  %731 = vst.msk [vmem:[#allocation3 + $0x18] sm:$0xff] (!%p2346_p5), %vm493_vm1, %v2951_v21  ;;  %732 = vst.msk [vmem:[#allocation3 + $0x20] sm:$0xff] (!%p2346_p5), %vm493_vm1, %v2951_v21  ;;  %v2347_v22 = vld [vmem:[%s3707_s9] ss:$0 sm:$0xff] (!%p2346_p5) }
  0x14   : > { %2627 = vmatprep.mubr.msk.bf16.mxu0 (!%p2346_p5), %vm415_vm0, %v400_v9  ;;  %2648 = vmatpush3.bf16.msra.mxu0 (!%p2346_p5), %v2899_v10  ;;  %v2906_v20 = vld [vmem:[%s3703_s5 + $0x18] sm:$0xff] (!%p2346_p5)   ;;  %733 = vst.msk [vmem:[#allocation3 + $0x28] sm:$0xff] (!%p2346_p5), %vm493_vm1, %v2951_v21  ;;  %734 = vst.msk [vmem:[#allocation3 + $0x30] sm:$0xff] (!%p2346_p5), %vm493_vm1, %v2951_v21 }
  0x15   : > { %2632 = vmatpush3.bf16.msra.mxu1 (!%p2346_p5), %v2900_v13  ;;  %2649 = vmatprep.subr.bf16.mxu0 (!%p2346_p5), %v2901_v14  ;;  %735 = vst.msk [vmem:[#allocation3 + $0x38] sm:$0xff] (!%p2346_p5), %vm493_vm1, %v2951_v21 }
  0x16   : > { %2633 = vmatprep.subr.bf16.mxu1 (!%p2346_p5), %v2902_v15 }
  0x18   : > { %2650 = vmatpush3.bf16.msra.mxu0 %v2901_v14 }
  0x19   : > { %2634 = vmatpush3.bf16.msra.mxu1 %v2902_v15  ;;  %2651 = vmatprep.subr.bf16.mxu0 %v2903_v17 }
  0x1a   : > { %2635 = vmatprep.subr.bf16.mxu1 %v2904_v18 }
  0x1b   : > { %2628 = vmatmul.mubr.msk.bf16.gmra.mrb[4].mxu0 %vm415_vm0, %v401_v16 }
  0x1c   : > { %2652 = vmatpush3.bf16.msra.mxu0 %v2903_v17 }
  0x1d   : > { %2636 = vmatpush3.bf16.msra.mxu1 %v2904_v18  ;;  %2653 = vmatprep.subr.bf16.mxu0 %v2905_v19 }
  0x1e   : > { %2637 = vmatprep.subr.bf16.mxu1 %v2906_v20 }
  0x20   : > { %2654 = vmatpush3.bf16.msra.mxu0 %v2905_v19 }
  0x21   : > { %2638 = vmatpush3.bf16.msra.mxu1 %v2906_v20 }
  0xe6   : > { %v2625_v23 = vpop.f32.mrb[0].mxu0 }
  0xe7   : > { %v471_v24 = vadd.f32 %v2625_v23, %v2347_v22  ;;  %v462_v25 = vpop.f32.mrb[1].mxu0 }
  0xe8   : > { %v463_v26 = vadd.f32 %v2347_v22, %v462_v25  ;;  %v2626_v27 = vpop.f32.mrb[2].mxu0 }
  0xe9   : > { %496 = vst.msk [vmem:[#allocation2 + $0x10] sm:$0xff] %vm493_vm1, %v471_v24  ;;  %v474_v28 = vadd.f32 %v2626_v27, %v2347_v22  ;;  %v465_v29 = vpop.f32.mrb[3].mxu0 }
  0xea   : > { %494 = vst.msk [vmem:[#allocation2] sm:$0xff] %vm493_vm1, %v463_v26  ;;  %v466_v30 = vadd.f32 %v2347_v22, %v465_v29 }
  0xeb   : > { %497 = vst.msk [vmem:[#allocation2 + $0x18] sm:$0xff] %vm493_vm1, %v474_v28  ;;  %v503_v31 = vpack.c.bf16 %v474_v28, %v471_v24 }
  0xec   : > { %495 = vst.msk [vmem:[#allocation2 + $0x8] sm:$0xff] %vm493_vm1, %v466_v30  ;;  %v502_v32 = vpack.c.bf16 %v466_v30, %v463_v26 }
  0xee   : > { %v2629_v33 = vpop.f32.mrb[4].mxu0  ;;  %2639 = vmatprep.mubr.msk.bf16.mxu1 %vm493_vm1, %v502_v32  ;;  %2655 = vmatprep.mubr.msk.bf16.mxu0 %vm493_vm1, %v502_v32 }
  0xef   : > { %v487_v34 = vadd.f32 %v2629_v33, %v2347_v22  ;;  %v478_v35 = vpop.f32.mrb[5].mxu0  ;;  %2640 = vmatmul.mubr.msk.bf16.vlgmr.msra.gmra.mrb[0].mxu1 %vm493_vm1, %v503_v31  ;;  %2656 = vmatmul.mubr.msk.bf16.vlgmr.msra.gmra.mrb[8].mxu0 %vm493_vm1, %v503_v31 }
  0xf0   : > { %v479_v36 = vadd.f32 %v2347_v22, %v478_v35  ;;  %v2630_v37 = vpop.f32.mrb[6].mxu0 }
  0xf1   : > { %500 = vst.msk [vmem:[#allocation2 + $0x30] sm:$0xff] %vm493_vm1, %v487_v34  ;;  %v490_v38 = vadd.f32 %v2630_v37, %v2347_v22  ;;  %v481_v39 = vpop.f32.mrb[7].mxu0 }
  0xf2   : > { %498 = vst.msk [vmem:[#allocation2 + $0x20] sm:$0xff] %vm493_vm1, %v479_v36  ;;  %v482_v40 = vadd.f32 %v2347_v22, %v481_v39 }
  0xf3   : > { %501 = vst.msk [vmem:[#allocation2 + $0x38] sm:$0xff] %vm493_vm1, %v490_v38  ;;  %v505_v41 = vpack.c.bf16 %v490_v38, %v487_v34 }
  0xf4   : > { %499 = vst.msk [vmem:[#allocation2 + $0x28] sm:$0xff] %vm493_vm1, %v482_v40  ;;  %v504_v42 = vpack.c.bf16 %v482_v40, %v479_v36 }
  0xf6   : > { %2643 = vmatprep.mubr.msk.bf16.mxu1 %vm493_vm1, %v504_v42  ;;  %2659 = vmatprep.mubr.msk.bf16.mxu0 %vm493_vm1, %v504_v42 }
  0xf7   : > { %2644 = vmatmul.mubr.msk.bf16.gmra.mrb[4].mxu1 %vm493_vm1, %v505_v41  ;;  %2660 = vmatmul.mubr.msk.bf16.gmra.mrb[12].mxu0 %vm493_vm1, %v505_v41 }
 0x1c2   : > { %v2641_v43 = vpop.f32.mrb[0].mxu1  ;;  %v2657_v44 = vpop.f32.mrb[8].mxu0 }
 0x1c3   : > { %v584_v45 = vpop.f32.mrb[1].mxu1  ;;  %v689_v46 = vpop.f32.mrb[9].mxu0 }
 0x1c4   : > { %v2642_v47 = vpop.f32.mrb[2].mxu1  ;;  %v2658_v48 = vpop.f32.mrb[10].mxu0 }
 0x1c5   : > { %v616_v49 = vpack.c.bf16 %v2642_v47, %v2641_v43  ;;  %v721_v50 = vpack.c.bf16 %v2658_v48, %v2657_v44  ;;  %v587_v51 = vpop.f32.mrb[3].mxu1  ;;  %v692_v52 = vpop.f32.mrb[11].mxu0 }
 0x1c6   : > { %v615_v53 = vpack.c.bf16 %v587_v51, %v584_v45  ;;  %v720_v54 = vpack.c.bf16 %v692_v52, %v689_v46 }
 0x1c7   : > { %620 = vst.msk [vmem:[#allocation4 + $0x8] sm:$0xff] %vm493_vm1, %v616_v49  ;;  %725 = vst.msk [vmem:[#allocation4 + $0x28] sm:$0xff] %vm493_vm1, %v721_v50 }
 0x1c8   : > { %619 = vst.msk [vmem:[#allocation4] sm:$0xff] %vm493_vm1, %v615_v53  ;;  %724 = vst.msk [vmem:[#allocation4 + $0x20] sm:$0xff] %vm493_vm1, %v720_v54 }
 0x1ca   : > { %v2645_v55 = vpop.f32.mrb[4].mxu1  ;;  %v2661_v56 = vpop.f32.mrb[12].mxu0 }
 0x1cb   : > { %v600_v57 = vpop.f32.mrb[5].mxu1  ;;  %v705_v58 = vpop.f32.mrb[13].mxu0 }
 0x1cc   : > { %v2646_v59 = vpop.f32.mrb[6].mxu1  ;;  %v2662_v60 = vpop.f32.mrb[14].mxu0 }
 0x1cd   : > { %v618_v61 = vpack.c.bf16 %v2646_v59, %v2645_v55  ;;  %v723_v62 = vpack.c.bf16 %v2662_v60, %v2661_v56  ;;  %v603_v63 = vpop.f32.mrb[7].mxu1  ;;  %v708_v0 = vpop.f32.mrb[15].mxu0 }
 0x1ce   : > { %v617_v1 = vpack.c.bf16 %v603_v63, %v600_v57  ;;  %v722_v2 = vpack.c.bf16 %v708_v0, %v705_v58 }
 0x1cf   : > { %622 = vst.msk [vmem:[#allocation4 + $0x18] sm:$0xff] %vm493_vm1, %v618_v61  ;;  %727 = vst.msk [vmem:[#allocation4 + $0x38] sm:$0xff] %vm493_vm1, %v723_v62 }
 0x1d0   : > { %621 = vst.msk [vmem:[#allocation4 + $0x10] sm:$0xff] %vm493_vm1, %v617_v1  ;;  %726 = vst.msk [vmem:[#allocation4 + $0x30] sm:$0xff] %vm493_vm1, %v722_v2 }
 0x1d1 PF: > { %v736_v3 = vlaneseq  ;;  %v2907_v4 = vld [vmem:[%s3703_s5 + $0x40] sm:$0xff]   ;;  %v2908_v6 = vld [vmem:[%s3703_s5 + $0x48] sm:$0xff]   ;;  %v2909_v9 = vld [vmem:[%s3703_s5 + $0x50] sm:$0xff]   ;;  %v2952_v21 = vmov 0.0   ;;  %vm1052_vm13 = vcmask 523264   ;;  %p2443_p6 = scmp.ne.s32.totalorder %s3015_s14, 1 }
 0x1d2   : > { %v3135_v5 = vld [vmem:[%s383_s26] sm:$0x3]  ;;  %2663 = vmatprep.subr.bf16.mxu0 %v2907_v4  ;;  %2839 = vmatprep.subr.bf16.mxu1 %v2907_v4  ;;  %v2910_v20 = vld [vmem:[%s3703_s5 + $0x58] sm:$0xff]   ;;  %v2912_v37 = vld [vmem:[%s3026_s20 + $0x8] sm:$0xff]  }
 0x1d3   : > { %v3140_v7 = vshrl.u32 %v736_v3, 7  ;;  %v770_v8 = vld [vmem:[%s378_s23] sm:$0x3]  ;;  %2664 = vmatpush3.bf16.msra.mxu0 %v2907_v4  ;;  %2843 = vmatpush3.bf16.msra.mxu1 %v2907_v4  ;;  %v2913_v42 = vld [vmem:[%s3026_s20 + $0x10] sm:$0xff]   ;;  %v901_v48 = vld [vmem:[#allocation4 + $0x8] sm:$0xff] }
 0x1d4   : > { %2665 = vmatprep.subr.bf16.mxu0 %v2908_v6  ;;  %2840 = vmatprep.subr.bf16.mxu1 %v2908_v6  ;;  %v3175_v19 = vadd.s32 64, %v770_v8  ;;  %v900_v34 = vld [vmem:[#allocation4] sm:$0xff]  ;;  %v2914_v56 = vld [vmem:[%s3026_s20 + $0x18] sm:$0xff]  }
 0x1d5   : > { %v3151_v10 = vadd.s32 8, %v3140_v7  ;;  %v774_v11 = vsub.s32 0, %v3140_v7  ;;  %v3155_v12 = vadd.s32 16, %v3140_v7  ;;  %v3158_v13 = vadd.s32 24, %v3140_v7  ;;  %v2911_v35 = vld [vmem:[%s3026_s20] sm:$0xff]  }
 0x1d6   : > { %v3164_v15 = vadd.s32 32, %v3140_v7  ;;  %v3167_v16 = vadd.s32 40, %v3140_v7  ;;  %v3170_v17 = vadd.s32 48, %v3140_v7  ;;  %v3173_v18 = vadd.s32 56, %v3140_v7  ;;  %2671 = vmatprep.mubr.msk.bf16.mxu0 %vm1052_vm13, %v2911_v35  ;;  %v2915_v57 = vld [vmem:[%s3026_s20 + $0x20] sm:$0xff]  }
 0x1d7   : > { %v3161_v14 = vrot.slane %v3135_v5, %v774_v11  ;;  %2666 = vmatpush3.bf16.msra.mxu0 %v2908_v6  ;;  %2844 = vmatpush3.bf16.msra.mxu1 %v2908_v6  ;;  %v3207_v29 = vadd.s32 64, %v3140_v7  ;;  %v3210_v30 = vadd.s32 72, %v3140_v7  ;;  %v3213_v31 = vrot.slane %v3175_v19, %v774_v11  ;;  %v902_v59 = vld [vmem:[#allocation4 + $0x10] sm:$0xff] }
 0x1d8   : > { %2667 = vmatprep.subr.bf16.mxu0 %v2909_v9  ;;  %2841 = vmatprep.subr.bf16.mxu1 %v2909_v9  ;;  %v3229_v36 = vadd.s32 80, %v3140_v7  ;;  %v3241_v41 = vadd.s32 88, %v3140_v7  ;;  %v778_v43 = vsub.s32 1, %v3140_v7  ;;  %v3251_v45 = vadd.s32 96, %v3140_v7 }
 0x1d9   : > { %vm820_vm2 = vcmp.eq.s32.totalorder %v3140_v7, %v3161_v14  ;;  %vm822_vm3 = vcmp.eq.s32.totalorder %v3151_v10, %v3161_v14  ;;  %vm824_vm4 = vcmp.eq.s32.totalorder %v3155_v12, %v3161_v14  ;;  %vm826_vm5 = vcmp.eq.s32.totalorder %v3158_v13, %v3161_v14 }
 0x1da   : > { %v852_v22 = vsel %vm820_vm2, 1.0, %v2952_v21  ;;  %v854_v23 = vsel %vm822_vm3, 1.0, %v2952_v21  ;;  %vm3190_vm6 = vmpackc.low %vm822_vm3, %vm820_vm2  ;;  %v856_v25 = vsel %vm824_vm4, 1.0, %v2952_v21  ;;  %v858_v26 = vsel %vm826_vm5, 1.0, %v2952_v21 }
 0x1db   : > { %v884_v27 = vpack.c.bf16 %v854_v23, %v852_v22  ;;  %vm828_vm7 = vcmp.eq.s32.totalorder %v3164_v15, %v3161_v14  ;;  %vm3711_vm8 = vcmp.eq.s32.totalorder %v3167_v16, %v3161_v14  ;;  %2668 = vmatpush3.bf16.msra.mxu0 %v2909_v9  ;;  %2845 = vmatpush3.bf16.msra.mxu1 %v2909_v9  ;;  %v3254_v46 = vadd.s32 104, %v3140_v7  ;;  %v2923_v22 = vld [vmem:[%s3026_s20 + $0x60] sm:$0xff]  }
 0x1dc   : > { %v886_v28 = vpack.c.bf16 %v858_v26, %v856_v25  ;;  %2669 = vmatprep.subr.bf16.mxu0 %v2910_v20  ;;  %v860_v32 = vsel %vm828_vm7, 1.0, %v2952_v21  ;;  %v862_v33 = vsel %vm3711_vm8, 1.0, %v2952_v21  ;;  %vm3710_vm9 = vcmp.eq.s32.totalorder %v3170_v17, %v3161_v14  ;;  %2842 = vmatprep.subr.bf16.mxu1 %v2910_v20  ;;  %v2917_v25 = vld [vmem:[%s3026_s20 + $0x30] sm:$0xff]   ;;  %v2924_v26 = vld [vmem:[%s3026_s20 + $0x68] sm:$0xff]  }
 0x1dd   : > { %1262 = vxpose.xlu0.c.b16.start [1/8] %v884_v27, 128  ;;  %vm3709_vm10 = vcmp.eq.s32.totalorder %v3173_v18, %v3161_v14  ;;  %v888_v38 = vpack.c.bf16 %v862_v33, %v860_v32  ;;  %v864_v39 = vsel %vm3710_vm9, 1.0, %v2952_v21  ;;  %vm836_vm11 = vcmp.eq.s32.totalorder %v3207_v29, %v3213_v31  ;;  %2695 = vmatprep.mubr.msk.bf16.mxu1 %vm1052_vm13, %v2923_v22 }
 0x1de   : > { %v866_v40 = vsel %vm3709_vm10, 1.0, %v2952_v21  ;;  %vm838_vm12 = vcmp.eq.s32.totalorder %v3210_v30, %v3213_v31  ;;  %v3257_v47 = vrot.slane %v3135_v5, %v778_v43  ;;  %v868_v49 = vsel %vm836_vm11, 1.0, %v2952_v21  ;;  %v903_v5 = vld [vmem:[#allocation4 + $0x18] sm:$0xff] }
 0x1df   : > { %2670 = vmatpush3.bf16.msra.mxu0 %v2910_v20  ;;  %2846 = vmatpush3.bf16.msra.mxu1 %v2910_v20  ;;  %v890_v44 = vpack.c.bf16 %v866_v40, %v864_v39  ;;  %v870_v50 = vsel %vm838_vm12, 1.0, %v2952_v21  ;;  %vm840_vm14 = vcmp.eq.s32.totalorder %v3229_v36, %v3213_v31  ;;  %vm842_vm15 = vcmp.eq.s32.totalorder %v3241_v41, %v3213_v31  ;;  %v904_v20 = vld [vmem:[#allocation4 + $0x20] sm:$0xff]  ;;  %v2925_v39 = vld [vmem:[%s3026_s20 + $0x70] sm:$0xff]  }
 0x1e0   : > { %2703 = vmatprep.subr.bf16.mxu0 %v900_v34  ;;  %vm821_vm0 = vcmp.eq.s32.totalorder %v3140_v7, %v3257_v47  ;;  %vm823_vm1 = vcmp.eq.s32.totalorder %v3151_v10, %v3257_v47  ;;  %vm825_vm2 = vcmp.eq.s32.totalorder %v3155_v12, %v3257_v47  ;;  %vm827_vm3 = vcmp.eq.s32.totalorder %v3158_v13, %v3257_v47  ;;  %v2919_v40 = vld [vmem:[%s3026_s20 + $0x40] sm:$0xff]  }
 0x1e1   : > { %1263 = vxpose.xlu0.c.b16.cont [2/8] %v886_v28, 128  ;;  %v853_v51 = vsel %vm821_vm0, 1.0, %v2952_v21  ;;  %v855_v52 = vsel %vm823_vm1, 1.0, %v2952_v21  ;;  %vm3277_vm11 = vmpackc.low %vm823_vm1, %vm821_vm0  ;;  %v857_v54 = vsel %vm825_vm2, 1.0, %v2952_v21  ;;  %v859_v55 = vsel %vm827_vm3, 1.0, %v2952_v21  ;;  %v1786_v13 = vld [vmem:[#allocation3] sm:$0xff] }
 0x1e2   : > { %2672 = vmatmul.mubr.msk.bf16.vlgmr.msra.gmra.mrb[0].mxu0 %vm1052_vm13, %v2912_v37  ;;  %v885_v58 = vpack.c.bf16 %v855_v52, %v853_v51  ;;  %vm829_vm12 = vcmp.eq.s32.totalorder %v3164_v15, %v3257_v47  ;;  %vm831_vm0 = vcmp.eq.s32.totalorder %v3167_v16, %v3257_v47  ;;  %v892_v60 = vpack.c.bf16 %v870_v50, %v868_v49  ;;  %v2918_v37 = vld [vmem:[%s3026_s20 + $0x38] sm:$0xff]   ;;  %v2920_v50 = vld [vmem:[%s3026_s20 + $0x48] sm:$0xff]   ;;  %v2927_v51 = vld [vmem:[%s3704_s6] sm:$0xff]  }
 0x1e3   : > { %2675 = vmatprep.mubr.msk.bf16.mxu0 %vm1052_vm13, %v2913_v42  ;;  %2704 = vmatpush3.bf16.msra.mxu0 %v900_v34  ;;  %v872_v61 = vsel %vm840_vm14, 1.0, %v2952_v21  ;;  %v874_v62 = vsel %vm842_vm15, 1.0, %v2952_v21  ;;  %v3304_v63 = vadd.s32 112, %v3140_v7  ;;  %v3307_v0 = vadd.s32 120, %v3140_v7  ;;  %v2921_v52 = vld [vmem:[%s3026_s20 + $0x50] sm:$0xff]  }
 0x1e4   : > { %2705 = vmatprep.subr.bf16.mxu0 %v901_v48  ;;  %1278 = vxpose.xlu1.c.b16.start [1/8] %v885_v58, 128  ;;  %v887_v1 = vpack.c.bf16 %v859_v55, %v857_v54  ;;  %vm844_vm1 = vcmp.eq.s32.totalorder %v3251_v45, %v3213_v31  ;;  %vm846_vm14 = vcmp.eq.s32.totalorder %v3254_v46, %v3213_v31  ;;  %v861_v2 = vsel %vm829_vm12, 1.0, %v2952_v21  ;;  %v2928_v54 = vld [vmem:[%s3704_s6 + $0x8] sm:$0xff]  }
 0x1e5   : > { %1264 = vxpose.xlu0.c.b16.cont [3/8] %v888_v38, 128  ;;  %v863_v3 = vsel %vm831_vm0, 1.0, %v2952_v21  ;;  %vm3713_vm15 = vcmp.eq.s32.totalorder %v3170_v17, %v3257_v47  ;;  %vm3712_vm10 = vcmp.eq.s32.totalorder %v3173_v18, %v3257_v47  ;;  %v3326_v4 = vrot.slane %v3175_v19, %v778_v43  ;;  %v2916_v19 = vld [vmem:[%s3026_s20 + $0x28] sm:$0xff]   ;;  %2696 = vmatmul.mubr.msk.bf16.vlgmr.msra.gmra.mrb[0].mxu1 %vm1052_vm13, %v2924_v26  ;;  %v906_v38 = vld [vmem:[#allocation4 + $0x30] sm:$0xff] }
 0x1e6   : > { %v894_v6 = vpack.c.bf16 %v874_v62, %v872_v61  ;;  %v876_v7 = vsel %vm844_vm1, 1.0, %v2952_v21  ;;  %v878_v8 = vsel %vm846_vm14, 1.0, %v2952_v21  ;;  %v889_v9 = vpack.c.bf16 %v863_v3, %v861_v2  ;;  %2699 = vmatprep.mubr.msk.bf16.mxu1 %vm1052_vm13, %v2925_v39  ;;  %2751 = vmatprep.subr.bf16.mxu1 %v2927_v51 }
 0x1e7   : > { %2706 = vmatpush3.bf16.msra.mxu0 %v901_v48  ;;  %vm848_vm9 = vcmp.eq.s32.totalorder %v3304_v63, %v3213_v31  ;;  %vm850_vm8 = vcmp.eq.s32.totalorder %v3307_v0, %v3213_v31  ;;  %v865_v10 = vsel %vm3713_vm15, 1.0, %v2952_v21  ;;  %v867_v11 = vsel %vm3712_vm10, 1.0, %v2952_v21  ;;  %2752 = vmatpush3.bf16.msra.mxu1 %v2927_v51 }
 0x1e8   : > { %2707 = vmatprep.subr.bf16.mxu0 %v902_v59  ;;  %1279 = vxpose.xlu1.c.b16.cont [2/8] %v887_v1, 128  ;;  %vm837_vm1 = vcmp.eq.s32.totalorder %v3207_v29, %v3326_v4  ;;  %vm839_vm14 = vcmp.eq.s32.totalorder %v3210_v30, %v3326_v4  ;;  %v896_v23 = vpack.c.bf16 %v878_v8, %v876_v7  ;;  %v880_v27 = vsel %vm848_vm9, 1.0, %v2952_v21  ;;  %v905_v30 = vld [vmem:[#allocation4 + $0x28] sm:$0xff]  ;;  %v2929_v8 = vld [vmem:[%s3704_s6 + $0x10] sm:$0xff]  }
 0x1e9   : > { %1265 = vxpose.xlu0.c.b16.cont [4/8] %v890_v44, 128  ;;  %v882_v28 = vsel %vm850_vm8, 1.0, %v2952_v21  ;;  %v891_v31 = vpack.c.bf16 %v867_v11, %v865_v10  ;;  %v869_v32 = vsel %vm837_vm1, 1.0, %v2952_v21  ;;  %v871_v29 = vsel %vm839_vm14, 1.0, %v2952_v21  ;;  %2753 = vmatprep.subr.bf16.mxu1 %v2928_v54  ;;  %vm2433_vm1 = vmpackc.low %vm826_vm5, %vm824_vm4 }
 0x1ea   : > { %2676 = vmatmul.mubr.msk.bf16.gmra.mrb[4].mxu0 %vm1052_vm13, %v2914_v56  ;;  %vm841_vm10 = vcmp.eq.s32.totalorder %v3229_v36, %v3326_v4  ;;  %vm843_vm15 = vcmp.eq.s32.totalorder %v3241_v41, %v3326_v4  ;;  %v898_v33 = vpack.c.bf16 %v882_v28, %v880_v27  ;;  %v893_v34 = vpack.c.bf16 %v871_v29, %v869_v32  ;;  %v2926_v41 = vld [vmem:[%s3026_s20 + $0x78] sm:$0xff]   ;;  %v3423_v27 = vld [vmem:[%s3707_s9 + $0x1] ss:$0 sm:$0xff] }
 0x1eb   : > { %2679 = vmatprep.mubr.msk.bf16.mxu0 %vm1052_vm13, %v2915_v57  ;;  %2708 = vmatpush3.bf16.msra.mxu0 %v902_v59  ;;  %v873_v35 = vsel %vm841_vm10, 1.0, %v2952_v21  ;;  %v875_v36 = vsel %vm843_vm15, 1.0, %v2952_v21  ;;  %vm845_vm8 = vcmp.eq.s32.totalorder %v3251_v45, %v3326_v4  ;;  %vm847_vm9 = vcmp.eq.s32.totalorder %v3254_v46, %v3326_v4  ;;  %v907_v45 = vld [vmem:[#allocation4 + $0x38] sm:$0xff] }
 0x1ec   : > { %2709 = vmatprep.subr.bf16.mxu0 %v903_v5  ;;  %1280 = vxpose.xlu1.c.b16.cont [3/8] %v889_v9, 128  ;;  %v895_v42 = vpack.c.bf16 %v875_v36, %v873_v35  ;;  %v877_v43 = vsel %vm845_vm8, 1.0, %v2952_v21  ;;  %v879_v44 = vsel %vm847_vm9, 1.0, %v2952_v21  ;;  %vm849_vm10 = vcmp.eq.s32.totalorder %v3304_v63, %v3326_v4  ;;  %v2930_v9 = vld [vmem:[%s3704_s6 + $0x18] sm:$0xff]  }
 0x1ed   : > { %1266 = vxpose.xlu0.c.b16.cont [5/8] %v892_v60, 128  ;;  %vm851_vm15 = vcmp.eq.s32.totalorder %v3307_v0, %v3326_v4  ;;  %2700 = vmatmul.mubr.msk.bf16.gmra.mrb[4].mxu1 %vm1052_vm13, %v2926_v41  ;;  %v897_v46 = vpack.c.bf16 %v879_v44, %v877_v43  ;;  %v881_v48 = vsel %vm849_vm10, 1.0, %v2952_v21  ;;  %vm3719_vm4 = vcmp.eq.s32.totalorder %v3170_v17, %v3257_v47 }
 0x1ee   : > { %v883_v49 = vsel %vm851_vm15, 1.0, %v2952_v21  ;;  %v2922_v21 = vld [vmem:[%s3026_s20 + $0x58] sm:$0xff]   ;;  %2754 = vmatpush3.bf16.msra.mxu1 %v2928_v54  ;;  %vm3720_vm5 = vcmp.eq.s32.totalorder %v3173_v18, %v3257_v47  ;;  %v1787_v47 = vld [vmem:[#allocation3 + $0x8] sm:$0xff] }
 0x1ef   : > { %2710 = vmatpush3.bf16.msra.mxu0 %v903_v5  ;;  %v899_v55 = vpack.c.bf16 %v883_v49, %v881_v48  ;;  %2755 = vmatprep.subr.bf16.mxu1 %v2929_v8  ;;  %vm2439_vm14 = vmpackc.low %vm3720_vm5, %vm3719_vm4 }
 0x1f0   : > { %2711 = vmatprep.subr.bf16.mxu0 %v904_v20  ;;  %1281 = vxpose.xlu1.c.b16.cont [4/8] %v891_v31, 128 }
 0x1f1   : > { %1267 = vxpose.xlu0.c.b16.cont [6/8] %v894_v6, 128 }
 0x1f2   : > { %2680 = vmatmul.mubr.msk.bf16.gmra.mrb[8].mxu0 %vm1052_vm13, %v2916_v19  ;;  %2756 = vmatpush3.bf16.msra.mxu1 %v2929_v8 }
 0x1f3   : > { %2683 = vmatprep.mubr.msk.bf16.mxu0 %vm1052_vm13, %v2917_v25  ;;  %2712 = vmatpush3.bf16.msra.mxu0 %v904_v20 }
 0x1f4   : > { %2713 = vmatprep.subr.bf16.mxu0 %v905_v30  ;;  %1282 = vxpose.xlu1.c.b16.cont [5/8] %v893_v34, 128 }
 0x1f5   : > { %1268 = vxpose.xlu0.c.b16.cont [7/8] %v896_v23, 128  ;;  %2757 = vmatprep.subr.bf16.mxu1 %v2930_v9 }
 0x1f6   : > { %2758 = vmatpush3.bf16.msra.mxu1 %v2930_v9 }
 0x1f7   : > { %2714 = vmatpush3.bf16.msra.mxu0 %v905_v30 }
 0x1f8   : > { %2715 = vmatprep.subr.bf16.mxu0 %v906_v38  ;;  %1283 = vxpose.xlu1.c.b16.cont [6/8] %v895_v42, 128 }
 0x1f9   : > { %1269 = vxpose.xlu0.c.b16.end [8/8] %v898_v33, 128 }
 0x1fa   : > { %2684 = vmatmul.mubr.msk.bf16.gmra.mrb[12].mxu0 %vm1052_vm13, %v2918_v37 }
 0x1fb   : > { %2687 = vmatprep.mubr.msk.bf16.mxu0 %vm1052_vm13, %v2919_v40  ;;  %2716 = vmatpush3.bf16.msra.mxu0 %v906_v38 }
 0x1fc   : > { %2717 = vmatprep.subr.bf16.mxu0 %v907_v45  ;;  %1284 = vxpose.xlu1.c.b16.cont [7/8] %v897_v46, 128 }
 0x1ff   : > { %2718 = vmatpush3.bf16.msra.mxu0 %v907_v45 }
 0x200   : > { %1285 = vxpose.xlu1.c.b16.end [8/8] %v899_v55, 128 }
 0x202   : > { %2688 = vmatmul.mubr.msk.bf16.gmra.mrb[16].mxu0 %vm1052_vm13, %v2920_v50 }
 0x203   : > { %2691 = vmatprep.mubr.msk.bf16.mxu0 %vm1052_vm13, %v2921_v52 }
 0x20a   : > { %2692 = vmatmul.mubr.msk.bf16.gmra.mrb[20].mxu0 %vm1052_vm13, %v2922_v21 }
 0x243   : > { %v1270_v56 = vpop.trf.xlu0 }
 0x244   : > { %2719 = vmatprep.mubr.bf16.mxu0 %v1270_v56 }
 0x247   : > { %v1271_v57 = vpop.trf.xlu0 }
 0x248   : > { %2720 = vmatmul.mubr.bf16.vlgmr.msra.gmra.mrb[0].mxu0 %v1271_v57 }
 0x24a   : > { %v1286_v60 = vpop.trf.xlu1 }
 0x24b   : > { %v1272_v58 = vpop.trf.xlu0 }
 0x24c   : > { %2723 = vmatprep.mubr.bf16.mxu0 %v1272_v58 }
 0x24e   : > { %v1287_v63 = vpop.trf.xlu1 }
 0x24f   : > { %v1273_v59 = vpop.trf.xlu0 }
 0x250   : > { %2724 = vmatmul.mubr.bf16.gmra.mrb[4].mxu0 %v1273_v59 }
 0x252   : > { %v1288_v1 = vpop.trf.xlu1 }
 0x253   : > { %v1274_v61 = vpop.trf.xlu0 }
 0x254   : > { %2727 = vmatprep.mubr.bf16.mxu0 %v1274_v61 }
 0x256   : > { %v1289_v3 = vpop.trf.xlu1 }
 0x257   : > { %v1275_v62 = vpop.trf.xlu0 }
 0x258   : > { %2728 = vmatmul.mubr.bf16.gmra.mrb[8].mxu0 %v1275_v62 }
 0x25a   : > { %v1290_v4 = vpop.trf.xlu1 }
 0x25b   : > { %v1276_v0 = vpop.trf.xlu0 }
 0x25c   : > { %2731 = vmatprep.mubr.bf16.mxu0 %v1276_v0 }
 0x25e   : > { %v1291_v5 = vpop.trf.xlu1 }
 0x25f   : > { %v1277_v2 = vpop.trf.xlu0 }
 0x260   : > { %2732 = vmatmul.mubr.bf16.gmra.mrb[12].mxu0 %v1277_v2 }
 0x261   : > { %2735 = vmatprep.mubr.bf16.mxu0 %v1286_v60 }
 0x262   : > { %v1292_v6 = vpop.trf.xlu1 }
 0x266   : > { %v1293_v7 = vpop.trf.xlu1 }
 0x268   : > { %2736 = vmatmul.mubr.bf16.gmra.mrb[16].mxu0 %v1287_v63 }
 0x269   : > { %2739 = vmatprep.mubr.bf16.mxu0 %v1288_v1 }
 0x270   : > { %2740 = vmatmul.mubr.bf16.gmra.mrb[20].mxu0 %v1289_v3 }
 0x271   : > { %2743 = vmatprep.mubr.bf16.mxu0 %v1290_v4 }
 0x278   : > { %2744 = vmatmul.mubr.bf16.gmra.mrb[24].mxu0 %v1291_v5 }
 0x279   : > { %2747 = vmatprep.mubr.bf16.mxu0 %v1292_v6 }
 0x280   : > { %2748 = vmatmul.mubr.bf16.gmra.mrb[28].mxu0 %v1293_v7 }
 0x2b8   : > { %v3404_v10 = vpop.f32.mrb[0].mxu1 }
 0x2b9   : > { %v3406_v11 = vpop.f32.mrb[1].mxu1 }
 0x2ba   : > { %v3408_v19 = vpop.f32.mrb[2].mxu1 }
 0x2bb   : > { %v3410_v20 = vpop.f32.mrb[3].mxu1 }
 0x2c0   : > { %v3412_v22 = vpop.f32.mrb[4].mxu1 }
 0x2c1   : > { %v3414_v23 = vpop.f32.mrb[5].mxu1 }
 0x2c2   : > { %v3416_v25 = vpop.f32.mrb[6].mxu1 }
 0x2c3   : > { %v3418_v26 = vpop.f32.mrb[7].mxu1 }
 0x31b   : > { %v2721_v28 = vpop.f32.mrb[0].mxu0 }
 0x31c   : > { %v1462_v31 = vadd.f32 %v2721_v28, %v3423_v27  ;;  %v1328_v32 = vpop.f32.mrb[1].mxu0 }
 0x31d   : > { %v1460_v29 = vadd.f32 %v3423_v27, %v1328_v32  ;;  %v2722_v30 = vpop.f32.mrb[2].mxu0 }
 0x31e   : > { %v1463_v33 = vadd.f32 %v2722_v30, %v3423_v27  ;;  %v1331_v34 = vpop.f32.mrb[3].mxu0  ;;  %v1494_v36 = vmax.f32 %v1462_v31, 0.0 }
 0x31f   : > { %v1461_v35 = vadd.f32 %v3423_v27, %v1331_v34  ;;  %v1492_v38 = vmax.f32 %v1460_v29, 0.0 }
 0x320   : > { %v1495_v37 = vmax.f32 %v1463_v33, 0.0 }
 0x321   : > { %v1493_v39 = vmax.f32 %v1461_v35, 0.0 }
 0x322   : > { %v1525_v40 = vpack.c.bf16 %v1495_v37, %v1494_v36 }
 0x323   : > { %v1524_v41 = vpack.c.bf16 %v1493_v39, %v1492_v38  ;;  %v2725_v42 = vpop.f32.mrb[4].mxu0 }
 0x324   : > { %v1466_v43 = vadd.f32 %v2725_v42, %v3423_v27  ;;  %v1344_v44 = vpop.f32.mrb[5].mxu0 }
 0x325   : > { %v1464_v45 = vadd.f32 %v3423_v27, %v1344_v44  ;;  %v2726_v46 = vpop.f32.mrb[6].mxu0  ;;  %2759 = vmatprep.mubr.msk.bf16.mxu1 %vm1052_vm13, %v1524_v41 }
 0x326   : > { %v1467_v48 = vadd.f32 %v2726_v46, %v3423_v27  ;;  %v1347_v49 = vpop.f32.mrb[7].mxu0  ;;  %2760 = vmatmul.mubr.msk.bf16.vlgmr.msra.gmra.mrb[8].mxu1 %vm1052_vm13, %v1525_v40  ;;  %v1498_v51 = vmax.f32 %v1466_v43, 0.0 }
 0x327   : > { %v1465_v50 = vadd.f32 %v3423_v27, %v1347_v49  ;;  %v1496_v54 = vmax.f32 %v1464_v45, 0.0 }
 0x328   : > { %v1499_v52 = vmax.f32 %v1467_v48, 0.0 }
 0x329   : > { %v1497_v55 = vmax.f32 %v1465_v50, 0.0 }
 0x32a   : > { %v1527_v21 = vpack.c.bf16 %v1499_v52, %v1498_v51 }
 0x32b   : > { %v1526_v56 = vpack.c.bf16 %v1497_v55, %v1496_v54  ;;  %v2729_v57 = vpop.f32.mrb[8].mxu0 }
 0x32c   : > { %v1470_v58 = vadd.f32 %v2729_v57, %v3423_v27  ;;  %v1360_v59 = vpop.f32.mrb[9].mxu0 }
 0x32d   : > { %v1468_v60 = vadd.f32 %v3423_v27, %v1360_v59  ;;  %v2730_v61 = vpop.f32.mrb[10].mxu0  ;;  %2763 = vmatprep.mubr.msk.bf16.mxu1 %vm1052_vm13, %v1526_v56 }
 0x32e   : > { %v1471_v62 = vadd.f32 %v2730_v61, %v3423_v27  ;;  %v1363_v63 = vpop.f32.mrb[11].mxu0  ;;  %2764 = vmatmul.mubr.msk.bf16.gmra.mrb[12].mxu1 %vm1052_vm13, %v1527_v21  ;;  %v1502_v1 = vmax.f32 %v1470_v58, 0.0 }
 0x32f   : > { %v1469_v0 = vadd.f32 %v3423_v27, %v1363_v63  ;;  %v1500_v3 = vmax.f32 %v1468_v60, 0.0 }
 0x330   : > { %v1503_v2 = vmax.f32 %v1471_v62, 0.0 }
 0x331   : > { %v1501_v4 = vmax.f32 %v1469_v0, 0.0 }
 0x332   : > { %v1529_v5 = vpack.c.bf16 %v1503_v2, %v1502_v1 }
 0x333   : > { %v1528_v6 = vpack.c.bf16 %v1501_v4, %v1500_v3  ;;  %v2733_v7 = vpop.f32.mrb[12].mxu0 }
 0x334   : > { %v1474_v8 = vadd.f32 %v2733_v7, %v3423_v27  ;;  %v1376_v9 = vpop.f32.mrb[13].mxu0 }
 0x335   : > { %v1472_v28 = vadd.f32 %v3423_v27, %v1376_v9  ;;  %v2734_v31 = vpop.f32.mrb[14].mxu0  ;;  %2767 = vmatprep.mubr.msk.bf16.mxu1 %vm1052_vm13, %v1528_v6 }
 0x336   : > { %v1475_v32 = vadd.f32 %v2734_v31, %v3423_v27  ;;  %v1379_v29 = vpop.f32.mrb[15].mxu0  ;;  %2768 = vmatmul.mubr.msk.bf16.gmra.mrb[16].mxu1 %vm1052_vm13, %v1529_v5  ;;  %v1506_v33 = vmax.f32 %v1474_v8, 0.0 }
 0x337   : > { %v1473_v30 = vadd.f32 %v3423_v27, %v1379_v29  ;;  %v1504_v35 = vmax.f32 %v1472_v28, 0.0 }
 0x338   : > { %v1507_v34 = vmax.f32 %v1475_v32, 0.0 }
 0x339   : > { %v1505_v36 = vmax.f32 %v1473_v30, 0.0 }
 0x33a   : > { %v1531_v37 = vpack.c.bf16 %v1507_v34, %v1506_v33 }
 0x33b   : > { %v1530_v38 = vpack.c.bf16 %v1505_v36, %v1504_v35  ;;  %v2737_v39 = vpop.f32.mrb[16].mxu0 }
 0x33c   : > { %v1478_v40 = vadd.f32 %v2737_v39, %v3423_v27  ;;  %v1392_v41 = vpop.f32.mrb[17].mxu0 }
 0x33d   : > { %v1476_v42 = vadd.f32 %v3423_v27, %v1392_v41  ;;  %v2738_v43 = vpop.f32.mrb[18].mxu0  ;;  %2771 = vmatprep.mubr.msk.bf16.mxu1 %vm1052_vm13, %v1530_v38 }
 0x33e   : > { %v1479_v44 = vadd.f32 %v2738_v43, %v3423_v27  ;;  %v1395_v45 = vpop.f32.mrb[19].mxu0  ;;  %2772 = vmatmul.mubr.msk.bf16.gmra.mrb[20].mxu1 %vm1052_vm13, %v1531_v37  ;;  %v1510_v48 = vmax.f32 %v1478_v40, 0.0 }
 0x33f   : > { %v1477_v46 = vadd.f32 %v3423_v27, %v1395_v45  ;;  %v1508_v50 = vmax.f32 %v1476_v42, 0.0 }
 0x340   : > { %v1511_v49 = vmax.f32 %v1479_v44, 0.0 }
 0x341   : > { %v1509_v51 = vmax.f32 %v1477_v46, 0.0 }
 0x342   : > { %v1533_v52 = vpack.c.bf16 %v1511_v49, %v1510_v48 }
 0x343   : > { %v1532_v54 = vpack.c.bf16 %v1509_v51, %v1508_v50  ;;  %v2741_v55 = vpop.f32.mrb[20].mxu0 }
 0x344   : > { %v1482_v21 = vadd.f32 %v2741_v55, %v3423_v27  ;;  %v1408_v56 = vpop.f32.mrb[21].mxu0 }
 0x345   : > { %v1480_v57 = vadd.f32 %v3423_v27, %v1408_v56  ;;  %v2742_v58 = vpop.f32.mrb[22].mxu0  ;;  %2775 = vmatprep.mubr.msk.bf16.mxu1 %vm1052_vm13, %v1532_v54 }
 0x346   : > { %v1483_v59 = vadd.f32 %v2742_v58, %v3423_v27  ;;  %v1411_v60 = vpop.f32.mrb[23].mxu0  ;;  %2776 = vmatmul.mubr.msk.bf16.gmra.mrb[24].mxu1 %vm1052_vm13, %v1533_v52  ;;  %v1514_v62 = vmax.f32 %v1482_v21, 0.0 }
 0x347   : > { %v1481_v61 = vadd.f32 %v3423_v27, %v1411_v60  ;;  %v1512_v0 = vmax.f32 %v1480_v57, 0.0 }
 0x348   : > { %v1515_v63 = vmax.f32 %v1483_v59, 0.0 }
 0x349   : > { %v1513_v1 = vmax.f32 %v1481_v61, 0.0 }
 0x34a   : > { %v1535_v2 = vpack.c.bf16 %v1515_v63, %v1514_v62 }
 0x34b   : > { %v1534_v3 = vpack.c.bf16 %v1513_v1, %v1512_v0  ;;  %v2745_v4 = vpop.f32.mrb[24].mxu0 }
 0x34c   : > { %v1433_v5 = vadd.f32 %v2745_v4, %v3404_v10  ;;  %v1424_v6 = vpop.f32.mrb[25].mxu0 }
 0x34d   : > { %v1425_v7 = vadd.f32 %v1424_v6, %v3406_v11  ;;  %v2746_v8 = vpop.f32.mrb[26].mxu0  ;;  %2779 = vmatprep.mubr.msk.bf16.mxu1 %vm1052_vm13, %v1534_v3 }
 0x34e   : > { %v1486_v9 = vadd.f32 %v3423_v27, %v1433_v5  ;;  %v1436_v28 = vadd.f32 %v2746_v8, %v3408_v19  ;;  %v1427_v31 = vpop.f32.mrb[27].mxu0  ;;  %2780 = vmatmul.mubr.msk.bf16.gmra.mrb[28].mxu1 %vm1052_vm13, %v1535_v2 }
 0x34f   : > { %v1484_v32 = vadd.f32 %v3423_v27, %v1425_v7  ;;  %v1428_v29 = vadd.f32 %v1427_v31, %v3410_v20 }
 0x350   : > { %v1487_v30 = vadd.f32 %v3423_v27, %v1436_v28  ;;  %v1518_v33 = vmax.f32 %v1486_v9, 0.0 }
 0x351   : > { %v1485_v10 = vadd.f32 %v3423_v27, %v1428_v29  ;;  %v1516_v34 = vmax.f32 %v1484_v32, 0.0 }
 0x352   : > { %v1519_v11 = vmax.f32 %v1487_v30, 0.0 }
 0x353   : > { %v1517_v35 = vmax.f32 %v1485_v10, 0.0  ;;  %v2749_v36 = vpop.f32.mrb[28].mxu0 }
 0x354   : > { %v1537_v37 = vpack.c.bf16 %v1519_v11, %v1518_v33  ;;  %v1449_v38 = vadd.f32 %v2749_v36, %v3412_v22  ;;  %v1440_v19 = vpop.f32.mrb[29].mxu0 }
 0x355   : > { %v1536_v39 = vpack.c.bf16 %v1517_v35, %v1516_v34  ;;  %v1441_v40 = vadd.f32 %v1440_v19, %v3414_v23  ;;  %v2750_v41 = vpop.f32.mrb[30].mxu0 }
 0x356   : > { %v1490_v42 = vadd.f32 %v3423_v27, %v1449_v38  ;;  %v1452_v20 = vadd.f32 %v2750_v41, %v3416_v25  ;;  %v1443_v43 = vpop.f32.mrb[31].mxu0  ;;  %v2953_v25 = vmov 1.0|1.0  }
 0x357   : > { %v1488_v44 = vadd.f32 %v3423_v27, %v1441_v40  ;;  %v1444_v45 = vadd.f32 %v1443_v43, %v3418_v26  ;;  %2783 = vmatprep.mubr.msk.bf16.mxu1 %vm1052_vm13, %v1536_v39 }
 0x358   : > { %v1491_v46 = vadd.f32 %v3423_v27, %v1452_v20  ;;  %2784 = vmatmul.mubr.msk.bf16.gmra.mrb[32].mxu1 %vm1052_vm13, %v1537_v37  ;;  %v1522_v48 = vmax.f32 %v1490_v42, 0.0 }
 0x359   : > { %v1489_v22 = vadd.f32 %v3423_v27, %v1444_v45  ;;  %v1520_v49 = vmax.f32 %v1488_v44, 0.0  ;;  %v3487_v27 = vld [vmem:[%s3707_s9 + $0x2] ss:$0 sm:$0xff] }
 0x35a   : > { %v1523_v23 = vmax.f32 %v1491_v46, 0.0 }
 0x35b   : > { %v1521_v50 = vmax.f32 %v1489_v22, 0.0 }
 0x35c   : > { %v1539_v51 = vpack.c.bf16 %v1523_v23, %v1522_v48 }
 0x35d   : > { %v1538_v52 = vpack.c.bf16 %v1521_v50, %v1520_v49 }
 0x35f   : > { %2787 = vmatprep.mubr.msk.bf16.mxu1 %vm1052_vm13, %v1538_v52 }
 0x360   : > { %2788 = vmatmul.mubr.msk.bf16.gmra.mrb[36].mxu1 %vm1052_vm13, %v1539_v51 }
 0x361   : > { %2428 = vmatprep.mubr.msk.bf16.mxu1 %vm3277_vm11, %v2953_v25  ;;  %vm2431_vm11 = vmpackc.low %vm827_vm3, %vm825_vm2 }
 0x362   : > { %vm2435_vm2 = vmpackc.low %vm831_vm0, %vm829_vm12  ;;  %vm3721_vm12 = vcmp.eq.s32.totalorder %v3170_v17, %v3161_v14  ;;  %vm3722_vm0 = vcmp.eq.s32.totalorder %v3173_v18, %v3161_v14 }
 0x363   : > { %vm2441_vm8 = vmpackc.low %vm3722_vm0, %vm3721_vm12 }
 0x3f9   : > { %v2761_v26 = vpop.f32.mrb[8].mxu1 }
 0x3fa   : > { %v1659_v54 = vpop.f32.mrb[9].mxu1  ;;  %v1668_v21 = vadd.f32 %v2761_v26, %v3487_v27 }
 0x3fb   : > { %v2762_v55 = vpop.f32.mrb[10].mxu1  ;;  %v1660_v58 = vadd.f32 %v3487_v27, %v1659_v54 }
 0x3fc   : > { %v1671_v56 = vadd.f32 %v2762_v55, %v3487_v27  ;;  %v1662_v57 = vpop.f32.mrb[11].mxu1 }
 0x3fd   : > { %v1663_v59 = vadd.f32 %v3487_v27, %v1662_v57 }
 0x3fe   : > { %v1795_v60 = vpack.c.bf16 %v1671_v56, %v1668_v21 }
 0x3ff   : > { %v1794_v53 = vpack.c.bf16 %v1663_v59, %v1660_v58 }
 0x401   : > { %v2765_v61 = vpop.f32.mrb[12].mxu1 }
 0x402   : > { %v1675_v62 = vpop.f32.mrb[13].mxu1  ;;  %v1684_v0 = vadd.f32 %v2765_v61, %v3487_v27 }
 0x403   : > { %v2766_v63 = vpop.f32.mrb[14].mxu1  ;;  %v1676_v3 = vadd.f32 %v3487_v27, %v1675_v62 }
 0x404   : > { %v1687_v1 = vadd.f32 %v2766_v63, %v3487_v27  ;;  %v1678_v2 = vpop.f32.mrb[15].mxu1 }
 0x405   : > { %v1679_v4 = vadd.f32 %v3487_v27, %v1678_v2 }
 0x406   : > { %v1797_v5 = vpack.c.bf16 %v1687_v1, %v1684_v0 }
 0x407   : > { %v1796_v6 = vpack.c.bf16 %v1679_v4, %v1676_v3 }
 0x409   : > { %v2769_v7 = vpop.f32.mrb[16].mxu1 }
 0x40a   : > { %v1691_v8 = vpop.f32.mrb[17].mxu1  ;;  %v3498_v28 = vadd.f32 %v2769_v7, %v3487_v27 }
 0x40b   : > { %v2770_v9 = vpop.f32.mrb[18].mxu1  ;;  %v1692_v29 = vadd.f32 %v3487_v27, %v1691_v8 }
 0x40c   : > { %v3501_v31 = vadd.f32 %v2770_v9, %v3487_v27  ;;  %v1694_v32 = vpop.f32.mrb[19].mxu1 }
 0x40d   : > { %v1695_v30 = vadd.f32 %v3487_v27, %v1694_v32 }
 0x40e   : > { %v1799_v10 = vpack.c.bf16 %v3501_v31, %v3498_v28 }
 0x40f   : > { %v1798_v33 = vpack.c.bf16 %v1695_v30, %v1692_v29 }
 0x411   : > { %v2773_v11 = vpop.f32.mrb[20].mxu1 }
 0x412   : > { %v1707_v34 = vpop.f32.mrb[21].mxu1  ;;  %v1716_v36 = vadd.f32 %v2773_v11, %v3487_v27  ;;  %v1788_v11 = vld [vmem:[#allocation3 + $0x10] sm:$0xff] }
 0x413   : > { %v2774_v35 = vpop.f32.mrb[22].mxu1  ;;  %v1708_v19 = vadd.f32 %v3487_v27, %v1707_v34 }
 0x414   : > { %v1719_v37 = vadd.f32 %v2774_v35, %v3487_v27  ;;  %v1710_v38 = vpop.f32.mrb[23].mxu1 }
 0x415   : > { %v1711_v39 = vadd.f32 %v3487_v27, %v1710_v38 }
 0x416   : > { %v1801_v40 = vpack.c.bf16 %v1719_v37, %v1716_v36 }
 0x417   : > { %v1800_v41 = vpack.c.bf16 %v1711_v39, %v1708_v19  ;;  %v1790_v39 = vld [vmem:[#allocation3 + $0x20] sm:$0xff] }
 0x419   : > { %v2777_v42 = vpop.f32.mrb[24].mxu1 }
 0x41a   : > { %v1723_v20 = vpop.f32.mrb[25].mxu1  ;;  %v1732_v44 = vadd.f32 %v2777_v42, %v3487_v27 }
 0x41b   : > { %v2778_v43 = vpop.f32.mrb[26].mxu1  ;;  %v1724_v22 = vadd.f32 %v3487_v27, %v1723_v20  ;;  %v1791_v20 = vld [vmem:[#allocation3 + $0x28] sm:$0xff] }
 0x41c   : > { %v1735_v45 = vadd.f32 %v2778_v43, %v3487_v27  ;;  %v1726_v46 = vpop.f32.mrb[27].mxu1 }
 0x41d   : > { %v1727_v48 = vadd.f32 %v3487_v27, %v1726_v46 }
 0x41e   : > { %v1803_v23 = vpack.c.bf16 %v1735_v45, %v1732_v44 }
 0x41f   : > { %v1802_v49 = vpack.c.bf16 %v1727_v48, %v1724_v22  ;;  %v1792_v48 = vld [vmem:[#allocation3 + $0x30] sm:$0xff] }
 0x421   : > { %v2781_v50 = vpop.f32.mrb[28].mxu1  ;;  %2557 = vmatprep.subr.bf16.mxu1 %v1802_v49 }
 0x422   : > { %v1739_v51 = vpop.f32.mrb[29].mxu1  ;;  %2558 = vmatpush3.bf16.msra.mxu1 %v1794_v53  ;;  %v1748_v26 = vadd.f32 %v2781_v50, %v3487_v27 }
 0x423   : > { %v2782_v52 = vpop.f32.mrb[30].mxu1  ;;  %2559 = vmatprep.subr.bf16.mxu1 %v1803_v23  ;;  %v1740_v21 = vadd.f32 %v3487_v27, %v1739_v51  ;;  %v1793_v51 = vld [vmem:[#allocation3 + $0x38] sm:$0xff] }
 0x424   : > { %v1751_v54 = vadd.f32 %v2782_v52, %v3487_v27  ;;  %v1742_v55 = vpop.f32.mrb[31].mxu1 }
 0x425   : > { %v1743_v56 = vadd.f32 %v3487_v27, %v1742_v55 }
 0x426   : > { %v1805_v57 = vpack.c.bf16 %v1751_v54, %v1748_v26  ;;  %2560 = vmatpush3.bf16.msra.mxu1 %v1795_v60 }
 0x427   : > { %v1804_v58 = vpack.c.bf16 %v1743_v56, %v1740_v21  ;;  %v2931_v21 = vld [vmem:[%s3705_s7 + $0x20] sm:$0xff] (!%p2443_p6)   ;;  %v2932_v56 = vld [vmem:[%s3705_s7 + $0x28] sm:$0xff] (!%p2443_p6)  }
 0x428   : > { %2791 = vmatprep.subr.bf16.mxu0 (!%p2443_p6), %v2931_v21 }
 0x429   : > { %2561 = vmatprep.subr.bf16.mxu1 %v1804_v58  ;;  %2792 = vmatpush3.bf16.msra.mxu0 (!%p2443_p6), %v2931_v21 }
 0x42a   : > { %2562 = vmatpush3.bf16.msra.mxu1 %v1796_v6  ;;  %2793 = vmatprep.subr.bf16.mxu0 (!%p2443_p6), %v2932_v56 }
 0x42b   : > { %v2785_v59 = vpop.f32.mrb[32].mxu1  ;;  %2563 = vmatprep.subr.bf16.mxu1 %v1805_v57  ;;  %v2933_v57 = vld [vmem:[%s3705_s7 + $0x30] sm:$0xff] (!%p2443_p6)  }
 0x42c   : > { %v1755_v61 = vpop.f32.mrb[33].mxu1  ;;  %v1764_v62 = vadd.f32 %v2785_v59, %v3487_v27 }
 0x42d   : > { %v2786_v53 = vpop.f32.mrb[34].mxu1  ;;  %v1756_v1 = vadd.f32 %v3487_v27, %v1755_v61  ;;  %2794 = vmatpush3.bf16.msra.mxu0 (!%p2443_p6), %v2932_v56  ;;  %v2461_v56 = vld [vmem:[%s3707_s9 + $0x4] ss:$0 sm:$0xff] (!%p2443_p6) }
 0x42e   : > { %v1767_v63 = vadd.f32 %v2786_v53, %v3487_v27  ;;  %v1758_v0 = vpop.f32.mrb[35].mxu1  ;;  %2564 = vmatpush3.bf16.msra.mxu1 %v1797_v5  ;;  %2795 = vmatprep.subr.bf16.mxu0 (!%p2443_p6), %v2933_v57  ;;  %v2934_v53 = vld [vmem:[%s3705_s7 + $0x38] sm:$0xff] (!%p2443_p6)  }
 0x42f   : > { %v1759_v2 = vadd.f32 %v3487_v27, %v1758_v0  ;;  %v2935_v0 = vld [vmem:[%s3705_s7] sm:$0xff] (!%p2443_p6)  }
 0x430   : > { %v1807_v3 = vpack.c.bf16 %v1767_v63, %v1764_v62 }
 0x431   : > { %v1806_v4 = vpack.c.bf16 %v1759_v2, %v1756_v1  ;;  %2796 = vmatpush3.bf16.msra.mxu0 (!%p2443_p6), %v2933_v57 }
 0x432   : > { %2797 = vmatprep.subr.bf16.mxu0 (!%p2443_p6), %v2934_v53 }
 0x433   : > { %v2789_v60 = vpop.f32.mrb[36].mxu1  ;;  %2565 = vmatprep.subr.bf16.mxu1 %v1806_v4  ;;  %v2939_v4 = vld [vmem:[%s3706_s8] sm:$0xff] (!%p2443_p6)  }
 0x434   : > { %v1771_v7 = vpop.f32.mrb[37].mxu1  ;;  %2566 = vmatpush3.bf16.msra.mxu1 %v1798_v33  ;;  %v1780_v8 = vadd.f32 %v2789_v60, %v3487_v27 }
 0x435   : > { %v2790_v6 = vpop.f32.mrb[38].mxu1  ;;  %2567 = vmatprep.subr.bf16.mxu1 %v1807_v3  ;;  %v1772_v31 = vadd.f32 %v3487_v27, %v1771_v7  ;;  %2798 = vmatpush3.bf16.msra.mxu0 (!%p2443_p6), %v2934_v53  ;;  %v2940_v7 = vld [vmem:[%s3706_s8 + $0x8] sm:$0xff] (!%p2443_p6)  }
 0x436   : > { %v1783_v9 = vadd.f32 %v2790_v6, %v3487_v27  ;;  %v1774_v28 = vpop.f32.mrb[39].mxu1  ;;  %2807 = vmatprep.subr.bf16.mxu0 (!%p2443_p6), %v2935_v0  ;;  %v2936_v6 = vld [vmem:[%s3705_s7 + $0x8] sm:$0xff] (!%p2443_p6)  }
 0x437   : > { %v1775_v5 = vadd.f32 %v3487_v27, %v1774_v28  ;;  %v2937_v28 = vld [vmem:[%s3705_s7 + $0x10] sm:$0xff] (!%p2443_p6)  }
 0x438   : > { %v1809_v32 = vpack.c.bf16 %v1783_v9, %v1780_v8  ;;  %2568 = vmatpush3.bf16.msra.mxu1 %v1799_v10 }
 0x439   : > { %v1808_v29 = vpack.c.bf16 %v1775_v5, %v1772_v31  ;;  %v3611_v31 = vld [vmem:[#allocation2] sm:$0xff] (!%p2443_p6)  ;;  %v3613_v5 = vld [vmem:[#allocation2 + $0x8] sm:$0xff] (!%p2443_p6) }
 0x43b   : > { %2569 = vmatprep.subr.bf16.mxu1 %v1808_v29  ;;  %v1903_v29 = vpack.c.bf16 (!%p2443_p6), %v3613_v5, %v3611_v31 }
 0x43c   : > { %2570 = vmatpush3.bf16.msra.mxu1 %v1800_v41 }
 0x43d   : > { %2571 = vmatprep.subr.bf16.mxu1 %v1809_v32 }
 0x440   : > { %2572 = vmatpush3.bf16.msra.mxu1 %v1801_v40 }
 0x441   : > { %2823 = vmatprep.subr.bf16.mxu1 (!%p2443_p6), %v2939_v4 }
 0x443   : > { %2430 = vmatmul.mubr.msk.bf16.vlgmr.msra.gmra.mrb[40].mxu1 %vm3190_vm6, %v2953_v25  ;;  %vm3718_vm6 = vcmp.eq.s32.totalorder %v3167_v16, %v3161_v14 }
 0x444   : > { %2432 = vmatprep.mubr.msk.bf16.mxu1 %vm2431_vm11, %v2953_v25  ;;  %vm2437_vm3 = vmpackc.low %vm3718_vm6, %vm828_vm7  ;;  %2824 = vmatpush3.bf16.msra.mxu1 (!%p2443_p6), %v2939_v4 }
 0x445   : > { %2825 = vmatprep.subr.bf16.mxu1 (!%p2443_p6), %v2940_v7 }
 0x448   : > { %2826 = vmatpush3.bf16.msra.mxu1 (!%p2443_p6), %v2940_v7 }
 0x44b   : > { %2434 = vmatmul.mubr.msk.bf16.gmra.mrb[44].mxu1 %vm2433_vm1, %v2953_v25 }
 0x44c   : > { %2436 = vmatprep.mubr.msk.bf16.mxu1 %vm2435_vm2, %v2953_v25 }
 0x453   : > { %2438 = vmatmul.mubr.msk.bf16.gmra.mrb[48].mxu1 %vm2437_vm3, %v2953_v25 }
 0x454   : > { %2440 = vmatprep.mubr.msk.bf16.mxu1 %vm2439_vm14, %v2953_v25 }
 0x45b   : > { %2442 = vmatmul.mubr.msk.bf16.gmra.mrb[52].mxu1 %vm2441_vm8, %v2953_v25  ;;  %v1789_v25 = vld [vmem:[#allocation3 + $0x18] sm:$0xff] }
 0x516   : > { %v2573_v12 = vpop.f32.mrb[40].mxu1 }
 0x517   : > { %v2574_v15 = vpop.f32.mrb[41].mxu1 }
 0x518   : > { %v2575_v16 = vadd.f32 %v2574_v15, %v2573_v12  ;;  %v2576_v24 = vpop.f32.mrb[42].mxu1  ;;  %v2938_v12 = vld [vmem:[%s3705_s7 + $0x18] sm:$0xff] (!%p2443_p6)  }
 0x519   : > { %v2577_v27 = vpop.f32.mrb[43].mxu1  ;;  %v3622_v15 = vld [vmem:[#allocation2 + $0x18] sm:$0xff] (!%p2443_p6) }
 0x51a   : > { %v1875_v30 = vadd.f32 %v2575_v16, %v1786_v13  ;;  %v2578_v10 = vadd.f32 %v2577_v27, %v2576_v24  ;;  %v1897_v13 = vld [vmem:[#allocation2 + $0x10] sm:$0xff] (!%p2443_p6)  ;;  %v3624_v16 = vld [vmem:[#allocation2 + $0x20] sm:$0xff] (!%p2443_p6)  ;;  %v3626_v24 = vld [vmem:[#allocation2 + $0x28] sm:$0xff] (!%p2443_p6) }
 0x51b   : > { %v1905_v27 = vpack.c.bf16 (!%p2443_p6), %v3626_v24, %v3624_v16 }
 0x51c   : > { %1883 = vst.msk [vmem:[#allocation3] sm:$0xff] %vm1052_vm13, %v1875_v30  ;;  %v1876_v33 = vadd.f32 %v2578_v10, %v1787_v47  ;;  %v1904_v47 = vpack.c.bf16 (!%p2443_p6), %v3622_v15, %v1897_v13  ;;  %v3633_v30 = vld [vmem:[#allocation2 + $0x30] sm:$0xff] (!%p2443_p6)  ;;  %v3635_v10 = vld [vmem:[#allocation2 + $0x38] sm:$0xff] (!%p2443_p6) }
 0x51e   : > { %1884 = vst.msk [vmem:[#allocation3 + $0x8] sm:$0xff] %vm1052_vm13, %v1876_v33  ;;  %v2579_v17 = vpop.f32.mrb[44].mxu1  ;;  %v1906_v33 = vpack.c.bf16 (!%p2443_p6), %v3635_v10, %v3633_v30 }
 0x51f   : > { %v2580_v14 = vpop.f32.mrb[45].mxu1 }
 0x520   : > { %v2581_v18 = vadd.f32 %v2580_v14, %v2579_v17  ;;  %v2582_v34 = vpop.f32.mrb[46].mxu1  ;;  %v2941_v17 = vld [vmem:[%s3706_s8 + $0x10] sm:$0xff] (!%p2443_p6)   ;;  %v2460_v14 = vld [vmem:[%s3707_s9 + $0x3] ss:$0 sm:$0xff] (!%p2443_p6) }
 0x521   : > { %v2583_v35 = vpop.f32.mrb[47].mxu1  ;;  %2827 = vmatprep.subr.bf16.mxu1 (!%p2443_p6), %v2941_v17 }
 0x522   : > { %v1877_v36 = vadd.f32 %v2581_v18, %v1788_v11  ;;  %v2584_v37 = vadd.f32 %v2583_v35, %v2582_v34  ;;  %2828 = vmatpush3.bf16.msra.mxu1 (!%p2443_p6), %v2941_v17  ;;  %v2942_v11 = vld [vmem:[%s3706_s8 + $0x18] sm:$0xff] (!%p2443_p6)  }
 0x523   : > { %v1915_v58 = vld [vmem:[#allocation3] sm:$0xff] (!%p2443_p6)  ;;  %2829 = vmatprep.subr.bf16.mxu1 (!%p2443_p6), %v2942_v11 }
 0x524   : > { %1885 = vst.msk [vmem:[#allocation3 + $0x10] sm:$0xff] %vm1052_vm13, %v1877_v36  ;;  %v1878_v38 = vadd.f32 %v2584_v37, %v1789_v25 }
 0x525   : > { %v1916_v59 = vld [vmem:[#allocation3 + $0x8] sm:$0xff] (!%p2443_p6) }
 0x526   : > { %1886 = vst.msk [vmem:[#allocation3 + $0x18] sm:$0xff] %vm1052_vm13, %v1878_v38  ;;  %v2585_v19 = vpop.f32.mrb[48].mxu1  ;;  %v1923_v61 = vpack.c.bf16 (!%p2443_p6), %v1916_v59, %v1915_v58  ;;  %2830 = vmatpush3.bf16.msra.mxu1 (!%p2443_p6), %v2942_v11 }
 0x527   : > { %v2586_v40 = vpop.f32.mrb[49].mxu1 }
 0x528   : > { %v2587_v41 = vadd.f32 %v2586_v40, %v2585_v19  ;;  %v2588_v42 = vpop.f32.mrb[50].mxu1  ;;  %2799 = vmatprep.mubr.msk.bf16.mxu0 (!%p2443_p6), %vm1052_vm13, %v1923_v61 }
 0x529   : > { %v2589_v43 = vpop.f32.mrb[51].mxu1 }
 0x52a   : > { %v1879_v44 = vadd.f32 %v2587_v41, %v1790_v39  ;;  %v2590_v45 = vadd.f32 %v2589_v43, %v2588_v42 }
 0x52b   : > { %v1917_v62 = vld [vmem:[#allocation3 + $0x10] sm:$0xff] (!%p2443_p6) }
 0x52c   : > { %1887 = vst.msk [vmem:[#allocation3 + $0x20] sm:$0xff] %vm1052_vm13, %v1879_v44  ;;  %v1880_v46 = vadd.f32 %v2590_v45, %v1791_v20 }
 0x52d   : > { %v1918_v63 = vld [vmem:[#allocation3 + $0x18] sm:$0xff] (!%p2443_p6) }
 0x52e   : > { %1888 = vst.msk [vmem:[#allocation3 + $0x28] sm:$0xff] %vm1052_vm13, %v1880_v46  ;;  %v2591_v22 = vpop.f32.mrb[52].mxu1  ;;  %v1924_v3 = vpack.c.bf16 (!%p2443_p6), %v1918_v63, %v1917_v62 }
 0x52f   : > { %v2592_v23 = vpop.f32.mrb[53].mxu1 }
 0x530   : > { %v2593_v49 = vadd.f32 %v2592_v23, %v2591_v22  ;;  %v2594_v50 = vpop.f32.mrb[54].mxu1  ;;  %1894 = sbr.rel (%p2443_p6) target bundleno = 1802 (0x70a), region = 68  ;;  %2800 = vmatmul.mubr.msk.bf16.vlgmr.msra.gmra.mrb[0].mxu0 (!%p2443_p6), %vm1052_vm13, %v1924_v3 }
 0x531   : > { %v2595_v52 = vpop.f32.mrb[55].mxu1  ;;  %2808 = vmatpush3.bf16.msra.mxu0 (!%p2443_p6), %v2935_v0 }
 0x532   : > { %v1881_v26 = vadd.f32 %v2593_v49, %v1792_v48  ;;  %v2596_v54 = vadd.f32 %v2595_v52, %v2594_v50  ;;  %2809 = vmatprep.subr.bf16.mxu0 (!%p2443_p6), %v2936_v6 }
 0x533   : > { %v1919_v1 = vld [vmem:[#allocation3 + $0x20] sm:$0xff] (!%p2443_p6) }
 0x534   : > { %1889 = vst.msk [vmem:[#allocation3 + $0x30] sm:$0xff] %vm1052_vm13, %v1881_v26  ;;  %v1882_v55 = vadd.f32 %v2596_v54, %v1793_v51 }
 0x535   : > { %v1920_v2 = vld [vmem:[#allocation3 + $0x28] sm:$0xff] (!%p2443_p6)  ;;  %2810 = vmatpush3.bf16.msra.mxu0 (!%p2443_p6), %v2936_v6 }
 0x536   : > { %1890 = vst.msk [vmem:[#allocation3 + $0x38] sm:$0xff] %vm1052_vm13, %v1882_v55  ;;  %v1925_v60 = vpack.c.bf16 (!%p2443_p6), %v1920_v2, %v1919_v1  ;;  %2811 = vmatprep.subr.bf16.mxu0 (!%p2443_p6), %v2937_v28 }
 0x538   : > { %2803 = vmatprep.mubr.msk.bf16.mxu0 %vm1052_vm13, %v1925_v60 }
 0x539   : > { %2812 = vmatpush3.bf16.msra.mxu0 %v2937_v28 }
 0x53a   : > { %2813 = vmatprep.subr.bf16.mxu0 %v2938_v12 }
 0x53b   : > { %v1921_v8 = vld [vmem:[#allocation3 + $0x30] sm:$0xff] }
 0x53d   : > { %v1922_v9 = vld [vmem:[#allocation3 + $0x38] sm:$0xff]  ;;  %2814 = vmatpush3.bf16.msra.mxu0 %v2938_v12 }
 0x53e   : > { %v1926_v32 = vpack.c.bf16 %v1922_v9, %v1921_v8 }
 0x540   : > { %2804 = vmatmul.mubr.msk.bf16.gmra.mrb[4].mxu0 %vm1052_vm13, %v1926_v32 }
 0x541   : > { %2815 = vmatprep.mubr.msk.bf16.mxu0 %vm1052_vm13, %v1903_v29 }
 0x548   : > { %2816 = vmatmul.mubr.msk.bf16.vlgmr.msra.gmra.mrb[0].mxu0 %vm1052_vm13, %v1904_v47 }
 0x549   : > { %2819 = vmatprep.mubr.msk.bf16.mxu0 %vm1052_vm13, %v1905_v27 }
 0x550   : > { %2820 = vmatmul.mubr.msk.bf16.gmra.mrb[4].mxu0 %vm1052_vm13, %v1906_v33 }
 0x61b   : > { %v2817_v18 = vpop.f32.mrb[0].mxu0 }
 0x61c   : > { %v2144_v34 = vadd.f32 %v2817_v18, %v2460_v14  ;;  %v2106_v25 = vpop.f32.mrb[1].mxu0 }
 0x61d   : > { %v2142_v35 = vadd.f32 %v2460_v14, %v2106_v25  ;;  %v2818_v36 = vpop.f32.mrb[2].mxu0 }
 0x61e   : > { %v2145_v37 = vadd.f32 %v2818_v36, %v2460_v14  ;;  %v2109_v38 = vpop.f32.mrb[3].mxu0  ;;  %v2152_v39 = vmax.f32 %v2144_v34, 0.0 }
 0x61f   : > { %v2143_v19 = vadd.f32 %v2460_v14, %v2109_v38  ;;  %v2150_v41 = vmax.f32 %v2142_v35, 0.0 }
 0x620   : > { %v2153_v40 = vmax.f32 %v2145_v37, 0.0 }
 0x621   : > { %v2151_v42 = vmax.f32 %v2143_v19, 0.0 }
 0x622   : > { %v2159_v20 = vpack.c.bf16 %v2153_v40, %v2152_v39 }
 0x623   : > { %v2821_v43 = vpop.f32.mrb[4].mxu0  ;;  %v2158_v44 = vpack.c.bf16 %v2151_v42, %v2150_v41 }
 0x624   : > { %v2148_v45 = vadd.f32 %v2821_v43, %v2460_v14  ;;  %v2122_v46 = vpop.f32.mrb[5].mxu0 }
 0x625   : > { %v2146_v22 = vadd.f32 %v2460_v14, %v2122_v46  ;;  %v2822_v48 = vpop.f32.mrb[6].mxu0  ;;  %2831 = vmatprep.mubr.msk.bf16.mxu1 %vm1052_vm13, %v2158_v44 }
 0x626   : > { %v2149_v23 = vadd.f32 %v2822_v48, %v2460_v14  ;;  %v2125_v49 = vpop.f32.mrb[7].mxu0  ;;  %2832 = vmatmul.mubr.msk.bf16.vlgmr.msra.gmra.mrb[0].mxu1 %vm1052_vm13, %v2159_v20  ;;  %v2156_v51 = vmax.f32 %v2148_v45, 0.0 }
 0x627   : > { %v2147_v50 = vadd.f32 %v2460_v14, %v2125_v49  ;;  %v2154_v26 = vmax.f32 %v2146_v22, 0.0 }
 0x628   : > { %v2157_v52 = vmax.f32 %v2149_v23, 0.0 }
 0x629   : > { %v2155_v54 = vmax.f32 %v2147_v50, 0.0 }
 0x62a   : > { %v2161_v55 = vpack.c.bf16 %v2157_v52, %v2156_v51 }
 0x62b   : > { %v2160_v21 = vpack.c.bf16 %v2155_v54, %v2154_v26 }
 0x62d   : > { %2835 = vmatprep.mubr.msk.bf16.mxu1 %vm1052_vm13, %v2160_v21 }
 0x62e   : > { %2836 = vmatmul.mubr.msk.bf16.gmra.mrb[4].mxu1 %vm1052_vm13, %v2161_v55 }
 0x6f9   : > { %v2833_v57 = vpop.f32.mrb[0].mxu1 }
 0x6fa   : > { %v2254_v58 = vadd.f32 %v2833_v57, %v2461_v56  ;;  %v2245_v59 = vpop.f32.mrb[1].mxu1 }
 0x6fb   : > { %v2246_v61 = vadd.f32 %v2461_v56, %v2245_v59  ;;  %v2834_v53 = vpop.f32.mrb[2].mxu1 }
 0x6fc   : > { %v2278_v62 = vadd.f32 %v2254_v58, %v1897_v13  ;;  %v2257_v63 = vadd.f32 %v2834_v53, %v2461_v56  ;;  %v2248_v0 = vpop.f32.mrb[3].mxu1 }
 0x6fd   : > { %v2276_v1 = vadd.f32 %v2246_v61, %v3611_v31  ;;  %v2249_v2 = vadd.f32 %v2461_v56, %v2248_v0 }
 0x6fe   : > { %2286 = vst.msk [vmem:[%s3708_s10 + $0x10] sm:$0xff] %vm1052_vm13, %v2278_v62  ;;  %v2279_v3 = vadd.f32 %v2257_v63, %v3622_v15 }
 0x6ff   : > { %2284 = vst.msk [vmem:[%s3708_s10] sm:$0xff] %vm1052_vm13, %v2276_v1  ;;  %v2277_v4 = vadd.f32 %v2249_v2, %v3613_v5 }
 0x700   : > { %2287 = vst.msk [vmem:[%s3708_s10 + $0x18] sm:$0xff] %vm1052_vm13, %v2279_v3 }
 0x701   : > { %2285 = vst.msk [vmem:[%s3708_s10 + $0x8] sm:$0xff] %vm1052_vm13, %v2277_v4  ;;  %v2837_v60 = vpop.f32.mrb[4].mxu1 }
 0x702   : > { %v2270_v7 = vadd.f32 %v2837_v60, %v2461_v56  ;;  %v2261_v6 = vpop.f32.mrb[5].mxu1 }
 0x703   : > { %v2262_v8 = vadd.f32 %v2461_v56, %v2261_v6  ;;  %v2838_v9 = vpop.f32.mrb[6].mxu1 }
 0x704   : > { %v2282_v28 = vadd.f32 %v2270_v7, %v3633_v30  ;;  %v2273_v31 = vadd.f32 %v2838_v9, %v2461_v56  ;;  %v2264_v32 = vpop.f32.mrb[7].mxu1 }
 0x705   : > { %v2280_v5 = vadd.f32 %v2262_v8, %v3624_v16  ;;  %v2265_v29 = vadd.f32 %v2461_v56, %v2264_v32 }
 0x706   : > { %2290 = vst.msk [vmem:[%s3708_s10 + $0x30] sm:$0xff] %vm1052_vm13, %v2282_v28  ;;  %v2283_v12 = vadd.f32 %v2273_v31, %v3635_v10 }
 0x707   : > { %2288 = vst.msk [vmem:[%s3708_s10 + $0x20] sm:$0xff] %vm1052_vm13, %v2280_v5  ;;  %v2281_v13 = vadd.f32 %v2265_v29, %v3626_v24 }
 0x708   : > { %2291 = vst.msk [vmem:[%s3708_s10 + $0x38] sm:$0xff] %vm1052_vm13, %v2283_v12 }
 0x709   : > { %2289 = vst.msk [vmem:[%s3708_s10 + $0x28] sm:$0xff] %vm1052_vm13, %v2281_v13 }
 0x70a PF: > { %s20_s13 = sadd.s32 1, %s2949_s13  }
 0x70b   : > { %p17_p7 = scmp.ge.s32.totalorder %s20_s13, 4  }
 0x70d   :  { %19 = sbr.rel (!%p17_p7) target bundleno = 1 (0x1), region = 100 }

// kernel: gcn_forward.3
= control target key start
LH: loop header
LB: loop body
LE: loop exit
PB: predicated region body
PF: predicated region fallthrough
CT: control target
= control target key end

     0   :  { %vm220_vm0 = vcmask 1042432   ;;  %vm221_vm1 = vcmask 1043456   ;;  %v3542_v1 = vmov 65535   ;;  %vm123_vm2 = vcmask 56320   ;;  %s5233_s1 = inlined_call_operand.vmem [shape: bf16[7,64], index: 1, kind: input, shape index: {}]   ;;  %s5234_s0 = inlined_call_operand.vmem [shape: f32[512,7], index: 0, kind: input, shape index: {}]   ;;  %s5235_s2 = inlined_call_operand.vmem [shape: bf16[64,64], index: 2, kind: input, shape index: {}]   ;;  %s5236_s4 = inlined_call_operand.vmem [shape: f32[5,64], index: 4, kind: input, shape index: {}]   ;;  %s5237_s3 = inlined_call_operand.vmem [shape: bf16[64,64], index: 3, kind: input, shape index: {}]   ;;  %s5238_s5 = inlined_call_operand.vmem [shape: bf16[512,64], index: 5, kind: output, shape index: {}]  }
   0x1   :  { %v117_v0 = vld [vmem:[%s5233_s1] sm:$0xf]  ;;  %v222_v2 = vsel %vm220_vm0, 4294967295, %v3542_v1  ;;  %v22_v4 = vld [vmem:[%s5234_s0 + $0x8] sm:$0xff]  ;;  %v23_v7 = vld [vmem:[%s5234_s0 + $0x10] sm:$0xff]  ;;  %vm649_vm3 = vcmask 523264  }
   0x2   :  { %v21_v3 = vld [vmem:[%s5234_s0] sm:$0xff]  ;;  %v223_v5 = vsel %vm221_vm1, %v222_v2, 0  ;;  %v24_v8 = vld [vmem:[%s5234_s0 + $0x18] sm:$0xff]  ;;  %v26_v11 = vld [vmem:[%s5234_s0 + $0x28] sm:$0xff]  ;;  %vm2780_vm4 = vcmask 519168  }
   0x3   :  { %v85_v6 = vpack.c.bf16 %v22_v4, %v21_v3  ;;  %v225_v9 = vand.u32 %v223_v5, %v117_v0  ;;  %v25_v10 = vld [vmem:[%s5234_s0 + $0x20] sm:$0xff]  ;;  %v86_v12 = vpack.c.bf16 %v24_v8, %v23_v7  ;;  %v27_v14 = vld [vmem:[%s5234_s0 + $0x30] sm:$0xff]  ;;  %v28_v15 = vld [vmem:[%s5234_s0 + $0x38] sm:$0xff] }
   0x4   :  { %v87_v13 = vpack.c.bf16 %v26_v11, %v25_v10  ;;  %v29_v16 = vld [vmem:[%s5234_s0 + $0x40] sm:$0xff]  ;;  %v30_v17 = vld [vmem:[%s5234_s0 + $0x48] sm:$0xff]  ;;  %v55_v20 = vld [vmem:[%s5234_s0 + $0x110] sm:$0xff]  ;;  %v88_v21 = vpack.c.bf16 %v28_v15, %v27_v14 }
   0x5   :  { %3193 = vmatprep.mubr.msk.bf16.mxu0 %vm123_vm2, %v85_v6  ;;  %3191 = vmatprep.subr.bf16.mxu0 %v225_v9  ;;  %v53_v18 = vld [vmem:[%s5234_s0 + $0x100] sm:$0xff]  ;;  %v54_v19 = vld [vmem:[%s5234_s0 + $0x108] sm:$0xff]  ;;  %v56_v23 = vld [vmem:[%s5234_s0 + $0x118] sm:$0xff]  ;;  %v89_v26 = vpack.c.bf16 %v30_v17, %v29_v16 }
   0x6   :  { %3401 = vmatprep.subr.bf16.mxu1 %v225_v9  ;;  %3192 = vmatpush3.bf16.msra.mxu0 %v225_v9  ;;  %v101_v22 = vpack.c.bf16 %v54_v19, %v53_v18  ;;  %v57_v24 = vld [vmem:[%s5234_s0 + $0x120] sm:$0xff]  ;;  %v58_v25 = vld [vmem:[%s5234_s0 + $0x128] sm:$0xff]  ;;  %v102_v27 = vpack.c.bf16 %v56_v23, %v55_v20  ;;  %v31_v29 = vld [vmem:[%s5234_s0 + $0x50] sm:$0xff] }
   0x7   :  { %3402 = vmatpush3.bf16.msra.mxu1 %v225_v9  ;;  %v103_v28 = vpack.c.bf16 %v58_v25, %v57_v24  ;;  %v59_v30 = vld [vmem:[%s5234_s0 + $0x130] sm:$0xff]  ;;  %v60_v31 = vld [vmem:[%s5234_s0 + $0x138] sm:$0xff]  ;;  %v61_v33 = vld [vmem:[%s5234_s0 + $0x140] sm:$0xff] }
   0x8   :  { %3225 = vmatprep.mubr.msk.bf16.mxu1 %vm123_vm2, %v101_v22  ;;  %v32_v32 = vld [vmem:[%s5234_s0 + $0x58] sm:$0xff]  ;;  %v62_v34 = vld [vmem:[%s5234_s0 + $0x148] sm:$0xff]  ;;  %v33_v35 = vld [vmem:[%s5234_s0 + $0x60] sm:$0xff]  ;;  %v104_v37 = vpack.c.bf16 %v60_v31, %v59_v30 }
   0x9   :  { %3194 = vmatmul.mubr.msk.bf16.vlgmr.msra.gmra.mrb[0].mxu0 %vm123_vm2, %v86_v12  ;;  %v34_v36 = vld [vmem:[%s5234_s0 + $0x68] sm:$0xff]  ;;  %v90_v38 = vpack.c.bf16 %v32_v32, %v31_v29  ;;  %v105_v39 = vpack.c.bf16 %v62_v34, %v61_v33  ;;  %v63_v41 = vld [vmem:[%s5234_s0 + $0x150] sm:$0xff]  ;;  %v3404_v42 = vld [vmem:[%s5235_s2] sm:$0xff]  }
   0xa   :  { %3197 = vmatprep.mubr.msk.bf16.mxu0 %vm123_vm2, %v87_v13  ;;  %3226 = vmatmul.mubr.msk.bf16.vlgmr.msra.gmra.mrb[0].mxu1 %vm123_vm2, %v102_v27  ;;  %v91_v40 = vpack.c.bf16 %v34_v36, %v33_v35  ;;  %v35_v43 = vld [vmem:[%s5234_s0 + $0x70] sm:$0xff]  ;;  %v36_v44 = vld [vmem:[%s5234_s0 + $0x78] sm:$0xff]  ;;  %v3405_v45 = vld [vmem:[%s5235_s2 + $0x8] sm:$0xff]  }
   0xb   :  { %3229 = vmatprep.mubr.msk.bf16.mxu1 %vm123_vm2, %v103_v28  ;;  %v64_v46 = vld [vmem:[%s5234_s0 + $0x158] sm:$0xff]  ;;  %v65_v47 = vld [vmem:[%s5234_s0 + $0x160] sm:$0xff]  ;;  %v66_v48 = vld [vmem:[%s5234_s0 + $0x168] sm:$0xff]  ;;  %3257 = vmatprep.subr.bf16.mxu1 %v3404_v42  ;;  %v92_v53 = vpack.c.bf16 %v36_v44, %v35_v43 }
   0xc   :  { %v37_v49 = vld [vmem:[%s5234_s0 + $0x80] sm:$0xff]  ;;  %v38_v50 = vld [vmem:[%s5234_s0 + $0x88] sm:$0xff]  ;;  %3258 = vmatpush3.bf16.msra.mxu1 %v3404_v42  ;;  %v106_v51 = vpack.c.bf16 %v64_v46, %v63_v41  ;;  %v3406_v52 = vld [vmem:[%s5235_s2 + $0x10] sm:$0xff]   ;;  %v107_v54 = vpack.c.bf16 %v66_v48, %v65_v47 }
   0xd   :  { %3259 = vmatprep.subr.bf16.mxu1 %v3405_v45  ;;  %v93_v55 = vpack.c.bf16 %v38_v50, %v37_v49  ;;  %v3407_v56 = vld [vmem:[%s5235_s2 + $0x18] sm:$0xff]   ;;  %v39_v57 = vld [vmem:[%s5234_s0 + $0x90] sm:$0xff]  ;;  %v69_v61 = vld [vmem:[%s5234_s0 + $0x180] sm:$0xff] }
   0xe   :  { %v67_v58 = vld [vmem:[%s5234_s0 + $0x170] sm:$0xff]  ;;  %v68_v59 = vld [vmem:[%s5234_s0 + $0x178] sm:$0xff]  ;;  %v70_v62 = vld [vmem:[%s5234_s0 + $0x188] sm:$0xff] }
   0xf   :  { %v40_v60 = vld [vmem:[%s5234_s0 + $0x98] sm:$0xff]  ;;  %v41_v63 = vld [vmem:[%s5234_s0 + $0xa0] sm:$0xff]  ;;  %v42_v0 = vld [vmem:[%s5234_s0 + $0xa8] sm:$0xff]  ;;  %v108_v1 = vpack.c.bf16 %v68_v59, %v67_v58  ;;  %v109_v3 = vpack.c.bf16 %v70_v62, %v69_v61 }
  0x10   :  { %3260 = vmatpush3.bf16.msra.mxu1 %v3405_v45  ;;  %v94_v2 = vpack.c.bf16 %v40_v60, %v39_v57  ;;  %v95_v4 = vpack.c.bf16 %v42_v0, %v41_v63  ;;  %v43_v5 = vld [vmem:[%s5234_s0 + $0xb0] sm:$0xff]  ;;  %v72_v7 = vld [vmem:[%s5234_s0 + $0x198] sm:$0xff]  ;;  %v73_v9 = vld [vmem:[%s5234_s0 + $0x1a0] sm:$0xff] }
  0x11   :  { %3198 = vmatmul.mubr.msk.bf16.gmra.mrb[4].mxu0 %vm123_vm2, %v88_v21  ;;  %3261 = vmatprep.subr.bf16.mxu1 %v3406_v52  ;;  %v71_v6 = vld [vmem:[%s5234_s0 + $0x190] sm:$0xff]  ;;  %v44_v8 = vld [vmem:[%s5234_s0 + $0xb8] sm:$0xff]  ;;  %v74_v10 = vld [vmem:[%s5234_s0 + $0x1a8] sm:$0xff] }
  0x12   :  { %3201 = vmatprep.mubr.msk.bf16.mxu0 %vm123_vm2, %v89_v26  ;;  %3230 = vmatmul.mubr.msk.bf16.gmra.mrb[4].mxu1 %vm123_vm2, %v104_v37  ;;  %v45_v11 = vld [vmem:[%s5234_s0 + $0xc0] sm:$0xff]  ;;  %v46_v12 = vld [vmem:[%s5234_s0 + $0xc8] sm:$0xff]  ;;  %v110_v13 = vpack.c.bf16 %v72_v7, %v71_v6  ;;  %v96_v14 = vpack.c.bf16 %v44_v8, %v43_v5  ;;  %v111_v15 = vpack.c.bf16 %v74_v10, %v73_v9  ;;  %v47_v17 = vld [vmem:[%s5234_s0 + $0xd0] sm:$0xff] }
  0x13   :  { %3233 = vmatprep.mubr.msk.bf16.mxu1 %vm123_vm2, %v105_v39  ;;  %v97_v16 = vpack.c.bf16 %v46_v12, %v45_v11  ;;  %v75_v18 = vld [vmem:[%s5234_s0 + $0x1b0] sm:$0xff]  ;;  %v76_v19 = vld [vmem:[%s5234_s0 + $0x1b8] sm:$0xff]  ;;  %v77_v21 = vld [vmem:[%s5234_s0 + $0x1c0] sm:$0xff] }
  0x14   :  { %3262 = vmatpush3.bf16.msra.mxu1 %v3406_v52  ;;  %v48_v20 = vld [vmem:[%s5234_s0 + $0xd8] sm:$0xff]  ;;  %v78_v22 = vld [vmem:[%s5234_s0 + $0x1c8] sm:$0xff]  ;;  %v49_v23 = vld [vmem:[%s5234_s0 + $0xe0] sm:$0xff]  ;;  %v112_v25 = vpack.c.bf16 %v76_v19, %v75_v18 }
  0x15   :  { %3263 = vmatprep.subr.bf16.mxu1 %v3407_v56  ;;  %v50_v24 = vld [vmem:[%s5234_s0 + $0xe8] sm:$0xff]  ;;  %v98_v26 = vpack.c.bf16 %v48_v20, %v47_v17  ;;  %v113_v27 = vpack.c.bf16 %v78_v22, %v77_v21  ;;  %v51_v29 = vld [vmem:[%s5234_s0 + $0xf0] sm:$0xff]  ;;  %v80_v31 = vld [vmem:[%s5234_s0 + $0x1d8] sm:$0xff] }
  0x16   :  { %v99_v28 = vpack.c.bf16 %v50_v24, %v49_v23  ;;  %v79_v30 = vld [vmem:[%s5234_s0 + $0x1d0] sm:$0xff]  ;;  %v52_v32 = vld [vmem:[%s5234_s0 + $0xf8] sm:$0xff]  ;;  %v81_v33 = vld [vmem:[%s5234_s0 + $0x1e0] sm:$0xff] }
  0x17   :  { %v82_v34 = vld [vmem:[%s5234_s0 + $0x1e8] sm:$0xff]  ;;  %v114_v35 = vpack.c.bf16 %v80_v31, %v79_v30  ;;  %v100_v36 = vpack.c.bf16 %v52_v32, %v51_v29  ;;  %v84_v39 = vld [vmem:[%s5234_s0 + $0x1f8] sm:$0xff]  ;;  %v3815_v41 = vld [vmem:[%s5236_s4] ss:$0 sm:$0xff] }
  0x18   :  { %3264 = vmatpush3.bf16.msra.mxu1 %v3407_v56  ;;  %v115_v37 = vpack.c.bf16 %v82_v34, %v81_v33  ;;  %v3410_v62 = vld [vmem:[%s5237_s3 + $0x10] sm:$0xff]  }
  0x19   :  { %3202 = vmatmul.mubr.msk.bf16.gmra.mrb[8].mxu0 %vm123_vm2, %v90_v38  ;;  %v83_v38 = vld [vmem:[%s5234_s0 + $0x1f0] sm:$0xff] }
  0x1a   :  { %3205 = vmatprep.mubr.msk.bf16.mxu0 %vm123_vm2, %v91_v40  ;;  %3234 = vmatmul.mubr.msk.bf16.gmra.mrb[8].mxu1 %vm123_vm2, %v106_v51  ;;  %v116_v40 = vpack.c.bf16 %v84_v39, %v83_v38  ;;  %v3408_v51 = vld [vmem:[%s5237_s3] sm:$0xff]  }
  0x1b   :  { %3237 = vmatprep.mubr.msk.bf16.mxu1 %vm123_vm2, %v107_v54  ;;  %3329 = vmatprep.subr.bf16.mxu0 %v3408_v51 }
  0x1c   :  { %3330 = vmatpush3.bf16.msra.mxu0 %v3408_v51 }
  0x21   :  { %3206 = vmatmul.mubr.msk.bf16.gmra.mrb[12].mxu0 %vm123_vm2, %v92_v53  ;;  %v3409_v53 = vld [vmem:[%s5237_s3 + $0x8] sm:$0xff]  }
  0x22   :  { %3209 = vmatprep.mubr.msk.bf16.mxu0 %vm123_vm2, %v93_v55  ;;  %3238 = vmatmul.mubr.msk.bf16.gmra.mrb[12].mxu1 %vm123_vm2, %v108_v1 }
  0x23   :  { %3241 = vmatprep.mubr.msk.bf16.mxu1 %vm123_vm2, %v109_v3  ;;  %3331 = vmatprep.subr.bf16.mxu0 %v3409_v53 }
  0x24   :  { %3332 = vmatpush3.bf16.msra.mxu0 %v3409_v53 }
  0x25   :  { %3333 = vmatprep.subr.bf16.mxu0 %v3410_v62 }
  0x28   :  { %3334 = vmatpush3.bf16.msra.mxu0 %v3410_v62 }
  0x29   :  { %3210 = vmatmul.mubr.msk.bf16.gmra.mrb[16].mxu0 %vm123_vm2, %v94_v2 }
  0x2a   :  { %3213 = vmatprep.mubr.msk.bf16.mxu0 %vm123_vm2, %v95_v4  ;;  %3242 = vmatmul.mubr.msk.bf16.gmra.mrb[16].mxu1 %vm123_vm2, %v110_v13 }
  0x2b   :  { %3245 = vmatprep.mubr.msk.bf16.mxu1 %vm123_vm2, %v111_v15 }
  0x31   :  { %3214 = vmatmul.mubr.msk.bf16.gmra.mrb[20].mxu0 %vm123_vm2, %v96_v14  ;;  %v3411_v14 = vld [vmem:[%s5237_s3 + $0x18] sm:$0xff]  }
  0x32   :  { %3217 = vmatprep.mubr.msk.bf16.mxu0 %vm123_vm2, %v97_v16  ;;  %3246 = vmatmul.mubr.msk.bf16.gmra.mrb[20].mxu1 %vm123_vm2, %v112_v25 }
  0x33   :  { %3249 = vmatprep.mubr.msk.bf16.mxu1 %vm123_vm2, %v113_v27  ;;  %3335 = vmatprep.subr.bf16.mxu0 %v3411_v14 }
  0x34   :  { %3336 = vmatpush3.bf16.msra.mxu0 %v3411_v14 }
  0x39   :  { %3218 = vmatmul.mubr.msk.bf16.gmra.mrb[24].mxu0 %vm123_vm2, %v98_v26 }
  0x3a   :  { %3221 = vmatprep.mubr.msk.bf16.mxu0 %vm123_vm2, %v99_v28  ;;  %3250 = vmatmul.mubr.msk.bf16.gmra.mrb[24].mxu1 %vm123_vm2, %v114_v35 }
  0x3b   :  { %3253 = vmatprep.mubr.msk.bf16.mxu1 %vm123_vm2, %v115_v37 }
  0x41   :  { %3222 = vmatmul.mubr.msk.bf16.gmra.mrb[28].mxu0 %vm123_vm2, %v100_v36 }
  0x42   :  { %3254 = vmatmul.mubr.msk.bf16.gmra.mrb[28].mxu1 %vm123_vm2, %v116_v40 }
  0xdc   :  { %v3195_v42 = vpop.f32.mrb[0].mxu0 }
  0xdd   :  { %v270_v43 = vadd.f32 %v3195_v42, %v3815_v41  ;;  %v261_v44 = vpop.f32.mrb[1].mxu0  ;;  %v3227_v57 = vpop.f32.mrb[0].mxu1 }
  0xde   :  { %v262_v45 = vadd.f32 %v3815_v41, %v261_v44  ;;  %v3196_v46 = vpop.f32.mrb[2].mxu0  ;;  %v398_v60 = vadd.f32 %v3227_v57, %v3815_v41  ;;  %v389_v61 = vpop.f32.mrb[1].mxu1 }
  0xdf   :  { %v273_v47 = vadd.f32 %v3196_v46, %v3815_v41  ;;  %v264_v48 = vpop.f32.mrb[3].mxu0  ;;  %v518_v49 = vmax.f32 %v270_v43, 0.0  ;;  %v390_v1 = vadd.f32 %v3815_v41, %v389_v61  ;;  %v3228_v2 = vpop.f32.mrb[2].mxu1 }
  0xe0   :  { %v265_v50 = vadd.f32 %v3815_v41, %v264_v48  ;;  %v516_v54 = vmax.f32 %v262_v45, 0.0  ;;  %v550_v5 = vmax.f32 %v398_v60, 0.0  ;;  %v401_v6 = vadd.f32 %v3228_v2, %v3815_v41  ;;  %v392_v7 = vpop.f32.mrb[3].mxu1 }
  0xe1   :  { %v519_v52 = vmax.f32 %v273_v47, 0.0  ;;  %v548_v10 = vmax.f32 %v390_v1, 0.0  ;;  %v393_v11 = vadd.f32 %v3815_v41, %v392_v7 }
  0xe2   :  { %v517_v55 = vmax.f32 %v265_v50, 0.0  ;;  %v551_v13 = vmax.f32 %v401_v6, 0.0 }
  0xe3   :  { %v581_v56 = vpack.c.bf16 %v519_v52, %v518_v49  ;;  %v549_v17 = vmax.f32 %v393_v11, 0.0 }
  0xe4   :  { %v580_v58 = vpack.c.bf16 %v517_v55, %v516_v54  ;;  %v3199_v59 = vpop.f32.mrb[4].mxu0  ;;  %v3843_v20 = vpack.c.bf16 %v551_v13, %v550_v5 }
  0xe5   :  { %v286_v63 = vadd.f32 %v3199_v59, %v3815_v41  ;;  %v277_v0 = vpop.f32.mrb[5].mxu0  ;;  %v3845_v22 = vpack.c.bf16 %v549_v17, %v548_v10  ;;  %v3231_v23 = vpop.f32.mrb[4].mxu1 }
  0xe6   :  { %v278_v3 = vadd.f32 %v3815_v41, %v277_v0  ;;  %v3200_v4 = vpop.f32.mrb[6].mxu0  ;;  %3265 = vmatprep.mubr.msk.bf16.mxu1 %vm649_vm3, %v580_v58  ;;  %v414_v26 = vadd.f32 %v3231_v23, %v3815_v41  ;;  %v405_v27 = vpop.f32.mrb[5].mxu1 }
  0xe7   :  { %v289_v8 = vadd.f32 %v3200_v4, %v3815_v41  ;;  %v280_v9 = vpop.f32.mrb[7].mxu0  ;;  %3266 = vmatmul.mubr.msk.bf16.vlgmr.msra.gmra.mrb[32].mxu1 %vm649_vm3, %v581_v56  ;;  %v522_v15 = vmax.f32 %v286_v63, 0.0  ;;  %v406_v30 = vadd.f32 %v3815_v41, %v405_v27  ;;  %v3232_v31 = vpop.f32.mrb[6].mxu1 }
  0xe8   :  { %v281_v12 = vadd.f32 %v3815_v41, %v280_v9  ;;  %v520_v18 = vmax.f32 %v278_v3, 0.0  ;;  %v554_v34 = vmax.f32 %v414_v26, 0.0  ;;  %v417_v35 = vadd.f32 %v3232_v31, %v3815_v41  ;;  %v408_v36 = vpop.f32.mrb[7].mxu1 }
  0xe9   :  { %v523_v16 = vmax.f32 %v289_v8, 0.0  ;;  %v552_v39 = vmax.f32 %v406_v30, 0.0  ;;  %v409_v40 = vadd.f32 %v3815_v41, %v408_v36 }
  0xea   :  { %v521_v19 = vmax.f32 %v281_v12, 0.0  ;;  %v555_v43 = vmax.f32 %v417_v35, 0.0 }
  0xeb   :  { %v583_v21 = vpack.c.bf16 %v523_v16, %v522_v15  ;;  %v553_v46 = vmax.f32 %v409_v40, 0.0 }
  0xec   :  { %v582_v24 = vpack.c.bf16 %v521_v19, %v520_v18  ;;  %v3203_v25 = vpop.f32.mrb[8].mxu0  ;;  %v3857_v49 = vpack.c.bf16 %v555_v43, %v554_v34 }
  0xed   :  { %v302_v28 = vadd.f32 %v3203_v25, %v3815_v41  ;;  %v293_v29 = vpop.f32.mrb[9].mxu0  ;;  %v3859_v51 = vpack.c.bf16 %v553_v46, %v552_v39  ;;  %v3235_v52 = vpop.f32.mrb[8].mxu1 }
  0xee   :  { %v294_v32 = vadd.f32 %v3815_v41, %v293_v29  ;;  %v3204_v33 = vpop.f32.mrb[10].mxu0  ;;  %3269 = vmatprep.mubr.msk.bf16.mxu1 %vm649_vm3, %v582_v24  ;;  %v430_v55 = vadd.f32 %v3235_v52, %v3815_v41  ;;  %v421_v56 = vpop.f32.mrb[9].mxu1 }
  0xef   :  { %v305_v37 = vadd.f32 %v3204_v33, %v3815_v41  ;;  %v296_v38 = vpop.f32.mrb[11].mxu0  ;;  %3270 = vmatmul.mubr.msk.bf16.gmra.mrb[36].mxu1 %vm649_vm3, %v583_v21  ;;  %v526_v44 = vmax.f32 %v302_v28, 0.0  ;;  %v422_v59 = vadd.f32 %v3815_v41, %v421_v56  ;;  %v3236_v60 = vpop.f32.mrb[10].mxu1 }
  0xf0   :  { %v297_v42 = vadd.f32 %v3815_v41, %v296_v38  ;;  %v524_v47 = vmax.f32 %v294_v32, 0.0  ;;  %v558_v63 = vmax.f32 %v430_v55, 0.0  ;;  %v433_v0 = vadd.f32 %v3236_v60, %v3815_v41  ;;  %v424_v1 = vpop.f32.mrb[11].mxu1 }
  0xf1   :  { %v527_v45 = vmax.f32 %v305_v37, 0.0  ;;  %v556_v4 = vmax.f32 %v422_v59, 0.0  ;;  %v425_v5 = vadd.f32 %v3815_v41, %v424_v1 }
  0xf2   :  { %v525_v48 = vmax.f32 %v297_v42, 0.0  ;;  %v559_v7 = vmax.f32 %v433_v0, 0.0 }
  0xf3   :  { %v585_v50 = vpack.c.bf16 %v527_v45, %v526_v44  ;;  %v557_v10 = vmax.f32 %v425_v5, 0.0 }
  0xf4   :  { %v584_v53 = vpack.c.bf16 %v525_v48, %v524_v47  ;;  %v3207_v54 = vpop.f32.mrb[12].mxu0  ;;  %v3871_v13 = vpack.c.bf16 %v559_v7, %v558_v63 }
  0xf5   :  { %v318_v57 = vadd.f32 %v3207_v54, %v3815_v41  ;;  %v309_v58 = vpop.f32.mrb[13].mxu0  ;;  %v3873_v15 = vpack.c.bf16 %v557_v10, %v556_v4  ;;  %v3239_v16 = vpop.f32.mrb[12].mxu1 }
  0xf6   :  { %v310_v61 = vadd.f32 %v3815_v41, %v309_v58  ;;  %v3208_v62 = vpop.f32.mrb[14].mxu0  ;;  %3273 = vmatprep.mubr.msk.bf16.mxu1 %vm649_vm3, %v584_v53  ;;  %v446_v19 = vadd.f32 %v3239_v16, %v3815_v41  ;;  %v437_v21 = vpop.f32.mrb[13].mxu1 }
  0xf7   :  { %v321_v2 = vadd.f32 %v3208_v62, %v3815_v41  ;;  %v312_v3 = vpop.f32.mrb[15].mxu0  ;;  %3274 = vmatmul.mubr.msk.bf16.gmra.mrb[40].mxu1 %vm649_vm3, %v585_v50  ;;  %v530_v8 = vmax.f32 %v318_v57, 0.0  ;;  %v438_v25 = vadd.f32 %v3815_v41, %v437_v21  ;;  %v3240_v26 = vpop.f32.mrb[14].mxu1 }
  0xf8   :  { %v313_v6 = vadd.f32 %v3815_v41, %v312_v3  ;;  %v528_v11 = vmax.f32 %v310_v61, 0.0  ;;  %v562_v29 = vmax.f32 %v446_v19, 0.0  ;;  %v449_v30 = vadd.f32 %v3240_v26, %v3815_v41  ;;  %v440_v31 = vpop.f32.mrb[15].mxu1 }
  0xf9   :  { %v531_v9 = vmax.f32 %v321_v2, 0.0  ;;  %v560_v34 = vmax.f32 %v438_v25, 0.0  ;;  %v441_v35 = vadd.f32 %v3815_v41, %v440_v31 }
  0xfa   :  { %v529_v12 = vmax.f32 %v313_v6, 0.0  ;;  %v563_v37 = vmax.f32 %v449_v30, 0.0 }
  0xfb   :  { %v587_v14 = vpack.c.bf16 %v531_v9, %v530_v8  ;;  %v561_v40 = vmax.f32 %v441_v35, 0.0 }
  0xfc   :  { %v586_v17 = vpack.c.bf16 %v529_v12, %v528_v11  ;;  %v3211_v18 = vpop.f32.mrb[16].mxu0  ;;  %v3885_v44 = vpack.c.bf16 %v563_v37, %v562_v29 }
  0xfd   :  { %v334_v23 = vadd.f32 %v3211_v18, %v3815_v41  ;;  %v325_v24 = vpop.f32.mrb[17].mxu0  ;;  %v3887_v46 = vpack.c.bf16 %v561_v40, %v560_v34  ;;  %v3243_v47 = vpop.f32.mrb[16].mxu1 }
  0xfe   :  { %v326_v27 = vadd.f32 %v3815_v41, %v325_v24  ;;  %v3212_v28 = vpop.f32.mrb[18].mxu0  ;;  %3277 = vmatprep.mubr.msk.bf16.mxu1 %vm649_vm3, %v586_v17  ;;  %v462_v52 = vadd.f32 %v3243_v47, %v3815_v41  ;;  %v453_v53 = vpop.f32.mrb[17].mxu1 }
  0xff   :  { %v337_v32 = vadd.f32 %v3212_v28, %v3815_v41  ;;  %v328_v33 = vpop.f32.mrb[19].mxu0  ;;  %3278 = vmatmul.mubr.msk.bf16.gmra.mrb[44].mxu1 %vm649_vm3, %v587_v14  ;;  %v534_v38 = vmax.f32 %v334_v23, 0.0  ;;  %v454_v56 = vadd.f32 %v3815_v41, %v453_v53  ;;  %v3244_v57 = vpop.f32.mrb[18].mxu1 }
 0x100   :  { %v329_v36 = vadd.f32 %v3815_v41, %v328_v33  ;;  %v532_v42 = vmax.f32 %v326_v27, 0.0  ;;  %v566_v60 = vmax.f32 %v462_v52, 0.0  ;;  %v465_v61 = vadd.f32 %v3244_v57, %v3815_v41  ;;  %v456_v62 = vpop.f32.mrb[19].mxu1 }
 0x101   :  { %v535_v39 = vmax.f32 %v337_v32, 0.0  ;;  %v564_v1 = vmax.f32 %v454_v56, 0.0  ;;  %v457_v2 = vadd.f32 %v3815_v41, %v456_v62 }
 0x102   :  { %v533_v43 = vmax.f32 %v329_v36, 0.0  ;;  %v567_v4 = vmax.f32 %v465_v61, 0.0 }
 0x103   :  { %v589_v45 = vpack.c.bf16 %v535_v39, %v534_v38  ;;  %v565_v7 = vmax.f32 %v457_v2, 0.0 }
 0x104   :  { %v588_v48 = vpack.c.bf16 %v533_v43, %v532_v42  ;;  %v3215_v50 = vpop.f32.mrb[20].mxu0  ;;  %v3899_v10 = vpack.c.bf16 %v567_v4, %v566_v60 }
 0x105   :  { %v350_v54 = vadd.f32 %v3215_v50, %v3815_v41  ;;  %v341_v55 = vpop.f32.mrb[21].mxu0  ;;  %v3901_v12 = vpack.c.bf16 %v565_v7, %v564_v1  ;;  %v3247_v14 = vpop.f32.mrb[20].mxu1 }
 0x106   :  { %v342_v58 = vadd.f32 %v3815_v41, %v341_v55  ;;  %v3216_v59 = vpop.f32.mrb[22].mxu0  ;;  %3281 = vmatprep.mubr.msk.bf16.mxu1 %vm649_vm3, %v588_v48  ;;  %v478_v18 = vadd.f32 %v3247_v14, %v3815_v41  ;;  %v469_v19 = vpop.f32.mrb[21].mxu1 }
 0x107   :  { %v353_v63 = vadd.f32 %v3216_v59, %v3815_v41  ;;  %v344_v0 = vpop.f32.mrb[23].mxu0  ;;  %3282 = vmatmul.mubr.msk.bf16.gmra.mrb[48].mxu1 %vm649_vm3, %v589_v45  ;;  %v538_v5 = vmax.f32 %v350_v54, 0.0  ;;  %v470_v24 = vadd.f32 %v3815_v41, %v469_v19  ;;  %v3248_v25 = vpop.f32.mrb[22].mxu1 }
 0x108   :  { %v345_v3 = vadd.f32 %v3815_v41, %v344_v0  ;;  %v536_v8 = vmax.f32 %v342_v58, 0.0  ;;  %v570_v28 = vmax.f32 %v478_v18, 0.0  ;;  %v481_v29 = vadd.f32 %v3248_v25, %v3815_v41  ;;  %v472_v30 = vpop.f32.mrb[23].mxu1 }
 0x109   :  { %v539_v6 = vmax.f32 %v353_v63, 0.0  ;;  %v568_v33 = vmax.f32 %v470_v24, 0.0  ;;  %v473_v34 = vadd.f32 %v3815_v41, %v472_v30 }
 0x10a   :  { %v537_v9 = vmax.f32 %v345_v3, 0.0  ;;  %v571_v36 = vmax.f32 %v481_v29, 0.0 }
 0x10b   :  { %v591_v11 = vpack.c.bf16 %v539_v6, %v538_v5  ;;  %v569_v39 = vmax.f32 %v473_v34, 0.0 }
 0x10c   :  { %v590_v16 = vpack.c.bf16 %v537_v9, %v536_v8  ;;  %v3219_v17 = vpop.f32.mrb[24].mxu0  ;;  %v607_v43 = vpack.c.bf16 %v571_v36, %v570_v28 }
 0x10d   :  { %v366_v21 = vadd.f32 %v3219_v17, %v3815_v41  ;;  %v357_v23 = vpop.f32.mrb[25].mxu0  ;;  %v606_v47 = vpack.c.bf16 %v569_v39, %v568_v33  ;;  %v3251_v48 = vpop.f32.mrb[24].mxu1 }
 0x10e   :  { %v358_v26 = vadd.f32 %v3815_v41, %v357_v23  ;;  %v3220_v27 = vpop.f32.mrb[26].mxu0  ;;  %3285 = vmatprep.mubr.msk.bf16.mxu1 %vm649_vm3, %v590_v16  ;;  %v494_v53 = vadd.f32 %v3251_v48, %v3815_v41  ;;  %v485_v54 = vpop.f32.mrb[25].mxu1 }
 0x10f   :  { %v369_v31 = vadd.f32 %v3220_v27, %v3815_v41  ;;  %v360_v32 = vpop.f32.mrb[27].mxu0  ;;  %3286 = vmatmul.mubr.msk.bf16.gmra.mrb[52].mxu1 %vm649_vm3, %v591_v11  ;;  %v542_v37 = vmax.f32 %v366_v21, 0.0  ;;  %v486_v57 = vadd.f32 %v3815_v41, %v485_v54  ;;  %v3252_v58 = vpop.f32.mrb[26].mxu1 }
 0x110   :  { %v361_v35 = vadd.f32 %v3815_v41, %v360_v32  ;;  %v540_v40 = vmax.f32 %v358_v26, 0.0  ;;  %v574_v61 = vmax.f32 %v494_v53, 0.0  ;;  %v497_v62 = vadd.f32 %v3252_v58, %v3815_v41  ;;  %v488_v63 = vpop.f32.mrb[27].mxu1 }
 0x111   :  { %v543_v38 = vmax.f32 %v369_v31, 0.0  ;;  %v572_v2 = vmax.f32 %v486_v57, 0.0  ;;  %v489_v3 = vadd.f32 %v3815_v41, %v488_v63 }
 0x112   :  { %v541_v42 = vmax.f32 %v361_v35, 0.0  ;;  %v575_v5 = vmax.f32 %v497_v62, 0.0 }
 0x113   :  { %v593_v45 = vpack.c.bf16 %v543_v38, %v542_v37  ;;  %v573_v8 = vmax.f32 %v489_v3, 0.0 }
 0x114   :  { %v592_v50 = vpack.c.bf16 %v541_v42, %v540_v40  ;;  %v3223_v52 = vpop.f32.mrb[28].mxu0  ;;  %v609_v14 = vpack.c.bf16 %v575_v5, %v574_v61 }
 0x115   :  { %v382_v55 = vadd.f32 %v3223_v52, %v3815_v41  ;;  %v373_v56 = vpop.f32.mrb[29].mxu0  ;;  %v608_v17 = vpack.c.bf16 %v573_v8, %v572_v2  ;;  %v3255_v18 = vpop.f32.mrb[28].mxu1 }
 0x116   :  { %v374_v59 = vadd.f32 %v3815_v41, %v373_v56  ;;  %v3224_v60 = vpop.f32.mrb[30].mxu0  ;;  %3289 = vmatprep.mubr.msk.bf16.mxu1 %vm649_vm3, %v592_v50  ;;  %v510_v21 = vadd.f32 %v3255_v18, %v3815_v41  ;;  %v501_v23 = vpop.f32.mrb[29].mxu1 }
 0x117   :  { %v385_v0 = vadd.f32 %v3224_v60, %v3815_v41  ;;  %v376_v1 = vpop.f32.mrb[31].mxu0  ;;  %3290 = vmatmul.mubr.msk.bf16.gmra.mrb[56].mxu1 %vm649_vm3, %v593_v45  ;;  %v546_v6 = vmax.f32 %v382_v55, 0.0  ;;  %v502_v24 = vadd.f32 %v3815_v41, %v501_v23  ;;  %v3256_v25 = vpop.f32.mrb[30].mxu1 }
 0x118   :  { %v377_v4 = vadd.f32 %v3815_v41, %v376_v1  ;;  %v544_v9 = vmax.f32 %v374_v59, 0.0  ;;  %v578_v26 = vmax.f32 %v510_v21, 0.0  ;;  %v513_v27 = vadd.f32 %v3256_v25, %v3815_v41  ;;  %v504_v28 = vpop.f32.mrb[31].mxu1 }
 0x119   :  { %v547_v7 = vmax.f32 %v385_v0, 0.0  ;;  %v576_v29 = vmax.f32 %v502_v24, 0.0  ;;  %v505_v30 = vadd.f32 %v3815_v41, %v504_v28  ;;  %v3958_v41 = vld [vmem:[%s5236_s4 + $0x1] ss:$0 sm:$0xff] }
 0x11a   :  { %v545_v11 = vmax.f32 %v377_v4, 0.0  ;;  %v579_v31 = vmax.f32 %v513_v27, 0.0 }
 0x11b   :  { %v595_v16 = vpack.c.bf16 %v547_v7, %v546_v6  ;;  %v577_v32 = vmax.f32 %v505_v30, 0.0 }
 0x11c   :  { %v594_v19 = vpack.c.bf16 %v545_v11, %v544_v9  ;;  %v611_v33 = vpack.c.bf16 %v579_v31, %v578_v26 }
 0x11d   :  { %v610_v34 = vpack.c.bf16 %v577_v32, %v576_v29 }
 0x11e   :  { %3293 = vmatprep.mubr.msk.bf16.mxu1 %vm649_vm3, %v594_v19 }
 0x11f   :  { %3294 = vmatmul.mubr.msk.bf16.gmra.mrb[60].mxu1 %vm649_vm3, %v595_v16 }
 0x120   :  { %3297 = vmatprep.mubr.msk.bf16.mxu1 %vm649_vm3, %v3845_v22 }
 0x127   :  { %3298 = vmatmul.mubr.msk.bf16.gmra.mrb[64].mxu1 %vm649_vm3, %v3843_v20 }
 0x128   :  { %3301 = vmatprep.mubr.msk.bf16.mxu1 %vm649_vm3, %v3859_v51 }
 0x12f   :  { %3302 = vmatmul.mubr.msk.bf16.gmra.mrb[68].mxu1 %vm649_vm3, %v3857_v49 }
 0x130   :  { %3305 = vmatprep.mubr.msk.bf16.mxu1 %vm649_vm3, %v3873_v15 }
 0x137   :  { %3306 = vmatmul.mubr.msk.bf16.gmra.mrb[72].mxu1 %vm649_vm3, %v3871_v13 }
 0x138   :  { %3309 = vmatprep.mubr.msk.bf16.mxu1 %vm649_vm3, %v3887_v46 }
 0x13f   :  { %3310 = vmatmul.mubr.msk.bf16.gmra.mrb[76].mxu1 %vm649_vm3, %v3885_v44 }
 0x140   :  { %3313 = vmatprep.mubr.msk.bf16.mxu1 %vm649_vm3, %v3901_v12 }
 0x147   :  { %3314 = vmatmul.mubr.msk.bf16.gmra.mrb[80].mxu1 %vm649_vm3, %v3899_v10 }
 0x148   :  { %3317 = vmatprep.mubr.msk.bf16.mxu1 %vm649_vm3, %v606_v47 }
 0x14f   :  { %3318 = vmatmul.mubr.msk.bf16.gmra.mrb[84].mxu1 %vm649_vm3, %v607_v43 }
 0x150   :  { %3321 = vmatprep.mubr.msk.bf16.mxu1 %vm649_vm3, %v608_v17 }
 0x157   :  { %3322 = vmatmul.mubr.msk.bf16.gmra.mrb[88].mxu1 %vm649_vm3, %v609_v14 }
 0x158   :  { %3325 = vmatprep.mubr.msk.bf16.mxu1 %vm649_vm3, %v610_v34 }
 0x15f   :  { %3326 = vmatmul.mubr.msk.bf16.gmra.mrb[92].mxu1 %vm649_vm3, %v611_v33 }
 0x1ba   :  { %v3267_v20 = vpop.f32.mrb[32].mxu1 }
 0x1bb   :  { %v789_v22 = vadd.f32 %v3267_v20, %v3958_v41  ;;  %v780_v49 = vpop.f32.mrb[33].mxu1 }
 0x1bc   :  { %v781_v51 = vadd.f32 %v3958_v41, %v780_v49  ;;  %v3268_v13 = vpop.f32.mrb[34].mxu1 }
 0x1bd   :  { %v792_v15 = vadd.f32 %v3268_v13, %v3958_v41  ;;  %v783_v44 = vpop.f32.mrb[35].mxu1  ;;  %v1037_v10 = vmax.f32 %v789_v22, 0.0 }
 0x1be   :  { %v784_v46 = vadd.f32 %v3958_v41, %v783_v44  ;;  %v1035_v35 = vmax.f32 %v781_v51, 0.0 }
 0x1bf   :  { %v1038_v12 = vmax.f32 %v792_v15, 0.0 }
 0x1c0   :  { %v1036_v36 = vmax.f32 %v784_v46, 0.0 }
 0x1c1   :  { %v1100_v37 = vpack.c.bf16 %v1038_v12, %v1037_v10 }
 0x1c2   :  { %v1099_v38 = vpack.c.bf16 %v1036_v36, %v1035_v35  ;;  %v3271_v39 = vpop.f32.mrb[36].mxu1 }
 0x1c3   :  { %v805_v40 = vadd.f32 %v3271_v39, %v3958_v41  ;;  %v796_v42 = vpop.f32.mrb[37].mxu1 }
 0x1c4   :  { %v797_v43 = vadd.f32 %v3958_v41, %v796_v42  ;;  %v3272_v45 = vpop.f32.mrb[38].mxu1  ;;  %3337 = vmatprep.mubr.msk.bf16.mxu0 %vm649_vm3, %v1099_v38 }
 0x1c5   :  { %v808_v47 = vadd.f32 %v3272_v45, %v3958_v41  ;;  %v799_v48 = vpop.f32.mrb[39].mxu1  ;;  %3338 = vmatmul.mubr.msk.bf16.vlgmr.msra.gmra.mrb[32].mxu0 %vm649_vm3, %v1100_v37  ;;  %v1041_v52 = vmax.f32 %v805_v40, 0.0 }
 0x1c6   :  { %v800_v50 = vadd.f32 %v3958_v41, %v799_v48  ;;  %v1039_v54 = vmax.f32 %v797_v43, 0.0 }
 0x1c7   :  { %v1042_v53 = vmax.f32 %v808_v47, 0.0 }
 0x1c8   :  { %v1040_v55 = vmax.f32 %v800_v50, 0.0 }
 0x1c9   :  { %v1102_v56 = vpack.c.bf16 %v1042_v53, %v1041_v52 }
 0x1ca   :  { %v1101_v57 = vpack.c.bf16 %v1040_v55, %v1039_v54  ;;  %v3275_v58 = vpop.f32.mrb[40].mxu1 }
 0x1cb   :  { %v821_v59 = vadd.f32 %v3275_v58, %v3958_v41  ;;  %v812_v60 = vpop.f32.mrb[41].mxu1 }
 0x1cc   :  { %v813_v61 = vadd.f32 %v3958_v41, %v812_v60  ;;  %v3276_v62 = vpop.f32.mrb[42].mxu1  ;;  %3341 = vmatprep.mubr.msk.bf16.mxu0 %vm649_vm3, %v1101_v57 }
 0x1cd   :  { %v824_v63 = vadd.f32 %v3276_v62, %v3958_v41  ;;  %v815_v0 = vpop.f32.mrb[43].mxu1  ;;  %3342 = vmatmul.mubr.msk.bf16.gmra.mrb[36].mxu0 %vm649_vm3, %v1102_v56  ;;  %v1045_v2 = vmax.f32 %v821_v59, 0.0 }
 0x1ce   :  { %v816_v1 = vadd.f32 %v3958_v41, %v815_v0  ;;  %v1043_v4 = vmax.f32 %v813_v61, 0.0 }
 0x1cf   :  { %v1046_v3 = vmax.f32 %v824_v63, 0.0 }
 0x1d0   :  { %v1044_v5 = vmax.f32 %v816_v1, 0.0 }
 0x1d1   :  { %v1104_v6 = vpack.c.bf16 %v1046_v3, %v1045_v2 }
 0x1d2   :  { %v1103_v7 = vpack.c.bf16 %v1044_v5, %v1043_v4  ;;  %v3279_v8 = vpop.f32.mrb[44].mxu1 }
 0x1d3   :  { %v837_v9 = vadd.f32 %v3279_v8, %v3958_v41  ;;  %v828_v11 = vpop.f32.mrb[45].mxu1 }
 0x1d4   :  { %v829_v14 = vadd.f32 %v3958_v41, %v828_v11  ;;  %v3280_v16 = vpop.f32.mrb[46].mxu1  ;;  %3345 = vmatprep.mubr.msk.bf16.mxu0 %vm649_vm3, %v1103_v7 }
 0x1d5   :  { %v840_v17 = vadd.f32 %v3280_v16, %v3958_v41  ;;  %v831_v18 = vpop.f32.mrb[47].mxu1  ;;  %3346 = vmatmul.mubr.msk.bf16.gmra.mrb[40].mxu0 %vm649_vm3, %v1104_v6  ;;  %v1049_v21 = vmax.f32 %v837_v9, 0.0 }
 0x1d6   :  { %v832_v19 = vadd.f32 %v3958_v41, %v831_v18  ;;  %v1047_v24 = vmax.f32 %v829_v14, 0.0 }
 0x1d7   :  { %v1050_v23 = vmax.f32 %v840_v17, 0.0 }
 0x1d8   :  { %v1048_v25 = vmax.f32 %v832_v19, 0.0 }
 0x1d9   :  { %v1106_v26 = vpack.c.bf16 %v1050_v23, %v1049_v21 }
 0x1da   :  { %v1105_v27 = vpack.c.bf16 %v1048_v25, %v1047_v24  ;;  %v3283_v28 = vpop.f32.mrb[48].mxu1 }
 0x1db   :  { %v853_v29 = vadd.f32 %v3283_v28, %v3958_v41  ;;  %v844_v30 = vpop.f32.mrb[49].mxu1 }
 0x1dc   :  { %v845_v31 = vadd.f32 %v3958_v41, %v844_v30  ;;  %v3284_v32 = vpop.f32.mrb[50].mxu1  ;;  %3349 = vmatprep.mubr.msk.bf16.mxu0 %vm649_vm3, %v1105_v27 }
 0x1dd   :  { %v856_v33 = vadd.f32 %v3284_v32, %v3958_v41  ;;  %v847_v34 = vpop.f32.mrb[51].mxu1  ;;  %3350 = vmatmul.mubr.msk.bf16.gmra.mrb[44].mxu0 %vm649_vm3, %v1106_v26  ;;  %v1053_v22 = vmax.f32 %v853_v29, 0.0 }
 0x1de   :  { %v848_v20 = vadd.f32 %v3958_v41, %v847_v34  ;;  %v1051_v51 = vmax.f32 %v845_v31, 0.0 }
 0x1df   :  { %v1054_v49 = vmax.f32 %v856_v33, 0.0 }
 0x1e0   :  { %v1052_v13 = vmax.f32 %v848_v20, 0.0 }
 0x1e1   :  { %v1108_v15 = vpack.c.bf16 %v1054_v49, %v1053_v22 }
 0x1e2   :  { %v1107_v44 = vpack.c.bf16 %v1052_v13, %v1051_v51  ;;  %v3287_v46 = vpop.f32.mrb[52].mxu1 }
 0x1e3   :  { %v869_v10 = vadd.f32 %v3287_v46, %v3958_v41  ;;  %v860_v12 = vpop.f32.mrb[53].mxu1 }
 0x1e4   :  { %v861_v35 = vadd.f32 %v3958_v41, %v860_v12  ;;  %v3288_v36 = vpop.f32.mrb[54].mxu1  ;;  %3353 = vmatprep.mubr.msk.bf16.mxu0 %vm649_vm3, %v1107_v44 }
 0x1e5   :  { %v872_v37 = vadd.f32 %v3288_v36, %v3958_v41  ;;  %v863_v38 = vpop.f32.mrb[55].mxu1  ;;  %3354 = vmatmul.mubr.msk.bf16.gmra.mrb[48].mxu0 %vm649_vm3, %v1108_v15  ;;  %v1057_v40 = vmax.f32 %v869_v10, 0.0 }
 0x1e6   :  { %v864_v39 = vadd.f32 %v3958_v41, %v863_v38  ;;  %v1055_v43 = vmax.f32 %v861_v35, 0.0 }
 0x1e7   :  { %v1058_v42 = vmax.f32 %v872_v37, 0.0 }
 0x1e8   :  { %v1056_v45 = vmax.f32 %v864_v39, 0.0 }
 0x1e9   :  { %v1110_v47 = vpack.c.bf16 %v1058_v42, %v1057_v40 }
 0x1ea   :  { %v1109_v48 = vpack.c.bf16 %v1056_v45, %v1055_v43  ;;  %v3291_v50 = vpop.f32.mrb[56].mxu1 }
 0x1eb   :  { %v885_v52 = vadd.f32 %v3291_v50, %v3958_v41  ;;  %v876_v53 = vpop.f32.mrb[57].mxu1 }
 0x1ec   :  { %v877_v54 = vadd.f32 %v3958_v41, %v876_v53  ;;  %v3292_v55 = vpop.f32.mrb[58].mxu1  ;;  %3357 = vmatprep.mubr.msk.bf16.mxu0 %vm649_vm3, %v1109_v48 }
 0x1ed   :  { %v888_v56 = vadd.f32 %v3292_v55, %v3958_v41  ;;  %v879_v57 = vpop.f32.mrb[59].mxu1  ;;  %3358 = vmatmul.mubr.msk.bf16.gmra.mrb[52].mxu0 %vm649_vm3, %v1110_v47  ;;  %v1061_v59 = vmax.f32 %v885_v52, 0.0 }
 0x1ee   :  { %v880_v58 = vadd.f32 %v3958_v41, %v879_v57  ;;  %v1059_v61 = vmax.f32 %v877_v54, 0.0 }
 0x1ef   :  { %v1062_v60 = vmax.f32 %v888_v56, 0.0 }
 0x1f0   :  { %v1060_v62 = vmax.f32 %v880_v58, 0.0 }
 0x1f1   :  { %v1112_v63 = vpack.c.bf16 %v1062_v60, %v1061_v59 }
 0x1f2   :  { %v1111_v0 = vpack.c.bf16 %v1060_v62, %v1059_v61  ;;  %v3295_v1 = vpop.f32.mrb[60].mxu1 }
 0x1f3   :  { %v901_v2 = vadd.f32 %v3295_v1, %v3958_v41  ;;  %v892_v3 = vpop.f32.mrb[61].mxu1 }
 0x1f4   :  { %v893_v4 = vadd.f32 %v3958_v41, %v892_v3  ;;  %v3296_v5 = vpop.f32.mrb[62].mxu1  ;;  %3361 = vmatprep.mubr.msk.bf16.mxu0 %vm649_vm3, %v1111_v0 }
 0x1f5   :  { %v904_v6 = vadd.f32 %v3296_v5, %v3958_v41  ;;  %v895_v7 = vpop.f32.mrb[63].mxu1  ;;  %3362 = vmatmul.mubr.msk.bf16.gmra.mrb[56].mxu0 %vm649_vm3, %v1112_v63  ;;  %v1065_v9 = vmax.f32 %v901_v2, 0.0 }
 0x1f6   :  { %v896_v8 = vadd.f32 %v3958_v41, %v895_v7  ;;  %v1063_v14 = vmax.f32 %v893_v4, 0.0 }
 0x1f7   :  { %v1066_v11 = vmax.f32 %v904_v6, 0.0 }
 0x1f8   :  { %v1064_v16 = vmax.f32 %v896_v8, 0.0 }
 0x1f9   :  { %v1114_v17 = vpack.c.bf16 %v1066_v11, %v1065_v9 }
 0x1fa   :  { %v1113_v18 = vpack.c.bf16 %v1064_v16, %v1063_v14  ;;  %v3299_v19 = vpop.f32.mrb[64].mxu1 }
 0x1fb   :  { %v917_v21 = vadd.f32 %v3299_v19, %v3958_v41  ;;  %v908_v23 = vpop.f32.mrb[65].mxu1 }
 0x1fc   :  { %v909_v24 = vadd.f32 %v3958_v41, %v908_v23  ;;  %v3300_v25 = vpop.f32.mrb[66].mxu1  ;;  %3365 = vmatprep.mubr.msk.bf16.mxu0 %vm649_vm3, %v1113_v18 }
 0x1fd   :  { %v920_v26 = vadd.f32 %v3300_v25, %v3958_v41  ;;  %v911_v27 = vpop.f32.mrb[67].mxu1  ;;  %3366 = vmatmul.mubr.msk.bf16.gmra.mrb[60].mxu0 %vm649_vm3, %v1114_v17  ;;  %v1069_v29 = vmax.f32 %v917_v21, 0.0 }
 0x1fe   :  { %v912_v28 = vadd.f32 %v3958_v41, %v911_v27  ;;  %v1067_v31 = vmax.f32 %v909_v24, 0.0 }
 0x1ff   :  { %v1070_v30 = vmax.f32 %v920_v26, 0.0 }
 0x200   :  { %v1068_v32 = vmax.f32 %v912_v28, 0.0 }
 0x201   :  { %v1116_v33 = vpack.c.bf16 %v1070_v30, %v1069_v29 }
 0x202   :  { %v1115_v34 = vpack.c.bf16 %v1068_v32, %v1067_v31  ;;  %v3303_v20 = vpop.f32.mrb[68].mxu1 }
 0x203   :  { %v933_v22 = vadd.f32 %v3303_v20, %v3958_v41  ;;  %v924_v49 = vpop.f32.mrb[69].mxu1 }
 0x204   :  { %v925_v51 = vadd.f32 %v3958_v41, %v924_v49  ;;  %v3304_v13 = vpop.f32.mrb[70].mxu1  ;;  %3369 = vmatprep.mubr.msk.bf16.mxu0 %vm649_vm3, %v1115_v34 }
 0x205   :  { %v936_v15 = vadd.f32 %v3304_v13, %v3958_v41  ;;  %v927_v44 = vpop.f32.mrb[71].mxu1  ;;  %3370 = vmatmul.mubr.msk.bf16.gmra.mrb[64].mxu0 %vm649_vm3, %v1116_v33  ;;  %v1073_v10 = vmax.f32 %v933_v22, 0.0 }
 0x206   :  { %v928_v46 = vadd.f32 %v3958_v41, %v927_v44  ;;  %v1071_v35 = vmax.f32 %v925_v51, 0.0 }
 0x207   :  { %v1074_v12 = vmax.f32 %v936_v15, 0.0 }
 0x208   :  { %v1072_v36 = vmax.f32 %v928_v46, 0.0 }
 0x209   :  { %v1118_v37 = vpack.c.bf16 %v1074_v12, %v1073_v10 }
 0x20a   :  { %v1117_v38 = vpack.c.bf16 %v1072_v36, %v1071_v35  ;;  %v3307_v39 = vpop.f32.mrb[72].mxu1 }
 0x20b   :  { %v949_v40 = vadd.f32 %v3307_v39, %v3958_v41  ;;  %v940_v42 = vpop.f32.mrb[73].mxu1 }
 0x20c   :  { %v941_v43 = vadd.f32 %v3958_v41, %v940_v42  ;;  %v3308_v45 = vpop.f32.mrb[74].mxu1  ;;  %3373 = vmatprep.mubr.msk.bf16.mxu0 %vm649_vm3, %v1117_v38 }
 0x20d   :  { %v952_v47 = vadd.f32 %v3308_v45, %v3958_v41  ;;  %v943_v48 = vpop.f32.mrb[75].mxu1  ;;  %3374 = vmatmul.mubr.msk.bf16.gmra.mrb[68].mxu0 %vm649_vm3, %v1118_v37  ;;  %v1077_v52 = vmax.f32 %v949_v40, 0.0 }
 0x20e   :  { %v944_v50 = vadd.f32 %v3958_v41, %v943_v48  ;;  %v1075_v54 = vmax.f32 %v941_v43, 0.0 }
 0x20f   :  { %v1078_v53 = vmax.f32 %v952_v47, 0.0 }
 0x210   :  { %v1076_v55 = vmax.f32 %v944_v50, 0.0 }
 0x211   :  { %v1120_v56 = vpack.c.bf16 %v1078_v53, %v1077_v52 }
 0x212   :  { %v1119_v57 = vpack.c.bf16 %v1076_v55, %v1075_v54  ;;  %v3311_v58 = vpop.f32.mrb[76].mxu1 }
 0x213   :  { %v965_v59 = vadd.f32 %v3311_v58, %v3958_v41  ;;  %v956_v60 = vpop.f32.mrb[77].mxu1 }
 0x214   :  { %v957_v61 = vadd.f32 %v3958_v41, %v956_v60  ;;  %v3312_v62 = vpop.f32.mrb[78].mxu1  ;;  %3377 = vmatprep.mubr.msk.bf16.mxu0 %vm649_vm3, %v1119_v57 }
 0x215   :  { %v968_v63 = vadd.f32 %v3312_v62, %v3958_v41  ;;  %v959_v0 = vpop.f32.mrb[79].mxu1  ;;  %3378 = vmatmul.mubr.msk.bf16.gmra.mrb[72].mxu0 %vm649_vm3, %v1120_v56  ;;  %v1081_v2 = vmax.f32 %v965_v59, 0.0 }
 0x216   :  { %v960_v1 = vadd.f32 %v3958_v41, %v959_v0  ;;  %v1079_v4 = vmax.f32 %v957_v61, 0.0 }
 0x217   :  { %v1082_v3 = vmax.f32 %v968_v63, 0.0 }
 0x218   :  { %v1080_v5 = vmax.f32 %v960_v1, 0.0  ;;  %v4059_v1 = vld [vmem:[%s5236_s4 + $0x2] ss:$0 sm:$0xff] }
 0x219   :  { %v1122_v6 = vpack.c.bf16 %v1082_v3, %v1081_v2 }
 0x21a   :  { %v1121_v7 = vpack.c.bf16 %v1080_v5, %v1079_v4  ;;  %v3315_v8 = vpop.f32.mrb[80].mxu1 }
 0x21b   :  { %v981_v9 = vadd.f32 %v3315_v8, %v3958_v41  ;;  %v972_v11 = vpop.f32.mrb[81].mxu1 }
 0x21c   :  { %v973_v14 = vadd.f32 %v3958_v41, %v972_v11  ;;  %v3316_v16 = vpop.f32.mrb[82].mxu1  ;;  %3381 = vmatprep.mubr.msk.bf16.mxu0 %vm649_vm3, %v1121_v7 }
 0x21d   :  { %v984_v17 = vadd.f32 %v3316_v16, %v3958_v41  ;;  %v975_v18 = vpop.f32.mrb[83].mxu1  ;;  %3382 = vmatmul.mubr.msk.bf16.gmra.mrb[76].mxu0 %vm649_vm3, %v1122_v6  ;;  %v1085_v21 = vmax.f32 %v981_v9, 0.0 }
 0x21e   :  { %v976_v19 = vadd.f32 %v3958_v41, %v975_v18  ;;  %v1083_v24 = vmax.f32 %v973_v14, 0.0 }
 0x21f   :  { %v1086_v23 = vmax.f32 %v984_v17, 0.0 }
 0x220   :  { %v1084_v25 = vmax.f32 %v976_v19, 0.0 }
 0x221   :  { %v1124_v26 = vpack.c.bf16 %v1086_v23, %v1085_v21 }
 0x222   :  { %v1123_v27 = vpack.c.bf16 %v1084_v25, %v1083_v24  ;;  %v3319_v28 = vpop.f32.mrb[84].mxu1 }
 0x223   :  { %v997_v29 = vadd.f32 %v3319_v28, %v3958_v41  ;;  %v988_v30 = vpop.f32.mrb[85].mxu1 }
 0x224   :  { %v989_v31 = vadd.f32 %v3958_v41, %v988_v30  ;;  %v3320_v32 = vpop.f32.mrb[86].mxu1  ;;  %3385 = vmatprep.mubr.msk.bf16.mxu0 %vm649_vm3, %v1123_v27 }
 0x225   :  { %v1000_v33 = vadd.f32 %v3320_v32, %v3958_v41  ;;  %v991_v34 = vpop.f32.mrb[87].mxu1  ;;  %3386 = vmatmul.mubr.msk.bf16.gmra.mrb[80].mxu0 %vm649_vm3, %v1124_v26  ;;  %v1089_v22 = vmax.f32 %v997_v29, 0.0 }
 0x226   :  { %v992_v20 = vadd.f32 %v3958_v41, %v991_v34  ;;  %v1087_v51 = vmax.f32 %v989_v31, 0.0 }
 0x227   :  { %v1090_v49 = vmax.f32 %v1000_v33, 0.0 }
 0x228   :  { %v1088_v13 = vmax.f32 %v992_v20, 0.0 }
 0x229   :  { %v1126_v15 = vpack.c.bf16 %v1090_v49, %v1089_v22 }
 0x22a   :  { %v1125_v44 = vpack.c.bf16 %v1088_v13, %v1087_v51  ;;  %v3323_v46 = vpop.f32.mrb[88].mxu1 }
 0x22b   :  { %v1013_v10 = vadd.f32 %v3323_v46, %v3958_v41  ;;  %v1004_v12 = vpop.f32.mrb[89].mxu1 }
 0x22c   :  { %v1005_v35 = vadd.f32 %v3958_v41, %v1004_v12  ;;  %v3324_v36 = vpop.f32.mrb[90].mxu1  ;;  %3389 = vmatprep.mubr.msk.bf16.mxu0 %vm649_vm3, %v1125_v44 }
 0x22d   :  { %v1016_v37 = vadd.f32 %v3324_v36, %v3958_v41  ;;  %v1007_v38 = vpop.f32.mrb[91].mxu1  ;;  %3390 = vmatmul.mubr.msk.bf16.gmra.mrb[84].mxu0 %vm649_vm3, %v1126_v15  ;;  %v1093_v40 = vmax.f32 %v1013_v10, 0.0 }
 0x22e   :  { %v1008_v39 = vadd.f32 %v3958_v41, %v1007_v38  ;;  %v1091_v43 = vmax.f32 %v1005_v35, 0.0 }
 0x22f   :  { %v1094_v42 = vmax.f32 %v1016_v37, 0.0 }
 0x230   :  { %v1092_v45 = vmax.f32 %v1008_v39, 0.0 }
 0x231   :  { %v1128_v47 = vpack.c.bf16 %v1094_v42, %v1093_v40 }
 0x232   :  { %v1127_v48 = vpack.c.bf16 %v1092_v45, %v1091_v43  ;;  %v3327_v50 = vpop.f32.mrb[92].mxu1 }
 0x233   :  { %v1029_v52 = vadd.f32 %v3327_v50, %v3958_v41  ;;  %v1020_v53 = vpop.f32.mrb[93].mxu1 }
 0x234   :  { %v1021_v54 = vadd.f32 %v3958_v41, %v1020_v53  ;;  %v3328_v55 = vpop.f32.mrb[94].mxu1  ;;  %3393 = vmatprep.mubr.msk.bf16.mxu0 %vm649_vm3, %v1127_v48 }
 0x235   :  { %v1032_v56 = vadd.f32 %v3328_v55, %v3958_v41  ;;  %v1023_v57 = vpop.f32.mrb[95].mxu1  ;;  %3394 = vmatmul.mubr.msk.bf16.gmra.mrb[88].mxu0 %vm649_vm3, %v1128_v47  ;;  %v1097_v59 = vmax.f32 %v1029_v52, 0.0 }
 0x236   :  { %v1024_v58 = vadd.f32 %v3958_v41, %v1023_v57  ;;  %v1095_v61 = vmax.f32 %v1021_v54, 0.0 }
 0x237   :  { %v1098_v60 = vmax.f32 %v1032_v56, 0.0 }
 0x238   :  { %v1096_v62 = vmax.f32 %v1024_v58, 0.0 }
 0x239   :  { %v1130_v63 = vpack.c.bf16 %v1098_v60, %v1097_v59 }
 0x23a   :  { %v1129_v0 = vpack.c.bf16 %v1096_v62, %v1095_v61 }
 0x23c   :  { %3397 = vmatprep.mubr.msk.bf16.mxu0 %vm649_vm3, %v1129_v0 }
 0x23d   :  { %3398 = vmatmul.mubr.msk.bf16.gmra.mrb[92].mxu0 %vm649_vm3, %v1130_v63 }
 0x298   :  { %v3339_v2 = vpop.f32.mrb[32].mxu0 }
 0x299   :  { %v4062_v3 = vadd.f32 %v3339_v2, %v4059_v1  ;;  %v1298_v41 = vpop.f32.mrb[33].mxu0 }
 0x29a   :  { %v4065_v4 = vadd.f32 %v4059_v1, %v1298_v41  ;;  %v3340_v5 = vpop.f32.mrb[34].mxu0 }
 0x29b   :  { %v4068_v6 = vadd.f32 %v3340_v5, %v4059_v1  ;;  %v1301_v7 = vpop.f32.mrb[35].mxu0  ;;  %v1559_v8 = vsel %vm649_vm3, %v4062_v3, 0.0 }
 0x29c   :  { %v4073_v9 = vadd.f32 %v4059_v1, %v1301_v7  ;;  %1560 = vadd.xlane.f32.xlu1 %v1559_v8  ;;  %v1553_v11 = vsel %vm649_vm3, %v4065_v4, 0.0 }
 0x29d   :  { %1554 = vadd.xlane.f32.xlu0 %v1553_v11  ;;  %v1562_v14 = vsel %vm649_vm3, %v4068_v6, 0.0 }
 0x29e   :  { %v1556_v17 = vsel %vm649_vm3, %v4073_v9, 0.0 }
 0x2a0   :  { %1563 = vadd.xlane.f32.xlu1 %v1562_v14  ;;  %v3343_v16 = vpop.f32.mrb[36].mxu0 }
 0x2a1   :  { %v4082_v18 = vadd.f32 %v3343_v16, %v4059_v1  ;;  %v1314_v19 = vpop.f32.mrb[37].mxu0  ;;  %1557 = vadd.xlane.f32.xlu0 %v1556_v17 }
 0x2a2   :  { %v3344_v21 = vpop.f32.mrb[38].mxu0  ;;  %v4090_v26 = vadd.f32 %v4059_v1, %v1314_v19 }
 0x2a3   :  { %v4085_v23 = vadd.f32 %v3344_v21, %v4059_v1  ;;  %v1317_v24 = vpop.f32.mrb[39].mxu0  ;;  %v1571_v25 = vsel %vm649_vm3, %v4082_v18, 0.0 }
 0x2a4   :  { %v4093_v27 = vadd.f32 %v4059_v1, %v1317_v24  ;;  %v1565_v30 = vsel %vm649_vm3, %v4090_v26, 0.0 }
 0x2a5   :  { %1572 = vadd.xlane.f32.xlu0 %v1571_v25  ;;  %v1574_v28 = vsel %vm649_vm3, %v4085_v23, 0.0 }
 0x2a6   :  { %1575 = vadd.xlane.f32.xlu1 %v1574_v28  ;;  %v1568_v33 = vsel %vm649_vm3, %v4093_v27, 0.0 }
 0x2a8   :  { %v3347_v29 = vpop.f32.mrb[40].mxu0 }
 0x2a9   :  { %v4100_v31 = vadd.f32 %v3347_v29, %v4059_v1  ;;  %v1330_v32 = vpop.f32.mrb[41].mxu0  ;;  %1566 = vadd.xlane.f32.xlu0 %v1565_v30 }
 0x2aa   :  { %v3348_v34 = vpop.f32.mrb[42].mxu0  ;;  %1569 = vadd.xlane.f32.xlu1 %v1568_v33  ;;  %v4110_v51 = vadd.f32 %v4059_v1, %v1330_v32 }
 0x2ab   :  { %v4105_v20 = vadd.f32 %v3348_v34, %v4059_v1  ;;  %v1333_v22 = vpop.f32.mrb[43].mxu0  ;;  %v1583_v49 = vsel %vm649_vm3, %v4100_v31, 0.0 }
 0x2ac   :  { %v4113_v13 = vadd.f32 %v4059_v1, %v1333_v22  ;;  %v1577_v46 = vsel %vm649_vm3, %v4110_v51, 0.0 }
 0x2ad   :  { %1584 = vadd.xlane.f32.xlu0 %v1583_v49  ;;  %v1586_v15 = vsel %vm649_vm3, %v4105_v20, 0.0 }
 0x2ae   :  { %1587 = vadd.xlane.f32.xlu1 %v1586_v15  ;;  %v1580_v35 = vsel %vm649_vm3, %v4113_v13, 0.0 }
 0x2b0   :  { %v3351_v44 = vpop.f32.mrb[44].mxu0 }
 0x2b1   :  { %v4120_v10 = vadd.f32 %v3351_v44, %v4059_v1  ;;  %v1346_v12 = vpop.f32.mrb[45].mxu0  ;;  %1578 = vadd.xlane.f32.xlu0 %v1577_v46 }
 0x2b2   :  { %v3352_v36 = vpop.f32.mrb[46].mxu0  ;;  %1581 = vadd.xlane.f32.xlu1 %v1580_v35  ;;  %v4130_v40 = vadd.f32 %v4059_v1, %v1346_v12 }
 0x2b3   :  { %v4125_v37 = vadd.f32 %v3352_v36, %v4059_v1  ;;  %v1349_v38 = vpop.f32.mrb[47].mxu0  ;;  %v1595_v39 = vsel %vm649_vm3, %v4120_v10, 0.0 }
 0x2b4   :  { %v4133_v42 = vadd.f32 %v4059_v1, %v1349_v38  ;;  %v1589_v47 = vsel %vm649_vm3, %v4130_v40, 0.0 }
 0x2b5   :  { %1596 = vadd.xlane.f32.xlu0 %v1595_v39  ;;  %v1598_v43 = vsel %vm649_vm3, %v4125_v37, 0.0 }
 0x2b6   :  { %1599 = vadd.xlane.f32.xlu1 %v1598_v43  ;;  %v1592_v52 = vsel %vm649_vm3, %v4133_v42, 0.0 }
 0x2b8   :  { %v3355_v45 = vpop.f32.mrb[48].mxu0 }
 0x2b9   :  { %v4140_v48 = vadd.f32 %v3355_v45, %v4059_v1  ;;  %v1362_v50 = vpop.f32.mrb[49].mxu0  ;;  %1590 = vadd.xlane.f32.xlu0 %v1589_v47 }
 0x2ba   :  { %v3356_v53 = vpop.f32.mrb[50].mxu0  ;;  %1593 = vadd.xlane.f32.xlu1 %v1592_v52  ;;  %v4150_v57 = vadd.f32 %v4059_v1, %v1362_v50 }
 0x2bb   :  { %v4145_v54 = vadd.f32 %v3356_v53, %v4059_v1  ;;  %v1365_v55 = vpop.f32.mrb[51].mxu0  ;;  %v1607_v56 = vsel %vm649_vm3, %v4140_v48, 0.0 }
 0x2bc   :  { %v4153_v58 = vadd.f32 %v4059_v1, %v1365_v55  ;;  %v1601_v61 = vsel %vm649_vm3, %v4150_v57, 0.0 }
 0x2bd   :  { %1608 = vadd.xlane.f32.xlu0 %v1607_v56  ;;  %v1610_v59 = vsel %vm649_vm3, %v4145_v54, 0.0 }
 0x2be   :  { %1611 = vadd.xlane.f32.xlu1 %v1610_v59  ;;  %v1604_v0 = vsel %vm649_vm3, %v4153_v58, 0.0 }
 0x2c0   :  { %v3359_v60 = vpop.f32.mrb[52].mxu0 }
 0x2c1   :  { %v4160_v62 = vadd.f32 %v3359_v60, %v4059_v1  ;;  %v1378_v63 = vpop.f32.mrb[53].mxu0  ;;  %1602 = vadd.xlane.f32.xlu0 %v1601_v61 }
 0x2c2   :  { %v3360_v2 = vpop.f32.mrb[54].mxu0  ;;  %1605 = vadd.xlane.f32.xlu1 %v1604_v0  ;;  %v4170_v8 = vadd.f32 %v4059_v1, %v1378_v63 }
 0x2c3   :  { %v4165_v41 = vadd.f32 %v3360_v2, %v4059_v1  ;;  %v1381_v5 = vpop.f32.mrb[55].mxu0  ;;  %v1619_v7 = vsel %vm649_vm3, %v4160_v62, 0.0 }
 0x2c4   :  { %v4173_v11 = vadd.f32 %v4059_v1, %v1381_v5  ;;  %v1613_v17 = vsel %vm649_vm3, %v4170_v8, 0.0 }
 0x2c5   :  { %1620 = vadd.xlane.f32.xlu0 %v1619_v7  ;;  %v1622_v14 = vsel %vm649_vm3, %v4165_v41, 0.0 }
 0x2c6   :  { %1623 = vadd.xlane.f32.xlu1 %v1622_v14  ;;  %v1616_v24 = vsel %vm649_vm3, %v4173_v11, 0.0 }
 0x2c8   :  { %v3363_v16 = vpop.f32.mrb[56].mxu0 }
 0x2c9   :  { %v4180_v19 = vadd.f32 %v3363_v16, %v4059_v1  ;;  %v1394_v21 = vpop.f32.mrb[57].mxu0  ;;  %1614 = vadd.xlane.f32.xlu0 %v1613_v17 }
 0x2ca   :  { %v3364_v25 = vpop.f32.mrb[58].mxu0  ;;  %1617 = vadd.xlane.f32.xlu1 %v1616_v24  ;;  %v4190_v32 = vadd.f32 %v4059_v1, %v1394_v21 }
 0x2cb   :  { %v4185_v28 = vadd.f32 %v3364_v25, %v4059_v1  ;;  %v1397_v29 = vpop.f32.mrb[59].mxu0  ;;  %v1631_v30 = vsel %vm649_vm3, %v4180_v19, 0.0 }
 0x2cc   :  { %v4193_v33 = vadd.f32 %v4059_v1, %v1397_v29  ;;  %v1625_v49 = vsel %vm649_vm3, %v4190_v32, 0.0 }
 0x2cd   :  { %1632 = vadd.xlane.f32.xlu0 %v1631_v30  ;;  %v1634_v34 = vsel %vm649_vm3, %v4185_v28, 0.0 }
 0x2ce   :  { %1635 = vadd.xlane.f32.xlu1 %v1634_v34  ;;  %v1628_v46 = vsel %vm649_vm3, %v4193_v33, 0.0 }
 0x2d0   :  { %v3367_v22 = vpop.f32.mrb[60].mxu0 }
 0x2d1   :  { %v4200_v15 = vadd.f32 %v3367_v22, %v4059_v1  ;;  %v1410_v44 = vpop.f32.mrb[61].mxu0  ;;  %1626 = vadd.xlane.f32.xlu0 %v1625_v49 }
 0x2d2   :  { %v3368_v12 = vpop.f32.mrb[62].mxu0  ;;  %1629 = vadd.xlane.f32.xlu1 %v1628_v46  ;;  %v4210_v39 = vadd.f32 %v4059_v1, %v1410_v44 }
 0x2d3   :  { %v4205_v35 = vadd.f32 %v3368_v12, %v4059_v1  ;;  %v1413_v36 = vpop.f32.mrb[63].mxu0  ;;  %v1643_v38 = vsel %vm649_vm3, %v4200_v15, 0.0 }
 0x2d4   :  { %v4213_v43 = vadd.f32 %v4059_v1, %v1413_v36  ;;  %v1637_v50 = vsel %vm649_vm3, %v4210_v39, 0.0 }
 0x2d5   :  { %1644 = vadd.xlane.f32.xlu0 %v1643_v38  ;;  %v1646_v45 = vsel %vm649_vm3, %v4205_v35, 0.0 }
 0x2d6   :  { %1647 = vadd.xlane.f32.xlu1 %v1646_v45  ;;  %v1640_v55 = vsel %vm649_vm3, %v4213_v43, 0.0 }
 0x2d8   :  { %v3371_v47 = vpop.f32.mrb[64].mxu0 }
 0x2d9   :  { %v4220_v52 = vadd.f32 %v3371_v47, %v4059_v1  ;;  %v1426_v53 = vpop.f32.mrb[65].mxu0  ;;  %1638 = vadd.xlane.f32.xlu0 %v1637_v50 }
 0x2da   :  { %v3372_v56 = vpop.f32.mrb[66].mxu0  ;;  %1641 = vadd.xlane.f32.xlu1 %v1640_v55  ;;  %v4230_v63 = vadd.f32 %v4059_v1, %v1426_v53 }
 0x2db   :  { %v4225_v59 = vadd.f32 %v3372_v56, %v4059_v1  ;;  %v1429_v60 = vpop.f32.mrb[67].mxu0  ;;  %v1655_v61 = vsel %vm649_vm3, %v4220_v52, 0.0 }
 0x2dc   :  { %v4233_v0 = vadd.f32 %v4059_v1, %v1429_v60  ;;  %v1649_v7 = vsel %vm649_vm3, %v4230_v63, 0.0 }
 0x2dd   :  { %1656 = vadd.xlane.f32.xlu0 %v1655_v61  ;;  %v1658_v2 = vsel %vm649_vm3, %v4225_v59, 0.0 }
 0x2de   :  { %1659 = vadd.xlane.f32.xlu1 %v1658_v2  ;;  %v1652_v17 = vsel %vm649_vm3, %v4233_v0, 0.0 }
 0x2e0   :  { %v3375_v5 = vpop.f32.mrb[68].mxu0 }
 0x2e1   :  { %v4240_v14 = vadd.f32 %v3375_v5, %v4059_v1  ;;  %v1442_v16 = vpop.f32.mrb[69].mxu0  ;;  %1650 = vadd.xlane.f32.xlu0 %v1649_v7 }
 0x2e2   :  { %v3376_v21 = vpop.f32.mrb[70].mxu0  ;;  %1653 = vadd.xlane.f32.xlu1 %v1652_v17  ;;  %v4250_v30 = vadd.f32 %v4059_v1, %v1442_v16 }
 0x2e3   :  { %v4245_v24 = vadd.f32 %v3376_v21, %v4059_v1  ;;  %v1445_v25 = vpop.f32.mrb[71].mxu0  ;;  %v1667_v29 = vsel %vm649_vm3, %v4240_v14, 0.0 }
 0x2e4   :  { %v4253_v34 = vadd.f32 %v4059_v1, %v1445_v25  ;;  %v1661_v44 = vsel %vm649_vm3, %v4250_v30, 0.0 }
 0x2e5   :  { %1668 = vadd.xlane.f32.xlu0 %v1667_v29  ;;  %v1670_v22 = vsel %vm649_vm3, %v4245_v24, 0.0 }
 0x2e6   :  { %1671 = vadd.xlane.f32.xlu1 %v1670_v22  ;;  %v1664_v36 = vsel %vm649_vm3, %v4253_v34, 0.0 }
 0x2e8   :  { %v3379_v49 = vpop.f32.mrb[72].mxu0 }
 0x2e9   :  { %v4260_v46 = vadd.f32 %v3379_v49, %v4059_v1  ;;  %v1458_v12 = vpop.f32.mrb[73].mxu0  ;;  %1662 = vadd.xlane.f32.xlu0 %v1661_v44 }
 0x2ea   :  { %v3380_v38 = vpop.f32.mrb[74].mxu0  ;;  %1665 = vadd.xlane.f32.xlu1 %v1664_v36  ;;  %v4270_v53 = vadd.f32 %v4059_v1, %v1458_v12 }
 0x2eb   :  { %v4265_v45 = vadd.f32 %v3380_v38, %v4059_v1  ;;  %v1461_v47 = vpop.f32.mrb[75].mxu0  ;;  %v1679_v50 = vsel %vm649_vm3, %v4260_v46, 0.0 }
 0x2ec   :  { %v4273_v55 = vadd.f32 %v4059_v1, %v1461_v47  ;;  %v1673_v61 = vsel %vm649_vm3, %v4270_v53, 0.0 }
 0x2ed   :  { %1680 = vadd.xlane.f32.xlu0 %v1679_v50  ;;  %v1682_v56 = vsel %vm649_vm3, %v4265_v45, 0.0 }
 0x2ee   :  { %1683 = vadd.xlane.f32.xlu1 %v1682_v56  ;;  %v1676_v7 = vsel %vm649_vm3, %v4273_v55, 0.0 }
 0x2f0   :  { %v3383_v60 = vpop.f32.mrb[76].mxu0 }
 0x2f1   :  { %v4280_v2 = vadd.f32 %v3383_v60, %v4059_v1  ;;  %v1474_v5 = vpop.f32.mrb[77].mxu0  ;;  %1674 = vadd.xlane.f32.xlu0 %v1673_v61 }
 0x2f2   :  { %v3384_v16 = vpop.f32.mrb[78].mxu0  ;;  %1677 = vadd.xlane.f32.xlu1 %v1676_v7  ;;  %v4290_v29 = vadd.f32 %v4059_v1, %v1474_v5 }
 0x2f3   :  { %v4285_v17 = vadd.f32 %v3384_v16, %v4059_v1  ;;  %v1477_v21 = vpop.f32.mrb[79].mxu0  ;;  %v1691_v25 = vsel %vm649_vm3, %v4280_v2, 0.0 }
 0x2f4   :  { %v4293_v22 = vadd.f32 %v4059_v1, %v1477_v21  ;;  %v1685_v12 = vsel %vm649_vm3, %v4290_v29, 0.0 }
 0x2f5   :  { %1692 = vadd.xlane.f32.xlu0 %v1691_v25  ;;  %v1694_v49 = vsel %vm649_vm3, %v4285_v17, 0.0 }
 0x2f6   :  { %1695 = vadd.xlane.f32.xlu1 %v1694_v49  ;;  %v1688_v47 = vsel %vm649_vm3, %v4293_v22, 0.0 }
 0x2f8   :  { %v3387_v44 = vpop.f32.mrb[80].mxu0 }
 0x2f9   :  { %v4300_v36 = vadd.f32 %v3387_v44, %v4059_v1  ;;  %v1490_v38 = vpop.f32.mrb[81].mxu0  ;;  %1686 = vadd.xlane.f32.xlu0 %v1685_v12 }
 0x2fa   :  { %v3388_v50 = vpop.f32.mrb[82].mxu0  ;;  %1689 = vadd.xlane.f32.xlu1 %v1688_v47  ;;  %v4310_v5 = vadd.f32 %v4059_v1, %v1490_v38 }
 0x2fb   :  { %v4305_v56 = vadd.f32 %v3388_v50, %v4059_v1  ;;  %v1493_v60 = vpop.f32.mrb[83].mxu0  ;;  %v1703_v61 = vsel %vm649_vm3, %v4300_v36, 0.0 }
 0x2fc   :  { %v4313_v7 = vadd.f32 %v4059_v1, %v1493_v60  ;;  %v1697_v25 = vsel %vm649_vm3, %v4310_v5, 0.0 }
 0x2fd   :  { %1704 = vadd.xlane.f32.xlu0 %v1703_v61  ;;  %v1706_v16 = vsel %vm649_vm3, %v4305_v56, 0.0 }
 0x2fe   :  { %5272 = vst [vmem:[#allocation2_spill] sm:$0xff] %v4313_v7  ;;  %1707 = vadd.xlane.f32.xlu1 %v1706_v16  ;;  %v1700_v12 = vsel %vm649_vm3, %v4313_v7, 0.0 }
 0x300   :  { %v3391_v21 = vpop.f32.mrb[84].mxu0 }
 0x301   :  { %v4320_v49 = vadd.f32 %v3391_v21, %v4059_v1  ;;  %v1506_v44 = vpop.f32.mrb[85].mxu0  ;;  %1698 = vadd.xlane.f32.xlu0 %v1697_v25 }
 0x302   :  { %v3392_v38 = vpop.f32.mrb[86].mxu0  ;;  %1701 = vadd.xlane.f32.xlu1 %v1700_v12  ;;  %v4330_v61 = vadd.f32 %v4059_v1, %v1506_v44 }
 0x303   :  { %5273 = vst [vmem:[#allocation3_spill] sm:$0xff] %v4320_v49  ;;  %v4325_v47 = vadd.f32 %v3392_v38, %v4059_v1  ;;  %v1509_v50 = vpop.f32.mrb[87].mxu0  ;;  %v1715_v60 = vsel %vm649_vm3, %v4320_v49, 0.0 }
 0x304   :  { %5275 = vst [vmem:[#allocation5_spill] sm:$0xff] %v4330_v61  ;;  %v4333_v16 = vadd.f32 %v4059_v1, %v1509_v50  ;;  %v1709_v12 = vsel %vm649_vm3, %v4330_v61, 0.0 }
 0x305   :  { %5274 = vst [vmem:[#allocation4_spill] sm:$0xff] %v4325_v47  ;;  %1716 = vadd.xlane.f32.xlu0 %v1715_v60  ;;  %v1718_v21 = vsel %vm649_vm3, %v4325_v47, 0.0 }
 0x306   :  { %5276 = vst [vmem:[#allocation6_spill] sm:$0xff] %v4333_v16  ;;  %1719 = vadd.xlane.f32.xlu1 %v1718_v21  ;;  %v1712_v44 = vsel %vm649_vm3, %v4333_v16, 0.0 }
 0x308   :  { %v3395_v25 = vpop.f32.mrb[88].mxu0 }
 0x309   :  { %v4340_v38 = vadd.f32 %v3395_v25, %v4059_v1  ;;  %v1522_v7 = vpop.f32.mrb[89].mxu0  ;;  %1710 = vadd.xlane.f32.xlu0 %v1709_v12 }
 0x30a   :  { %v3396_v49 = vpop.f32.mrb[90].mxu0  ;;  %1713 = vadd.xlane.f32.xlu1 %v1712_v44  ;;  %v4350_v47 = vadd.f32 %v4059_v1, %v1522_v7 }
 0x30b   :  { %5277 = vst [vmem:[#allocation7_spill] sm:$0xff] %v4340_v38  ;;  %v4345_v50 = vadd.f32 %v3396_v49, %v4059_v1  ;;  %v1525_v60 = vpop.f32.mrb[91].mxu0  ;;  %v1727_v21 = vsel %vm649_vm3, %v4340_v38, 0.0 }
 0x30c   :  { %5279 = vst [vmem:[#allocation9_spill] sm:$0xff] %v4350_v47  ;;  %v4353_v25 = vadd.f32 %v4059_v1, %v1525_v60  ;;  %v1721_v49 = vsel %vm649_vm3, %v4350_v47, 0.0 }
 0x30d   :  { %5278 = vst [vmem:[#allocation8_spill] sm:$0xff] %v4345_v50  ;;  %1728 = vadd.xlane.f32.xlu0 %v1727_v21  ;;  %v1730_v12 = vsel %vm649_vm3, %v4345_v50, 0.0 }
 0x30e   :  { %5280 = vst [vmem:[#allocation10_spill] sm:$0xff] %v4353_v25  ;;  %1731 = vadd.xlane.f32.xlu1 %v1730_v12  ;;  %v1724_v7 = vsel %vm649_vm3, %v4353_v25, 0.0 }
 0x310   :  { %v3399_v16 = vpop.f32.mrb[92].mxu0 }
 0x311   :  { %v4360_v44 = vadd.f32 %v3399_v16, %v4059_v1  ;;  %v1538_v61 = vpop.f32.mrb[93].mxu0  ;;  %1722 = vadd.xlane.f32.xlu0 %v1721_v49 }
 0x312   :  { %v3400_v38 = vpop.f32.mrb[94].mxu0  ;;  %1725 = vadd.xlane.f32.xlu1 %v1724_v7  ;;  %v4370_v50 = vadd.f32 %v4059_v1, %v1538_v61 }
 0x313   :  { %5281 = vst [vmem:[#allocation11_spill] sm:$0xff] %v4360_v44  ;;  %v4365_v60 = vadd.f32 %v3400_v38, %v4059_v1  ;;  %v1541_v21 = vpop.f32.mrb[95].mxu0  ;;  %v1739_v12 = vsel %vm649_vm3, %v4360_v44, 0.0 }
 0x314   :  { %5283 = vst [vmem:[#allocation13_spill] sm:$0xff] %v4370_v50  ;;  %v4373_v16 = vadd.f32 %v4059_v1, %v1541_v21  ;;  %v1733_v7 = vsel %vm649_vm3, %v4370_v50, 0.0 }
 0x315   :  { %5282 = vst [vmem:[#allocation12_spill] sm:$0xff] %v4365_v60  ;;  %1740 = vadd.xlane.f32.xlu0 %v1739_v12  ;;  %v1742_v49 = vsel %vm649_vm3, %v4365_v60, 0.0 }
 0x316   :  { %5284 = vst [vmem:[#allocation14_spill] sm:$0xff] %v4373_v16  ;;  %1743 = vadd.xlane.f32.xlu1 %v1742_v49  ;;  %v1736_v38 = vsel %vm649_vm3, %v4373_v16, 0.0 }
 0x319   :  { %1734 = vadd.xlane.f32.xlu0 %v1733_v7 }
 0x31a   :  { %1737 = vadd.xlane.f32.xlu1 %v1736_v38 }
 0x329   :  { %v1561_v44 = vpop.xlane.xlu1 %1560 }
 0x32a   :  { %v1748_v25 = vmul.f32 0.015625, %v1561_v44  ;;  %v1555_v61 = vpop.xlane.xlu0 %1554 }
 0x32b   :  { %v1746_v47 = vmul.f32 0.015625, %v1555_v61 }
 0x32c   :  { %v4382_v1 = vsub.f32 %v4062_v3, %v1748_v25 }
 0x32d   :  { %v4385_v21 = vsub.f32 %v4065_v4, %v1746_v47  ;;  %v1564_v12 = vpop.xlane.xlu1 %1563 }
 0x32e   :  { %v1749_v49 = vmul.f32 0.015625, %v1564_v12  ;;  %v1558_v60 = vpop.xlane.xlu0 %1557  ;;  %v1876_v7 = vmul.f32 %v4382_v1, %v4382_v1 }
 0x32f   :  { %v1747_v50 = vmul.f32 0.015625, %v1558_v60  ;;  %v1874_v38 = vmul.f32 %v4385_v21, %v4385_v21 }
 0x330   :  { %v4390_v16 = vsub.f32 %v4068_v6, %v1749_v49  ;;  %v1944_v44 = vsel %vm649_vm3, %v1876_v7, 0.0 }
 0x331   :  { %v4396_v3 = vsub.f32 %v4073_v9, %v1747_v50  ;;  %1945 = vadd.xlane.f32.xlu0 %v1944_v44  ;;  %v1938_v6 = vsel %vm649_vm3, %v1874_v38, 0.0 }
 0x332   :  { %v1573_v4 = vpop.xlane.xlu0 %1572  ;;  %v1877_v47 = vmul.f32 %v4390_v16, %v4390_v16 }
 0x333   :  { %5285 = vst [vmem:[#allocation15_spill] sm:$0xff] %v4396_v3  ;;  %v1752_v25 = vmul.f32 0.015625, %v1573_v4  ;;  %v1576_v61 = vpop.xlane.xlu1 %1575  ;;  %v1875_v49 = vmul.f32 %v4396_v3, %v4396_v3 }
 0x334   :  { %v1753_v12 = vmul.f32 0.015625, %v1576_v61  ;;  %v1947_v60 = vsel %vm649_vm3, %v1877_v47, 0.0 }
 0x335   :  { %v4405_v7 = vsub.f32 %v4082_v18, %v1752_v25  ;;  %1948 = vadd.xlane.f32.xlu1 %v1947_v60  ;;  %1939 = vadd.xlane.f32.xlu0 %v1938_v6  ;;  %v1941_v38 = vsel %vm649_vm3, %v1875_v49, 0.0 }
 0x336   :  { %v4408_v9 = vsub.f32 %v4085_v23, %v1753_v12  ;;  %v1567_v50 = vpop.xlane.xlu0 %1566 }
 0x337   :  { %v1750_v44 = vmul.f32 0.015625, %v1567_v50  ;;  %v1570_v4 = vpop.xlane.xlu1 %1569  ;;  %v1880_v61 = vmul.f32 %v4405_v7, %v4405_v7 }
 0x338   :  { %v1751_v47 = vmul.f32 0.015625, %v1570_v4  ;;  %v1881_v3 = vmul.f32 %v4408_v9, %v4408_v9 }
 0x339   :  { %v4416_v18 = vsub.f32 %v4090_v26, %v1750_v44  ;;  %1942 = vadd.xlane.f32.xlu1 %v1941_v38  ;;  %v1956_v25 = vsel %vm649_vm3, %v1880_v61, 0.0 }
 0x33a   :  { %v4420_v23 = vsub.f32 %v4093_v27, %v1751_v47  ;;  %1957 = vadd.xlane.f32.xlu0 %v1956_v25  ;;  %v1585_v12 = vpop.xlane.xlu0 %1584  ;;  %v1959_v4 = vsel %vm649_vm3, %v1881_v3, 0.0 }
 0x33b   :  { %v1756_v60 = vmul.f32 0.015625, %v1585_v12  ;;  %v1588_v6 = vpop.xlane.xlu1 %1587  ;;  %v1878_v50 = vmul.f32 %v4416_v18, %v4416_v18 }
 0x33c   :  { %v1757_v49 = vmul.f32 0.015625, %v1588_v6  ;;  %v1879_v26 = vmul.f32 %v4420_v23, %v4420_v23 }
 0x33d   :  { %v4428_v44 = vsub.f32 %v4100_v31, %v1756_v60  ;;  %1960 = vadd.xlane.f32.xlu1 %v1959_v4  ;;  %v1950_v27 = vsel %vm649_vm3, %v1878_v50, 0.0 }
 0x33e   :  { %v4432_v61 = vsub.f32 %v4105_v20, %v1757_v49  ;;  %1951 = vadd.xlane.f32.xlu0 %v1950_v27  ;;  %v1579_v47 = vpop.xlane.xlu0 %1578  ;;  %v1953_v6 = vsel %vm649_vm3, %v1879_v26, 0.0 }
 0x33f   :  { %v1754_v38 = vmul.f32 0.015625, %v1579_v47  ;;  %v1582_v25 = vpop.xlane.xlu1 %1581  ;;  %v1884_v12 = vmul.f32 %v4428_v44, %v4428_v44 }
 0x340   :  { %v1755_v3 = vmul.f32 0.015625, %v1582_v25  ;;  %v1885_v31 = vmul.f32 %v4432_v61, %v4432_v61 }
 0x341   :  { %v4440_v60 = vsub.f32 %v4110_v51, %v1754_v38  ;;  %1954 = vadd.xlane.f32.xlu1 %v1953_v6  ;;  %v1968_v20 = vsel %vm649_vm3, %v1884_v12, 0.0 }
 0x342   :  { %v4444_v50 = vsub.f32 %v4113_v13, %v1755_v3  ;;  %1969 = vadd.xlane.f32.xlu0 %v1968_v20  ;;  %v1597_v49 = vpop.xlane.xlu0 %1596  ;;  %v1971_v25 = vsel %vm649_vm3, %v1885_v31, 0.0 }
 0x343   :  { %v1760_v4 = vmul.f32 0.015625, %v1597_v49  ;;  %v1600_v27 = vpop.xlane.xlu1 %1599  ;;  %v1882_v47 = vmul.f32 %v4440_v60, %v4440_v60 }
 0x344   :  { %v1761_v26 = vmul.f32 0.015625, %v1600_v27  ;;  %v1883_v51 = vmul.f32 %v4444_v50, %v4444_v50 }
 0x345   :  { %v4452_v38 = vsub.f32 %v4120_v10, %v1760_v4  ;;  %1972 = vadd.xlane.f32.xlu1 %v1971_v25  ;;  %v1962_v13 = vsel %vm649_vm3, %v1882_v47, 0.0 }
 0x346   :  { %v4456_v12 = vsub.f32 %v4125_v37, %v1761_v26  ;;  %1963 = vadd.xlane.f32.xlu0 %v1962_v13  ;;  %v1591_v3 = vpop.xlane.xlu0 %1590  ;;  %v1965_v27 = vsel %vm649_vm3, %v1883_v51, 0.0 }
 0x347   :  { %v1758_v6 = vmul.f32 0.015625, %v1591_v3  ;;  %v1594_v20 = vpop.xlane.xlu1 %1593  ;;  %v1888_v49 = vmul.f32 %v4452_v38, %v4452_v38 }
 0x348   :  { %v1759_v31 = vmul.f32 0.015625, %v1594_v20  ;;  %v1889_v10 = vmul.f32 %v4456_v12, %v4456_v12 }
 0x349   :  { %v4464_v4 = vsub.f32 %v4130_v40, %v1758_v6  ;;  %1966 = vadd.xlane.f32.xlu1 %v1965_v27  ;;  %v1980_v37 = vsel %vm649_vm3, %v1888_v49, 0.0 }
 0x34a   :  { %v4468_v47 = vsub.f32 %v4133_v42, %v1759_v31  ;;  %1981 = vadd.xlane.f32.xlu0 %v1980_v37  ;;  %v1609_v26 = vpop.xlane.xlu0 %1608  ;;  %v1983_v20 = vsel %vm649_vm3, %v1889_v10, 0.0 }
 0x34b   :  { %v1764_v25 = vmul.f32 0.015625, %v1609_v26  ;;  %v1612_v13 = vpop.xlane.xlu1 %1611  ;;  %v1886_v3 = vmul.f32 %v4464_v4, %v4464_v4 }
 0x34c   :  { %v1765_v51 = vmul.f32 0.015625, %v1612_v13  ;;  %v1887_v40 = vmul.f32 %v4468_v47, %v4468_v47 }
 0x34d   :  { %v4476_v6 = vsub.f32 %v4140_v48, %v1764_v25  ;;  %1984 = vadd.xlane.f32.xlu1 %v1983_v20  ;;  %v1974_v42 = vsel %vm649_vm3, %v1886_v3, 0.0 }
 0x34e   :  { %v4480_v49 = vsub.f32 %v4145_v54, %v1765_v51  ;;  %1975 = vadd.xlane.f32.xlu0 %v1974_v42  ;;  %v1603_v31 = vpop.xlane.xlu0 %1602  ;;  %v1977_v13 = vsel %vm649_vm3, %v1887_v40, 0.0 }
 0x34f   :  { %v1762_v27 = vmul.f32 0.015625, %v1603_v31  ;;  %v1606_v37 = vpop.xlane.xlu1 %1605  ;;  %v1892_v26 = vmul.f32 %v4476_v6, %v4476_v6 }
 0x350   :  { %v1763_v10 = vmul.f32 0.015625, %v1606_v37  ;;  %v1893_v48 = vmul.f32 %v4480_v49, %v4480_v49 }
 0x351   :  { %v4488_v25 = vsub.f32 %v4150_v57, %v1762_v27  ;;  %1978 = vadd.xlane.f32.xlu1 %v1977_v13  ;;  %v1992_v54 = vsel %vm649_vm3, %v1892_v26, 0.0 }
 0x352   :  { %v4492_v3 = vsub.f32 %v4153_v58, %v1763_v10  ;;  %1993 = vadd.xlane.f32.xlu0 %v1992_v54  ;;  %v1621_v51 = vpop.xlane.xlu0 %1620  ;;  %v1995_v37 = vsel %vm649_vm3, %v1893_v48, 0.0 }
 0x353   :  { %v1768_v20 = vmul.f32 0.015625, %v1621_v51  ;;  %v1624_v42 = vpop.xlane.xlu1 %1623  ;;  %v1890_v31 = vmul.f32 %v4488_v25, %v4488_v25 }
 0x354   :  { %v1769_v40 = vmul.f32 0.015625, %v1624_v42  ;;  %v1891_v57 = vmul.f32 %v4492_v3, %v4492_v3 }
 0x355   :  { %v4500_v27 = vsub.f32 %v4160_v62, %v1768_v20  ;;  %1996 = vadd.xlane.f32.xlu1 %v1995_v37  ;;  %v1986_v58 = vsel %vm649_vm3, %v1890_v31, 0.0 }
 0x356   :  { %v4504_v26 = vsub.f32 %v4165_v41, %v1769_v40  ;;  %1987 = vadd.xlane.f32.xlu0 %v1986_v58  ;;  %v1615_v10 = vpop.xlane.xlu0 %1614  ;;  %v1989_v42 = vsel %vm649_vm3, %v1891_v57, 0.0 }
 0x357   :  { %v1766_v13 = vmul.f32 0.015625, %v1615_v10  ;;  %v1618_v54 = vpop.xlane.xlu1 %1617  ;;  %v1896_v51 = vmul.f32 %v4500_v27, %v4500_v27 }
 0x358   :  { %v1767_v48 = vmul.f32 0.015625, %v1618_v54  ;;  %v1897_v62 = vmul.f32 %v4504_v26, %v4504_v26 }
 0x359   :  { %v4512_v20 = vsub.f32 %v4170_v8, %v1766_v13  ;;  %1990 = vadd.xlane.f32.xlu1 %v1989_v42  ;;  %v2004_v41 = vsel %vm649_vm3, %v1896_v51, 0.0 }
 0x35a   :  { %v4516_v31 = vsub.f32 %v4173_v11, %v1767_v48  ;;  %2005 = vadd.xlane.f32.xlu0 %v2004_v41  ;;  %v1633_v40 = vpop.xlane.xlu0 %1632  ;;  %v2007_v54 = vsel %vm649_vm3, %v1897_v62, 0.0 }
 0x35b   :  { %v1772_v37 = vmul.f32 0.015625, %v1633_v40  ;;  %v1636_v58 = vpop.xlane.xlu1 %1635  ;;  %v1894_v10 = vmul.f32 %v4512_v20, %v4512_v20 }
 0x35c   :  { %v1773_v57 = vmul.f32 0.015625, %v1636_v58  ;;  %v1895_v8 = vmul.f32 %v4516_v31, %v4516_v31 }
 0x35d   :  { %v4524_v13 = vsub.f32 %v4180_v19, %v1772_v37  ;;  %2008 = vadd.xlane.f32.xlu1 %v2007_v54  ;;  %v1998_v11 = vsel %vm649_vm3, %v1894_v10, 0.0 }
 0x35e   :  { %v4528_v51 = vsub.f32 %v4185_v28, %v1773_v57  ;;  %1999 = vadd.xlane.f32.xlu0 %v1998_v11  ;;  %v1627_v48 = vpop.xlane.xlu0 %1626  ;;  %v2001_v58 = vsel %vm649_vm3, %v1895_v8, 0.0 }
 0x35f   :  { %v1770_v42 = vmul.f32 0.015625, %v1627_v48  ;;  %v1630_v41 = vpop.xlane.xlu1 %1629  ;;  %v1900_v40 = vmul.f32 %v4524_v13, %v4524_v13 }
 0x360   :  { %v1771_v62 = vmul.f32 0.015625, %v1630_v41  ;;  %v1901_v19 = vmul.f32 %v4528_v51, %v4528_v51 }
 0x361   :  { %v4536_v37 = vsub.f32 %v4190_v32, %v1770_v42  ;;  %2002 = vadd.xlane.f32.xlu1 %v2001_v58  ;;  %v2016_v28 = vsel %vm649_vm3, %v1900_v40, 0.0 }
 0x362   :  { %v4540_v10 = vsub.f32 %v4193_v33, %v1771_v62  ;;  %2017 = vadd.xlane.f32.xlu0 %v2016_v28  ;;  %v1645_v57 = vpop.xlane.xlu0 %1644  ;;  %v2019_v41 = vsel %vm649_vm3, %v1901_v19, 0.0 }
 0x363   :  { %v1776_v54 = vmul.f32 0.015625, %v1645_v57  ;;  %v1648_v11 = vpop.xlane.xlu1 %1647  ;;  %v1898_v48 = vmul.f32 %v4536_v37, %v4536_v37 }
 0x364   :  { %v1777_v8 = vmul.f32 0.015625, %v1648_v11  ;;  %v1899_v32 = vmul.f32 %v4540_v10, %v4540_v10 }
 0x365   :  { %v4548_v42 = vsub.f32 %v4200_v15, %v1776_v54  ;;  %2020 = vadd.xlane.f32.xlu1 %v2019_v41  ;;  %v2010_v33 = vsel %vm649_vm3, %v1898_v48, 0.0 }
 0x366   :  { %v4552_v40 = vsub.f32 %v4205_v35, %v1777_v8  ;;  %2011 = vadd.xlane.f32.xlu0 %v2010_v33  ;;  %v1639_v62 = vpop.xlane.xlu0 %1638  ;;  %v2013_v11 = vsel %vm649_vm3, %v1899_v32, 0.0 }
 0x367   :  { %v1774_v58 = vmul.f32 0.015625, %v1639_v62  ;;  %v1642_v28 = vpop.xlane.xlu1 %1641  ;;  %v1904_v57 = vmul.f32 %v4548_v42, %v4548_v42 }
 0x368   :  { %v1775_v19 = vmul.f32 0.015625, %v1642_v28  ;;  %v1905_v15 = vmul.f32 %v4552_v40, %v4552_v40 }
 0x369   :  { %v4560_v54 = vsub.f32 %v4210_v39, %v1774_v58  ;;  %2014 = vadd.xlane.f32.xlu1 %v2013_v11  ;;  %v2028_v35 = vsel %vm649_vm3, %v1904_v57, 0.0 }
 0x36a   :  { %v4564_v48 = vsub.f32 %v4213_v43, %v1775_v19  ;;  %2029 = vadd.xlane.f32.xlu0 %v2028_v35  ;;  %v1657_v8 = vpop.xlane.xlu0 %1656  ;;  %v2031_v28 = vsel %vm649_vm3, %v1905_v15, 0.0 }
 0x36b   :  { %v1780_v41 = vmul.f32 0.015625, %v1657_v8  ;;  %v1660_v33 = vpop.xlane.xlu1 %1659  ;;  %v1902_v62 = vmul.f32 %v4560_v54, %v4560_v54 }
 0x36c   :  { %v1781_v32 = vmul.f32 0.015625, %v1660_v33  ;;  %v1903_v39 = vmul.f32 %v4564_v48, %v4564_v48 }
 0x36d   :  { %v4572_v58 = vsub.f32 %v4220_v52, %v1780_v41  ;;  %2032 = vadd.xlane.f32.xlu1 %v2031_v28  ;;  %v2022_v43 = vsel %vm649_vm3, %v1902_v62, 0.0 }
 0x36e   :  { %v4576_v57 = vsub.f32 %v4225_v59, %v1781_v32  ;;  %2023 = vadd.xlane.f32.xlu0 %v2022_v43  ;;  %v1651_v19 = vpop.xlane.xlu0 %1650  ;;  %v2025_v33 = vsel %vm649_vm3, %v1903_v39, 0.0 }
 0x36f   :  { %v1778_v11 = vmul.f32 0.015625, %v1651_v19  ;;  %v1654_v35 = vpop.xlane.xlu1 %1653  ;;  %v1908_v8 = vmul.f32 %v4572_v58, %v4572_v58 }
 0x370   :  { %v1779_v15 = vmul.f32 0.015625, %v1654_v35  ;;  %v1909_v52 = vmul.f32 %v4576_v57, %v4576_v57 }
 0x371   :  { %v4584_v41 = vsub.f32 %v4230_v63, %v1778_v11  ;;  %2026 = vadd.xlane.f32.xlu1 %v2025_v33  ;;  %v2040_v59 = vsel %vm649_vm3, %v1908_v8, 0.0 }
 0x372   :  { %v4588_v62 = vsub.f32 %v4233_v0, %v1779_v15  ;;  %2041 = vadd.xlane.f32.xlu0 %v2040_v59  ;;  %v1669_v32 = vpop.xlane.xlu0 %1668  ;;  %v2043_v35 = vsel %vm649_vm3, %v1909_v52, 0.0 }
 0x373   :  { %v1784_v28 = vmul.f32 0.015625, %v1669_v32  ;;  %v1672_v43 = vpop.xlane.xlu1 %1671  ;;  %v1906_v19 = vmul.f32 %v4584_v41, %v4584_v41 }
 0x374   :  { %v1785_v39 = vmul.f32 0.015625, %v1672_v43  ;;  %v1907_v63 = vmul.f32 %v4588_v62, %v4588_v62 }
 0x375   :  { %v4596_v11 = vsub.f32 %v4240_v14, %v1784_v28  ;;  %2044 = vadd.xlane.f32.xlu1 %v2043_v35  ;;  %v2034_v0 = vsel %vm649_vm3, %v1906_v19, 0.0 }
 0x376   :  { %v4600_v8 = vsub.f32 %v4245_v24, %v1785_v39  ;;  %2035 = vadd.xlane.f32.xlu0 %v2034_v0  ;;  %v1663_v15 = vpop.xlane.xlu0 %1662  ;;  %v2037_v43 = vsel %vm649_vm3, %v1907_v63, 0.0 }
 0x377   :  { %v1782_v33 = vmul.f32 0.015625, %v1663_v15  ;;  %v1666_v59 = vpop.xlane.xlu1 %1665  ;;  %v1912_v32 = vmul.f32 %v4596_v11, %v4596_v11 }
 0x378   :  { %v1783_v52 = vmul.f32 0.015625, %v1666_v59  ;;  %v1913_v14 = vmul.f32 %v4600_v8, %v4600_v8 }
 0x379   :  { %v4608_v28 = vsub.f32 %v4250_v30, %v1782_v33  ;;  %2038 = vadd.xlane.f32.xlu1 %v2037_v43  ;;  %v2052_v24 = vsel %vm649_vm3, %v1912_v32, 0.0 }
 0x37a   :  { %v4612_v19 = vsub.f32 %v4253_v34, %v1783_v52  ;;  %2053 = vadd.xlane.f32.xlu0 %v2052_v24  ;;  %v1681_v39 = vpop.xlane.xlu0 %1680  ;;  %v2055_v59 = vsel %vm649_vm3, %v1913_v14, 0.0 }
 0x37b   :  { %v1788_v35 = vmul.f32 0.015625, %v1681_v39  ;;  %v1684_v0 = vpop.xlane.xlu1 %1683  ;;  %v1910_v15 = vmul.f32 %v4608_v28, %v4608_v28 }
 0x37c   :  { %v1789_v63 = vmul.f32 0.015625, %v1684_v0  ;;  %v1911_v30 = vmul.f32 %v4612_v19, %v4612_v19 }
 0x37d   :  { %v4620_v33 = vsub.f32 %v4260_v46, %v1788_v35  ;;  %2056 = vadd.xlane.f32.xlu1 %v2055_v59  ;;  %v2046_v34 = vsel %vm649_vm3, %v1910_v15, 0.0 }
 0x37e   :  { %v4624_v32 = vsub.f32 %v4265_v45, %v1789_v63  ;;  %2047 = vadd.xlane.f32.xlu0 %v2046_v34  ;;  %v1675_v52 = vpop.xlane.xlu0 %1674  ;;  %v2049_v0 = vsel %vm649_vm3, %v1911_v30, 0.0 }
 0x37f   :  { %v1786_v43 = vmul.f32 0.015625, %v1675_v52  ;;  %v1678_v24 = vpop.xlane.xlu1 %1677  ;;  %v1916_v39 = vmul.f32 %v4620_v33, %v4620_v33 }
 0x380   :  { %v1787_v14 = vmul.f32 0.015625, %v1678_v24  ;;  %v1917_v46 = vmul.f32 %v4624_v32, %v4624_v32 }
 0x381   :  { %v4632_v35 = vsub.f32 %v4270_v53, %v1786_v43  ;;  %2050 = vadd.xlane.f32.xlu1 %v2049_v0  ;;  %v2064_v45 = vsel %vm649_vm3, %v1916_v39, 0.0 }
 0x382   :  { %v4636_v15 = vsub.f32 %v4273_v55, %v1787_v14  ;;  %2065 = vadd.xlane.f32.xlu0 %v2064_v45  ;;  %v1693_v63 = vpop.xlane.xlu0 %1692  ;;  %v2067_v24 = vsel %vm649_vm3, %v1917_v46, 0.0 }
 0x383   :  { %v1792_v59 = vmul.f32 0.015625, %v1693_v63  ;;  %v1696_v34 = vpop.xlane.xlu1 %1695  ;;  %v1914_v52 = vmul.f32 %v4632_v35, %v4632_v35 }
 0x384   :  { %v1793_v30 = vmul.f32 0.015625, %v1696_v34  ;;  %v1915_v53 = vmul.f32 %v4636_v15, %v4636_v15 }
 0x385   :  { %v4644_v43 = vsub.f32 %v4280_v2, %v1792_v59  ;;  %2068 = vadd.xlane.f32.xlu1 %v2067_v24  ;;  %v2058_v55 = vsel %vm649_vm3, %v1914_v52, 0.0 }
 0x386   :  { %v4648_v39 = vsub.f32 %v4285_v17, %v1793_v30  ;;  %2059 = vadd.xlane.f32.xlu0 %v2058_v55  ;;  %v1687_v14 = vpop.xlane.xlu0 %1686  ;;  %v2061_v34 = vsel %vm649_vm3, %v1915_v53, 0.0 }
 0x387   :  { %v1790_v0 = vmul.f32 0.015625, %v1687_v14  ;;  %v1690_v45 = vpop.xlane.xlu1 %1689  ;;  %v1920_v63 = vmul.f32 %v4644_v43, %v4644_v43 }
 0x388   :  { %5286 = vst [vmem:[#allocation16_spill] sm:$0xff] %v4648_v39  ;;  %v1791_v46 = vmul.f32 0.015625, %v1690_v45  ;;  %v1921_v2 = vmul.f32 %v4648_v39, %v4648_v39 }
 0x389   :  { %v4656_v59 = vsub.f32 %v4290_v29, %v1790_v0  ;;  %2062 = vadd.xlane.f32.xlu1 %v2061_v34  ;;  %v2076_v17 = vsel %vm649_vm3, %v1920_v63, 0.0 }
 0x38a   :  { %v4660_v52 = vsub.f32 %v4293_v22, %v1791_v46  ;;  %2077 = vadd.xlane.f32.xlu0 %v2076_v17  ;;  %v1705_v30 = vpop.xlane.xlu0 %1704  ;;  %v2079_v45 = vsel %vm649_vm3, %v1921_v2, 0.0 }
 0x38b   :  { %5287 = vst [vmem:[#allocation17_spill] sm:$0xff] %v4656_v59  ;;  %v1796_v24 = vmul.f32 0.015625, %v1705_v30  ;;  %v1708_v55 = vpop.xlane.xlu1 %1707  ;;  %v1918_v14 = vmul.f32 %v4656_v59, %v4656_v59 }
 0x38c   :  { %5288 = vst [vmem:[#allocation18_spill] sm:$0xff] %v4660_v52  ;;  %v1797_v53 = vmul.f32 0.015625, %v1708_v55  ;;  %v1919_v29 = vmul.f32 %v4660_v52, %v4660_v52 }
 0x38d   :  { %v4668_v0 = vsub.f32 %v4300_v36, %v1796_v24  ;;  %2080 = vadd.xlane.f32.xlu1 %v2079_v45  ;;  %v2070_v22 = vsel %vm649_vm3, %v1918_v14, 0.0  ;;  %v5292_v14 = vld [vmem:[#allocation2_spill] sm:$0xff] }
 0x38e   :  { %v4672_v63 = vsub.f32 %v4305_v56, %v1797_v53  ;;  %2071 = vadd.xlane.f32.xlu0 %v2070_v22  ;;  %v1699_v46 = vpop.xlane.xlu0 %1698  ;;  %v2073_v55 = vsel %vm649_vm3, %v1919_v29, 0.0 }
 0x38f   :  { %5289 = vst [vmem:[#allocation19_spill] sm:$0xff] %v4668_v0  ;;  %v1794_v34 = vmul.f32 0.015625, %v1699_v46  ;;  %v1702_v17 = vpop.xlane.xlu1 %1701  ;;  %v1924_v30 = vmul.f32 %v4668_v0, %v4668_v0 }
 0x390   :  { %5290 = vst [vmem:[#allocation20_spill] sm:$0xff] %v4672_v63  ;;  %v1795_v2 = vmul.f32 0.015625, %v1702_v17  ;;  %v1925_v36 = vmul.f32 %v4672_v63, %v4672_v63 }
 0x391   :  { %v4680_v24 = vsub.f32 %v4310_v5, %v1794_v34  ;;  %2074 = vadd.xlane.f32.xlu1 %v2073_v55  ;;  %v2088_v56 = vsel %vm649_vm3, %v1924_v30, 0.0  ;;  %v5294_v34 = vld [vmem:[#allocation3_spill] sm:$0xff] }
 0x392   :  { %v4684_v53 = vsub.f32 %v5292_v14, %v1795_v2  ;;  %2089 = vadd.xlane.f32.xlu0 %v2088_v56  ;;  %v1717_v45 = vpop.xlane.xlu0 %1716  ;;  %v2091_v0 = vsel %vm649_vm3, %v1925_v36, 0.0  ;;  %v5296_v2 = vld [vmem:[#allocation4_spill] sm:$0xff] }
 0x393   :  { %5291 = vst [vmem:[#allocation21_spill] sm:$0xff] %v4680_v24  ;;  %v1800_v22 = vmul.f32 0.015625, %v1717_v45  ;;  %v1720_v46 = vpop.xlane.xlu1 %1719  ;;  %v1922_v17 = vmul.f32 %v4680_v24, %v4680_v24 }
 0x394   :  { %5293 = vst [vmem:[#allocation2_spill] sm:$0xff] %v4684_v53  ;;  %v1801_v29 = vmul.f32 0.015625, %v1720_v46  ;;  %v1923_v5 = vmul.f32 %v4684_v53, %v4684_v53 }
 0x395   :  { %v4692_v55 = vsub.f32 %v5294_v34, %v1800_v22  ;;  %2092 = vadd.xlane.f32.xlu1 %v2091_v0  ;;  %v2082_v30 = vsel %vm649_vm3, %v1922_v17, 0.0  ;;  %v5298_v34 = vld [vmem:[#allocation5_spill] sm:$0xff] }
 0x396   :  { %v4696_v56 = vsub.f32 %v5296_v2, %v1801_v29  ;;  %2083 = vadd.xlane.f32.xlu0 %v2082_v30  ;;  %v1711_v14 = vpop.xlane.xlu0 %1710  ;;  %v2085_v24 = vsel %vm649_vm3, %v1923_v5, 0.0  ;;  %v5300_v29 = vld [vmem:[#allocation6_spill] sm:$0xff] }
 0x397   :  { %5295 = vst [vmem:[#allocation3_spill] sm:$0xff] %v4692_v55  ;;  %v1798_v45 = vmul.f32 0.015625, %v1711_v14  ;;  %v1714_v63 = vpop.xlane.xlu1 %1713  ;;  %v1928_v46 = vmul.f32 %v4692_v55, %v4692_v55 }
 0x398   :  { %5297 = vst [vmem:[#allocation4_spill] sm:$0xff] %v4696_v56  ;;  %v1799_v36 = vmul.f32 0.015625, %v1714_v63  ;;  %v1929_v22 = vmul.f32 %v4696_v56, %v4696_v56 }
 0x399   :  { %v4704_v0 = vsub.f32 %v5298_v34, %v1798_v45  ;;  %2086 = vadd.xlane.f32.xlu1 %v2085_v24  ;;  %v2100_v17 = vsel %vm649_vm3, %v1928_v46, 0.0  ;;  %v5302_v34 = vld [vmem:[#allocation7_spill] sm:$0xff] }
 0x39a   :  { %v4708_v30 = vsub.f32 %v5300_v29, %v1799_v36  ;;  %2101 = vadd.xlane.f32.xlu0 %v2100_v17  ;;  %v1729_v2 = vpop.xlane.xlu0 %1728  ;;  %v2103_v55 = vsel %vm649_vm3, %v1929_v22, 0.0  ;;  %v5304_v36 = vld [vmem:[#allocation8_spill] sm:$0xff] }
 0x39b   :  { %5299 = vst [vmem:[#allocation5_spill] sm:$0xff] %v4704_v0  ;;  %v1804_v14 = vmul.f32 0.015625, %v1729_v2  ;;  %v1732_v53 = vpop.xlane.xlu1 %1731  ;;  %v1926_v63 = vmul.f32 %v4704_v0, %v4704_v0 }
 0x39c   :  { %5301 = vst [vmem:[#allocation6_spill] sm:$0xff] %v4708_v30  ;;  %v1805_v5 = vmul.f32 0.015625, %v1732_v53  ;;  %v1927_v45 = vmul.f32 %v4708_v30, %v4708_v30  ;;  %v5310_v30 = vld [vmem:[#allocation11_spill] sm:$0xff] }
 0x39d   :  { %v4716_v24 = vsub.f32 %v5302_v34, %v1804_v14  ;;  %2104 = vadd.xlane.f32.xlu1 %v2103_v55  ;;  %v2094_v46 = vsel %vm649_vm3, %v1926_v63, 0.0  ;;  %v5306_v34 = vld [vmem:[#allocation9_spill] sm:$0xff] }
 0x39e   :  { %v4720_v17 = vsub.f32 %v5304_v36, %v1805_v5  ;;  %2095 = vadd.xlane.f32.xlu0 %v2094_v46  ;;  %v1723_v29 = vpop.xlane.xlu0 %1722  ;;  %v2097_v0 = vsel %vm649_vm3, %v1927_v45, 0.0  ;;  %v5308_v5 = vld [vmem:[#allocation10_spill] sm:$0xff] }
 0x39f   :  { %5303 = vst [vmem:[#allocation7_spill] sm:$0xff] %v4716_v24  ;;  %v1802_v2 = vmul.f32 0.015625, %v1723_v29  ;;  %v1726_v56 = vpop.xlane.xlu1 %1725  ;;  %v1932_v53 = vmul.f32 %v4716_v24, %v4716_v24 }
 0x3a0   :  { %5305 = vst [vmem:[#allocation8_spill] sm:$0xff] %v4720_v17  ;;  %v1803_v22 = vmul.f32 0.015625, %v1726_v56  ;;  %v1933_v14 = vmul.f32 %v4720_v17, %v4720_v17 }
 0x3a1   :  { %v4728_v55 = vsub.f32 %v5306_v34, %v1802_v2  ;;  %2098 = vadd.xlane.f32.xlu1 %v2097_v0  ;;  %v2112_v63 = vsel %vm649_vm3, %v1932_v53, 0.0 }
 0x3a2   :  { %v4732_v46 = vsub.f32 %v5308_v5, %v1803_v22  ;;  %2113 = vadd.xlane.f32.xlu0 %v2112_v63  ;;  %v1741_v36 = vpop.xlane.xlu0 %1740  ;;  %v2115_v45 = vsel %vm649_vm3, %v1933_v14, 0.0 }
 0x3a3   :  { %5307 = vst [vmem:[#allocation9_spill] sm:$0xff] %v4728_v55  ;;  %v1744_v29 = vpop.xlane.xlu1 %1743  ;;  %v1930_v56 = vmul.f32 %v4728_v55, %v4728_v55  ;;  %v1808_v24 = vmul.f32 0.015625, %v1741_v36  ;;  %v5312_v55 = vld [vmem:[#allocation13_spill] sm:$0xff] }
 0x3a4   :  { %5309 = vst [vmem:[#allocation10_spill] sm:$0xff] %v4732_v46  ;;  %v1931_v17 = vmul.f32 %v4732_v46, %v4732_v46  ;;  %v1809_v2 = vmul.f32 0.015625, %v1744_v29  ;;  %v5314_v46 = vld [vmem:[#allocation12_spill] sm:$0xff] }
 0x3a5   :  { %2116 = vadd.xlane.f32.xlu1 %v2115_v45  ;;  %v2106_v0 = vsel %vm649_vm3, %v1930_v56, 0.0  ;;  %v4742_v52 = vsub.f32 %v5310_v30, %v1808_v24  ;;  %v5316_v45 = vld [vmem:[#allocation14_spill] sm:$0xff] }
 0x3a6   :  { %2107 = vadd.xlane.f32.xlu0 %v2106_v0  ;;  %v1735_v53 = vpop.xlane.xlu0 %1734  ;;  %v2109_v5 = vsel %vm649_vm3, %v1931_v17, 0.0  ;;  %v4748_v36 = vsub.f32 %v5314_v46, %v1809_v2 }
 0x3a7   :  { %v1806_v22 = vmul.f32 0.015625, %v1735_v53  ;;  %v1738_v34 = vpop.xlane.xlu1 %1737  ;;  %5311 = vst [vmem:[#allocation11_spill] sm:$0xff] %v4742_v52  ;;  %v1936_v30 = vmul.f32 %v4742_v52, %v4742_v52 }
 0x3a8   :  { %v1807_v63 = vmul.f32 0.015625, %v1738_v34  ;;  %5315 = vst [vmem:[#allocation12_spill] sm:$0xff] %v4748_v36 }
 0x3a9   :  { %v4745_v14 = vsub.f32 %v5312_v55, %v1806_v22  ;;  %2110 = vadd.xlane.f32.xlu1 %v2109_v5  ;;  %v1937_v55 = vmul.f32 %v4748_v36, %v4748_v36  ;;  %v2124_v46 = vsel %vm649_vm3, %v1936_v30, 0.0 }
 0x3aa   :  { %v4751_v56 = vsub.f32 %v5316_v45, %v1807_v63 }
 0x3ab   :  { %5313 = vst [vmem:[#allocation13_spill] sm:$0xff] %v4745_v14  ;;  %v1934_v29 = vmul.f32 %v4745_v14, %v4745_v14  ;;  %v2127_v2 = vsel %vm649_vm3, %v1937_v55, 0.0 }
 0x3ac   :  { %5317 = vst [vmem:[#allocation14_spill] sm:$0xff] %v4751_v56  ;;  %v1935_v0 = vmul.f32 %v4751_v56, %v4751_v56 }
 0x3ad   :  { %v2118_v17 = vsel %vm649_vm3, %v1934_v29, 0.0 }
 0x3ae   :  { %2119 = vadd.xlane.f32.xlu0 %v2118_v17  ;;  %v2121_v24 = vsel %vm649_vm3, %v1935_v0, 0.0 }
 0x3af   :  { %2122 = vadd.xlane.f32.xlu1 %v2121_v24 }
 0x3b2   :  { %2125 = vadd.xlane.f32.xlu0 %v2124_v46 }
 0x3b3   :  { %2128 = vadd.xlane.f32.xlu1 %v2127_v2 }
 0x3be   :  { %v1946_v53 = vpop.xlane.xlu0 %1945 }
 0x3bf   :  { %v2132_v22 = vmul.f32 0.015625, %v1946_v53 }
 0x3c1   :  { %v2196_v34 = vadd.f32 1e-05, %v2132_v22 }
 0x3c2   :  { %v1949_v63 = vpop.xlane.xlu1 %1948  ;;  %v1940_v5 = vpop.xlane.xlu0 %1939 }
 0x3c3   :  { %3412 = vrsqrt.f32 %v2196_v34  ;;  %v2133_v45 = vmul.f32 0.015625, %v1949_v63  ;;  %v2130_v29 = vmul.f32 0.015625, %v1940_v5  ;;  %v4768_v34 = vld [vmem:[%s5236_s4 + $0x3] ss:$0 sm:$0xff] }
 0x3c5   :  { %v2197_v17 = vadd.f32 1e-05, %v2133_v45  ;;  %v2194_v0 = vadd.f32 1e-05, %v2130_v29 }
 0x3c6   :  { %v1943_v52 = vpop.xlane.xlu1 %1942 }
 0x3c7   :  { %3414 = vrsqrt.f32 %v2197_v17  ;;  %v2131_v36 = vmul.f32 0.015625, %v1943_v52  ;;  %v1958_v24 = vpop.xlane.xlu0 %1957 }
 0x3c8   :  { %3416 = vrsqrt.f32 %v2194_v0  ;;  %v2136_v30 = vmul.f32 0.015625, %v1958_v24 }
 0x3c9   :  { %v2195_v46 = vadd.f32 1e-05, %v2131_v36  ;;  %v4774_v36 = vld [vmem:[%s5236_s4 + $0x4] ss:$0 sm:$0xff] }
 0x3ca   :  { %v2200_v56 = vadd.f32 1e-05, %v2136_v30  ;;  %v1961_v55 = vpop.xlane.xlu1 %1960 }
 0x3cb   :  { %3418 = vrsqrt.f32 %v2195_v46  ;;  %v2137_v2 = vmul.f32 0.015625, %v1961_v55  ;;  %v1952_v53 = vpop.xlane.xlu0 %1951 }
 0x3cc   :  { %3420 = vrsqrt.f32 %v2200_v56  ;;  %v2134_v22 = vmul.f32 0.015625, %v1952_v53 }
 0x3cd   :  { %v3413_v14 = vpop.eup %3412  ;;  %v2201_v63 = vadd.f32 1e-05, %v2137_v2 }
 0x3ce   :  { %v2324_v52 = vmul.f32 %v3413_v14, %v4382_v1  ;;  %v2198_v5 = vadd.f32 1e-05, %v2134_v22  ;;  %v1955_v45 = vpop.xlane.xlu1 %1954 }
 0x3cf   :  { %3422 = vrsqrt.f32 %v2201_v63  ;;  %v2135_v29 = vmul.f32 0.015625, %v1955_v45  ;;  %v1970_v56 = vpop.xlane.xlu0 %1969 }
 0x3d0   :  { %v2393_v17 = vmul.f32 %v4768_v34, %v2324_v52  ;;  %3424 = vrsqrt.f32 %v2198_v5  ;;  %v2140_v0 = vmul.f32 0.015625, %v1970_v56 }
 0x3d1   :  { %v3415_v24 = vpop.eup %3414  ;;  %v2199_v30 = vadd.f32 1e-05, %v2135_v29 }
 0x3d2   :  { %v3417_v46 = vpop.eup %3416  ;;  %v2462_v55 = vadd.f32 %v4774_v36, %v2393_v17  ;;  %v2325_v1 = vmul.f32 %v3415_v24, %v4390_v16  ;;  %v2204_v14 = vadd.f32 1e-05, %v2140_v0  ;;  %v1973_v2 = vpop.xlane.xlu1 %1972 }
 0x3d3   :  { %v2322_v53 = vmul.f32 %v3417_v46, %v4385_v21  ;;  %3426 = vrsqrt.f32 %v2199_v30  ;;  %v2141_v22 = vmul.f32 0.015625, %v1973_v2  ;;  %v1964_v63 = vpop.xlane.xlu0 %1963  ;;  %v5318_v21 = vld [vmem:[#allocation15_spill] sm:$0xff] }
 0x3d4   :  { %v3024_v45 = vpack.c.bf16 %v2462_v55, %v2462_v55  ;;  %v2394_v52 = vmul.f32 %v4768_v34, %v2325_v1  ;;  %3428 = vrsqrt.f32 %v2204_v14  ;;  %v2138_v5 = vmul.f32 0.015625, %v1964_v63 }
 0x3d5   :  { %v3419_v56 = vpop.eup %3418  ;;  %v2391_v29 = vmul.f32 %v4768_v34, %v2322_v53  ;;  %v2205_v59 = vadd.f32 1e-05, %v2141_v22 }
 0x3d6   :  { %v3421_v17 = vpop.eup %3420  ;;  %2783 = vst.msk [vmem:[%s5238_s5 + $0x8] sm:$0xf] %vm2780_vm4, %v3024_v45  ;;  %v2463_v16 = vadd.f32 %v4774_v36, %v2394_v52  ;;  %v2323_v0 = vmul.f32 %v3419_v56, %v5318_v21  ;;  %v2202_v24 = vadd.f32 1e-05, %v2138_v5  ;;  %v1967_v30 = vpop.xlane.xlu1 %1966 }
 0x3d7   :  { %v2460_v46 = vadd.f32 %v4774_v36, %v2391_v29  ;;  %v2328_v55 = vmul.f32 %v3421_v17, %v4405_v7  ;;  %3430 = vrsqrt.f32 %v2205_v59  ;;  %v2139_v1 = vmul.f32 0.015625, %v1967_v30  ;;  %v1982_v14 = vpop.xlane.xlu0 %1981 }
 0x3d8   :  { %v3025_v2 = vpack.c.bf16 %v2463_v16, %v2463_v16  ;;  %v2392_v53 = vmul.f32 %v4768_v34, %v2323_v0  ;;  %3432 = vrsqrt.f32 %v2202_v24  ;;  %v2144_v22 = vmul.f32 0.015625, %v1982_v14 }
 0x3d9   :  { %v3423_v63 = vpop.eup %3422  ;;  %v3022_v45 = vpack.c.bf16 %v2460_v46, %v2460_v46  ;;  %v2397_v52 = vmul.f32 %v4768_v34, %v2328_v55  ;;  %v2203_v39 = vadd.f32 1e-05, %v2139_v1 }
 0x3da   :  { %v3425_v56 = vpop.eup %3424  ;;  %2784 = vst.msk [vmem:[%s5238_s5 + $0xc] sm:$0xf] %vm2780_vm4, %v3025_v2  ;;  %v2461_v7 = vadd.f32 %v4774_v36, %v2392_v53  ;;  %v2329_v59 = vmul.f32 %v3423_v63, %v4408_v9  ;;  %v2208_v5 = vadd.f32 1e-05, %v2144_v22  ;;  %v1985_v29 = vpop.xlane.xlu1 %1984 }
 0x3db   :  { %2781 = vst.msk [vmem:[%s5238_s5] sm:$0xf] %vm2780_vm4, %v3022_v45  ;;  %v2466_v17 = vadd.f32 %v4774_v36, %v2397_v52  ;;  %v2326_v16 = vmul.f32 %v3425_v56, %v4416_v18  ;;  %3434 = vrsqrt.f32 %v2203_v39  ;;  %v2145_v21 = vmul.f32 0.015625, %v1985_v29  ;;  %v1976_v0 = vpop.xlane.xlu0 %1975 }
 0x3dc   :  { %v3023_v24 = vpack.c.bf16 %v2461_v7, %v2461_v7  ;;  %v2398_v30 = vmul.f32 %v4768_v34, %v2329_v59  ;;  %3436 = vrsqrt.f32 %v2208_v5  ;;  %v2142_v46 = vmul.f32 0.015625, %v1976_v0 }
 0x3dd   :  { %v3427_v9 = vpop.eup %3426  ;;  %v3028_v55 = vpack.c.bf16 %v2466_v17, %v2466_v17  ;;  %v2395_v1 = vmul.f32 %v4768_v34, %v2326_v16  ;;  %v2209_v14 = vadd.f32 1e-05, %v2145_v21 }
 0x3de   :  { %v3429_v2 = vpop.eup %3428  ;;  %2782 = vst.msk [vmem:[%s5238_s5 + $0x4] sm:$0xf] %vm2780_vm4, %v3023_v24  ;;  %v2467_v18 = vadd.f32 %v4774_v36, %v2398_v30  ;;  %v2327_v39 = vmul.f32 %v3427_v9, %v4420_v23  ;;  %v2206_v53 = vadd.f32 1e-05, %v2142_v46  ;;  %v1979_v22 = vpop.xlane.xlu1 %1978 }
 0x3df   :  { %2787 = vst.msk [vmem:[%s5238_s5 + $0x18] sm:$0xf] %vm2780_vm4, %v3028_v55  ;;  %v2464_v63 = vadd.f32 %v4774_v36, %v2395_v1  ;;  %v2332_v45 = vmul.f32 %v3429_v2, %v4428_v44  ;;  %3438 = vrsqrt.f32 %v2209_v14  ;;  %v2143_v52 = vmul.f32 0.015625, %v1979_v22  ;;  %v1994_v56 = vpop.xlane.xlu0 %1993 }
 0x3e0   :  { %v3029_v7 = vpack.c.bf16 %v2467_v18, %v2467_v18  ;;  %v2396_v59 = vmul.f32 %v4768_v34, %v2327_v39  ;;  %3440 = vrsqrt.f32 %v2206_v53  ;;  %v2148_v5 = vmul.f32 0.015625, %v1994_v56 }
 0x3e1   :  { %v3431_v23 = vpop.eup %3430  ;;  %v3026_v29 = vpack.c.bf16 %v2464_v63, %v2464_v63  ;;  %v2401_v17 = vmul.f32 %v4768_v34, %v2332_v45  ;;  %v2207_v16 = vadd.f32 1e-05, %v2143_v52 }
 0x3e2   :  { %v3433_v21 = vpop.eup %3432  ;;  %2788 = vst.msk [vmem:[%s5238_s5 + $0x1c] sm:$0xf] %vm2780_vm4, %v3029_v7  ;;  %v2465_v44 = vadd.f32 %v4774_v36, %v2396_v59  ;;  %v2333_v0 = vmul.f32 %v3431_v23, %v4432_v61  ;;  %v2212_v24 = vadd.f32 1e-05, %v2148_v5  ;;  %v1997_v30 = vpop.xlane.xlu1 %1996 }
 0x3e3   :  { %2785 = vst.msk [vmem:[%s5238_s5 + $0x10] sm:$0xf] %vm2780_vm4, %v3026_v29  ;;  %v2470_v46 = vadd.f32 %v4774_v36, %v2401_v17  ;;  %v2330_v9 = vmul.f32 %v3433_v21, %v4440_v60  ;;  %3442 = vrsqrt.f32 %v2207_v16  ;;  %v2149_v55 = vmul.f32 0.015625, %v1997_v30  ;;  %v1988_v1 = vpop.xlane.xlu0 %1987 }
 0x3e4   :  { %v3027_v14 = vpack.c.bf16 %v2465_v44, %v2465_v44  ;;  %v2402_v2 = vmul.f32 %v4768_v34, %v2333_v0  ;;  %3444 = vrsqrt.f32 %v2212_v24  ;;  %v2146_v18 = vmul.f32 0.015625, %v1988_v1 }
 0x3e5   :  { %v3435_v61 = vpop.eup %3434  ;;  %v3032_v39 = vpack.c.bf16 %v2470_v46, %v2470_v46  ;;  %v2399_v53 = vmul.f32 %v4768_v34, %v2330_v9  ;;  %v2213_v22 = vadd.f32 1e-05, %v2149_v55 }
 0x3e6   :  { %v3437_v63 = vpop.eup %3436  ;;  %2786 = vst.msk [vmem:[%s5238_s5 + $0x14] sm:$0xf] %vm2780_vm4, %v3027_v14  ;;  %v2471_v60 = vadd.f32 %v4774_v36, %v2402_v2  ;;  %v2331_v45 = vmul.f32 %v3435_v61, %v4444_v50  ;;  %v2210_v52 = vadd.f32 1e-05, %v2146_v18  ;;  %v1991_v56 = vpop.xlane.xlu1 %1990 }
 0x3e7   :  { %2791 = vst.msk [vmem:[%s5238_s5 + $0x28] sm:$0xf] %vm2780_vm4, %v3032_v39  ;;  %v2468_v7 = vadd.f32 %v4774_v36, %v2399_v53  ;;  %v2336_v59 = vmul.f32 %v3437_v63, %v4452_v38  ;;  %3446 = vrsqrt.f32 %v2213_v22  ;;  %v2147_v5 = vmul.f32 0.015625, %v1991_v56  ;;  %v2006_v23 = vpop.xlane.xlu0 %2005 }
 0x3e8   :  { %v3033_v29 = vpack.c.bf16 %v2471_v60, %v2471_v60  ;;  %v2400_v17 = vmul.f32 %v4768_v34, %v2331_v45  ;;  %3448 = vrsqrt.f32 %v2210_v52  ;;  %v2152_v16 = vmul.f32 0.015625, %v2006_v23 }
 0x3e9   :  { %v3439_v50 = vpop.eup %3438  ;;  %v3030_v21 = vpack.c.bf16 %v2468_v7, %v2468_v7  ;;  %v2405_v44 = vmul.f32 %v4768_v34, %v2336_v59  ;;  %v2211_v0 = vadd.f32 1e-05, %v2147_v5 }
 0x3ea   :  { %v3441_v24 = vpop.eup %3440  ;;  %2792 = vst.msk [vmem:[%s5238_s5 + $0x2c] sm:$0xf] %vm2780_vm4, %v3033_v29  ;;  %v2469_v38 = vadd.f32 %v4774_v36, %v2400_v17  ;;  %v2337_v30 = vmul.f32 %v3439_v50, %v4456_v12  ;;  %v2216_v46 = vadd.f32 1e-05, %v2152_v16  ;;  %v2009_v9 = vpop.xlane.xlu1 %2008 }
 0x3eb   :  { %2789 = vst.msk [vmem:[%s5238_s5 + $0x20] sm:$0xf] %vm2780_vm4, %v3030_v21  ;;  %v2474_v55 = vadd.f32 %v4774_v36, %v2405_v44  ;;  %v2334_v1 = vmul.f32 %v3441_v24, %v4464_v4  ;;  %3450 = vrsqrt.f32 %v2211_v0  ;;  %v2153_v14 = vmul.f32 0.015625, %v2009_v9  ;;  %v2000_v2 = vpop.xlane.xlu0 %1999 }
 0x3ec   :  { %v3031_v18 = vpack.c.bf16 %v2469_v38, %v2469_v38  ;;  %v2406_v61 = vmul.f32 %v4768_v34, %v2337_v30  ;;  %3452 = vrsqrt.f32 %v2216_v46  ;;  %v2150_v39 = vmul.f32 0.015625, %v2000_v2 }
 0x3ed   :  { %v3443_v12 = vpop.eup %3442  ;;  %v3036_v53 = vpack.c.bf16 %v2474_v55, %v2474_v55  ;;  %v2403_v22 = vmul.f32 %v4768_v34, %v2334_v1  ;;  %v2217_v63 = vadd.f32 1e-05, %v2153_v14 }
 0x3ee   :  { %v3445_v60 = vpop.eup %3444  ;;  %2790 = vst.msk [vmem:[%s5238_s5 + $0x24] sm:$0xf] %vm2780_vm4, %v3031_v18  ;;  %v2475_v4 = vadd.f32 %v4774_v36, %v2406_v61  ;;  %v2335_v45 = vmul.f32 %v3443_v12, %v4468_v47  ;;  %v2214_v52 = vadd.f32 1e-05, %v2150_v39  ;;  %v2003_v56 = vpop.xlane.xlu1 %2002 }
 0x3ef   :  { %2795 = vst.msk [vmem:[%s5238_s5 + $0x38] sm:$0xf] %vm2780_vm4, %v3036_v53  ;;  %v2472_v7 = vadd.f32 %v4774_v36, %v2403_v22  ;;  %v2340_v59 = vmul.f32 %v3445_v60, %v4476_v6  ;;  %3454 = vrsqrt.f32 %v2217_v63  ;;  %v2151_v5 = vmul.f32 0.015625, %v2003_v56  ;;  %v2018_v23 = vpop.xlane.xlu0 %2017 }
 0x3f0   :  { %v3037_v29 = vpack.c.bf16 %v2475_v4, %v2475_v4  ;;  %v2404_v17 = vmul.f32 %v4768_v34, %v2335_v45  ;;  %3456 = vrsqrt.f32 %v2214_v52  ;;  %v2156_v16 = vmul.f32 0.015625, %v2018_v23 }
 0x3f1   :  { %v3447_v47 = vpop.eup %3446  ;;  %v3034_v50 = vpack.c.bf16 %v2472_v7, %v2472_v7  ;;  %v2409_v21 = vmul.f32 %v4768_v34, %v2340_v59  ;;  %v2215_v44 = vadd.f32 1e-05, %v2151_v5 }
 0x3f2   :  { %v3449_v0 = vpop.eup %3448  ;;  %2796 = vst.msk [vmem:[%s5238_s5 + $0x3c] sm:$0xf] %vm2780_vm4, %v3037_v29  ;;  %v2473_v6 = vadd.f32 %v4774_v36, %v2404_v17  ;;  %v2341_v24 = vmul.f32 %v3447_v47, %v4480_v49  ;;  %v2220_v38 = vadd.f32 1e-05, %v2156_v16  ;;  %v2021_v30 = vpop.xlane.xlu1 %2020 }
 0x3f3   :  { %2793 = vst.msk [vmem:[%s5238_s5 + $0x30] sm:$0xf] %vm2780_vm4, %v3034_v50  ;;  %v2478_v46 = vadd.f32 %v4774_v36, %v2409_v21  ;;  %v2338_v9 = vmul.f32 %v3449_v0, %v4488_v25  ;;  %3458 = vrsqrt.f32 %v2215_v44  ;;  %v2157_v55 = vmul.f32 0.015625, %v2021_v30  ;;  %v2012_v1 = vpop.xlane.xlu0 %2011 }
 0x3f4   :  { %v3035_v14 = vpack.c.bf16 %v2473_v6, %v2473_v6  ;;  %v2410_v2 = vmul.f32 %v4768_v34, %v2341_v24  ;;  %3460 = vrsqrt.f32 %v2220_v38  ;;  %v2154_v18 = vmul.f32 0.015625, %v2012_v1 }
 0x3f5   :  { %v3451_v49 = vpop.eup %3450  ;;  %v3040_v61 = vpack.c.bf16 %v2478_v46, %v2478_v46  ;;  %v2407_v39 = vmul.f32 %v4768_v34, %v2338_v9  ;;  %v2221_v12 = vadd.f32 1e-05, %v2157_v55 }
 0x3f6   :  { %v3453_v53 = vpop.eup %3452  ;;  %2794 = vst.msk [vmem:[%s5238_s5 + $0x34] sm:$0xf] %vm2780_vm4, %v3035_v14  ;;  %v2479_v25 = vadd.f32 %v4774_v36, %v2410_v2  ;;  %v2339_v22 = vmul.f32 %v3451_v49, %v4492_v3  ;;  %v2218_v63 = vadd.f32 1e-05, %v2154_v18  ;;  %v2015_v60 = vpop.xlane.xlu1 %2014 }
 0x3f7   :  { %2799 = vst.msk [vmem:[%s5238_s5 + $0x48] sm:$0xf] %vm2780_vm4, %v3040_v61  ;;  %v2476_v4 = vadd.f32 %v4774_v36, %v2407_v39  ;;  %v2344_v45 = vmul.f32 %v3453_v53, %v4500_v27  ;;  %3462 = vrsqrt.f32 %v2221_v12  ;;  %v2155_v52 = vmul.f32 0.015625, %v2015_v60  ;;  %v2030_v56 = vpop.xlane.xlu0 %2029 }
 0x3f8   :  { %v3041_v7 = vpack.c.bf16 %v2479_v25, %v2479_v25  ;;  %v2408_v59 = vmul.f32 %v4768_v34, %v2339_v22  ;;  %3464 = vrsqrt.f32 %v2218_v63  ;;  %v2160_v5 = vmul.f32 0.015625, %v2030_v56 }
 0x3f9   :  { %v3455_v3 = vpop.eup %3454  ;;  %v3038_v23 = vpack.c.bf16 %v2476_v4, %v2476_v4  ;;  %v2413_v29 = vmul.f32 %v4768_v34, %v2344_v45  ;;  %v2219_v17 = vadd.f32 1e-05, %v2155_v52 }
 0x3fa   :  { %v3457_v16 = vpop.eup %3456  ;;  %2800 = vst.msk [vmem:[%s5238_s5 + $0x4c] sm:$0xf] %vm2780_vm4, %v3041_v7  ;;  %v2477_v27 = vadd.f32 %v4774_v36, %v2408_v59  ;;  %v2345_v47 = vmul.f32 %v3455_v3, %v4504_v26  ;;  %v2224_v50 = vadd.f32 1e-05, %v2160_v5  ;;  %v2033_v21 = vpop.xlane.xlu1 %2032 }
 0x3fb   :  { %2797 = vst.msk [vmem:[%s5238_s5 + $0x40] sm:$0xf] %vm2780_vm4, %v3038_v23  ;;  %v2482_v44 = vadd.f32 %v4774_v36, %v2413_v29  ;;  %v2342_v0 = vmul.f32 %v3457_v16, %v4512_v20  ;;  %3466 = vrsqrt.f32 %v2219_v17  ;;  %v2161_v6 = vmul.f32 0.015625, %v2033_v21  ;;  %v2024_v24 = vpop.xlane.xlu0 %2023 }
 0x3fc   :  { %v3039_v38 = vpack.c.bf16 %v2477_v27, %v2477_v27  ;;  %v2414_v30 = vmul.f32 %v4768_v34, %v2345_v47  ;;  %3468 = vrsqrt.f32 %v2224_v50  ;;  %v2158_v46 = vmul.f32 0.015625, %v2024_v24 }
 0x3fd   :  { %v3459_v26 = vpop.eup %3458  ;;  %v3044_v9 = vpack.c.bf16 %v2482_v44, %v2482_v44  ;;  %v2411_v55 = vmul.f32 %v4768_v34, %v2342_v0  ;;  %v2225_v1 = vadd.f32 1e-05, %v2161_v6 }
 0x3fe   :  { %v3461_v14 = vpop.eup %3460  ;;  %2798 = vst.msk [vmem:[%s5238_s5 + $0x44] sm:$0xf] %vm2780_vm4, %v3039_v38  ;;  %v2483_v20 = vadd.f32 %v4774_v36, %v2414_v30  ;;  %v2343_v2 = vmul.f32 %v3459_v26, %v4516_v31  ;;  %v2222_v18 = vadd.f32 1e-05, %v2158_v46  ;;  %v2027_v49 = vpop.xlane.xlu1 %2026 }
 0x3ff   :  { %2803 = vst.msk [vmem:[%s5238_s5 + $0x58] sm:$0xf] %vm2780_vm4, %v3044_v9  ;;  %v2480_v61 = vadd.f32 %v4774_v36, %v2411_v55  ;;  %v2348_v39 = vmul.f32 %v3461_v14, %v4524_v13  ;;  %3470 = vrsqrt.f32 %v2225_v1  ;;  %v2159_v12 = vmul.f32 0.015625, %v2027_v49  ;;  %v2042_v53 = vpop.xlane.xlu0 %2041 }
 0x400   :  { %v3045_v25 = vpack.c.bf16 %v2483_v20, %v2483_v20  ;;  %v2412_v22 = vmul.f32 %v4768_v34, %v2343_v2  ;;  %3472 = vrsqrt.f32 %v2222_v18  ;;  %v2164_v63 = vmul.f32 0.015625, %v2042_v53 }
 0x401   :  { %v3463_v31 = vpop.eup %3462  ;;  %v3042_v60 = vpack.c.bf16 %v2480_v61, %v2480_v61  ;;  %v2417_v4 = vmul.f32 %v4768_v34, %v2348_v39  ;;  %v2223_v45 = vadd.f32 1e-05, %v2159_v12 }
 0x402   :  { %v3465_v52 = vpop.eup %3464  ;;  %2804 = vst.msk [vmem:[%s5238_s5 + $0x5c] sm:$0xf] %vm2780_vm4, %v3045_v25  ;;  %v2481_v13 = vadd.f32 %v4774_v36, %v2412_v22  ;;  %v2349_v56 = vmul.f32 %v3463_v31, %v4528_v51  ;;  %v2228_v7 = vadd.f32 1e-05, %v2164_v63  ;;  %v2045_v59 = vpop.xlane.xlu1 %2044 }
 0x403   :  { %2801 = vst.msk [vmem:[%s5238_s5 + $0x50] sm:$0xf] %vm2780_vm4, %v3042_v60  ;;  %v2486_v5 = vadd.f32 %v4774_v36, %v2417_v4  ;;  %v2346_v3 = vmul.f32 %v3465_v52, %v4536_v37  ;;  %3474 = vrsqrt.f32 %v2223_v45  ;;  %v2165_v23 = vmul.f32 0.015625, %v2045_v59  ;;  %v2036_v29 = vpop.xlane.xlu0 %2035 }
 0x404   :  { %v3043_v17 = vpack.c.bf16 %v2481_v13, %v2481_v13  ;;  %v2418_v16 = vmul.f32 %v4768_v34, %v2349_v56  ;;  %3476 = vrsqrt.f32 %v2228_v7  ;;  %v2162_v27 = vmul.f32 0.015625, %v2036_v29 }
 0x405   :  { %v3467_v51 = vpop.eup %3466  ;;  %v3048_v47 = vpack.c.bf16 %v2486_v5, %v2486_v5  ;;  %v2415_v50 = vmul.f32 %v4768_v34, %v2346_v3  ;;  %v2229_v21 = vadd.f32 1e-05, %v2165_v23 }
 0x406   :  { %v3469_v44 = vpop.eup %3468  ;;  %2802 = vst.msk [vmem:[%s5238_s5 + $0x54] sm:$0xf] %vm2780_vm4, %v3043_v17  ;;  %v2487_v37 = vadd.f32 %v4774_v36, %v2418_v16  ;;  %v2347_v0 = vmul.f32 %v3467_v51, %v4540_v10  ;;  %v2226_v6 = vadd.f32 1e-05, %v2162_v27  ;;  %v2039_v24 = vpop.xlane.xlu1 %2038 }
 0x407   :  { %2807 = vst.msk [vmem:[%s5238_s5 + $0x68] sm:$0xf] %vm2780_vm4, %v3048_v47  ;;  %v2484_v38 = vadd.f32 %v4774_v36, %v2415_v50  ;;  %v2352_v30 = vmul.f32 %v3469_v44, %v4548_v42  ;;  %3478 = vrsqrt.f32 %v2229_v21  ;;  %v2163_v46 = vmul.f32 0.015625, %v2039_v24  ;;  %v2054_v26 = vpop.xlane.xlu0 %2053 }
 0x408   :  { %v3049_v9 = vpack.c.bf16 %v2487_v37, %v2487_v37  ;;  %v2416_v55 = vmul.f32 %v4768_v34, %v2347_v0  ;;  %3480 = vrsqrt.f32 %v2226_v6  ;;  %v2168_v1 = vmul.f32 0.015625, %v2054_v26 }
 0x409   :  { %v3471_v10 = vpop.eup %3470  ;;  %v3046_v14 = vpack.c.bf16 %v2484_v38, %v2484_v38  ;;  %v2421_v20 = vmul.f32 %v4768_v34, %v2352_v30  ;;  %v2227_v2 = vadd.f32 1e-05, %v2163_v46 }
 0x40a   :  { %v3473_v18 = vpop.eup %3472  ;;  %2808 = vst.msk [vmem:[%s5238_s5 + $0x6c] sm:$0xf] %vm2780_vm4, %v3049_v9  ;;  %v2485_v42 = vadd.f32 %v4774_v36, %v2416_v55  ;;  %v2353_v49 = vmul.f32 %v3471_v10, %v4552_v40  ;;  %v2232_v61 = vadd.f32 1e-05, %v2168_v1  ;;  %v2057_v39 = vpop.xlane.xlu1 %2056 }
 0x40b   :  { %2805 = vst.msk [vmem:[%s5238_s5 + $0x60] sm:$0xf] %vm2780_vm4, %v3046_v14  ;;  %v2490_v12 = vadd.f32 %v4774_v36, %v2421_v20  ;;  %v2350_v53 = vmul.f32 %v3473_v18, %v4560_v54  ;;  %3482 = vrsqrt.f32 %v2227_v2  ;;  %v2169_v25 = vmul.f32 0.015625, %v2057_v39  ;;  %v2048_v22 = vpop.xlane.xlu0 %2047 }
 0x40c   :  { %v3047_v63 = vpack.c.bf16 %v2485_v42, %v2485_v42  ;;  %v2422_v31 = vmul.f32 %v4768_v34, %v2353_v49  ;;  %3484 = vrsqrt.f32 %v2232_v61  ;;  %v2166_v60 = vmul.f32 0.015625, %v2048_v22 }
 0x40d   :  { %v3475_v40 = vpop.eup %3474  ;;  %v3052_v4 = vpack.c.bf16 %v2490_v12, %v2490_v12  ;;  %v2419_v45 = vmul.f32 %v4768_v34, %v2350_v53  ;;  %v2233_v52 = vadd.f32 1e-05, %v2169_v25 }
 0x40e   :  { %v3477_v13 = vpop.eup %3476  ;;  %2806 = vst.msk [vmem:[%s5238_s5 + $0x64] sm:$0xf] %vm2780_vm4, %v3047_v63  ;;  %v2491_v54 = vadd.f32 %v4774_v36, %v2422_v31  ;;  %v2351_v56 = vmul.f32 %v3475_v40, %v4564_v48  ;;  %v2230_v7 = vadd.f32 1e-05, %v2166_v60  ;;  %v2051_v59 = vpop.xlane.xlu1 %2050 }
 0x40f   :  { %2811 = vst.msk [vmem:[%s5238_s5 + $0x78] sm:$0xf] %vm2780_vm4, %v3052_v4  ;;  %v2488_v5 = vadd.f32 %v4774_v36, %v2419_v45  ;;  %v2356_v3 = vmul.f32 %v3477_v13, %v4572_v58  ;;  %3486 = vrsqrt.f32 %v2233_v52  ;;  %v2167_v23 = vmul.f32 0.015625, %v2051_v59  ;;  %v2066_v29 = vpop.xlane.xlu0 %2065 }
 0x410   :  { %v3053_v17 = vpack.c.bf16 %v2491_v54, %v2491_v54  ;;  %v2420_v16 = vmul.f32 %v4768_v34, %v2351_v56  ;;  %3488 = vrsqrt.f32 %v2230_v7  ;;  %v2172_v27 = vmul.f32 0.015625, %v2066_v29 }
 0x411   :  { %v3479_v48 = vpop.eup %3478  ;;  %v3050_v51 = vpack.c.bf16 %v2488_v5, %v2488_v5  ;;  %v2425_v47 = vmul.f32 %v4768_v34, %v2356_v3  ;;  %v2231_v50 = vadd.f32 1e-05, %v2167_v23 }
 0x412   :  { %v3481_v21 = vpop.eup %3480  ;;  %2812 = vst.msk [vmem:[%s5238_s5 + $0x7c] sm:$0xf] %vm2780_vm4, %v3053_v17  ;;  %v2489_v58 = vadd.f32 %v4774_v36, %v2420_v16  ;;  %v2357_v44 = vmul.f32 %v3479_v48, %v4576_v57  ;;  %v2236_v37 = vadd.f32 1e-05, %v2172_v27  ;;  %v2069_v0 = vpop.xlane.xlu1 %2068 }
 0x413   :  { %2809 = vst.msk [vmem:[%s5238_s5 + $0x70] sm:$0xf] %vm2780_vm4, %v3050_v51  ;;  %v2494_v6 = vadd.f32 %v4774_v36, %v2425_v47  ;;  %v2354_v24 = vmul.f32 %v3481_v21, %v4584_v41  ;;  %3490 = vrsqrt.f32 %v2231_v50  ;;  %v2173_v38 = vmul.f32 0.015625, %v2069_v0  ;;  %v2060_v30 = vpop.xlane.xlu0 %2059 }
 0x414   :  { %v3051_v46 = vpack.c.bf16 %v2489_v58, %v2489_v58  ;;  %v2426_v26 = vmul.f32 %v4768_v34, %v2357_v44  ;;  %3492 = vrsqrt.f32 %v2236_v37  ;;  %v2170_v9 = vmul.f32 0.015625, %v2060_v30 }
 0x415   :  { %v3483_v57 = vpop.eup %3482  ;;  %v3056_v55 = vpack.c.bf16 %v2494_v6, %v2494_v6  ;;  %v2423_v1 = vmul.f32 %v4768_v34, %v2354_v24  ;;  %v2237_v10 = vadd.f32 1e-05, %v2173_v38 }
 0x416   :  { %v3485_v14 = vpop.eup %3484  ;;  %2810 = vst.msk [vmem:[%s5238_s5 + $0x74] sm:$0xf] %vm2780_vm4, %v3051_v46  ;;  %v2495_v41 = vadd.f32 %v4774_v36, %v2426_v26  ;;  %v2355_v20 = vmul.f32 %v3483_v57, %v4588_v62  ;;  %v2234_v2 = vadd.f32 1e-05, %v2170_v9  ;;  %v2063_v18 = vpop.xlane.xlu1 %2062 }
 0x417   :  { %2815 = vst.msk [vmem:[%s5238_s5 + $0x88] sm:$0xf] %vm2780_vm4, %v3056_v55  ;;  %v2492_v42 = vadd.f32 %v4774_v36, %v2423_v1  ;;  %v2360_v49 = vmul.f32 %v3485_v14, %v4596_v11  ;;  %3494 = vrsqrt.f32 %v2237_v10  ;;  %v2171_v61 = vmul.f32 0.015625, %v2063_v18  ;;  %v2078_v39 = vpop.xlane.xlu0 %2077 }
 0x418   :  { %v3057_v12 = vpack.c.bf16 %v2495_v41, %v2495_v41  ;;  %v2424_v53 = vmul.f32 %v4768_v34, %v2355_v20  ;;  %3496 = vrsqrt.f32 %v2234_v2  ;;  %v2176_v25 = vmul.f32 0.015625, %v2078_v39 }
 0x419   :  { %v3487_v62 = vpop.eup %3486  ;;  %v3054_v22 = vpack.c.bf16 %v2492_v42, %v2492_v42  ;;  %v2429_v63 = vmul.f32 %v4768_v34, %v2360_v49  ;;  %v2235_v31 = vadd.f32 1e-05, %v2171_v61 }
 0x41a   :  { %v3489_v60 = vpop.eup %3488  ;;  %2816 = vst.msk [vmem:[%s5238_s5 + $0x8c] sm:$0xf] %vm2780_vm4, %v3057_v12  ;;  %v2493_v11 = vadd.f32 %v4774_v36, %v2424_v53  ;;  %v2361_v40 = vmul.f32 %v3487_v62, %v4600_v8  ;;  %v2240_v4 = vadd.f32 1e-05, %v2176_v25  ;;  %v2081_v45 = vpop.xlane.xlu1 %2080 }
 0x41b   :  { %2813 = vst.msk [vmem:[%s5238_s5 + $0x80] sm:$0xf] %vm2780_vm4, %v3054_v22  ;;  %v2498_v52 = vadd.f32 %v4774_v36, %v2429_v63  ;;  %v2358_v13 = vmul.f32 %v3489_v60, %v4608_v28  ;;  %3498 = vrsqrt.f32 %v2235_v31  ;;  %v2177_v54 = vmul.f32 0.015625, %v2081_v45  ;;  %v2072_v56 = vpop.xlane.xlu0 %2071  ;;  %v5319_v45 = vld [vmem:[#allocation16_spill] sm:$0xff] }
 0x41c   :  { %v3055_v7 = vpack.c.bf16 %v2493_v11, %v2493_v11  ;;  %v2430_v59 = vmul.f32 %v4768_v34, %v2361_v40  ;;  %3500 = vrsqrt.f32 %v2240_v4  ;;  %v2174_v5 = vmul.f32 0.015625, %v2072_v56 }
 0x41d   :  { %v3491_v8 = vpop.eup %3490  ;;  %v3060_v3 = vpack.c.bf16 %v2498_v52, %v2498_v52  ;;  %v2427_v23 = vmul.f32 %v4768_v34, %v2358_v13  ;;  %v2241_v29 = vadd.f32 1e-05, %v2177_v54 }
 0x41e   :  { %v3493_v17 = vpop.eup %3492  ;;  %2814 = vst.msk [vmem:[%s5238_s5 + $0x84] sm:$0xf] %vm2780_vm4, %v3055_v7  ;;  %v2499_v28 = vadd.f32 %v4774_v36, %v2430_v59  ;;  %v2359_v16 = vmul.f32 %v3491_v8, %v4612_v19  ;;  %v2238_v27 = vadd.f32 1e-05, %v2174_v5  ;;  %v2075_v48 = vpop.xlane.xlu1 %2074  ;;  %v5320_v7 = vld [vmem:[#allocation17_spill] sm:$0xff] }
 0x41f   :  { %2819 = vst.msk [vmem:[%s5238_s5 + $0x98] sm:$0xf] %vm2780_vm4, %v3060_v3  ;;  %v2496_v51 = vadd.f32 %v4774_v36, %v2427_v23  ;;  %v2364_v47 = vmul.f32 %v3493_v17, %v4620_v33  ;;  %3502 = vrsqrt.f32 %v2241_v29  ;;  %v2175_v50 = vmul.f32 0.015625, %v2075_v48  ;;  %v2090_v21 = vpop.xlane.xlu0 %2089 }
 0x420   :  { %v3061_v58 = vpack.c.bf16 %v2499_v28, %v2499_v28  ;;  %v2428_v44 = vmul.f32 %v4768_v34, %v2359_v16  ;;  %3504 = vrsqrt.f32 %v2238_v27  ;;  %v2180_v37 = vmul.f32 0.015625, %v2090_v21 }
 0x421   :  { %v3495_v19 = vpop.eup %3494  ;;  %v3058_v0 = vpack.c.bf16 %v2496_v51, %v2496_v51  ;;  %v2433_v6 = vmul.f32 %v4768_v34, %v2364_v47  ;;  %v2239_v24 = vadd.f32 1e-05, %v2175_v50  ;;  %v5321_v47 = vld [vmem:[#allocation18_spill] sm:$0xff] }
 0x422   :  { %v3497_v38 = vpop.eup %3496  ;;  %2820 = vst.msk [vmem:[%s5238_s5 + $0x9c] sm:$0xf] %vm2780_vm4, %v3061_v58  ;;  %v2497_v33 = vadd.f32 %v4774_v36, %v2428_v44  ;;  %v2365_v30 = vmul.f32 %v3495_v19, %v4624_v32  ;;  %v2244_v46 = vadd.f32 1e-05, %v2180_v37  ;;  %v2093_v26 = vpop.xlane.xlu1 %2092  ;;  %v5322_v37 = vld [vmem:[#allocation19_spill] sm:$0xff] }
 0x423   :  { %2817 = vst.msk [vmem:[%s5238_s5 + $0x90] sm:$0xf] %vm2780_vm4, %v3058_v0  ;;  %v2502_v9 = vadd.f32 %v4774_v36, %v2433_v6  ;;  %v2362_v57 = vmul.f32 %v3497_v38, %v4632_v35  ;;  %3506 = vrsqrt.f32 %v2239_v24  ;;  %v2181_v55 = vmul.f32 0.015625, %v2093_v26  ;;  %v2084_v1 = vpop.xlane.xlu0 %2083 }
 0x424   :  { %v3059_v10 = vpack.c.bf16 %v2497_v33, %v2497_v33  ;;  %v2434_v14 = vmul.f32 %v4768_v34, %v2365_v30  ;;  %3508 = vrsqrt.f32 %v2244_v46  ;;  %v2178_v41 = vmul.f32 0.015625, %v2084_v1  ;;  %v5323_v1 = vld [vmem:[#allocation20_spill] sm:$0xff] }
 0x425   :  { %v3499_v32 = vpop.eup %3498  ;;  %v3064_v20 = vpack.c.bf16 %v2502_v9, %v2502_v9  ;;  %v2431_v2 = vmul.f32 %v4768_v34, %v2362_v57  ;;  %v2245_v18 = vadd.f32 1e-05, %v2181_v55 }
 0x426   :  { %v3501_v42 = vpop.eup %3500  ;;  %2818 = vst.msk [vmem:[%s5238_s5 + $0x94] sm:$0xf] %vm2780_vm4, %v3059_v10  ;;  %v2503_v35 = vadd.f32 %v4774_v36, %v2434_v14  ;;  %v2363_v49 = vmul.f32 %v3499_v32, %v4636_v15  ;;  %v2242_v61 = vadd.f32 1e-05, %v2178_v41  ;;  %v2087_v39 = vpop.xlane.xlu1 %2086 }
 0x427   :  { %2823 = vst.msk [vmem:[%s5238_s5 + $0xa8] sm:$0xf] %vm2780_vm4, %v3064_v20  ;;  %v2500_v12 = vadd.f32 %v4774_v36, %v2431_v2  ;;  %v2368_v53 = vmul.f32 %v3501_v42, %v4644_v43  ;;  %3510 = vrsqrt.f32 %v2245_v18  ;;  %v2179_v25 = vmul.f32 0.015625, %v2087_v39  ;;  %v2102_v62 = vpop.xlane.xlu0 %2101  ;;  %v5324_v20 = vld [vmem:[#allocation21_spill] sm:$0xff] }
 0x428   :  { %v3065_v22 = vpack.c.bf16 %v2503_v35, %v2503_v35  ;;  %v2432_v63 = vmul.f32 %v4768_v34, %v2363_v49  ;;  %3512 = vrsqrt.f32 %v2242_v61  ;;  %v2184_v31 = vmul.f32 0.015625, %v2102_v62 }
 0x429   :  { %v3503_v15 = vpop.eup %3502  ;;  %v3062_v60 = vpack.c.bf16 %v2500_v12, %v2500_v12  ;;  %v2437_v11 = vmul.f32 %v4768_v34, %v2368_v53  ;;  %v2243_v40 = vadd.f32 1e-05, %v2179_v25 }
 0x42a   :  { %v3505_v4 = vpop.eup %3504  ;;  %2824 = vst.msk [vmem:[%s5238_s5 + $0xac] sm:$0xf] %vm2780_vm4, %v3065_v22  ;;  %v2501_v43 = vadd.f32 %v4774_v36, %v2432_v63  ;;  %v2369_v52 = vmul.f32 %v3503_v15, %v5319_v45  ;;  %v2248_v13 = vadd.f32 1e-05, %v2184_v31  ;;  %v2105_v54 = vpop.xlane.xlu1 %2104  ;;  %v5325_v63 = vld [vmem:[#allocation2_spill] sm:$0xff] }
 0x42b   :  { %2821 = vst.msk [vmem:[%s5238_s5 + $0xa0] sm:$0xf] %vm2780_vm4, %v3062_v60  ;;  %v2506_v56 = vadd.f32 %v4774_v36, %v2437_v11  ;;  %v2366_v59 = vmul.f32 %v3505_v4, %v5320_v7  ;;  %3514 = vrsqrt.f32 %v2243_v40  ;;  %v2185_v5 = vmul.f32 0.015625, %v2105_v54  ;;  %v2096_v8 = vpop.xlane.xlu0 %2095  ;;  %v5326_v40 = vld [vmem:[#allocation3_spill] sm:$0xff]  ;;  %v5134_v45 = vld [vmem:[%s5236_s4 + $0x3] ss:$0 sm:$0xff] }
 0x42c   :  { %v3063_v3 = vpack.c.bf16 %v2501_v43, %v2501_v43  ;;  %v2438_v23 = vmul.f32 %v4768_v34, %v2369_v52  ;;  %3516 = vrsqrt.f32 %v2248_v13  ;;  %v2182_v29 = vmul.f32 0.015625, %v2096_v8  ;;  %v5327_v8 = vld [vmem:[#allocation4_spill] sm:$0xff] }
 0x42d   :  { %v3507_v17 = vpop.eup %3506  ;;  %v3068_v28 = vpack.c.bf16 %v2506_v56, %v2506_v56  ;;  %v2435_v16 = vmul.f32 %v4768_v34, %v2366_v59  ;;  %v2249_v27 = vadd.f32 1e-05, %v2185_v5 }
 0x42e   :  { %v3509_v48 = vpop.eup %3508  ;;  %2822 = vst.msk [vmem:[%s5238_s5 + $0xa4] sm:$0xf] %vm2780_vm4, %v3063_v3  ;;  %v2507_v51 = vadd.f32 %v4774_v36, %v2438_v23  ;;  %v2367_v50 = vmul.f32 %v3507_v17, %v5321_v47  ;;  %v2246_v21 = vadd.f32 1e-05, %v2182_v29  ;;  %v2099_v58 = vpop.xlane.xlu1 %2098  ;;  %v5328_v29 = vld [vmem:[#allocation5_spill] sm:$0xff] }
 0x42f   :  { %2827 = vst.msk [vmem:[%s5238_s5 + $0xb8] sm:$0xf] %vm2780_vm4, %v3068_v28  ;;  %v2504_v44 = vadd.f32 %v4774_v36, %v2435_v16  ;;  %v2372_v19 = vmul.f32 %v3509_v48, %v5322_v37  ;;  %3518 = vrsqrt.f32 %v2249_v27  ;;  %v2183_v0 = vmul.f32 0.015625, %v2099_v58  ;;  %v2114_v6 = vpop.xlane.xlu0 %2113 }
 0x430   :  { %v3069_v24 = vpack.c.bf16 %v2507_v51, %v2507_v51  ;;  %v2436_v38 = vmul.f32 %v4768_v34, %v2367_v50  ;;  %3520 = vrsqrt.f32 %v2246_v21  ;;  %v2188_v33 = vmul.f32 0.015625, %v2114_v6 }
 0x431   :  { %v3511_v30 = vpop.eup %3510  ;;  %v3066_v46 = vpack.c.bf16 %v2504_v44, %v2504_v44  ;;  %v2441_v26 = vmul.f32 %v4768_v34, %v2372_v19  ;;  %v2247_v9 = vadd.f32 1e-05, %v2183_v0  ;;  %v5329_v19 = vld [vmem:[#allocation6_spill] sm:$0xff] }
 0x432   :  { %v3513_v57 = vpop.eup %3512  ;;  %2828 = vst.msk [vmem:[%s5238_s5 + $0xbc] sm:$0xf] %vm2780_vm4, %v3069_v24  ;;  %v2505_v55 = vadd.f32 %v4774_v36, %v2436_v38  ;;  %v2373_v10 = vmul.f32 %v3511_v30, %v5323_v1  ;;  %v2252_v14 = vadd.f32 1e-05, %v2188_v33  ;;  %v2117_v41 = vpop.xlane.xlu1 %2116  ;;  %v5330_v38 = vld [vmem:[#allocation7_spill] sm:$0xff] }
 0x433   :  { %2825 = vst.msk [vmem:[%s5238_s5 + $0xb0] sm:$0xf] %vm2780_vm4, %v3066_v46  ;;  %v2510_v32 = vadd.f32 %v4774_v36, %v2441_v26  ;;  %v2370_v2 = vmul.f32 %v3513_v57, %v5324_v20  ;;  %3522 = vrsqrt.f32 %v2247_v9  ;;  %v2189_v18 = vmul.f32 0.015625, %v2117_v41  ;;  %v2108_v42 = vpop.xlane.xlu0 %2107 }
 0x434   :  { %v3067_v35 = vpack.c.bf16 %v2505_v55, %v2505_v55  ;;  %v2442_v49 = vmul.f32 %v4768_v34, %v2373_v10  ;;  %3524 = vrsqrt.f32 %v2252_v14  ;;  %v2186_v61 = vmul.f32 0.015625, %v2108_v42 }
 0x435   :  { %v3515_v39 = vpop.eup %3514  ;;  %v3072_v12 = vpack.c.bf16 %v2510_v32, %v2510_v32  ;;  %v2439_v53 = vmul.f32 %v4768_v34, %v2370_v2  ;;  %v2253_v25 = vadd.f32 1e-05, %v2189_v18  ;;  %v5127_v34 = vld [vmem:[%s5236_s4 + $0x4] ss:$0 sm:$0xff]  ;;  %v5331_v2 = vld [vmem:[#allocation8_spill] sm:$0xff] }
 0x436   :  { %v3517_v62 = vpop.eup %3516  ;;  %2826 = vst.msk [vmem:[%s5238_s5 + $0xb4] sm:$0xf] %vm2780_vm4, %v3067_v35  ;;  %v2511_v22 = vadd.f32 %v4774_v36, %v2442_v49  ;;  %v2371_v31 = vmul.f32 %v3515_v39, %v5325_v63  ;;  %v2250_v15 = vadd.f32 1e-05, %v2186_v61  ;;  %v2111_v60 = vpop.xlane.xlu1 %2110  ;;  %v5332_v49 = vld [vmem:[#allocation9_spill] sm:$0xff] }
 0x437   :  { %2831 = vst.msk [vmem:[%s5238_s5 + $0xc8] sm:$0xf] %vm2780_vm4, %v3072_v12  ;;  %v2508_v11 = vadd.f32 %v5127_v34, %v2439_v53  ;;  %v2376_v4 = vmul.f32 %v3517_v62, %v5326_v40  ;;  %3526 = vrsqrt.f32 %v2253_v25  ;;  %v2187_v36 = vmul.f32 0.015625, %v2111_v60 }
 0x438   :  { %v3073_v43 = vpack.c.bf16 %v2511_v22, %v2511_v22  ;;  %v2440_v52 = vmul.f32 %v5134_v45, %v2371_v31  ;;  %3528 = vrsqrt.f32 %v2250_v15  ;;  %v5333_v31 = vld [vmem:[#allocation10_spill] sm:$0xff] }
 0x439   :  { %v3519_v13 = vpop.eup %3518  ;;  %v3070_v54 = vpack.c.bf16 %v2508_v11, %v2508_v11  ;;  %v2445_v56 = vmul.f32 %v5134_v45, %v2376_v4  ;;  %v2251_v7 = vadd.f32 1e-05, %v2187_v36 }
 0x43a   :  { %v3521_v59 = vpop.eup %3520  ;;  %2832 = vst.msk [vmem:[%s5238_s5 + $0xcc] sm:$0xf] %vm2780_vm4, %v3073_v43  ;;  %v2509_v5 = vadd.f32 %v5127_v34, %v2440_v52  ;;  %v2377_v3 = vmul.f32 %v3519_v13, %v5327_v8  ;;  %v5334_v13 = vld [vmem:[#allocation13_spill] sm:$0xff] }
 0x43b   :  { %2829 = vst.msk [vmem:[%s5238_s5 + $0xc0] sm:$0xf] %vm2780_vm4, %v3070_v54  ;;  %v2514_v23 = vadd.f32 %v5127_v34, %v2445_v56  ;;  %v2374_v17 = vmul.f32 %v3521_v59, %v5328_v29  ;;  %3530 = vrsqrt.f32 %v2251_v7  ;;  %v2120_v28 = vpop.xlane.xlu0 %2119  ;;  %v5335_v7 = vld [vmem:[#allocation14_spill] sm:$0xff] }
 0x43c   :  { %v3071_v16 = vpack.c.bf16 %v2509_v5, %v2509_v5  ;;  %v2446_v27 = vmul.f32 %v5134_v45, %v2377_v3  ;;  %v2190_v48 = vmul.f32 0.015625, %v2120_v28  ;;  %v2123_v51 = vpop.xlane.xlu1 %2122 }
 0x43d   :  { %v3523_v47 = vpop.eup %3522  ;;  %v3076_v50 = vpack.c.bf16 %v2514_v23, %v2514_v23  ;;  %v2443_v21 = vmul.f32 %v5134_v45, %v2374_v17  ;;  %v2191_v58 = vmul.f32 0.015625, %v2123_v51  ;;  %v5336_v17 = vld [vmem:[#allocation11_spill] sm:$0xff] }
 0x43e   :  { %v3525_v44 = vpop.eup %3524  ;;  %2830 = vst.msk [vmem:[%s5238_s5 + $0xc4] sm:$0xf] %vm2780_vm4, %v3071_v16  ;;  %v2515_v37 = vadd.f32 %v5127_v34, %v2446_v27  ;;  %v2375_v0 = vmul.f32 %v3523_v47, %v5329_v19  ;;  %v2254_v6 = vadd.f32 1e-05, %v2190_v48  ;;  %v5337_v27 = vld [vmem:[#allocation12_spill] sm:$0xff] }
 0x43f   :  { %2835 = vst.msk [vmem:[%s5238_s5 + $0xd8] sm:$0xf] %vm2780_vm4, %v3076_v50  ;;  %v2512_v24 = vadd.f32 %v5127_v34, %v2443_v21  ;;  %v2380_v33 = vmul.f32 %v3525_v44, %v5330_v38  ;;  %v2255_v30 = vadd.f32 1e-05, %v2191_v58  ;;  %v2126_v46 = vpop.xlane.xlu0 %2125 }
 0x440   :  { %v3077_v26 = vpack.c.bf16 %v2515_v37, %v2515_v37  ;;  %v2444_v9 = vmul.f32 %v5134_v45, %v2375_v0  ;;  %3532 = vrsqrt.f32 %v2254_v6  ;;  %v2192_v57 = vmul.f32 0.015625, %v2126_v46  ;;  %v2129_v55 = vpop.xlane.xlu1 %2128 }
 0x441   :  { %v3527_v1 = vpop.eup %3526  ;;  %v3074_v10 = vpack.c.bf16 %v2512_v24, %v2512_v24  ;;  %v2449_v14 = vmul.f32 %v5134_v45, %v2380_v33  ;;  %3534 = vrsqrt.f32 %v2255_v30  ;;  %v2193_v41 = vmul.f32 0.015625, %v2129_v55 }
 0x442   :  { %v3529_v32 = vpop.eup %3528  ;;  %2836 = vst.msk [vmem:[%s5238_s5 + $0xdc] sm:$0xf] %vm2780_vm4, %v3077_v26  ;;  %v2513_v20 = vadd.f32 %v5127_v34, %v2444_v9  ;;  %v2381_v18 = vmul.f32 %v3527_v1, %v5331_v2  ;;  %v2256_v42 = vadd.f32 1e-05, %v2192_v57 }
 0x443   :  { %2833 = vst.msk [vmem:[%s5238_s5 + $0xd0] sm:$0xf] %vm2780_vm4, %v3074_v10  ;;  %v2518_v35 = vadd.f32 %v5127_v34, %v2449_v14  ;;  %v2378_v61 = vmul.f32 %v3529_v32, %v5332_v49  ;;  %v2257_v39 = vadd.f32 1e-05, %v2193_v41 }
 0x444   :  { %v3075_v12 = vpack.c.bf16 %v2513_v20, %v2513_v20  ;;  %v2450_v53 = vmul.f32 %v5134_v45, %v2381_v18  ;;  %3536 = vrsqrt.f32 %v2256_v42 }
 0x445   :  { %v3531_v25 = vpop.eup %3530  ;;  %v3080_v62 = vpack.c.bf16 %v2518_v35, %v2518_v35  ;;  %v2447_v22 = vmul.f32 %v5134_v45, %v2378_v61  ;;  %3538 = vrsqrt.f32 %v2257_v39 }
 0x446   :  { %2834 = vst.msk [vmem:[%s5238_s5 + $0xd4] sm:$0xf] %vm2780_vm4, %v3075_v12  ;;  %v2519_v63 = vadd.f32 %v5127_v34, %v2450_v53  ;;  %v2379_v15 = vmul.f32 %v3531_v25, %v5333_v31 }
 0x447   :  { %2839 = vst.msk [vmem:[%s5238_s5 + $0xe8] sm:$0xf] %vm2780_vm4, %v3080_v62  ;;  %v2516_v60 = vadd.f32 %v5127_v34, %v2447_v22 }
 0x448   :  { %v3081_v11 = vpack.c.bf16 %v2519_v63, %v2519_v63  ;;  %v2448_v40 = vmul.f32 %v5134_v45, %v2379_v15 }
 0x449   :  { %v3078_v4 = vpack.c.bf16 %v2516_v60, %v2516_v60 }
 0x44a   :  { %v3533_v36 = vpop.eup %3532  ;;  %2840 = vst.msk [vmem:[%s5238_s5 + $0xec] sm:$0xf] %vm2780_vm4, %v3081_v11  ;;  %v2517_v43 = vadd.f32 %v5127_v34, %v2448_v40 }
 0x44b   :  { %v3535_v52 = vpop.eup %3534  ;;  %2837 = vst.msk [vmem:[%s5238_s5 + $0xe0] sm:$0xf] %vm2780_vm4, %v3078_v4  ;;  %v2382_v54 = vmul.f32 %v3533_v36, %v5334_v13 }
 0x44c   :  { %v3079_v56 = vpack.c.bf16 %v2517_v43, %v2517_v43  ;;  %v2383_v59 = vmul.f32 %v3535_v52, %v5335_v7 }
 0x44d   :  { %v2451_v5 = vmul.f32 %v5134_v45, %v2382_v54 }
 0x44e   :  { %v3537_v8 = vpop.eup %3536  ;;  %2838 = vst.msk [vmem:[%s5238_s5 + $0xe4] sm:$0xf] %vm2780_vm4, %v3079_v56  ;;  %v2452_v3 = vmul.f32 %v5134_v45, %v2383_v59 }
 0x44f   :  { %v3539_v23 = vpop.eup %3538  ;;  %v2520_v29 = vadd.f32 %v5127_v34, %v2451_v5  ;;  %v2384_v28 = vmul.f32 %v3537_v8, %v5336_v17 }
 0x450   :  { %v2521_v16 = vadd.f32 %v5127_v34, %v2452_v3  ;;  %v2385_v48 = vmul.f32 %v3539_v23, %v5337_v27 }
 0x451   :  { %v3082_v51 = vpack.c.bf16 %v2520_v29, %v2520_v29  ;;  %v2453_v47 = vmul.f32 %v5134_v45, %v2384_v28 }
 0x452   :  { %v3083_v50 = vpack.c.bf16 %v2521_v16, %v2521_v16  ;;  %v2454_v21 = vmul.f32 %v5134_v45, %v2385_v48 }
 0x453   :  { %2841 = vst.msk [vmem:[%s5238_s5 + $0xf0] sm:$0xf] %vm2780_vm4, %v3082_v51  ;;  %v2522_v58 = vadd.f32 %v5127_v34, %v2453_v47 }
 0x454   :  { %2842 = vst.msk [vmem:[%s5238_s5 + $0xf4] sm:$0xf] %vm2780_vm4, %v3083_v50  ;;  %v2523_v44 = vadd.f32 %v5127_v34, %v2454_v21 }
 0x455   :  { %v3084_v37 = vpack.c.bf16 %v2522_v58, %v2522_v58 }
 0x456   :  { %v3085_v19 = vpack.c.bf16 %v2523_v44, %v2523_v44 }
 0x457   :  { %2843 = vst.msk [vmem:[%s5238_s5 + $0xf8] sm:$0xf] %vm2780_vm4, %v3084_v37 }
 0x458   :  { %2844 = vst.msk [vmem:[%s5238_s5 + $0xfc] sm:$0xf] %vm2780_vm4, %v3085_v19 }

</bundles_post_ra>
